<compile_context>
chip_gen: v7x
topology: tpu7x:2x2x1
jax: 0.10.0
libtpu: 0.0.40
codegen_flags: <defaults>
</compile_context>

<pallas_src>
import numpy as np
import jax
import jax.numpy as jnp
from jax import lax
from jax.experimental import pallas as pl
from jax.experimental.pallas import tpu as pltpu


def _params_1d():
    return pltpu.CompilerParams(
        dimension_semantics=("parallel",),
        # Leave headroom under v7x's 64 MiB physical VMEM (harmless on v5e/v6e: 128 MiB).
        vmem_limit_bytes=40 * 1024 * 1024,
    )


# --------------------------------------------------------------------------
# Block-size helpers
# --------------------------------------------------------------------------
def _row_block(rows, row_bytes, budget_bytes=8 << 20, max_rows=2048):
    """Largest divisor of `rows` whose double-buffered block fits `budget_bytes`."""
    limit = max(1, min(max_rows, budget_bytes // max(2 * row_bytes, 1)))
    if rows <= limit:
        return rows
    best = 1
    d = 1
    while d * d <= rows:
        if rows % d == 0:
            for cand in (d, rows // d):
                if cand <= limit:
                    best = max(best, cand)
        d += 1
    # TODO(synk): pathological row counts (large primes) degrade to tiny blocks; a cdiv
    # grid with a masked tail store would be the fully general fix.
    return best


def _pick_nb(N, H, W, Cin, Cout, target_m=256, budget_bytes=12 << 20):
    """Images per conv grid step: raise MXU M (= nb*H*W) while bounding per-step VMEM."""
    best = 1
    for nb in range(1, N + 1):
        if N % nb:
            continue
        m = nb * H * W
        step = (2 * (m * Cin * 2)                      # input block (bf16), double-buffered
                + 2 * (m * Cout * 2)                   # y output block (bf16), double-buffered
                + m * 9 * Cin * 2                      # in-register im2col staging (bf16)
                + m * Cout * 4                         # f32 accumulator
                + nb * (H + 2) * (W + 2) * Cin * 2)    # padded tile (bf16)
        if step > budget_bytes:
            break
        best = nb
        if m >= target_m:
            break
    return best


# --------------------------------------------------------------------------
# MaxPool 2x2
# --------------------------------------------------------------------------
def _make_maxpool_kernel(C):
    def kernel(x_ref, o_ref):
        v = x_ref[...]                                    # (tr, 2, W2, 2C) f32
        vm = jnp.maximum(v[:, 0], v[:, 1])                # vertical max -> (tr, W2, 2C)
        # horizontal max: lane-slice compare (even-w pixel vs odd-w pixel)
        o_ref[...] = jnp.maximum(vm[..., :C], vm[..., C:]).astype(o_ref.dtype)
    return kernel


def maxpool2_nhwc(x):
    """2x2 / stride-2 max pool.  NHWC f32 in -> NHWC bf16 out."""
    N, H, W, C = x.shape
    assert H % 2 == 0 and W % 2 == 0
    H2, W2 = H // 2, W // 2
    rows = N * H2
    xr = x.reshape(rows, 2, W2, 2 * C)                    # free, lane-dense view
    row_bytes = 2 * W2 * 2 * C * 4 + W2 * C * 2
    tr = _row_block(rows, row_bytes)
    out = pl.pallas_call(
        _make_maxpool_kernel(C),
        out_shape=jax.ShapeDtypeStruct((rows, W2, C), jnp.bfloat16),
        grid=(rows // tr,),
        in_specs=[pl.BlockSpec((tr, 2, W2, 2 * C), lambda i: (i, 0, 0, 0))],
        out_specs=pl.BlockSpec((tr, W2, C), lambda i: (i, 0, 0)),
        compiler_params=_params_1d(),
    )(xr)
    return out.reshape(N, H2, W2, C)


# --------------------------------------------------------------------------
# Direct 3x3 conv (+ optional fused BN-ReLU prologue) + fused BN batch stats
# --------------------------------------------------------------------------
def _make_conv3x3_kernel(nb, H, W, Cin, Cout, k_concat, fuse_bn_prologue):
    M = nb * H * W

    def kernel(*refs):
        if fuse_bn_prologue:
            x_ref, scale_ref, shift_ref, w_ref, y_ref, s_ref, ss_ref = refs
            # Fused BN-apply + ReLU of the previous conv (f32 math, bf16 result, cast once).
            a = jnp.maximum(
                x_ref[...].astype(jnp.float32) * scale_ref[...] + shift_ref[...], 0.0)
            x = a.astype(jnp.bfloat16).reshape(nb, H, W, Cin)
        else:
            x_ref, w_ref, y_ref, s_ref, ss_ref = refs
            x = x_ref[...]                                             # bf16 already

        # 'same' padding built in-register (no HBM pad pass).
        zc = jnp.zeros((nb, H, 1, Cin), jnp.bfloat16)
        xw = jnp.concatenate([zc, x, zc], axis=2)                      # pad W
        zr = jnp.zeros((nb, 1, W + 2, Cin), jnp.bfloat16)
        xw = jnp.concatenate([zr, xw, zr], axis=1)                     # pad H -> (nb,H+2,W+2,Cin)

        if k_concat:
            # im2col in registers: one MXU matmul with K = 9*Cin, M = nb*H*W.
            patches = jnp.concatenate(
                [xw[:, dy:dy + H, dx:dx + W, :].reshape(M, Cin)
                 for dy in range(3) for dx in range(3)],
                axis=-1)                                               # (M, 9*Cin) bf16
            acc = jnp.dot(patches, w_ref[...], preferred_element_type=jnp.float32)
        else:
            # Per-tap accumulation (K = Cin per dot) for large Cin.
            acc = jnp.zeros((M, Cout), jnp.float32)
            t = 0
            for dy in range(3):
                for dx in range(3):
                    sl = xw[:, dy:dy + H, dx:dx + W, :].reshape(M, Cin)
                    acc = acc + jnp.dot(sl, w_ref[t * Cin:(t + 1) * Cin, :],
                                        preferred_element_type=jnp.float32)
                    t += 1

        y_ref[...] = acc.astype(y_ref.dtype)                           # bf16 to HBM
        # Per-step BN partial sums from the f32 accumulator (activation never re-read).
        s_ref[...] = jnp.sum(acc, axis=0, keepdims=True).reshape(1, 1, Cout)
        ss_ref[...] = jnp.sum(acc * acc, axis=0, keepdims=True).reshape(1, 1, Cout)

    return kernel


def conv3x3_bn_stats(x, w_flat, spatial, prologue=None):
    """Direct 3x3 'same' conv (no bias) + fused per-step BN batch-stat partial sums.

    x        : (N, H, W, Cin) bf16 activation                  if prologue is None
               (N*H*W, Cin)  bf16 raw previous conv output     otherwise
    w_flat   : (9*Cin, Cout) bf16 weights, K order = (dy*3+dx)*Cin + cin
    prologue : optional (scale, shift) f32 (Cin,): input mapped through relu(x*scale+shift)
               inside the kernel (fused BN-apply+ReLU of the previous conv).
    Returns y (N*H*W, Cout) bf16 and s, ss (G, 1, Cout) f32 partial sums.
    """
    N, H, W = spatial
    Cin = w_flat.shape[0] // 9
    Cout = w_flat.shape[1]
    nb = _pick_nb(N, H, W, Cin, Cout)
    M = nb * H * W
    G = N // nb
    k_concat = Cin <= 256

    kernel = _make_conv3x3_kernel(nb, H, W, Cin, Cout, k_concat,
                                  fuse_bn_prologue=prologue is not None)

    if prologue is None:
        assert x.shape == (N, H, W, Cin)
        in_specs = [
            pl.BlockSpec((nb, H, W, Cin), lambda i: (i, 0, 0, 0)),
            pl.BlockSpec((9 * Cin, Cout), lambda i: (0, 0)),           # resident weights
        ]
        args = (x, w_flat)
    else:
        scale, shift = prologue
        assert x.shape == (N * H * W, Cin)
        in_specs = [
            pl.BlockSpec((M, Cin), lambda i: (i, 0)),
            pl.BlockSpec((1, Cin), lambda i: (0, 0)),                  # resident scale
            pl.BlockSpec((1, Cin), lambda i: (0, 0)),                  # resident shift
            pl.BlockSpec((9 * Cin, Cout), lambda i: (0, 0)),           # resident weights
        ]
        args = (x, scale.reshape(1, Cin).astype(jnp.float32),
                shift.reshape(1, Cin).astype(jnp.float32), w_flat)

    y, s, ss = pl.pallas_call(
        kernel,
        out_shape=(
            jax.ShapeDtypeStruct((N * H * W, Cout), jnp.bfloat16),
            jax.ShapeDtypeStruct((G, 1, Cout), jnp.float32),
            jax.ShapeDtypeStruct((G, 1, Cout), jnp.float32),
        ),
        grid=(G,),
        in_specs=in_specs,
        out_specs=(
            pl.BlockSpec((M, Cout), lambda i: (i, 0)),
            pl.BlockSpec((1, 1, Cout), lambda i: (i, 0, 0)),
            pl.BlockSpec((1, 1, Cout), lambda i: (i, 0, 0)),
        ),
        compiler_params=_params_1d(),
    )(*args)
    return y, s, ss


# --------------------------------------------------------------------------
# Final BN-apply + ReLU (only needed for the module's last activation)
# --------------------------------------------------------------------------
def _bn_relu_kernel(y_ref, scale_ref, shift_ref, o_ref):
    o_ref[...] = jnp.maximum(
        y_ref[...].astype(jnp.float32) * scale_ref[...] + shift_ref[...], 0.0)


def bn_relu_apply(y, scale, shift):
    """Fused BN-apply + ReLU.  y: (M, C) bf16 -> (M, C) f32."""
    M, C = y.shape
    row_bytes = C * 2 + C * 4
    br = _row_block(M, row_bytes)
    return pl.pallas_call(
        _bn_relu_kernel,
        out_shape=jax.ShapeDtypeStruct((M, C), jnp.float32),
        grid=(M // br,),
        in_specs=[
            pl.BlockSpec((br, C), lambda i: (i, 0)),
            pl.BlockSpec((1, C), lambda i: (0, 0)),
            pl.BlockSpec((1, C), lambda i: (0, 0)),
        ],
        out_specs=pl.BlockSpec((br, C), lambda i: (i, 0)),
        compiler_params=_params_1d(),
    )(y, scale.reshape(1, C), shift.reshape(1, C))


# --------------------------------------------------------------------------
# Module glue
# --------------------------------------------------------------------------
def _bn_scale_shift(s, ss, count, gamma, beta, eps=1e-5):
    # Tiny (C,)-sized finalize of the per-step partial sums; plain-JAX glue.
    C = s.shape[-1]
    s = jnp.sum(s.reshape(-1, C), axis=0)
    ss = jnp.sum(ss.reshape(-1, C), axis=0)
    mean = s / count
    var = jnp.maximum(ss / count - mean * mean, 0.0)      # biased var (train-mode BN)
    scale = gamma * lax.rsqrt(var + eps)
    shift = beta - mean * scale
    return scale, shift


def double_conv_apply(x, p):
    """(conv3x3 -> BN -> ReLU) * 2 on pooled NHWC bf16 input (training-mode BN)."""
    N, H, W, _ = x.shape
    count = N * H * W

    # conv1: emits raw y1 (bf16) + BN partial sums; its BN-ReLU output never hits HBM.
    y1, s1, ss1 = conv3x3_bn_stats(x, p["w1"], (N, H, W))
    sc1, sh1 = _bn_scale_shift(s1, ss1, count, p["g1"], p["b1"])

    # conv2: conv1's BN-apply + ReLU fused into its prologue.
    y2, s2, ss2 = conv3x3_bn_stats(y1, p["w2"], (N, H, W), prologue=(sc1, sh1))
    sc2, sh2 = _bn_scale_shift(s2, ss2, count, p["g2"], p["b2"])

    C2 = p["w2"].shape[1]
    return bn_relu_apply(y2, sc2, sh2).reshape(N, H, W, C2)


def down_forward(params, x_nchw):
    """`down(in_ch, out_ch)` forward: MaxPool2d(2) then double_conv.  x: NCHW f32."""
    # TODO(synk): the NCHW<->NHWC transposes are kept only to match the PyTorch interface;
    # drop them (keep NHWC end-to-end) when embedding this block in a larger NHWC network.
    x = jnp.transpose(x_nchw.astype(jnp.float32), (0, 2, 3, 1))
    x = maxpool2_nhwc(x)                                   # bf16 pooled activation
    x = double_conv_apply(x, params)
    return jnp.transpose(x, (0, 3, 1, 2))


# --------------------------------------------------------------------------
# Parameters + plain-JAX reference
# --------------------------------------------------------------------------
def init_down_params(key, in_ch, out_ch):
    # Conv weights stored flattened as (9*Cin, Cout) bf16 (MXU operand dtype), K order
    # (dy*3+dx)*Cin + cin.  Conv biases omitted: they cancel exactly inside the
    # training-mode BatchNorm that follows each conv (forward output unchanged).
    k1, k2 = jax.random.split(key)

    def conv_w(k, cin, cout):
        w = jax.random.normal(k, (3, 3, cin, cout), jnp.float32) / np.sqrt(cin * 9)
        return w.reshape(9 * cin, cout).astype(jnp.bfloat16)

    return {
        "w1": conv_w(k1, in_ch, out_ch),
        "w2": conv_w(k2, out_ch, out_ch),
        "g1": jnp.ones((out_ch,), jnp.float32), "b1": jnp.zeros((out_ch,), jnp.float32),
        "g2": jnp.ones((out_ch,), jnp.float32), "b2": jnp.zeros((out_ch,), jnp.float32),
    }


def reference_down(params, x_nchw):
    """Plain-JAX reference (f32 math on the same bf16 weights / bf16 pooled input)."""
    x = jnp.transpose(x_nchw.astype(jnp.float32), (0, 2, 3, 1))
    N, H, W, C = x.shape
    xp = jnp.max(x.reshape(N, H // 2, 2, W // 2, 2, C), axis=(2, 4))
    xp = xp.astype(jnp.bfloat16).astype(jnp.float32)

    def conv_bn_relu(a, w_flat, gamma, beta):
        cin, cout = w_flat.shape[0] // 9, w_flat.shape[1]
        w = w_flat.astype(jnp.float32).reshape(3, 3, cin, cout)
        y = lax.conv_general_dilated(a, w, (1, 1), "SAME",
                                     dimension_numbers=("NHWC", "HWIO", "NHWC"),
                                     precision=lax.Precision.HIGHEST)
        mean = jnp.mean(y, axis=(0, 1, 2))
        var = jnp.var(y, axis=(0, 1, 2))
        return jnp.maximum((y - mean) * lax.rsqrt(var + 1e-5) * gamma + beta, 0.0)

    a1 = conv_bn_relu(xp, params["w1"], params["g1"], params["b1"])
    a2 = conv_bn_relu(a1, params["w2"], params["g2"], params["b2"])
    return jnp.transpose(a2, (0, 3, 1, 2))


if __name__ == "__main__":
    key = jax.random.PRNGKey(0)
    pkey, xkey = jax.random.split(key)
    N, IN_CH, OUT_CH, H, W = 4, 64, 128, 16, 16            # e.g. UNet down1: 64 -> 128
    params = init_down_params(pkey, IN_CH, OUT_CH)
    x = jax.random.normal(xkey, (N, IN_CH, H, W), jnp.float32)

    out = jax.block_until_ready(jax.jit(down_forward)(params, x))

    assert out.shape == (N, OUT_CH, H // 2, W // 2)
    assert bool(jnp.all(jnp.isfinite(out)))
    assert bool(jnp.all(out >= 0.0))                       # ReLU output

    # Loose cross-check vs a plain-JAX reference (bf16 MXU operands and bf16 HBM
    # intermediates => ~1e-2-level relative differences expected).
    ref = jax.block_until_ready(jax.jit(reference_down)(params, x))
    rel = jnp.linalg.norm((out - ref).astype(jnp.float32)) / (jnp.linalg.norm(ref) + 1e-12)
    assert float(rel) < 5e-2, f"relative L2 error vs reference too high: {float(rel)}"
    print("KERNEL_OK")
</pallas_src>

<mosaic_0001>
module attributes {stable_mosaic.version = 11 : i64} {
  func.func @kernel(%arg0: i32, %arg1: memref<32x2x8x128xf32, #tpu.memory_space<vmem>>, %arg2: memref<32x8x64xbf16, #tpu.memory_space<vmem>>) attributes {dimension_semantics = [#tpu.dimension_semantics<parallel>], iteration_bounds = array<i64: 1>, scalar_prefetch = 0 : i64, scratch_operands = 0 : i64, tpu.core_type = #tpu.core_type<tc>, window_params = [{transform_indices = @transform_0, window_bounds = array<i64: 32, 2, 8, 128>}, {transform_indices = @transform_1, window_bounds = array<i64: 32, 8, 64>}]} {
    %c0 = arith.constant 0 : index
    %c0_0 = arith.constant 0 : index
    %c0_1 = arith.constant 0 : index
    %c0_2 = arith.constant 0 : index
    %0 = vector.load %arg1[%c0, %c0_0, %c0_1, %c0_2] : memref<32x2x8x128xf32, #tpu.memory_space<vmem>>, vector<32x2x8x128xf32>
    %1 = vector.extract_strided_slice %0 {offsets = [0, 0, 0, 0], sizes = [32, 1, 8, 128], strides = [1, 1, 1, 1]} : vector<32x2x8x128xf32> to vector<32x1x8x128xf32>
    %2 = vector.shape_cast %1 : vector<32x1x8x128xf32> to vector<32x8x128xf32>
    %3 = vector.extract_strided_slice %0 {offsets = [0, 1, 0, 0], sizes = [32, 1, 8, 128], strides = [1, 1, 1, 1]} : vector<32x2x8x128xf32> to vector<32x1x8x128xf32>
    %4 = vector.shape_cast %3 : vector<32x1x8x128xf32> to vector<32x8x128xf32>
    %5 = arith.maximumf %2, %4 : vector<32x8x128xf32>
    %6 = vector.extract_strided_slice %5 {offsets = [0, 0, 0], sizes = [32, 8, 64], strides = [1, 1, 1]} : vector<32x8x128xf32> to vector<32x8x64xf32>
    %7 = vector.extract_strided_slice %5 {offsets = [0, 0, 64], sizes = [32, 8, 64], strides = [1, 1, 1]} : vector<32x8x128xf32> to vector<32x8x64xf32>
    %8 = arith.maximumf %6, %7 : vector<32x8x64xf32>
    %9 = arith.truncf %8 : vector<32x8x64xf32> to vector<32x8x64xbf16>
    %c0_3 = arith.constant 0 : index
    %c0_4 = arith.constant 0 : index
    %c0_5 = arith.constant 0 : index
    %10 = vector.load %arg2[%c0_3, %c0_4, %c0_5] : memref<32x8x64xbf16, #tpu.memory_space<vmem>>, vector<32x8x64xbf16>
    tpu.vector_store %arg2[%c0_3, %c0_4, %c0_5], %9 {strides = array<i32>} : memref<32x8x64xbf16, #tpu.memory_space<vmem>>, vector<32x8x64xbf16>,
    return
  }
  func.func @transform_0(%arg0: i32) -> (i32, i32, i32, i32) {
    %c0_i32 = arith.constant 0 : i32
    %c0_i32_0 = arith.constant 0 : i32
    %c0_i32_1 = arith.constant 0 : i32
    %c0_i32_2 = arith.constant 0 : i32
    return %arg0, %c0_i32, %c0_i32_0, %c0_i32_1 : i32, i32, i32, i32
  }
  func.func @transform_1(%arg0: i32) -> (i32, i32, i32) {
    %c0_i32 = arith.constant 0 : i32
    %c0_i32_0 = arith.constant 0 : i32
    %c0_i32_1 = arith.constant 0 : i32
    return %arg0, %c0_i32, %c0_i32_0 : i32, i32, i32
  }
}

module attributes {stable_mosaic.version = 11 : i64} {
  func.func @kernel(%arg0: i32, %arg1: memref<4x8x8x64xbf16, #tpu.memory_space<vmem>>, %arg2: memref<576x128xbf16, #tpu.memory_space<vmem>>, %arg3: memref<256x128xbf16, #tpu.memory_space<vmem>>, %arg4: memref<1x1x128xf32, #tpu.memory_space<vmem>>, %arg5: memref<1x1x128xf32, #tpu.memory_space<vmem>>) attributes {dimension_semantics = [#tpu.dimension_semantics<parallel>], iteration_bounds = array<i64: 1>, scalar_prefetch = 0 : i64, scratch_operands = 0 : i64, tpu.core_type = #tpu.core_type<tc>, window_params = [{transform_indices = @transform_0, window_bounds = array<i64: 4, 8, 8, 64>}, {pipeline_mode = #tpu.pipeline_mode<synchronous>, transform_indices = @transform_1, window_bounds = array<i64: 576, 128>}, {transform_indices = @transform_2, window_bounds = array<i64: 256, 128>}, {transform_indices = @transform_3, window_bounds = array<i64: 1, 1, 128>}, {transform_indices = @transform_4, window_bounds = array<i64: 1, 1, 128>}]} {
    %c0 = arith.constant 0 : index
    %c0_0 = arith.constant 0 : index
    %c0_1 = arith.constant 0 : index
    %c0_2 = arith.constant 0 : index
    %0 = vector.load %arg1[%c0, %c0_0, %c0_1, %c0_2] : memref<4x8x8x64xbf16, #tpu.memory_space<vmem>>, vector<4x8x8x64xbf16>
    %cst = arith.constant 0.000000e+00 : bf16
    %1 = vector.broadcast %cst : bf16 to vector<4x8x1x64xbf16>
    %2 = tpu.concatenate %1, %0, %1 in 2 : vector<4x8x1x64xbf16>, vector<4x8x8x64xbf16>, vector<4x8x1x64xbf16> -> vector<4x8x10x64xbf16>
    %cst_3 = arith.constant 0.000000e+00 : bf16
    %3 = vector.broadcast %cst_3 : bf16 to vector<4x1x10x64xbf16>
    %4 = tpu.concatenate %3, %2, %3 in 1 : vector<4x1x10x64xbf16>, vector<4x8x10x64xbf16>, vector<4x1x10x64xbf16> -> vector<4x10x10x64xbf16>
    %5 = vector.extract_strided_slice %4 {offsets = [0, 0, 0, 0], sizes = [4, 8, 8, 64], strides = [1, 1, 1, 1]} : vector<4x10x10x64xbf16> to vector<4x8x8x64xbf16>
    %6 = vector.shape_cast %5 : vector<4x8x8x64xbf16> to vector<256x64xbf16>
    %7 = vector.extract_strided_slice %4 {offsets = [0, 0, 1, 0], sizes = [4, 8, 8, 64], strides = [1, 1, 1, 1]} : vector<4x10x10x64xbf16> to vector<4x8x8x64xbf16>
    %8 = vector.shape_cast %7 : vector<4x8x8x64xbf16> to vector<256x64xbf16>
    %9 = vector.extract_strided_slice %4 {offsets = [0, 0, 2, 0], sizes = [4, 8, 8, 64], strides = [1, 1, 1, 1]} : vector<4x10x10x64xbf16> to vector<4x8x8x64xbf16>
    %10 = vector.shape_cast %9 : vector<4x8x8x64xbf16> to vector<256x64xbf16>
    %11 = vector.extract_strided_slice %4 {offsets = [0, 1, 0, 0], sizes = [4, 8, 8, 64], strides = [1, 1, 1, 1]} : vector<4x10x10x64xbf16> to vector<4x8x8x64xbf16>
    %12 = vector.shape_cast %11 : vector<4x8x8x64xbf16> to vector<256x64xbf16>
    %13 = vector.extract_strided_slice %4 {offsets = [0, 1, 1, 0], sizes = [4, 8, 8, 64], strides = [1, 1, 1, 1]} : vector<4x10x10x64xbf16> to vector<4x8x8x64xbf16>
    %14 = vector.shape_cast %13 : vector<4x8x8x64xbf16> to vector<256x64xbf16>
    %15 = vector.extract_strided_slice %4 {offsets = [0, 1, 2, 0], sizes = [4, 8, 8, 64], strides = [1, 1, 1, 1]} : vector<4x10x10x64xbf16> to vector<4x8x8x64xbf16>
    %16 = vector.shape_cast %15 : vector<4x8x8x64xbf16> to vector<256x64xbf16>
    %17 = vector.extract_strided_slice %4 {offsets = [0, 2, 0, 0], sizes = [4, 8, 8, 64], strides = [1, 1, 1, 1]} : vector<4x10x10x64xbf16> to vector<4x8x8x64xbf16>
    %18 = vector.shape_cast %17 : vector<4x8x8x64xbf16> to vector<256x64xbf16>
    %19 = vector.extract_strided_slice %4 {offsets = [0, 2, 1, 0], sizes = [4, 8, 8, 64], strides = [1, 1, 1, 1]} : vector<4x10x10x64xbf16> to vector<4x8x8x64xbf16>
    %20 = vector.shape_cast %19 : vector<4x8x8x64xbf16> to vector<256x64xbf16>
    %21 = vector.extract_strided_slice %4 {offsets = [0, 2, 2, 0], sizes = [4, 8, 8, 64], strides = [1, 1, 1, 1]} : vector<4x10x10x64xbf16> to vector<4x8x8x64xbf16>
    %22 = vector.shape_cast %21 : vector<4x8x8x64xbf16> to vector<256x64xbf16>
    %23 = tpu.concatenate %6, %8, %10, %12, %14, %16, %18, %20, %22 in 1 : vector<256x64xbf16>, vector<256x64xbf16>, vector<256x64xbf16>, vector<256x64xbf16>, vector<256x64xbf16>, vector<256x64xbf16>, vector<256x64xbf16>, vector<256x64xbf16>, vector<256x64xbf16> -> vector<256x576xbf16>
    %c0_4 = arith.constant 0 : index
    %c0_5 = arith.constant 0 : index
    %24 = vector.load %arg2[%c0_4, %c0_5] : memref<576x128xbf16, #tpu.memory_space<vmem>>, vector<576x128xbf16>
    %cst_6 = arith.constant dense<0.000000e+00> : vector<256x128xf32>
    %25 = tpu.matmul %23, %24, %cst_6 {dimension_numbers = #tpu.dot_dimension_numbers<[1], [0], [0], [1], [0, 0, 1, 1], [], []>} : vector<256x576xbf16>, vector<576x128xbf16>, vector<256x128xf32> -> vector<256x128xf32>
    %26 = arith.truncf %25 : vector<256x128xf32> to vector<256x128xbf16>
    %c0_7 = arith.constant 0 : index
    %c0_8 = arith.constant 0 : index
    %27 = vector.load %arg3[%c0_7, %c0_8] : memref<256x128xbf16, #tpu.memory_space<vmem>>, vector<256x128xbf16>
    tpu.vector_store %arg3[%c0_7, %c0_8], %26 {strides = array<i32>} : memref<256x128xbf16, #tpu.memory_space<vmem>>, vector<256x128xbf16>,
    %cst_9 = arith.constant dense<0.000000e+00> : vector<128xf32>
    %28 = vector.multi_reduction <add>, %25, %cst_9 [0] : vector<256x128xf32> to vector<128xf32>
    %29 = vector.shape_cast %28 : vector<128xf32> to vector<1x128xf32>
    %30 = vector.shape_cast %29 : vector<1x128xf32> to vector<1x1x128xf32>
    %c0_10 = arith.constant 0 : index
    %c0_11 = arith.constant 0 : index
    %c0_12 = arith.constant 0 : index
    %31 = vector.load %arg4[%c0_10, %c0_11, %c0_12] : memref<1x1x128xf32, #tpu.memory_space<vmem>>, vector<1x1x128xf32>
    tpu.vector_store %arg4[%c0_10, %c0_11, %c0_12], %30 {strides = array<i32>} : memref<1x1x128xf32, #tpu.memory_space<vmem>>, vector<1x1x128xf32>,
    %32 = arith.mulf %25, %25 : vector<256x128xf32>
    %cst_13 = arith.constant dense<0.000000e+00> : vector<128xf32>
    %33 = vector.multi_reduction <add>, %32, %cst_13 [0] : vector<256x128xf32> to vector<128xf32>
    %34 = vector.shape_cast %33 : vector<128xf32> to vector<1x128xf32>
    %35 = vector.shape_cast %34 : vector<1x128xf32> to vector<1x1x128xf32>
    %c0_14 = arith.constant 0 : index
    %c0_15 = arith.constant 0 : index
    %c0_16 = arith.constant 0 : index
    %36 = vector.load %arg5[%c0_14, %c0_15, %c0_16] : memref<1x1x128xf32, #tpu.memory_space<vmem>>, vector<1x1x128xf32>
    tpu.vector_store %arg5[%c0_14, %c0_15, %c0_16], %35 {strides = array<i32>} : memref<1x1x128xf32, #tpu.memory_space<vmem>>, vector<1x1x128xf32>,
    return
  }
  func.func @transform_0(%arg0: i32) -> (i32, i32, i32, i32) {
    %c0_i32 = arith.constant 0 : i32
    %c0_i32_0 = arith.constant 0 : i32
    %c0_i32_1 = arith.constant 0 : i32
    %c0_i32_2 = arith.constant 0 : i32
    return %arg0, %c0_i32, %c0_i32_0, %c0_i32_1 : i32, i32, i32, i32
  }
  func.func @transform_1(%arg0: i32) -> (i32, i32) {
    %c0_i32 = arith.constant 0 : i32
    %c0_i32_0 = arith.constant 0 : i32
    %c0_i32_1 = arith.constant 0 : i32
    return %c0_i32, %c0_i32_0 : i32, i32
  }
  func.func @transform_2(%arg0: i32) -> (i32, i32) {
    %c0_i32 = arith.constant 0 : i32
    %c0_i32_0 = arith.constant 0 : i32
    return %arg0, %c0_i32 : i32, i32
  }
  func.func @transform_3(%arg0: i32) -> (i32, i32, i32) {
    %c0_i32 = arith.constant 0 : i32
    %c0_i32_0 = arith.constant 0 : i32
    %c0_i32_1 = arith.constant 0 : i32
    return %arg0, %c0_i32, %c0_i32_0 : i32, i32, i32
  }
  func.func @transform_4(%arg0: i32) -> (i32, i32, i32) {
    %c0_i32 = arith.constant 0 : i32
    %c0_i32_0 = arith.constant 0 : i32
    %c0_i32_1 = arith.constant 0 : i32
    return %arg0, %c0_i32, %c0_i32_0 : i32, i32, i32
  }
}

module attributes {stable_mosaic.version = 11 : i64} {
  func.func @_bn_relu_kernel(%arg0: i32, %arg1: memref<256x128xbf16, #tpu.memory_space<vmem>>, %arg2: memref<1x128xf32, #tpu.memory_space<vmem>>, %arg3: memref<1x128xf32, #tpu.memory_space<vmem>>, %arg4: memref<256x128xf32, #tpu.memory_space<vmem>>) attributes {dimension_semantics = [#tpu.dimension_semantics<parallel>], iteration_bounds = array<i64: 1>, scalar_prefetch = 0 : i64, scratch_operands = 0 : i64, tpu.core_type = #tpu.core_type<tc>, window_params = [{transform_indices = @transform_0, window_bounds = array<i64: 256, 128>}, {pipeline_mode = #tpu.pipeline_mode<synchronous>, transform_indices = @transform_1, window_bounds = array<i64: 1, 128>}, {pipeline_mode = #tpu.pipeline_mode<synchronous>, transform_indices = @transform_2, window_bounds = array<i64: 1, 128>}, {transform_indices = @transform_3, window_bounds = array<i64: 256, 128>}]} {
    %c0 = arith.constant 0 : index
    %c0_0 = arith.constant 0 : index
    %0 = vector.load %arg1[%c0, %c0_0] : memref<256x128xbf16, #tpu.memory_space<vmem>>, vector<256x128xbf16>
    %1 = arith.extf %0 : vector<256x128xbf16> to vector<256x128xf32>
    %c0_1 = arith.constant 0 : index
    %c0_2 = arith.constant 0 : index
    %2 = vector.load %arg2[%c0_1, %c0_2] : memref<1x128xf32, #tpu.memory_space<vmem>>, vector<1x128xf32>
    %3 = vector.broadcast %2 : vector<1x128xf32> to vector<256x128xf32>
    %4 = arith.mulf %1, %3 : vector<256x128xf32>
    %c0_3 = arith.constant 0 : index
    %c0_4 = arith.constant 0 : index
    %5 = vector.load %arg3[%c0_3, %c0_4] : memref<1x128xf32, #tpu.memory_space<vmem>>, vector<1x128xf32>
    %6 = vector.broadcast %5 : vector<1x128xf32> to vector<256x128xf32>
    %7 = arith.addf %4, %6 : vector<256x128xf32>
    %cst = arith.constant 0.000000e+00 : f32
    %8 = vector.broadcast %cst : f32 to vector<256x128xf32>
    %9 = arith.maximumf %7, %8 : vector<256x128xf32>
    %c0_5 = arith.constant 0 : index
    %c0_6 = arith.constant 0 : index
    %10 = vector.load %arg4[%c0_5, %c0_6] : memref<256x128xf32, #tpu.memory_space<vmem>>, vector<256x128xf32>
    tpu.vector_store %arg4[%c0_5, %c0_6], %9 {strides = array<i32>} : memref<256x128xf32, #tpu.memory_space<vmem>>, vector<256x128xf32>,
    return
  }
  func.func @transform_0(%arg0: i32) -> (i32, i32) {
    %c0_i32 = arith.constant 0 : i32
    %c0_i32_0 = arith.constant 0 : i32
    return %arg0, %c0_i32 : i32, i32
  }
  func.func @transform_1(%arg0: i32) -> (i32, i32) {
    %c0_i32 = arith.constant 0 : i32
    %c0_i32_0 = arith.constant 0 : i32
    %c0_i32_1 = arith.constant 0 : i32
    return %c0_i32, %c0_i32_0 : i32, i32
  }
  func.func @transform_2(%arg0: i32) -> (i32, i32) {
    %c0_i32 = arith.constant 0 : i32
    %c0_i32_0 = arith.constant 0 : i32
    %c0_i32_1 = arith.constant 0 : i32
    return %c0_i32, %c0_i32_0 : i32, i32
  }
  func.func @transform_3(%arg0: i32) -> (i32, i32) {
    %c0_i32 = arith.constant 0 : i32
    %c0_i32_0 = arith.constant 0 : i32
    return %arg0, %c0_i32 : i32, i32
  }
}

module attributes {stable_mosaic.version = 11 : i64} {
  func.func @kernel(%arg0: i32, %arg1: memref<256x128xbf16, #tpu.memory_space<vmem>>, %arg2: memref<1x128xf32, #tpu.memory_space<vmem>>, %arg3: memref<1x128xf32, #tpu.memory_space<vmem>>, %arg4: memref<1152x128xbf16, #tpu.memory_space<vmem>>, %arg5: memref<256x128xbf16, #tpu.memory_space<vmem>>, %arg6: memref<1x1x128xf32, #tpu.memory_space<vmem>>, %arg7: memref<1x1x128xf32, #tpu.memory_space<vmem>>) attributes {dimension_semantics = [#tpu.dimension_semantics<parallel>], iteration_bounds = array<i64: 1>, scalar_prefetch = 0 : i64, scratch_operands = 0 : i64, tpu.core_type = #tpu.core_type<tc>, window_params = [{transform_indices = @transform_0, window_bounds = array<i64: 256, 128>}, {pipeline_mode = #tpu.pipeline_mode<synchronous>, transform_indices = @transform_1, window_bounds = array<i64: 1, 128>}, {pipeline_mode = #tpu.pipeline_mode<synchronous>, transform_indices = @transform_2, window_bounds = array<i64: 1, 128>}, {pipeline_mode = #tpu.pipeline_mode<synchronous>, transform_indices = @transform_3, window_bounds = array<i64: 1152, 128>}, {transform_indices = @transform_4, window_bounds = array<i64: 256, 128>}, {transform_indices = @transform_5, window_bounds = array<i64: 1, 1, 128>}, {transform_indices = @transform_6, window_bounds = array<i64: 1, 1, 128>}]} {
    %c0 = arith.constant 0 : index
    %c0_0 = arith.constant 0 : index
    %0 = vector.load %arg1[%c0, %c0_0] : memref<256x128xbf16, #tpu.memory_space<vmem>>, vector<256x128xbf16>
    %1 = arith.extf %0 : vector<256x128xbf16> to vector<256x128xf32>
    %c0_1 = arith.constant 0 : index
    %c0_2 = arith.constant 0 : index
    %2 = vector.load %arg2[%c0_1, %c0_2] : memref<1x128xf32, #tpu.memory_space<vmem>>, vector<1x128xf32>
    %3 = vector.broadcast %2 : vector<1x128xf32> to vector<256x128xf32>
    %4 = arith.mulf %1, %3 : vector<256x128xf32>
    %c0_3 = arith.constant 0 : index
    %c0_4 = arith.constant 0 : index
    %5 = vector.load %arg3[%c0_3, %c0_4] : memref<1x128xf32, #tpu.memory_space<vmem>>, vector<1x128xf32>
    %6 = vector.broadcast %5 : vector<1x128xf32> to vector<256x128xf32>
    %7 = arith.addf %4, %6 : vector<256x128xf32>
    %cst = arith.constant 0.000000e+00 : f32
    %8 = vector.broadcast %cst : f32 to vector<256x128xf32>
    %9 = arith.maximumf %7, %8 : vector<256x128xf32>
    %10 = arith.truncf %9 : vector<256x128xf32> to vector<256x128xbf16>
    %11 = vector.shape_cast %10 : vector<256x128xbf16> to vector<4x8x8x128xbf16>
    %cst_5 = arith.constant 0.000000e+00 : bf16
    %12 = vector.broadcast %cst_5 : bf16 to vector<4x8x1x128xbf16>
    %13 = tpu.concatenate %12, %11, %12 in 2 : vector<4x8x1x128xbf16>, vector<4x8x8x128xbf16>, vector<4x8x1x128xbf16> -> vector<4x8x10x128xbf16>
    %cst_6 = arith.constant 0.000000e+00 : bf16
    %14 = vector.broadcast %cst_6 : bf16 to vector<4x1x10x128xbf16>
    %15 = tpu.concatenate %14, %13, %14 in 1 : vector<4x1x10x128xbf16>, vector<4x8x10x128xbf16>, vector<4x1x10x128xbf16> -> vector<4x10x10x128xbf16>
    %16 = vector.extract_strided_slice %15 {offsets = [0, 0, 0, 0], sizes = [4, 8, 8, 128], strides = [1, 1, 1, 1]} : vector<4x10x10x128xbf16> to vector<4x8x8x128xbf16>
    %17 = vector.shape_cast %16 : vector<4x8x8x128xbf16> to vector<256x128xbf16>
    %18 = vector.extract_strided_slice %15 {offsets = [0, 0, 1, 0], sizes = [4, 8, 8, 128], strides = [1, 1, 1, 1]} : vector<4x10x10x128xbf16> to vector<4x8x8x128xbf16>
    %19 = vector.shape_cast %18 : vector<4x8x8x128xbf16> to vector<256x128xbf16>
    %20 = vector.extract_strided_slice %15 {offsets = [0, 0, 2, 0], sizes = [4, 8, 8, 128], strides = [1, 1, 1, 1]} : vector<4x10x10x128xbf16> to vector<4x8x8x128xbf16>
    %21 = vector.shape_cast %20 : vector<4x8x8x128xbf16> to vector<256x128xbf16>
    %22 = vector.extract_strided_slice %15 {offsets = [0, 1, 0, 0], sizes = [4, 8, 8, 128], strides = [1, 1, 1, 1]} : vector<4x10x10x128xbf16> to vector<4x8x8x128xbf16>
    %23 = vector.shape_cast %22 : vector<4x8x8x128xbf16> to vector<256x128xbf16>
    %24 = vector.extract_strided_slice %15 {offsets = [0, 1, 1, 0], sizes = [4, 8, 8, 128], strides = [1, 1, 1, 1]} : vector<4x10x10x128xbf16> to vector<4x8x8x128xbf16>
    %25 = vector.shape_cast %24 : vector<4x8x8x128xbf16> to vector<256x128xbf16>
    %26 = vector.extract_strided_slice %15 {offsets = [0, 1, 2, 0], sizes = [4, 8, 8, 128], strides = [1, 1, 1, 1]} : vector<4x10x10x128xbf16> to vector<4x8x8x128xbf16>
    %27 = vector.shape_cast %26 : vector<4x8x8x128xbf16> to vector<256x128xbf16>
    %28 = vector.extract_strided_slice %15 {offsets = [0, 2, 0, 0], sizes = [4, 8, 8, 128], strides = [1, 1, 1, 1]} : vector<4x10x10x128xbf16> to vector<4x8x8x128xbf16>
    %29 = vector.shape_cast %28 : vector<4x8x8x128xbf16> to vector<256x128xbf16>
    %30 = vector.extract_strided_slice %15 {offsets = [0, 2, 1, 0], sizes = [4, 8, 8, 128], strides = [1, 1, 1, 1]} : vector<4x10x10x128xbf16> to vector<4x8x8x128xbf16>
    %31 = vector.shape_cast %30 : vector<4x8x8x128xbf16> to vector<256x128xbf16>
    %32 = vector.extract_strided_slice %15 {offsets = [0, 2, 2, 0], sizes = [4, 8, 8, 128], strides = [1, 1, 1, 1]} : vector<4x10x10x128xbf16> to vector<4x8x8x128xbf16>
    %33 = vector.shape_cast %32 : vector<4x8x8x128xbf16> to vector<256x128xbf16>
    %34 = tpu.concatenate %17, %19, %21, %23, %25, %27, %29, %31, %33 in 1 : vector<256x128xbf16>, vector<256x128xbf16>, vector<256x128xbf16>, vector<256x128xbf16>, vector<256x128xbf16>, vector<256x128xbf16>, vector<256x128xbf16>, vector<256x128xbf16>, vector<256x128xbf16> -> vector<256x1152xbf16>
    %c0_7 = arith.constant 0 : index
    %c0_8 = arith.constant 0 : index
    %35 = vector.load %arg4[%c0_7, %c0_8] : memref<1152x128xbf16, #tpu.memory_space<vmem>>, vector<1152x128xbf16>
    %cst_9 = arith.constant dense<0.000000e+00> : vector<256x128xf32>
    %36 = tpu.matmul %34, %35, %cst_9 {dimension_numbers = #tpu.dot_dimension_numbers<[1], [0], [0], [1], [0, 0, 1, 1], [], []>} : vector<256x1152xbf16>, vector<1152x128xbf16>, vector<256x128xf32> -> vector<256x128xf32>
    %37 = arith.truncf %36 : vector<256x128xf32> to vector<256x128xbf16>
    %c0_10 = arith.constant 0 : index
    %c0_11 = arith.constant 0 : index
    %38 = vector.load %arg5[%c0_10, %c0_11] : memref<256x128xbf16, #tpu.memory_space<vmem>>, vector<256x128xbf16>
    tpu.vector_store %arg5[%c0_10, %c0_11], %37 {strides = array<i32>} : memref<256x128xbf16, #tpu.memory_space<vmem>>, vector<256x128xbf16>,
    %cst_12 = arith.constant dense<0.000000e+00> : vector<128xf32>
    %39 = vector.multi_reduction <add>, %36, %cst_12 [0] : vector<256x128xf32> to vector<128xf32>
    %40 = vector.shape_cast %39 : vector<128xf32> to vector<1x128xf32>
    %41 = vector.shape_cast %40 : vector<1x128xf32> to vector<1x1x128xf32>
    %c0_13 = arith.constant 0 : index
    %c0_14 = arith.constant 0 : index
    %c0_15 = arith.constant 0 : index
    %42 = vector.load %arg6[%c0_13, %c0_14, %c0_15] : memref<1x1x128xf32, #tpu.memory_space<vmem>>, vector<1x1x128xf32>
    tpu.vector_store %arg6[%c0_13, %c0_14, %c0_15], %41 {strides = array<i32>} : memref<1x1x128xf32, #tpu.memory_space<vmem>>, vector<1x1x128xf32>,
    %43 = arith.mulf %36, %36 : vector<256x128xf32>
    %cst_16 = arith.constant dense<0.000000e+00> : vector<128xf32>
    %44 = vector.multi_reduction <add>, %43, %cst_16 [0] : vector<256x128xf32> to vector<128xf32>
    %45 = vector.shape_cast %44 : vector<128xf32> to vector<1x128xf32>
    %46 = vector.shape_cast %45 : vector<1x128xf32> to vector<1x1x128xf32>
    %c0_17 = arith.constant 0 : index
    %c0_18 = arith.constant 0 : index
    %c0_19 = arith.constant 0 : index
    %47 = vector.load %arg7[%c0_17, %c0_18, %c0_19] : memref<1x1x128xf32, #tpu.memory_space<vmem>>, vector<1x1x128xf32>
    tpu.vector_store %arg7[%c0_17, %c0_18, %c0_19], %46 {strides = array<i32>} : memref<1x1x128xf32, #tpu.memory_space<vmem>>, vector<1x1x128xf32>,
    return
  }
  func.func @transform_0(%arg0: i32) -> (i32, i32) {
    %c0_i32 = arith.constant 0 : i32
    %c0_i32_0 = arith.constant 0 : i32
    return %arg0, %c0_i32 : i32, i32
  }
  func.func @transform_1(%arg0: i32) -> (i32, i32) {
    %c0_i32 = arith.constant 0 : i32
    %c0_i32_0 = arith.constant 0 : i32
    %c0_i32_1 = arith.constant 0 : i32
    return %c0_i32, %c0_i32_0 : i32, i32
  }
  func.func @transform_2(%arg0: i32) -> (i32, i32) {
    %c0_i32 = arith.constant 0 : i32
    %c0_i32_0 = arith.constant 0 : i32
    %c0_i32_1 = arith.constant 0 : i32
    return %c0_i32, %c0_i32_0 : i32, i32
  }
  func.func @transform_3(%arg0: i32) -> (i32, i32) {
    %c0_i32 = arith.constant 0 : i32
    %c0_i32_0 = arith.constant 0 : i32
    %c0_i32_1 = arith.constant 0 : i32
    return %c0_i32, %c0_i32_0 : i32, i32
  }
  func.func @transform_4(%arg0: i32) -> (i32, i32) {
    %c0_i32 = arith.constant 0 : i32
    %c0_i32_0 = arith.constant 0 : i32
    return %arg0, %c0_i32 : i32, i32
  }
  func.func @transform_5(%arg0: i32) -> (i32, i32, i32) {
    %c0_i32 = arith.constant 0 : i32
    %c0_i32_0 = arith.constant 0 : i32
    %c0_i32_1 = arith.constant 0 : i32
    return %arg0, %c0_i32, %c0_i32_0 : i32, i32, i32
  }
  func.func @transform_6(%arg0: i32) -> (i32, i32, i32) {
    %c0_i32 = arith.constant 0 : i32
    %c0_i32_0 = arith.constant 0 : i32
    %c0_i32_1 = arith.constant 0 : i32
    return %arg0, %c0_i32, %c0_i32_0 : i32, i32, i32
  }
}

</mosaic_0001>

<bundles_post_ra>
// kernel: down_forward.7
= control target key start
LH: loop header
LB: loop body
LE: loop exit
PB: predicated region body
PF: predicated region fallthrough
CT: control target
= control target key end

     0   :  { %s502_s0 = inlined_call_operand.vmem [shape: bf16[256,128], index: 0, kind: input, shape index: {}]   ;;  %s503_s1 = inlined_call_operand.vmem [shape: f32[1,128], index: 1, kind: input, shape index: {}]   ;;  %s504_s2 = inlined_call_operand.vmem [shape: f32[1,128], index: 2, kind: input, shape index: {}]   ;;  %s505_s3 = inlined_call_operand.hbm [shape: f32[256,128], index: 3, kind: output, shape index: {}]  }
   0x1   :  { %v240_v0 = vld [vmem:[%s502_s0] sm:$0xff]   ;;  %v303_v4 = vld [vmem:[%s502_s0 + $0x8] sm:$0xff]   ;;  %v304_v5 = vld [vmem:[%s502_s0 + $0x10] sm:$0xff]  }
   0x2   :  { %v374_v1 = vld [vmem:[%s503_s1] ss:$0 sm:$0xff]  ;;  %v241_v2 = vunpack.c.l.bf16 %v240_v0  ;;  %v242_v3 = vunpack.c.h.bf16 %v240_v0  ;;  %v305_v6 = vld [vmem:[%s502_s0 + $0x18] sm:$0xff]   ;;  %v245_v8 = vunpack.c.l.bf16 %v303_v4  ;;  %v246_v9 = vunpack.c.h.bf16 %v303_v4 }
   0x3   :  { %v388_v7 = vld [vmem:[%s504_s2] ss:$0 sm:$0xff]  ;;  %v249_v10 = vunpack.c.l.bf16 %v304_v5  ;;  %v250_v11 = vunpack.c.h.bf16 %v304_v5  ;;  %v253_v14 = vunpack.c.l.bf16 %v305_v6  ;;  %v254_v15 = vunpack.c.h.bf16 %v305_v6 }
   0x4   :  { %v86_v12 = vmul.f32 %v241_v2, %v374_v1  ;;  %v87_v13 = vmul.f32 %v242_v3, %v374_v1  ;;  %v88_v16 = vmul.f32 %v245_v8, %v374_v1  ;;  %v89_v17 = vmul.f32 %v246_v9, %v374_v1  ;;  %v306_v28 = vld [vmem:[%s502_s0 + $0x20] sm:$0xff]  }
   0x5   :  { %v90_v18 = vmul.f32 %v249_v10, %v374_v1  ;;  %v91_v19 = vmul.f32 %v250_v11, %v374_v1  ;;  %v92_v22 = vmul.f32 %v253_v14, %v374_v1  ;;  %v93_v23 = vmul.f32 %v254_v15, %v374_v1 }
   0x6   :  { %v125_v20 = vadd.f32 %v388_v7, %v86_v12  ;;  %v126_v21 = vadd.f32 %v388_v7, %v87_v13  ;;  %v127_v24 = vadd.f32 %v388_v7, %v88_v16  ;;  %v128_v25 = vadd.f32 %v388_v7, %v89_v17 }
   0x7   :  { %v129_v26 = vadd.f32 %v388_v7, %v90_v18  ;;  %v130_v27 = vadd.f32 %v388_v7, %v91_v19 }
   0x8   :  { %8 = vsyncpa [#allocation3], 0  ;;  %v157_v29 = vmax.f32 %v125_v20, 0.0  ;;  %v158_v30 = vmax.f32 %v126_v21, 0.0  ;;  %v131_v31 = vadd.f32 %v388_v7, %v92_v22  ;;  %v132_v32 = vadd.f32 %v388_v7, %v93_v23  ;;  %v307_v33 = vld [vmem:[%s502_s0 + $0x28] sm:$0xff]   ;;  %v308_v34 = vld [vmem:[%s502_s0 + $0x30] sm:$0xff]  }
   0x9   :  { %v159_v35 = vmax.f32 %v127_v24, 0.0  ;;  %v160_v36 = vmax.f32 %v128_v25, 0.0  ;;  %v161_v37 = vmax.f32 %v129_v26, 0.0  ;;  %v162_v38 = vmax.f32 %v130_v27, 0.0  ;;  %v309_v39 = vld [vmem:[%s502_s0 + $0x38] sm:$0xff]   ;;  %v310_v0 = vld [vmem:[%s502_s0 + $0x40] sm:$0xff]  }
   0xa   :  { %189 = vst [vmem:[#allocation2] sm:$0xff] %v157_v29  ;;  %190 = vst [vmem:[#allocation2 + $0x8] sm:$0xff] %v158_v30  ;;  %v163_v40 = vmax.f32 %v131_v31, 0.0  ;;  %v164_v41 = vmax.f32 %v132_v32, 0.0  ;;  %v257_v42 = vunpack.c.l.bf16 %v306_v28  ;;  %v258_v43 = vunpack.c.h.bf16 %v306_v28  ;;  %v311_v6 = vld [vmem:[%s502_s0 + $0x48] sm:$0xff]   ;;  %v312_v8 = vld [vmem:[%s502_s0 + $0x50] sm:$0xff]  }
   0xb   :  { %191 = vst [vmem:[#allocation2 + $0x10] sm:$0xff] %v159_v35  ;;  %192 = vst [vmem:[#allocation2 + $0x18] sm:$0xff] %v160_v36  ;;  %v261_v44 = vunpack.c.l.bf16 %v307_v33  ;;  %v262_v45 = vunpack.c.h.bf16 %v307_v33  ;;  %v265_v46 = vunpack.c.l.bf16 %v308_v34  ;;  %v266_v47 = vunpack.c.h.bf16 %v308_v34  ;;  %v313_v13 = vld [vmem:[%s502_s0 + $0x58] sm:$0xff]  }
   0xc   :  { %193 = vst [vmem:[#allocation2 + $0x20] sm:$0xff] %v161_v37  ;;  %194 = vst [vmem:[#allocation2 + $0x28] sm:$0xff] %v162_v38  ;;  %v94_v48 = vmul.f32 %v257_v42, %v374_v1  ;;  %v95_v49 = vmul.f32 %v258_v43, %v374_v1  ;;  %v269_v50 = vunpack.c.l.bf16 %v309_v39  ;;  %v270_v51 = vunpack.c.h.bf16 %v309_v39  ;;  %v314_v38 = vld [vmem:[%s502_s0 + $0x60] sm:$0xff]   ;;  %v315_v43 = vld [vmem:[%s502_s0 + $0x68] sm:$0xff]  }
   0xd   :  { %195 = vst [vmem:[#allocation2 + $0x30] sm:$0xff] %v163_v40  ;;  %196 = vst [vmem:[#allocation2 + $0x38] sm:$0xff] %v164_v41  ;;  %v96_v52 = vmul.f32 %v261_v44, %v374_v1  ;;  %v97_v53 = vmul.f32 %v262_v45, %v374_v1  ;;  %v98_v54 = vmul.f32 %v265_v46, %v374_v1  ;;  %v273_v16 = vunpack.c.l.bf16 %v310_v0  ;;  %v316_v44 = vld [vmem:[%s502_s0 + $0x70] sm:$0xff]  }
   0xe   :  { %v99_v55 = vmul.f32 %v266_v47, %v374_v1  ;;  %v133_v56 = vadd.f32 %v388_v7, %v94_v48  ;;  %v134_v57 = vadd.f32 %v388_v7, %v95_v49  ;;  %v100_v58 = vmul.f32 %v269_v50, %v374_v1  ;;  %v317_v49 = vld [vmem:[%s502_s0 + $0x78] sm:$0xff]   ;;  %s345_s0 = smov [#allocation2]  }
   0xf   :  { %v101_v59 = vmul.f32 %v270_v51, %v374_v1  ;;  %v135_v60 = vadd.f32 %v388_v7, %v96_v52  ;;  %v136_v61 = vadd.f32 %v388_v7, %v97_v53  ;;  %v137_v62 = vadd.f32 %v388_v7, %v98_v54  ;;  %s226_s19 = sshll.u32 %s345_s0, 4  ;;  %s227_s19 = int_to_ptr.vmem [resolvable:$true] %s226_s19 }
  0x10   :  { %v138_v63 = vadd.f32 %v388_v7, %v99_v55  ;;  %v165_v2 = vmax.f32 %v133_v56, 0.0  ;;  %v166_v3 = vmax.f32 %v134_v57, 0.0  ;;  %v139_v4 = vadd.f32 %v388_v7, %v100_v58  ;;  %s321_s20 = scalar_lea.vmem %s227_s19, 4096  ;;  %p326_p1 = scmp.lt.s32.totalorder %s227_s19, %s227_s19 }
  0x11   :  { %v140_v5 = vadd.f32 %v388_v7, %v101_v59  ;;  %v167_v9 = vmax.f32 %v135_v60, 0.0  ;;  %v168_v10 = vmax.f32 %v136_v61, 0.0  ;;  %v169_v11 = vmax.f32 %v137_v62, 0.0  ;;  %p322_p0 = scmp.ne.s32.totalorder %s227_s19, %s321_s20  ;;  %p327_p2 = scmp.lt.s32.totalorder %s321_s20, %s321_s20 }
  0x12   :  { %v170_v12 = vmax.f32 %v138_v63, 0.0  ;;  %197 = vst [vmem:[#allocation2 + $0x40] sm:$0xff] %v165_v2  ;;  %198 = vst [vmem:[#allocation2 + $0x48] sm:$0xff] %v166_v3  ;;  %v171_v14 = vmax.f32 %v139_v4, 0.0  ;;  %v274_v17 = vunpack.c.h.bf16 %v310_v0  ;;  %v277_v18 = vunpack.c.l.bf16 %v311_v6 }
  0x13   :  { %v172_v15 = vmax.f32 %v140_v5, 0.0  ;;  %199 = vst [vmem:[#allocation2 + $0x50] sm:$0xff] %v167_v9  ;;  %200 = vst [vmem:[#allocation2 + $0x58] sm:$0xff] %v168_v10  ;;  %v278_v19 = vunpack.c.h.bf16 %v311_v6  ;;  %v281_v20 = vunpack.c.l.bf16 %v312_v8  ;;  %v282_v21 = vunpack.c.h.bf16 %v312_v8  ;;  %p328_p3 = por %p327_p2, %p326_p1 }
  0x14   :  { %201 = vst [vmem:[#allocation2 + $0x60] sm:$0xff] %v169_v11  ;;  %202 = vst [vmem:[#allocation2 + $0x68] sm:$0xff] %v170_v12  ;;  %v102_v22 = vmul.f32 %v273_v16, %v374_v1  ;;  %v103_v23 = vmul.f32 %v274_v17, %v374_v1  ;;  %v285_v24 = vunpack.c.l.bf16 %v313_v13  ;;  %v286_v25 = vunpack.c.h.bf16 %v313_v13 }
  0x15   :  { %203 = vst [vmem:[#allocation2 + $0x70] sm:$0xff] %v171_v14  ;;  %204 = vst [vmem:[#allocation2 + $0x78] sm:$0xff] %v172_v15  ;;  %v104_v26 = vmul.f32 %v277_v18, %v374_v1  ;;  %v105_v27 = vmul.f32 %v278_v19, %v374_v1  ;;  %v106_v28 = vmul.f32 %v281_v20, %v374_v1  ;;  %v289_v52 = vunpack.c.l.bf16 %v314_v38  ;;  %p329_p4 = pnand %p328_p3, %p322_p0 }
  0x16   :  { %v107_v29 = vmul.f32 %v282_v21, %v374_v1  ;;  %v141_v30 = vadd.f32 %v388_v7, %v102_v22  ;;  %v142_v31 = vadd.f32 %v388_v7, %v103_v23  ;;  %v108_v32 = vmul.f32 %v285_v24, %v374_v1 }
  0x17   :  { %v109_v33 = vmul.f32 %v286_v25, %v374_v1  ;;  %v143_v34 = vadd.f32 %v388_v7, %v104_v26  ;;  %v144_v35 = vadd.f32 %v388_v7, %v105_v27  ;;  %v145_v36 = vadd.f32 %v388_v7, %v106_v28 }
  0x18   :  { %v146_v37 = vadd.f32 %v388_v7, %v107_v29  ;;  %v173_v39 = vmax.f32 %v141_v30, 0.0  ;;  %v174_v40 = vmax.f32 %v142_v31, 0.0  ;;  %v147_v41 = vadd.f32 %v388_v7, %v108_v32 }
  0x19   :  { %v148_v42 = vadd.f32 %v388_v7, %v109_v33  ;;  %v175_v45 = vmax.f32 %v143_v34, 0.0  ;;  %v176_v46 = vmax.f32 %v144_v35, 0.0  ;;  %v177_v47 = vmax.f32 %v145_v36, 0.0 }
  0x1a   :  { %v178_v48 = vmax.f32 %v146_v37, 0.0  ;;  %205 = vst [vmem:[#allocation2 + $0x80] sm:$0xff] %v173_v39  ;;  %206 = vst [vmem:[#allocation2 + $0x88] sm:$0xff] %v174_v40  ;;  %v179_v50 = vmax.f32 %v147_v41, 0.0  ;;  %v290_v53 = vunpack.c.h.bf16 %v314_v38  ;;  %v293_v54 = vunpack.c.l.bf16 %v315_v43 }
  0x1b   :  { %v180_v51 = vmax.f32 %v148_v42, 0.0  ;;  %207 = vst [vmem:[#allocation2 + $0x90] sm:$0xff] %v175_v45  ;;  %208 = vst [vmem:[#allocation2 + $0x98] sm:$0xff] %v176_v46  ;;  %v294_v55 = vunpack.c.h.bf16 %v315_v43  ;;  %v297_v56 = vunpack.c.l.bf16 %v316_v44  ;;  %v298_v57 = vunpack.c.h.bf16 %v316_v44 }
  0x1c   :  { %209 = vst [vmem:[#allocation2 + $0xa0] sm:$0xff] %v177_v47  ;;  %210 = vst [vmem:[#allocation2 + $0xa8] sm:$0xff] %v178_v48  ;;  %v110_v58 = vmul.f32 %v289_v52, %v374_v1  ;;  %v111_v59 = vmul.f32 %v290_v53, %v374_v1  ;;  %v301_v60 = vunpack.c.l.bf16 %v317_v49  ;;  %v302_v61 = vunpack.c.h.bf16 %v317_v49 }
  0x1d   :  { %211 = vst [vmem:[#allocation2 + $0xb0] sm:$0xff] %v179_v50  ;;  %212 = vst [vmem:[#allocation2 + $0xb8] sm:$0xff] %v180_v51  ;;  %v112_v62 = vmul.f32 %v293_v54, %v374_v1  ;;  %v113_v63 = vmul.f32 %v294_v55, %v374_v1  ;;  %v114_v0 = vmul.f32 %v297_v56, %v374_v1 }
  0x1e   :  { %v115_v2 = vmul.f32 %v298_v57, %v374_v1  ;;  %v149_v3 = vadd.f32 %v388_v7, %v110_v58  ;;  %v150_v4 = vadd.f32 %v388_v7, %v111_v59  ;;  %v116_v5 = vmul.f32 %v301_v60, %v374_v1 }
  0x1f   :  { %v117_v6 = vmul.f32 %v302_v61, %v374_v1  ;;  %v151_v8 = vadd.f32 %v388_v7, %v112_v62  ;;  %v152_v9 = vadd.f32 %v388_v7, %v113_v63  ;;  %v153_v10 = vadd.f32 %v388_v7, %v114_v0 }
  0x20   :  { %v154_v11 = vadd.f32 %v388_v7, %v115_v2  ;;  %v181_v12 = vmax.f32 %v149_v3, 0.0  ;;  %v182_v13 = vmax.f32 %v150_v4, 0.0  ;;  %v155_v14 = vadd.f32 %v388_v7, %v116_v5 }
  0x21   :  { %v156_v15 = vadd.f32 %v388_v7, %v117_v6  ;;  %v183_v16 = vmax.f32 %v151_v8, 0.0  ;;  %v184_v17 = vmax.f32 %v152_v9, 0.0  ;;  %v185_v18 = vmax.f32 %v153_v10, 0.0 }
  0x22   :  { %v186_v1 = vmax.f32 %v154_v11, 0.0  ;;  %213 = vst [vmem:[#allocation2 + $0xc0] sm:$0xff] %v181_v12  ;;  %214 = vst [vmem:[#allocation2 + $0xc8] sm:$0xff] %v182_v13  ;;  %v187_v19 = vmax.f32 %v155_v14, 0.0 }
  0x23   :  { %v188_v20 = vmax.f32 %v156_v15, 0.0  ;;  %215 = vst [vmem:[#allocation2 + $0xd0] sm:$0xff] %v183_v16  ;;  %216 = vst [vmem:[#allocation2 + $0xd8] sm:$0xff] %v184_v17 }
  0x24   :  { %217 = vst [vmem:[#allocation2 + $0xe0] sm:$0xff] %v185_v18  ;;  %218 = vst [vmem:[#allocation2 + $0xe8] sm:$0xff] %v186_v1 }
  0x25   :  { %219 = vst [vmem:[#allocation2 + $0xf0] sm:$0xff] %v187_v19  ;;  %220 = vst [vmem:[#allocation2 + $0xf8] sm:$0xff] %v188_v20 }
  0x26   :  { %332 = shalt.err (!%p329_p4)
}
  0x27   :  { %s333_s23 = scalar_lea.hbm %s505_s3, 4096 }
  0x28   :  { %p334_p5 = scmp.ne.s32.totalorder %s505_s3, %s333_s23  ;;  %p337_p6 = scmp.lt.u32.totalorder %s333_s23, %s505_s3 }
  0x2a   :  { %p339_p7 = pnand %p337_p6, %p334_p5 }
  0x2c   :  { %342 = shalt.err (!%p339_p7)
}
  0x2d   :  { %s346_s26 = smov 128   ;;  %s347_s27 = smov 8  }
  0x2e   :  { %232 = dma.vmem_to_hbm [thread:$0]  %s227_s19, 4096, %s505_s3, [#allocation3], %s346_s26, %s346_s26, %s347_s27  }
  0x2f   :  { %343 = dma.done.wait [#allocation3], 4096  }
  0x30   :  { %344 = vsyncadd [#allocation3], 4294963200 }
  0x31   :  { %236 = vsyncpa [#allocation3], 1 }

// kernel: down_forward.4
= control target key start
LH: loop header
LB: loop body
LE: loop exit
PB: predicated region body
PF: predicated region fallthrough
CT: control target
= control target key end

     0   :  { %s414_s13 = smov 64   ;;  %vm296_vm0 = vcmask 519168   ;;  %s889_s0 = inlined_call_operand.vmem [shape: f32[32,2,8,128], index: 0, kind: input, shape index: {}]   ;;  %s890_s1 = inlined_call_operand.vmem [shape: bf16[32,8,64], index: 1, kind: output, shape index: {}]  }
   0x1   :  { %v16_v0 = vld [vmem:[%s889_s0 + $0x40] sm:$0xff]  ;;  %v17_v1 = vld [vmem:[%s889_s0 + $0x48] sm:$0xff]  ;;  %v18_v2 = vld [vmem:[%s889_s0 + $0x50] sm:$0xff] }
   0x2   :  { %v19_v3 = vld [vmem:[%s889_s0 + $0x58] sm:$0xff]  ;;  %v437_v4 = vmax.f32 %v16_v0, %v17_v1  ;;  %v8_v5 = vld [vmem:[%s889_s0] sm:$0xff]  ;;  %v9_v6 = vld [vmem:[%s889_s0 + $0x8] sm:$0xff] }
   0x3   :  { %v445_v7 = vmax.f32 %v18_v2, %v19_v3  ;;  %v10_v8 = vld [vmem:[%s889_s0 + $0x10] sm:$0xff]  ;;  %v11_v9 = vld [vmem:[%s889_s0 + $0x18] sm:$0xff]  ;;  %v453_v10 = vmax.f32 %v8_v5, %v9_v6  ;;  %v20_v11 = vld [vmem:[%s889_s0 + $0x60] sm:$0xff] }
   0x4   :  { %v458_v12 = vmax.f32 %v10_v8, %v11_v9  ;;  %v21_v13 = vld [vmem:[%s889_s0 + $0x68] sm:$0xff]  ;;  %v22_v14 = vld [vmem:[%s889_s0 + $0x70] sm:$0xff]  ;;  %v23_v15 = vld [vmem:[%s889_s0 + $0x78] sm:$0xff] }
   0x5   :  { %v344_v16 = vpack.i.bf16 %v445_v7, %v437_v4  ;;  %v471_v17 = vmax.f32 %v20_v11, %v21_v13  ;;  %v473_v18 = vmax.f32 %v22_v14, %v23_v15  ;;  %v12_v19 = vld [vmem:[%s889_s0 + $0x20] sm:$0xff]  ;;  %v13_v20 = vld [vmem:[%s889_s0 + $0x28] sm:$0xff]  ;;  %v14_v21 = vld [vmem:[%s889_s0 + $0x30] sm:$0xff] }
   0x6   :  { %v334_v22 = vpack.i.bf16 %v458_v12, %v453_v10  ;;  %v15_v23 = vld [vmem:[%s889_s0 + $0x38] sm:$0xff]  ;;  %v489_v24 = vmax.f32 %v12_v19, %v13_v20  ;;  %v28_v25 = vld [vmem:[%s889_s0 + $0xa0] sm:$0xff]  ;;  %v29_v26 = vld [vmem:[%s889_s0 + $0xa8] sm:$0xff] }
   0x7   :  { %345 = vrot.lane.b32.xlu1 %v344_v16, %s414_s13  ;;  %v349_v27 = vpack.i.bf16 %v473_v18, %v471_v17  ;;  %v500_v28 = vmax.f32 %v14_v21, %v15_v23  ;;  %v30_v29 = vld [vmem:[%s889_s0 + $0xb0] sm:$0xff]  ;;  %v31_v30 = vld [vmem:[%s889_s0 + $0xb8] sm:$0xff]  ;;  %v508_v31 = vmax.f32 %v28_v25, %v29_v26  ;;  %v24_v32 = vld [vmem:[%s889_s0 + $0x80] sm:$0xff] }
   0x8   :  { %335 = vrot.lane.b32.xlu0 %v334_v22, %s414_s13  ;;  %v514_v33 = vmax.f32 %v30_v29, %v31_v30  ;;  %v25_v34 = vld [vmem:[%s889_s0 + $0x88] sm:$0xff]  ;;  %v26_v35 = vld [vmem:[%s889_s0 + $0x90] sm:$0xff]  ;;  %v27_v36 = vld [vmem:[%s889_s0 + $0x98] sm:$0xff] }
   0x9   :  { %v339_v37 = vpack.i.bf16 %v500_v28, %v489_v24  ;;  %v527_v38 = vmax.f32 %v24_v32, %v25_v34  ;;  %v529_v39 = vmax.f32 %v26_v35, %v27_v36  ;;  %v36_v40 = vld [vmem:[%s889_s0 + $0xe0] sm:$0xff]  ;;  %v37_v41 = vld [vmem:[%s889_s0 + $0xe8] sm:$0xff]  ;;  %v38_v42 = vld [vmem:[%s889_s0 + $0xf0] sm:$0xff] }
   0xa   :  { %v39_v43 = vld [vmem:[%s889_s0 + $0xf8] sm:$0xff]  ;;  %v32_v44 = vld [vmem:[%s889_s0 + $0xc0] sm:$0xff]  ;;  %v33_v45 = vld [vmem:[%s889_s0 + $0xc8] sm:$0xff]  ;;  %v359_v46 = vpack.i.bf16 %v514_v33, %v508_v31  ;;  %v552_v47 = vmax.f32 %v36_v40, %v37_v41 }
   0xb   :  { %350 = vrot.lane.b32.xlu1 %v349_v27, %s414_s13  ;;  %v554_v48 = vmax.f32 %v38_v42, %v39_v43  ;;  %v34_v49 = vld [vmem:[%s889_s0 + $0xd0] sm:$0xff]  ;;  %v35_v50 = vld [vmem:[%s889_s0 + $0xd8] sm:$0xff]  ;;  %v44_v51 = vld [vmem:[%s889_s0 + $0x120] sm:$0xff]  ;;  %v354_v52 = vpack.i.bf16 %v529_v39, %v527_v38  ;;  %v568_v53 = vmax.f32 %v32_v44, %v33_v45 }
   0xc   :  { %340 = vrot.lane.b32.xlu0 %v339_v37, %s414_s13  ;;  %v570_v54 = vmax.f32 %v34_v49, %v35_v50  ;;  %v45_v55 = vld [vmem:[%s889_s0 + $0x128] sm:$0xff]  ;;  %v46_v56 = vld [vmem:[%s889_s0 + $0x130] sm:$0xff]  ;;  %v47_v57 = vld [vmem:[%s889_s0 + $0x138] sm:$0xff] }
   0xd   :  { %v40_v58 = vld [vmem:[%s889_s0 + $0x100] sm:$0xff]  ;;  %v41_v59 = vld [vmem:[%s889_s0 + $0x108] sm:$0xff]  ;;  %v42_v60 = vld [vmem:[%s889_s0 + $0x110] sm:$0xff]  ;;  %v369_v62 = vpack.i.bf16 %v554_v48, %v552_v47  ;;  %v596_v63 = vmax.f32 %v44_v51, %v45_v55  ;;  %v598_v0 = vmax.f32 %v46_v56, %v47_v57 }
   0xe   :  { %v43_v61 = vld [vmem:[%s889_s0 + $0x118] sm:$0xff]  ;;  %v52_v1 = vld [vmem:[%s889_s0 + $0x160] sm:$0xff]  ;;  %v53_v2 = vld [vmem:[%s889_s0 + $0x168] sm:$0xff]  ;;  %v364_v3 = vpack.i.bf16 %v570_v54, %v568_v53  ;;  %v609_v5 = vmax.f32 %v40_v58, %v41_v59 }
   0xf   :  { %360 = vrot.lane.b32.xlu1 %v359_v46, %s414_s13  ;;  %v611_v6 = vmax.f32 %v42_v60, %v43_v61  ;;  %v54_v8 = vld [vmem:[%s889_s0 + $0x170] sm:$0xff]  ;;  %v55_v9 = vld [vmem:[%s889_s0 + $0x178] sm:$0xff]  ;;  %v48_v11 = vld [vmem:[%s889_s0 + $0x140] sm:$0xff]  ;;  %v379_v16 = vpack.i.bf16 %v598_v0, %v596_v63  ;;  %v634_v19 = vmax.f32 %v52_v1, %v53_v2 }
  0x10   :  { %355 = vrot.lane.b32.xlu0 %v354_v52, %s414_s13  ;;  %v49_v13 = vld [vmem:[%s889_s0 + $0x148] sm:$0xff]  ;;  %v50_v14 = vld [vmem:[%s889_s0 + $0x150] sm:$0xff]  ;;  %v51_v15 = vld [vmem:[%s889_s0 + $0x158] sm:$0xff]  ;;  %v636_v20 = vmax.f32 %v54_v8, %v55_v9 }
  0x11   :  { %v60_v21 = vld [vmem:[%s889_s0 + $0x1a0] sm:$0xff]  ;;  %v61_v22 = vld [vmem:[%s889_s0 + $0x1a8] sm:$0xff]  ;;  %v374_v23 = vpack.i.bf16 %v611_v6, %v609_v5  ;;  %v647_v25 = vmax.f32 %v48_v11, %v49_v13  ;;  %v649_v26 = vmax.f32 %v50_v14, %v51_v15  ;;  %v62_v27 = vld [vmem:[%s889_s0 + $0x1b0] sm:$0xff] }
  0x12   :  { %v63_v29 = vld [vmem:[%s889_s0 + $0x1b8] sm:$0xff]  ;;  %v56_v30 = vld [vmem:[%s889_s0 + $0x180] sm:$0xff]  ;;  %v57_v32 = vld [vmem:[%s889_s0 + $0x188] sm:$0xff]  ;;  %v389_v36 = vpack.i.bf16 %v636_v20, %v634_v19  ;;  %v672_v37 = vmax.f32 %v60_v21, %v61_v22 }
  0x13   :  { %370 = vrot.lane.b32.xlu1 %v369_v62, %s414_s13  ;;  %v58_v34 = vld [vmem:[%s889_s0 + $0x190] sm:$0xff]  ;;  %v59_v35 = vld [vmem:[%s889_s0 + $0x198] sm:$0xff]  ;;  %v674_v40 = vmax.f32 %v62_v27, %v63_v29  ;;  %v68_v41 = vld [vmem:[%s889_s0 + $0x1e0] sm:$0xff]  ;;  %v384_v43 = vpack.i.bf16 %v649_v26, %v647_v25  ;;  %v685_v44 = vmax.f32 %v56_v30, %v57_v32 }
  0x14   :  { %365 = vrot.lane.b32.xlu0 %v364_v3, %s414_s13  ;;  %v69_v42 = vld [vmem:[%s889_s0 + $0x1e8] sm:$0xff]  ;;  %v687_v45 = vmax.f32 %v58_v34, %v59_v35  ;;  %v70_v46 = vld [vmem:[%s889_s0 + $0x1f0] sm:$0xff]  ;;  %v71_v49 = vld [vmem:[%s889_s0 + $0x1f8] sm:$0xff] }
  0x15   :  { %v64_v50 = vld [vmem:[%s889_s0 + $0x1c0] sm:$0xff]  ;;  %v65_v51 = vld [vmem:[%s889_s0 + $0x1c8] sm:$0xff]  ;;  %v66_v52 = vld [vmem:[%s889_s0 + $0x1d0] sm:$0xff]  ;;  %v399_v56 = vpack.i.bf16 %v674_v40, %v672_v37  ;;  %v710_v57 = vmax.f32 %v68_v41, %v69_v42  ;;  %v712_v58 = vmax.f32 %v70_v46, %v71_v49 }
  0x16   :  { %v67_v55 = vld [vmem:[%s889_s0 + $0x1d8] sm:$0xff]  ;;  %v394_v59 = vpack.i.bf16 %v687_v45, %v685_v44  ;;  %v717_v60 = vmax.f32 %v64_v50, %v65_v51 }
  0x17   :  { %380 = vrot.lane.b32.xlu1 %v379_v16, %s414_s13  ;;  %v719_v61 = vmax.f32 %v66_v52, %v67_v55  ;;  %v409_v62 = vpack.i.bf16 %v712_v58, %v710_v57 }
  0x18   :  { %375 = vrot.lane.b32.xlu0 %v374_v23, %s414_s13 }
  0x19   :  { %v404_v1 = vpack.i.bf16 %v719_v61, %v717_v60 }
  0x1b   :  { %390 = vrot.lane.b32.xlu1 %v389_v36, %s414_s13 }
  0x1c   :  { %385 = vrot.lane.b32.xlu0 %v384_v43, %s414_s13 }
  0x1f   :  { %400 = vrot.lane.b32.xlu1 %v399_v56, %s414_s13 }
  0x20   :  { %395 = vrot.lane.b32.xlu0 %v394_v59, %s414_s13 }
  0x23   :  { %410 = vrot.lane.b32.xlu1 %v409_v62, %s414_s13 }
  0x24   :  { %405 = vrot.lane.b32.xlu0 %v404_v1, %s414_s13 }
  0x79   :  { %v346_v2 = vpop.permute.xlu1 %345 }
  0x7a   :  { %v348_v3 = vunpack.i.h.bf16 %v346_v2  ;;  %v347_v8 = vunpack.i.l.bf16 %v346_v2  ;;  %v336_v9 = vpop.permute.xlu0 %335 }
  0x7b   :  { %v338_v11 = vunpack.i.h.bf16 %v336_v9  ;;  %v337_v13 = vunpack.i.l.bf16 %v336_v9 }
  0x7c   :  { %v237_v14 = vmax.f32 %v445_v7, %v348_v3  ;;  %v236_v15 = vmax.f32 %v437_v4, %v347_v8 }
  0x7d   :  { %v233_v16 = vmax.f32 %v458_v12, %v338_v11  ;;  %v232_v21 = vmax.f32 %v453_v10, %v337_v13  ;;  %v351_v22 = vpop.permute.xlu1 %350 }
  0x7e   :  { %v269_v23 = vpack.c.bf16 %v237_v14, %v237_v14  ;;  %v268_v27 = vpack.c.bf16 %v236_v15, %v236_v15  ;;  %v353_v29 = vunpack.i.h.bf16 %v351_v22  ;;  %v352_v30 = vunpack.i.l.bf16 %v351_v22  ;;  %v341_v32 = vpop.permute.xlu0 %340 }
  0x7f   :  { %v265_v34 = vpack.c.bf16 %v233_v16, %v233_v16  ;;  %v264_v35 = vpack.c.bf16 %v232_v21, %v232_v21  ;;  %v343_v36 = vunpack.i.h.bf16 %v341_v32  ;;  %v342_v41 = vunpack.i.l.bf16 %v341_v32 }
  0x80   :  { %302 = vst.msk [vmem:[%s890_s1 + $0x14] sm:$0xf] %vm296_vm0, %v269_v23  ;;  %301 = vst.msk [vmem:[%s890_s1 + $0x10] sm:$0xf] %vm296_vm0, %v268_v27  ;;  %v239_v4 = vmax.f32 %v473_v18, %v353_v29  ;;  %v238_v7 = vmax.f32 %v471_v17, %v352_v30 }
  0x81   :  { %298 = vst.msk [vmem:[%s890_s1 + $0x4] sm:$0xf] %vm296_vm0, %v265_v34  ;;  %297 = vst.msk [vmem:[%s890_s1] sm:$0xf] %vm296_vm0, %v264_v35  ;;  %v235_v10 = vmax.f32 %v500_v28, %v343_v36  ;;  %v234_v12 = vmax.f32 %v489_v24, %v342_v41  ;;  %v361_v42 = vpop.permute.xlu1 %360 }
  0x82   :  { %v271_v43 = vpack.c.bf16 %v239_v4, %v239_v4  ;;  %v270_v46 = vpack.c.bf16 %v238_v7, %v238_v7  ;;  %v363_v18 = vunpack.i.h.bf16 %v361_v42  ;;  %v362_v49 = vunpack.i.l.bf16 %v361_v42  ;;  %v356_v17 = vpop.permute.xlu0 %355 }
  0x83   :  { %v267_v50 = vpack.c.bf16 %v235_v10, %v235_v10  ;;  %v266_v51 = vpack.c.bf16 %v234_v12, %v234_v12  ;;  %v358_v52 = vunpack.i.h.bf16 %v356_v17  ;;  %v357_v55 = vunpack.i.l.bf16 %v356_v17 }
  0x84   :  { %304 = vst.msk [vmem:[%s890_s1 + $0x1c] sm:$0xf] %vm296_vm0, %v271_v43  ;;  %303 = vst.msk [vmem:[%s890_s1 + $0x18] sm:$0xf] %vm296_vm0, %v270_v46  ;;  %v243_v24 = vmax.f32 %v514_v33, %v363_v18  ;;  %v242_v28 = vmax.f32 %v508_v31, %v362_v49 }
  0x85   :  { %300 = vst.msk [vmem:[%s890_s1 + $0xc] sm:$0xf] %vm296_vm0, %v267_v50  ;;  %299 = vst.msk [vmem:[%s890_s1 + $0x8] sm:$0xf] %vm296_vm0, %v266_v51  ;;  %v241_v56 = vmax.f32 %v529_v39, %v358_v52  ;;  %v240_v59 = vmax.f32 %v527_v38, %v357_v55  ;;  %v371_v62 = vpop.permute.xlu1 %370 }
  0x86   :  { %v275_v1 = vpack.c.bf16 %v243_v24, %v243_v24  ;;  %v274_v2 = vpack.c.bf16 %v242_v28, %v242_v28  ;;  %v373_v33 = vunpack.i.h.bf16 %v371_v62  ;;  %v372_v3 = vunpack.i.l.bf16 %v371_v62  ;;  %v366_v31 = vpop.permute.xlu0 %365 }
  0x87   :  { %v273_v8 = vpack.c.bf16 %v241_v56, %v241_v56  ;;  %v272_v9 = vpack.c.bf16 %v240_v59, %v240_v59  ;;  %v368_v11 = vunpack.i.h.bf16 %v366_v31  ;;  %v367_v13 = vunpack.i.l.bf16 %v366_v31 }
  0x88   :  { %308 = vst.msk [vmem:[%s890_s1 + $0x2c] sm:$0xf] %vm296_vm0, %v275_v1  ;;  %307 = vst.msk [vmem:[%s890_s1 + $0x28] sm:$0xf] %vm296_vm0, %v274_v2  ;;  %v247_v38 = vmax.f32 %v554_v48, %v373_v33  ;;  %v246_v39 = vmax.f32 %v552_v47, %v372_v3 }
  0x89   :  { %306 = vst.msk [vmem:[%s890_s1 + $0x24] sm:$0xf] %vm296_vm0, %v273_v8  ;;  %305 = vst.msk [vmem:[%s890_s1 + $0x20] sm:$0xf] %vm296_vm0, %v272_v9  ;;  %v245_v14 = vmax.f32 %v570_v54, %v368_v11  ;;  %v244_v15 = vmax.f32 %v568_v53, %v367_v13  ;;  %v381_v16 = vpop.permute.xlu1 %380 }
  0x8a   :  { %v279_v21 = vpack.c.bf16 %v247_v38, %v247_v38  ;;  %v278_v22 = vpack.c.bf16 %v246_v39, %v246_v39  ;;  %v383_v48 = vunpack.i.h.bf16 %v381_v16  ;;  %v382_v23 = vunpack.i.l.bf16 %v381_v16  ;;  %v376_v47 = vpop.permute.xlu0 %375 }
  0x8b   :  { %v277_v27 = vpack.c.bf16 %v245_v14, %v245_v14  ;;  %v276_v29 = vpack.c.bf16 %v244_v15, %v244_v15  ;;  %v378_v30 = vunpack.i.h.bf16 %v376_v47  ;;  %v377_v32 = vunpack.i.l.bf16 %v376_v47 }
  0x8c   :  { %312 = vst.msk [vmem:[%s890_s1 + $0x3c] sm:$0xf] %vm296_vm0, %v279_v21  ;;  %311 = vst.msk [vmem:[%s890_s1 + $0x38] sm:$0xf] %vm296_vm0, %v278_v22  ;;  %v251_v53 = vmax.f32 %v598_v0, %v383_v48  ;;  %v250_v54 = vmax.f32 %v596_v63, %v382_v23 }
  0x8d   :  { %310 = vst.msk [vmem:[%s890_s1 + $0x34] sm:$0xf] %vm296_vm0, %v277_v27  ;;  %309 = vst.msk [vmem:[%s890_s1 + $0x30] sm:$0xf] %vm296_vm0, %v276_v29  ;;  %v249_v34 = vmax.f32 %v611_v6, %v378_v30  ;;  %v248_v35 = vmax.f32 %v609_v5, %v377_v32  ;;  %v391_v36 = vpop.permute.xlu1 %390 }
  0x8e   :  { %v283_v41 = vpack.c.bf16 %v251_v53, %v251_v53  ;;  %v282_v4 = vpack.c.bf16 %v250_v54, %v250_v54  ;;  %v393_v0 = vunpack.i.h.bf16 %v391_v36  ;;  %v392_v7 = vunpack.i.l.bf16 %v391_v36  ;;  %v386_v63 = vpop.permute.xlu0 %385 }
  0x8f   :  { %v281_v10 = vpack.c.bf16 %v249_v34, %v249_v34  ;;  %v280_v12 = vpack.c.bf16 %v248_v35, %v248_v35  ;;  %v388_v42 = vunpack.i.h.bf16 %v386_v63  ;;  %v387_v43 = vunpack.i.l.bf16 %v386_v63 }
  0x90   :  { %316 = vst.msk [vmem:[%s890_s1 + $0x4c] sm:$0xf] %vm296_vm0, %v283_v41  ;;  %315 = vst.msk [vmem:[%s890_s1 + $0x48] sm:$0xf] %vm296_vm0, %v282_v4  ;;  %v255_v5 = vmax.f32 %v636_v20, %v393_v0  ;;  %v254_v6 = vmax.f32 %v634_v19, %v392_v7 }
  0x91   :  { %314 = vst.msk [vmem:[%s890_s1 + $0x44] sm:$0xf] %vm296_vm0, %v281_v10  ;;  %313 = vst.msk [vmem:[%s890_s1 + $0x40] sm:$0xf] %vm296_vm0, %v280_v12  ;;  %v253_v46 = vmax.f32 %v649_v26, %v388_v42  ;;  %v252_v18 = vmax.f32 %v647_v25, %v387_v43  ;;  %v401_v49 = vpop.permute.xlu1 %400 }
  0x92   :  { %v287_v17 = vpack.c.bf16 %v255_v5, %v255_v5  ;;  %v286_v50 = vpack.c.bf16 %v254_v6, %v254_v6  ;;  %v403_v20 = vunpack.i.h.bf16 %v401_v49  ;;  %v402_v51 = vunpack.i.l.bf16 %v401_v49  ;;  %v396_v19 = vpop.permute.xlu0 %395 }
  0x93   :  { %v285_v52 = vpack.c.bf16 %v253_v46, %v253_v46  ;;  %v284_v55 = vpack.c.bf16 %v252_v18, %v252_v18  ;;  %v398_v24 = vunpack.i.h.bf16 %v396_v19  ;;  %v397_v28 = vunpack.i.l.bf16 %v396_v19 }
  0x94   :  { %320 = vst.msk [vmem:[%s890_s1 + $0x5c] sm:$0xf] %vm296_vm0, %v287_v17  ;;  %319 = vst.msk [vmem:[%s890_s1 + $0x58] sm:$0xf] %vm296_vm0, %v286_v50  ;;  %v259_v25 = vmax.f32 %v674_v40, %v403_v20  ;;  %v258_v26 = vmax.f32 %v672_v37, %v402_v51 }
  0x95   :  { %318 = vst.msk [vmem:[%s890_s1 + $0x54] sm:$0xf] %vm296_vm0, %v285_v52  ;;  %317 = vst.msk [vmem:[%s890_s1 + $0x50] sm:$0xf] %vm296_vm0, %v284_v55  ;;  %v257_v56 = vmax.f32 %v687_v45, %v398_v24  ;;  %v256_v59 = vmax.f32 %v685_v44, %v397_v28  ;;  %v411_v62 = vpop.permute.xlu1 %410 }
  0x96   :  { %v291_v1 = vpack.c.bf16 %v259_v25, %v259_v25  ;;  %v290_v2 = vpack.c.bf16 %v258_v26, %v258_v26  ;;  %v413_v40 = vunpack.i.h.bf16 %v411_v62  ;;  %v412_v33 = vunpack.i.l.bf16 %v411_v62  ;;  %v406_v37 = vpop.permute.xlu0 %405 }
  0x97   :  { %v289_v3 = vpack.c.bf16 %v257_v56, %v257_v56  ;;  %v288_v31 = vpack.c.bf16 %v256_v59, %v256_v59  ;;  %v408_v8 = vunpack.i.h.bf16 %v406_v37  ;;  %v407_v9 = vunpack.i.l.bf16 %v406_v37 }
  0x98   :  { %324 = vst.msk [vmem:[%s890_s1 + $0x6c] sm:$0xf] %vm296_vm0, %v291_v1  ;;  %323 = vst.msk [vmem:[%s890_s1 + $0x68] sm:$0xf] %vm296_vm0, %v290_v2  ;;  %v263_v44 = vmax.f32 %v712_v58, %v413_v40  ;;  %v262_v45 = vmax.f32 %v710_v57, %v412_v33 }
  0x99   :  { %322 = vst.msk [vmem:[%s890_s1 + $0x64] sm:$0xf] %vm296_vm0, %v289_v3  ;;  %321 = vst.msk [vmem:[%s890_s1 + $0x60] sm:$0xf] %vm296_vm0, %v288_v31  ;;  %v261_v11 = vmax.f32 %v719_v61, %v408_v8  ;;  %v260_v13 = vmax.f32 %v717_v60, %v407_v9 }
  0x9a   :  { %v295_v38 = vpack.c.bf16 %v263_v44, %v263_v44  ;;  %v294_v39 = vpack.c.bf16 %v262_v45, %v262_v45 }
  0x9b   :  { %v293_v14 = vpack.c.bf16 %v261_v11, %v261_v11  ;;  %v292_v58 = vpack.c.bf16 %v260_v13, %v260_v13 }
  0x9c   :  { %328 = vst.msk [vmem:[%s890_s1 + $0x7c] sm:$0xf] %vm296_vm0, %v295_v38  ;;  %327 = vst.msk [vmem:[%s890_s1 + $0x78] sm:$0xf] %vm296_vm0, %v294_v39 }
  0x9d   :  { %326 = vst.msk [vmem:[%s890_s1 + $0x74] sm:$0xf] %vm296_vm0, %v293_v14  ;;  %325 = vst.msk [vmem:[%s890_s1 + $0x70] sm:$0xf] %vm296_vm0, %v292_v58 }

// kernel: down_forward.5
= control target key start
LH: loop header
LB: loop body
LE: loop exit
PB: predicated region body
PF: predicated region fallthrough
CT: control target
= control target key end

     0   :  { %vm399_vm0 = vcmask 1040384   ;;  %vm400_vm1 = vsmask.f32 256  ;;  %vm434_vm2 = vcmask 1044480   ;;  %v5345_v5 = vmov 0   ;;  %s3630_s25 = smov 64   ;;  %s5340_s0 = inlined_call_operand.vmem [shape: bf16[4,8,8,64], index: 0, kind: input, shape index: {}]   ;;  %s5341_s1 = inlined_call_operand.vmem [shape: bf16[576,128], index: 1, kind: input, shape index: {}]   ;;  %s5342_s2 = inlined_call_operand.vmem [shape: bf16[256,128], index: 2, kind: output, shape index: {0}]   ;;  %s5343_s3 = inlined_call_operand.vmem [shape: f32[1,1,128], index: 3, kind: output, shape index: {1}]   ;;  %s5344_s4 = inlined_call_operand.vmem [shape: f32[1,1,128], index: 4, kind: output, shape index: {2}]  }
   0x1   :  { %v3560_v0 = vld [vmem:[%s5340_s0] ss:$0 sps:$4 sm:$0xff]   ;;  %v3561_v1 = vld [vmem:[%s5340_s0 + $0x4] ss:$0 sps:$4 sm:$0xff]   ;;  %v3667_v6 = vcombine.low %v5345_v5, %v5345_v5  ;;  %v3671_v7 = vcombine.high %v5345_v5, %v5345_v5  ;;  %vm435_vm3 = vsmask.f32 4352  ;;  %vm3678_vm5 = vmand %vm399_vm0, %vm400_vm1 }
   0x2   :  { %v144_v2 = vshrl.u32 %v3560_v0, 16  ;;  %v147_v3 = vshll.u32 %v3560_v0, 16  ;;  %v3562_v4 = vld [vmem:[%s5340_s0 + $0x60] ss:$0 sps:$4 sm:$0xff]   ;;  %v151_v8 = vshrl.u32 %v3561_v1, 16  ;;  %v154_v9 = vshll.u32 %v3561_v1, 16  ;;  %vm3684_vm6 = vmand %vm434_vm2, %vm435_vm3 }
   0x3   :  { %v3563_v10 = vld [vmem:[%s5340_s0 + $0x64] ss:$0 sps:$4 sm:$0xff]   ;;  %v312_v12 = vshrl.u32 %v3562_v4, 16  ;;  %v315_v13 = vshll.u32 %v3562_v4, 16  ;;  %vm614_vm4 = vsmask.f32 3328 }
   0x4   :  { %v146_v11 = vrot.slane %v144_v2, 7  ;;  %v153_v14 = vrot.slane %v151_v8, 7  ;;  %v319_v16 = vshrl.u32 %v3563_v10, 16  ;;  %v322_v17 = vshll.u32 %v3563_v10, 16  ;;  %v3564_v27 = vld [vmem:[%s5340_s0 + $0x8] ss:$0 sps:$4 sm:$0xff]  }
   0x5   :  { %v618_v18 = vshrl.u32 %v3667_v6, 16  ;;  %v314_v21 = vrot.slane %v312_v12, 7  ;;  %v621_v22 = vshll.u32 %v3667_v6, 16  ;;  %v627_v23 = vshll.u32 %v3671_v7, 16  ;;  %v3565_v52 = vld [vmem:[%s5340_s0 + $0xc] ss:$0 sps:$4 sm:$0xff]  }
   0x6   :  { %v149_v19 = vor.u32 %v147_v3, %v146_v11  ;;  %v156_v24 = vor.u32 %v154_v9, %v153_v14  ;;  %v321_v25 = vrot.slane %v319_v16, 7  ;;  %vm615_vm7 = vsmask.f32 7440  ;;  %v3566_v1 = vld [vmem:[%s5340_s0 + $0x68] ss:$0 sps:$4 sm:$0xff]  }
   0x7   :  { %v620_v26 = vrot.slane %v618_v18, 4  ;;  %v317_v29 = vor.u32 %v315_v13, %v314_v21  ;;  %v623_v30 = vrot.slane %v621_v22, 5  ;;  %v629_v31 = vrot.slane %v627_v23, 5  ;;  %vm3745_vm8 = vmor %vm614_vm4, %vm615_vm7 }
   0x8   :  { %v402_v28 = vsel %vm3678_vm5, 0, %v149_v19  ;;  %v403_v32 = vsel %vm3678_vm5, 0, %v156_v24  ;;  %v324_v34 = vor.u32 %v322_v17, %v321_v25  ;;  %v158_v35 = vshrl.u32 %v3564_v27, 16 }
   0x9   :  { %v3699_v33 = vsel %vm3684_vm6, %v402_v28, 0  ;;  %v3703_v36 = vsel %vm3684_vm6, %v403_v32, 0  ;;  %v426_v38 = vsel %vm3678_vm5, 0, %v317_v29  ;;  %v624_v46 = vor.u32 %v623_v30, %v620_v26 }
   0xa   :  { %v3707_v37 = vcombine.low %v3699_v33, %v3699_v33  ;;  %v3713_v39 = vcombine.high %v3699_v33, %v3699_v33  ;;  %v3717_v40 = vcombine.low %v3703_v36, %v3703_v36  ;;  %v3721_v41 = vcombine.high %v3703_v36, %v3703_v36 }
   0xb   :  { %v2987_v42 = vcombine.low %v3699_v33, %v3703_v36  ;;  %v427_v43 = vsel %vm3678_vm5, 0, %v324_v34  ;;  %v3729_v44 = vsel %vm3684_vm6, %v426_v38, 0  ;;  %v625_v53 = vrot.slane %v624_v46, 4 }
   0xc   :  { %v3733_v45 = vsel %vm3684_vm6, %v427_v43, 0  ;;  %v632_v47 = vshrl.u32 %v3707_v37, 16  ;;  %v3739_v48 = vcombine.low %v3729_v44, %v3729_v44  ;;  %v635_v51 = vshll.u32 %v3707_v37, 16 }
   0xd   :  { %5424 = vst [vmem:[#allocation2_spill] sm:$0xff] %v3733_v45  ;;  %1388 = vrot.lane.b32.xlu0 %v2987_v42, %s3630_s25  ;;  %v2999_v49 = vcombine.low %v3729_v44, %v3733_v45  ;;  %v641_v55 = vshll.u32 %v3713_v39, 16  ;;  %v646_v56 = vshrl.u32 %v3717_v40, 16  ;;  %v649_v58 = vshll.u32 %v3717_v40, 16  ;;  %v3568_v42 = vld [vmem:[%s5340_s0 + $0x10] ss:$0 sps:$4 sm:$0xff]  }
   0xe   :  { %v634_v54 = vrot.slane %v632_v47, 4  ;;  %v637_v57 = vrot.slane %v635_v51, 5  ;;  %v655_v59 = vshll.u32 %v3721_v41, 16  ;;  %v160_v60 = vrot.slane %v158_v35, 7 }
   0xf   :  { %v3759_v61 = vsel %vm3745_vm8, %v625_v53, %v629_v31  ;;  %v643_v62 = vrot.slane %v641_v55, 5  ;;  %v648_v63 = vrot.slane %v646_v56, 4  ;;  %v161_v0 = vshll.u32 %v3564_v27, 16  ;;  %v3567_v31 = vld [vmem:[%s5340_s0 + $0x6c] ss:$0 sps:$4 sm:$0xff]  }
  0x10   :  { %v638_v2 = vor.u32 %v637_v57, %v634_v54  ;;  %v651_v3 = vrot.slane %v649_v58, 5  ;;  %v657_v4 = vrot.slane %v655_v59, 5  ;;  %v165_v8 = vshrl.u32 %v3565_v52, 16  ;;  %v3569_v55 = vld [vmem:[%s5340_s0 + $0x14] ss:$0 sps:$4 sm:$0xff]  }
  0x11   :  { %1412 = vrot.lane.b32.xlu0 %v2999_v49, %s3630_s25  ;;  %v163_v9 = vor.u32 %v161_v0, %v160_v60  ;;  %v168_v10 = vshll.u32 %v3565_v52, 16  ;;  %v3767_v11 = vcombine.high %v3729_v44, %v3729_v44  ;;  %v926_v12 = vshrl.u32 %v3739_v48, 16 }
  0x12   :  { %v639_v13 = vrot.slane %v638_v2, 4  ;;  %v652_v14 = vor.u32 %v651_v3, %v648_v63  ;;  %v167_v16 = vrot.slane %v165_v8, 7  ;;  %v929_v17 = vshll.u32 %v3739_v48, 16 }
  0x13   :  { %v404_v18 = vsel %vm3678_vm5, 0, %v163_v9  ;;  %v928_v19 = vrot.slane %v926_v12, 4  ;;  %v935_v21 = vshll.u32 %v3767_v11, 16  ;;  %v326_v22 = vshrl.u32 %v3566_v1, 16 }
  0x14   :  { %v3776_v23 = vsel %vm3745_vm8, %v639_v13, %v643_v62  ;;  %v653_v24 = vrot.slane %v652_v14, 4  ;;  %v170_v25 = vor.u32 %v168_v10, %v167_v16  ;;  %v3780_v26 = vsel %vm3684_vm6, %v404_v18, 0 }
  0x15   :  { %5427 = vst [vmem:[#allocation3_spill] sm:$0xff] %v3776_v23  ;;  %v2955_v27 = vcombine.low %v3759_v61, %v3776_v23  ;;  %v3786_v28 = vcombine.low %v3780_v26, %v3780_v26  ;;  %v931_v29 = vrot.slane %v929_v17, 5  ;;  %v937_v30 = vrot.slane %v935_v21, 5 }
  0x16   :  { %v3793_v32 = vsel %vm3745_vm8, %v653_v24, %v657_v4  ;;  %v405_v34 = vsel %vm3678_vm5, 0, %v170_v25  ;;  %v3799_v35 = vcombine.high %v3780_v26, %v3780_v26  ;;  %v328_v38 = vrot.slane %v326_v22, 7 }
  0x17   :  { %5428 = vst [vmem:[#allocation4_spill] sm:$0xff] %v3793_v32  ;;  %1295 = vrot.lane.b32.xlu1 %v2955_v27, %s3630_s25  ;;  %v3809_v46 = vsel %vm3684_vm6, %v405_v34, 0  ;;  %v932_v47 = vor.u32 %v931_v29, %v928_v19  ;;  %v660_v49 = vshrl.u32 %v3786_v28, 16  ;;  %v3814_v51 = vcombine.low %v3733_v45, %v3733_v45 }
  0x18   :  { %5429 = vst [vmem:[#allocation5_spill] sm:$0xff] %v3809_v46  ;;  %v2988_v52 = vcombine.low %v3780_v26, %v3809_v46  ;;  %v663_v53 = vshll.u32 %v3786_v28, 16  ;;  %v669_v54 = vshll.u32 %v3799_v35, 16  ;;  %v329_v58 = vshll.u32 %v3566_v1, 16 }
  0x19   :  { %v933_v56 = vrot.slane %v932_v47, 4  ;;  %v662_v57 = vrot.slane %v660_v49, 4  ;;  %v333_v59 = vshrl.u32 %v3567_v31, 16  ;;  %v336_v63 = vshll.u32 %v3567_v31, 16 }
  0x1a   :  { %1390 = vrot.lane.b32.xlu0 %v2988_v52, %s3630_s25  ;;  %v665_v60 = vrot.slane %v663_v53, 5  ;;  %v671_v62 = vrot.slane %v669_v54, 5  ;;  %v172_v0 = vshrl.u32 %v3568_v42, 16  ;;  %v331_v3 = vor.u32 %v329_v58, %v328_v38  ;;  %v3590_v53 = vld [vmem:[%s5341_s1 + $0x40] sm:$0xff]  }
  0x1b   :  { %v3826_v2 = vsel %vm3745_vm8, %v933_v56, %v937_v30  ;;  %v335_v4 = vrot.slane %v333_v59, 7  ;;  %v175_v8 = vshll.u32 %v3568_v42, 16  ;;  %v179_v1 = vshrl.u32 %v3569_v55, 16  ;;  %v3593_v58 = vld [vmem:[%s5341_s1] sm:$0xff]   ;;  %3258 = vmatprep.subr.bf16.mxu0 %v3590_v53  ;;  %3542 = vmatprep.subr.bf16.mxu1 %v3590_v53 }
  0x1c   :  { %5430 = vst [vmem:[#allocation6_spill] sm:$0xff] %v3826_v2  ;;  %v2967_v9 = vcombine.low %v3759_v61, %v3826_v2  ;;  %v666_v10 = vor.u32 %v665_v60, %v662_v57  ;;  %v174_v12 = vrot.slane %v172_v0, 7  ;;  %v428_v14 = vsel %vm3678_vm5, 0, %v331_v3  ;;  %3259 = vmatpush3.bf16.msra.mxu0 %v3593_v58  ;;  %3550 = vmatpush3.bf16.msra.mxu1 %v3593_v58 }
  0x1d   :  { %v338_v13 = vor.u32 %v336_v63, %v335_v4  ;;  %v182_v16 = vshll.u32 %v3569_v55, 16  ;;  %v3834_v17 = vcombine.high %v3733_v45, %v3733_v45  ;;  %v3839_v19 = vsel %vm3684_vm6, %v428_v14, 0  ;;  %v3594_v14 = vld [vmem:[%s5341_s1 + $0x48] sm:$0xff]  }
  0x1e   :  { %1319 = vrot.lane.b32.xlu1 %v2967_v9, %s3630_s25  ;;  %v667_v18 = vrot.slane %v666_v10, 4  ;;  %v177_v21 = vor.u32 %v175_v8, %v174_v12  ;;  %v181_v22 = vrot.slane %v179_v1, 7  ;;  %v3845_v25 = vcombine.low %v3839_v19, %v3839_v19  ;;  %3260 = vmatprep.subr.bf16.mxu0 %v3594_v14 }
  0x1f   :  { %v429_v24 = vsel %vm3678_vm5, 0, %v338_v13  ;;  %v3849_v27 = vcombine.high %v3839_v19, %v3839_v19  ;;  %v940_v29 = vshrl.u32 %v3814_v51, 16  ;;  %v3864_v42 = vcombine.low %v3809_v46, %v3809_v46  ;;  %v3570_v13 = vld [vmem:[%s5340_s0 + $0x70] ss:$0 sps:$4 sm:$0xff]   ;;  %3543 = vmatprep.subr.bf16.mxu1 %v3594_v14 }
  0x20   :  { %v3854_v30 = vsel %vm3745_vm8, %v667_v18, %v671_v62  ;;  %v3858_v31 = vsel %vm3684_vm6, %v429_v24, 0  ;;  %v184_v34 = vor.u32 %v182_v16, %v181_v22  ;;  %v406_v38 = vsel %vm3678_vm5, 0, %v177_v21  ;;  %v3571_v24 = vld [vmem:[%s5340_s0 + $0x74] ss:$0 sps:$4 sm:$0xff]  }
  0x21   :  { %5431 = vst [vmem:[#allocation7_spill] sm:$0xff] %v3854_v30  ;;  %5432 = vst [vmem:[#allocation8_spill] sm:$0xff] %v3858_v31  ;;  %v2956_v47 = vcombine.low %v3793_v32, %v3854_v30  ;;  %v3000_v49 = vcombine.low %v3839_v19, %v3858_v31  ;;  %v3872_v52 = vsel %vm3684_vm6, %v406_v38, 0  ;;  %v942_v56 = vrot.slane %v940_v29, 4 }
  0x22   :  { %5433 = vst [vmem:[#allocation9_spill] sm:$0xff] %v3872_v52  ;;  %v407_v54 = vsel %vm3678_vm5, 0, %v184_v34  ;;  %v3881_v55 = vcombine.low %v3872_v52, %v3872_v52  ;;  %v943_v57 = vshll.u32 %v3814_v51, 16  ;;  %v949_v60 = vshll.u32 %v3834_v17, 16 }
  0x23   :  { %1297 = vrot.lane.b32.xlu0 %v2956_v47, %s3630_s25  ;;  %1414 = vrot.lane.b32.xlu1 %v3000_v49, %s3630_s25  ;;  %v3891_v59 = vsel %vm3684_vm6, %v407_v54, 0  ;;  %v954_v62 = vshrl.u32 %v3845_v25, 16  ;;  %v957_v63 = vshll.u32 %v3845_v25, 16  ;;  %v3898_v0 = vcombine.low %v3858_v31, %v3858_v31  ;;  %v3572_v49 = vld [vmem:[%s5340_s0 + $0x18] ss:$0 sps:$4 sm:$0xff]  }
  0x24   :  { %5434 = vst [vmem:[#allocation10_spill] sm:$0xff] %v3891_v59  ;;  %v2989_v3 = vcombine.low %v3872_v52, %v3891_v59  ;;  %v945_v4 = vrot.slane %v943_v57, 5  ;;  %v963_v8 = vshll.u32 %v3849_v27, 16  ;;  %v951_v9 = vrot.slane %v949_v60, 5 }
  0x25   :  { %5435 = vst [vmem:[#allocation11_spill] sm:$0xff] %v3898_v0  ;;  %v956_v10 = vrot.slane %v954_v62, 4  ;;  %v959_v12 = vrot.slane %v957_v63, 5  ;;  %v3905_v1 = vcombine.high %v3809_v46, %v3809_v46  ;;  %v3915_v21 = vcombine.high %v3872_v52, %v3872_v52 }
  0x26   :  { %v946_v16 = vor.u32 %v945_v4, %v942_v56  ;;  %v965_v18 = vrot.slane %v963_v8, 5  ;;  %v674_v22 = vshrl.u32 %v3864_v42, 16  ;;  %v677_v34 = vshll.u32 %v3864_v42, 16 }
  0x27   :  { %1392 = vrot.lane.b32.xlu0 %v2989_v3, %s3630_s25  ;;  %v960_v29 = vor.u32 %v959_v12, %v956_v10  ;;  %v683_v38 = vshll.u32 %v3905_v1, 16  ;;  %v688_v47 = vshrl.u32 %v3881_v55, 16  ;;  %v691_v56 = vshll.u32 %v3881_v55, 16  ;;  %v3573_v12 = vld [vmem:[%s5340_s0 + $0x1c] ss:$0 sps:$4 sm:$0xff]  }
  0x28   :  { %v947_v53 = vrot.slane %v946_v16, 4  ;;  %v676_v54 = vrot.slane %v674_v22, 4  ;;  %v697_v57 = vshll.u32 %v3915_v21, 16  ;;  %v679_v60 = vrot.slane %v677_v34, 5  ;;  %v3595_v16 = vld [vmem:[%s5341_s1 + $0x8] sm:$0xff]   ;;  %v3596_v34 = vld [vmem:[%s5341_s1 + $0x50] sm:$0xff]  }
  0x29   :  { %v961_v58 = vrot.slane %v960_v29, 4  ;;  %v685_v62 = vrot.slane %v683_v38, 5  ;;  %v690_v63 = vrot.slane %v688_v47, 4  ;;  %v693_v4 = vrot.slane %v691_v56, 5  ;;  %3261 = vmatpush3.bf16.msra.mxu0 %v3595_v16  ;;  %3551 = vmatpush3.bf16.msra.mxu1 %v3595_v16 }
  0x2a   :  { %v3932_v3 = vsel %vm3745_vm8, %v947_v53, %v951_v9  ;;  %v699_v8 = vrot.slane %v697_v57, 5  ;;  %v340_v10 = vshrl.u32 %v3570_v13, 16  ;;  %v680_v9 = vor.u32 %v679_v60, %v676_v54  ;;  %3262 = vmatprep.subr.bf16.mxu0 %v3596_v34  ;;  %3544 = vmatprep.subr.bf16.mxu1 %v3596_v34 }
  0x2b   :  { %5436 = vst [vmem:[#allocation12_spill] sm:$0xff] %v3932_v3  ;;  %v3942_v14 = vsel %vm3745_vm8, %v961_v58, %v965_v18  ;;  %v343_v29 = vshll.u32 %v3570_v13, 16  ;;  %v694_v47 = vor.u32 %v693_v4, %v690_v63  ;;  %v347_v56 = vshrl.u32 %v3571_v24, 16  ;;  %v3597_v63 = vld [vmem:[%s5341_s1 + $0x10] sm:$0xff]  }
  0x2c   :  { %5437 = vst [vmem:[#allocation13_spill] sm:$0xff] %v3942_v14  ;;  %v2968_v38 = vcombine.low %v3932_v3, %v3942_v14  ;;  %v342_v53 = vrot.slane %v340_v10, 7  ;;  %v681_v57 = vrot.slane %v680_v9, 4  ;;  %v350_v18 = vshll.u32 %v3571_v24, 16 }
  0x2d   :  { %v186_v58 = vshrl.u32 %v3572_v49, 16  ;;  %v189_v43 = vshll.u32 %v3572_v49, 16  ;;  %v695_v13 = vrot.slane %v694_v47, 4  ;;  %v349_v60 = vrot.slane %v347_v56, 7  ;;  %3263 = vmatpush3.bf16.msra.mxu0 %v3597_v63  ;;  %3552 = vmatpush3.bf16.msra.mxu1 %v3597_v63 }
  0x2e   :  { %1321 = vrot.lane.b32.xlu1 %v2968_v38, %s3630_s25  ;;  %v345_v54 = vor.u32 %v343_v29, %v342_v53  ;;  %v193_v22 = vshrl.u32 %v3573_v12, 16  ;;  %v3957_v4 = vsel %vm3745_vm8, %v681_v57, %v685_v62  ;;  %v196_v24 = vshll.u32 %v3573_v12, 16  ;;  %v3598_v62 = vld [vmem:[%s5341_s1 + $0x58] sm:$0xff]  }
  0x2f   :  { %5438 = vst [vmem:[#allocation14_spill] sm:$0xff] %v3957_v4  ;;  %v188_v10 = vrot.slane %v186_v58, 7  ;;  %v3961_v49 = vcombine.high %v3858_v31, %v3858_v31  ;;  %v3965_v16 = vsel %vm3745_vm8, %v695_v13, %v699_v8  ;;  %v352_v29 = vor.u32 %v350_v18, %v349_v60  ;;  %3264 = vmatprep.subr.bf16.mxu0 %v3598_v62 }
  0x30   :  { %5440 = vst [vmem:[#allocation16_spill] sm:$0xff] %v3965_v16  ;;  %v430_v34 = vsel %vm3678_vm5, 0, %v345_v54  ;;  %v2957_v12 = vcombine.low %v3957_v4, %v3965_v16  ;;  %v195_v47 = vrot.slane %v193_v22, 7  ;;  %v968_v18 = vshrl.u32 %v3898_v0, 16  ;;  %3545 = vmatprep.subr.bf16.mxu1 %v3598_v62  ;;  %v3599_v54 = vld [vmem:[%s5341_s1 + $0x18] sm:$0xff]  }
  0x31   :  { %5439 = vst [vmem:[#allocation15_spill] sm:$0xff] %v3961_v49  ;;  %v3978_v8 = vsel %vm3684_vm6, %v430_v34, 0  ;;  %v191_v38 = vor.u32 %v189_v43, %v188_v10  ;;  %v431_v53 = vsel %vm3678_vm5, 0, %v352_v29  ;;  %v971_v13 = vshll.u32 %v3898_v0, 16  ;;  %3265 = vmatpush3.bf16.msra.mxu0 %v3599_v54  ;;  %3553 = vmatpush3.bf16.msra.mxu1 %v3599_v54 }
  0x32   :  { %5441 = vst [vmem:[#allocation17_spill] sm:$0xff] %v3978_v8  ;;  %v3984_v56 = vcombine.low %v3978_v8, %v3978_v8  ;;  %v3988_v57 = vcombine.high %v3978_v8, %v3978_v8  ;;  %1299 = vrot.lane.b32.xlu0 %v2957_v12, %s3630_s25  ;;  %v3994_v43 = vsel %vm3684_vm6, %v431_v53, 0  ;;  %v198_v22 = vor.u32 %v196_v24, %v195_v47 }
  0x33   :  { %5444 = vst [vmem:[#allocation20_spill] sm:$0xff] %v3994_v43  ;;  %v408_v58 = vsel %vm3678_vm5, 0, %v191_v38  ;;  %v4004_v60 = vcombine.low %v3891_v59, %v3891_v59  ;;  %v3001_v63 = vcombine.low %v3978_v8, %v3994_v43  ;;  %v970_v24 = vrot.slane %v968_v18, 4  ;;  %v3600_v38 = vld [vmem:[%s5341_s1 + $0x60] sm:$0xff]  }
  0x34   :  { %5442 = vst [vmem:[#allocation18_spill] sm:$0xff] %v3984_v56  ;;  %5443 = vst [vmem:[#allocation19_spill] sm:$0xff] %v3988_v57  ;;  %v4010_v10 = vsel %vm3684_vm6, %v408_v58, 0  ;;  %v409_v29 = vsel %vm3678_vm5, 0, %v198_v22  ;;  %v973_v62 = vrot.slane %v971_v13, 5  ;;  %v977_v12 = vshll.u32 %v3961_v49, 16  ;;  %3266 = vmatprep.subr.bf16.mxu0 %v3600_v38  ;;  %3546 = vmatprep.subr.bf16.mxu1 %v3600_v38 }
  0x35   :  { %5445 = vst [vmem:[#allocation21_spill] sm:$0xff] %v4010_v10  ;;  %v4016_v34 = vcombine.low %v4010_v10, %v4010_v10  ;;  %1416 = vrot.lane.b32.xlu1 %v3001_v63, %s3630_s25  ;;  %v4025_v47 = vsel %vm3684_vm6, %v409_v29, 0  ;;  %v982_v53 = vshrl.u32 %v3984_v56, 16  ;;  %v985_v18 = vshll.u32 %v3984_v56, 16  ;;  %v3574_v63 = vld [vmem:[%s5340_s0 + $0x78] ss:$0 sps:$4 sm:$0xff]  }
  0x36   :  { %5446 = vst [vmem:[#allocation22_spill] sm:$0xff] %v4025_v47  ;;  %v991_v22 = vshll.u32 %v3988_v57, 16  ;;  %v4032_v58 = vcombine.low %v3994_v43, %v3994_v43  ;;  %v2990_v13 = vcombine.low %v4010_v10, %v4025_v47  ;;  %v974_v54 = vor.u32 %v973_v62, %v970_v24  ;;  %v3601_v29 = vld [vmem:[%s5341_s1 + $0x20] sm:$0xff]   ;;  %v3575_v24 = vld [vmem:[%s5340_s0 + $0x7c] ss:$0 sps:$4 sm:$0xff]   ;;  %v3602_v62 = vld [vmem:[%s5341_s1 + $0x68] sm:$0xff]  }
  0x37   :  { %v979_v9 = vrot.slane %v977_v12, 5  ;;  %v984_v5 = vrot.slane %v982_v53, 4  ;;  %v987_v3 = vrot.slane %v985_v18, 5  ;;  %v4044_v4 = vcombine.high %v3891_v59, %v3891_v59  ;;  %3267 = vmatpush3.bf16.msra.mxu0 %v3601_v29  ;;  %3554 = vmatpush3.bf16.msra.mxu1 %v3601_v29 }
  0x38   :  { %5447 = vst [vmem:[#allocation23_spill] sm:$0xff] %v4032_v58  ;;  %v993_v2 = vrot.slane %v991_v22, 5  ;;  %1394 = vrot.lane.b32.xlu0 %v2990_v13, %s3630_s25  ;;  %v975_v12 = vrot.slane %v974_v54, 4  ;;  %v4055_v38 = vcombine.high %v4010_v10, %v4010_v10  ;;  %v702_v53 = vshrl.u32 %v4004_v60, 16  ;;  %v3603_v22 = vld [vmem:[%s5341_s1 + $0x28] sm:$0xff]   ;;  %3268 = vmatprep.subr.bf16.mxu0 %v3602_v62  ;;  %v3604_v54 = vld [vmem:[%s5341_s1 + $0x70] sm:$0xff]  }
  0x39   :  { %v705_v18 = vshll.u32 %v4004_v60, 16  ;;  %v988_v30 = vor.u32 %v987_v3, %v984_v5  ;;  %v711_v32 = vshll.u32 %v4044_v4, 16  ;;  %v716_v23 = vshrl.u32 %v4016_v34, 16  ;;  %v4076_v3 = vld [vmem:[%s5340_s0 + $0x20] ss:$0 sps:$4 sm:$0xff]   ;;  %3547 = vmatprep.subr.bf16.mxu1 %v3602_v62 }
  0x3a   :  { %v719_v13 = vshll.u32 %v4016_v34, 16  ;;  %v4070_v59 = vsel %vm3745_vm8, %v975_v12, %v979_v9  ;;  %v704_v10 = vrot.slane %v702_v53, 4  ;;  %v725_v5 = vshll.u32 %v4055_v38, 16  ;;  %v3605_v53 = vld [vmem:[%s5341_s1 + $0x30] sm:$0xff]  }
  0x3b   :  { %5448 = vst [vmem:[#allocation24_spill] sm:$0xff] %v4070_v59  ;;  %v707_v31 = vrot.slane %v705_v18, 5  ;;  %v989_v29 = vrot.slane %v988_v30, 4  ;;  %v713_v57 = vrot.slane %v711_v32, 5  ;;  %v718_v56 = vrot.slane %v716_v23, 4  ;;  %3269 = vmatpush3.bf16.msra.mxu0 %v3603_v22  ;;  %3555 = vmatpush3.bf16.msra.mxu1 %v3603_v22  ;;  %v3606_v23 = vld [vmem:[%s5341_s1 + $0x78] sm:$0xff]  }
  0x3c   :  { %v721_v0 = vrot.slane %v719_v13, 5  ;;  %v727_v9 = vrot.slane %v725_v5, 5  ;;  %v354_v12 = vshrl.u32 %v3574_v63, 16  ;;  %v357_v62 = vshll.u32 %v3574_v63, 16  ;;  %3270 = vmatprep.subr.bf16.mxu0 %v3604_v54  ;;  %3548 = vmatprep.subr.bf16.mxu1 %v3604_v54  ;;  %v3607_v22 = vld [vmem:[%s5341_s1 + $0x38] sm:$0xff]  }
  0x3d   :  { %v708_v49 = vor.u32 %v707_v31, %v704_v10  ;;  %v4085_v18 = vsel %vm3745_vm8, %v989_v29, %v993_v2  ;;  %v361_v30 = vshrl.u32 %v3575_v24, 16  ;;  %v364_v46 = vshll.u32 %v3575_v24, 16  ;;  %v3577_v54 = vld [vmem:[%s5340_s0 + $0x24] ss:$0 sps:$4 sm:$0xff]  }
  0x3e   :  { %5449 = vst [vmem:[#allocation25_spill] sm:$0xff] %v4085_v18  ;;  %v2969_v32 = vcombine.low %v4070_v59, %v4085_v18  ;;  %v722_v10 = vor.u32 %v721_v0, %v718_v56  ;;  %v356_v13 = vrot.slane %v354_v12, 7  ;;  %v4094_v2 = vcombine.high %v3994_v43, %v3994_v43  ;;  %v3608_v12 = vld [vmem:[%s5341_s1 + $0xc0] sm:$0xff]  }
  0x3f   :  { %v709_v31 = vrot.slane %v708_v49, 4  ;;  %v363_v5 = vrot.slane %v361_v30, 7  ;;  %v996_v63 = vshrl.u32 %v4032_v58, 16  ;;  %v999_v24 = vshll.u32 %v4032_v58, 16  ;;  %3271 = vmatpush3.bf16.msra.mxu0 %v3605_v53  ;;  %3556 = vmatpush3.bf16.msra.mxu1 %v3605_v53  ;;  %v3609_v30 = vld [vmem:[%s5341_s1 + $0x100] sm:$0xff]  }
  0x40   :  { %5450 = vst [vmem:[#allocation26_spill] sm:$0xff] %v4094_v2  ;;  %1323 = vrot.lane.b32.xlu1 %v2969_v32, %s3630_s25  ;;  %v723_v49 = vrot.slane %v722_v10, 4  ;;  %v359_v56 = vor.u32 %v357_v62, %v356_v13  ;;  %v200_v29 = vshrl.u32 %v4076_v3, 16  ;;  %3272 = vmatprep.subr.bf16.mxu0 %v3606_v23  ;;  %v1005_v10 = vshll.u32 %v4094_v2, 16 }
  0x41   :  { %v4104_v0 = vsel %vm3745_vm8, %v709_v31, %v713_v57  ;;  %v366_v32 = vor.u32 %v364_v46, %v363_v5  ;;  %v998_v8 = vrot.slane %v996_v63, 4  ;;  %v1001_v57 = vrot.slane %v999_v24, 5  ;;  %3549 = vmatprep.subr.bf16.mxu1 %v3606_v23 }
  0x42   :  { %5451 = vst [vmem:[#allocation27_spill] sm:$0xff] %v4104_v0  ;;  %v4117_v62 = vsel %vm3745_vm8, %v723_v49, %v727_v9  ;;  %v432_v31 = vsel %vm3678_vm5, 0, %v359_v56  ;;  %v202_v13 = vrot.slane %v200_v29, 7  ;;  %v1007_v49 = vrot.slane %v1005_v10, 5 }
  0x43   :  { %5452 = vst [vmem:[#allocation28_spill] sm:$0xff] %v4117_v62  ;;  %v2958_v46 = vcombine.low %v4104_v0, %v4117_v62  ;;  %v433_v53 = vsel %vm3678_vm5, 0, %v366_v32  ;;  %v4131_v9 = vsel %vm3684_vm6, %v432_v31, 0  ;;  %v1002_v5 = vor.u32 %v1001_v57, %v998_v8  ;;  %3273 = vmatpush3.bf16.msra.mxu0 %v3607_v22  ;;  %3557 = vmatpush3.bf16.msra.mxu1 %v3607_v22 }
  0x44   :  { %5453 = vst [vmem:[#allocation29_spill] sm:$0xff] %v4131_v9  ;;  %v4135_v63 = vsel %vm3684_vm6, %v433_v53, 0  ;;  %v4139_v23 = vcombine.low %v4131_v9, %v4131_v9  ;;  %v4143_v24 = vcombine.high %v4131_v9, %v4131_v9  ;;  %v4147_v56 = vcombine.low %v4025_v47, %v4025_v47  ;;  %3370 = vmatprep.subr.bf16.mxu1 %v3608_v12 }
  0x45   :  { %5454 = vst [vmem:[#allocation30_spill] sm:$0xff] %v4135_v63  ;;  %1301 = vrot.lane.b32.xlu0 %v2958_v46, %s3630_s25  ;;  %v3002_v8 = vcombine.low %v4131_v9, %v4135_v63  ;;  %v1003_v29 = vrot.slane %v1002_v5, 4  ;;  %v203_v32 = vshll.u32 %v4076_v3, 16  ;;  %v207_v53 = vshrl.u32 %v3577_v54, 16  ;;  %3502 = vmatprep.subr.bf16.mxu0 %v3609_v30  ;;  %v3578_v3 = vld [vmem:[%s5340_s0 + $0x28] ss:$0 sps:$4 sm:$0xff]  }
  0x46   :  { %5455 = vst [vmem:[#allocation31_spill] sm:$0xff] %v4139_v23  ;;  %5456 = vst [vmem:[#allocation32_spill] sm:$0xff] %v4143_v24  ;;  %v1010_v57 = vshrl.u32 %v4139_v23, 16  ;;  %v1013_v31 = vshll.u32 %v4139_v23, 16  ;;  %v1019_v10 = vshll.u32 %v4143_v24, 16  ;;  %v210_v5 = vshll.u32 %v3577_v54, 16 }
  0x47   :  { %1418 = vrot.lane.b32.xlu1 %v3002_v8, %s3630_s25  ;;  %v4159_v46 = vsel %vm3745_vm8, %v1003_v29, %v1007_v49  ;;  %v205_v59 = vor.u32 %v203_v32, %v202_v13  ;;  %vm1023_vm9 = vcmask 1042432   ;;  %v209_v30 = vrot.slane %v207_v53, 7  ;;  %v3581_v24 = vld [vmem:[%s5340_s0 + $0x34] ss:$0 sps:$4 sm:$0xff]  }
  0x48   :  { %5457 = vst [vmem:[#allocation33_spill] sm:$0xff] %v4159_v46  ;;  %v1012_v22 = vrot.slane %v1010_v57, 4  ;;  %v1015_v14 = vrot.slane %v1013_v31, 5  ;;  %v1021_v0 = vrot.slane %v1019_v10, 5  ;;  %vm1024_vm10 = vcmask 1046532  }
  0x49   :  { %v410_v8 = vsel %vm3678_vm5, 0, %v205_v59  ;;  %v2899_v49 = vrot.slane %v3707_v37, 9  ;;  %vm4173_vm11 = vmor %vm1023_vm9, %vm1024_vm10  ;;  %v1032_v32 = vrot.slane %v3713_v39, 5  ;;  %v2900_v57 = vrot.slane %v3717_v40, 9  ;;  %v3579_v10 = vld [vmem:[%s5340_s0 + $0x2c] ss:$0 sps:$4 sm:$0xff]  }
  0x4a   :  { %v1016_v13 = vor.u32 %v1015_v14, %v1012_v22  ;;  %v4171_v54 = vsel %vm3684_vm6, %v410_v8, 0  ;;  %v212_v31 = vor.u32 %v210_v5, %v209_v30  ;;  %v1036_v14 = vrot.slane %v3721_v41, 5 }
  0x4b   :  { %5458 = vst [vmem:[#allocation34_spill] sm:$0xff] %v4171_v54  ;;  %v4181_v59 = vcombine.low %v4171_v54, %v4171_v54  ;;  %v4185_v37 = vcombine.high %v4171_v54, %v4171_v54  ;;  %v4193_v39 = vsel %vm4173_vm11, %v2899_v49, %v1032_v32  ;;  %v214_v40 = vshrl.u32 %v3578_v3, 16  ;;  %v5519_v29 = vld [vmem:[#allocation29_spill] sm:$0xff] }
  0x4c   :  { %v1017_v53 = vrot.slane %v1016_v13, 4  ;;  %v217_v5 = vshll.u32 %v3578_v3, 16  ;;  %v411_v22 = vsel %vm3678_vm5, 0, %v212_v31  ;;  %v1037_v3 = vsel %vm4173_vm11, %v2900_v57, %v1036_v14 }
  0x4d   :  { %v730_v30 = vshrl.u32 %v4181_v59, 16  ;;  %v733_v8 = vshll.u32 %v4181_v59, 16  ;;  %v739_v41 = vshll.u32 %v4185_v37, 16  ;;  %v4206_v13 = vsel %vm3684_vm6, %v411_v22, 0 }
  0x4e   :  { %v4202_v12 = vsel %vm3745_vm8, %v1017_v53, %v1021_v0  ;;  %5462 = vst [vmem:[#allocation36_spill] sm:$0xff] %v4206_v13  ;;  %v216_v49 = vrot.slane %v214_v40, 7  ;;  %v4214_v31 = vcombine.low %v4206_v13, %v4206_v13  ;;  %v2991_v18 = vcombine.low %v4171_v54, %v4206_v13 }
  0x4f   :  { %5461 = vst [vmem:[#allocation35_spill] sm:$0xff] %v4202_v12  ;;  %v2970_v32 = vcombine.low %v4159_v46, %v4202_v12  ;;  %v732_v0 = vrot.slane %v730_v30, 4  ;;  %v735_v53 = vrot.slane %v733_v8, 5  ;;  %v741_v16 = vrot.slane %v739_v41, 5 }
  0x50   :  { %v3019_v22 = vcombine.low %v4193_v39, %v1037_v3  ;;  %v219_v43 = vor.u32 %v217_v5, %v216_v49  ;;  %1396 = vrot.lane.b32.xlu0 %v2991_v18, %s3630_s25  ;;  %v221_v57 = vshrl.u32 %v3579_v10, 16  ;;  %v224_v14 = vshll.u32 %v3579_v10, 16 }
  0x51   :  { %1325 = vrot.lane.b32.xlu1 %v2970_v32, %s3630_s25  ;;  %v4223_v40 = vcombine.high %v4206_v13, %v4206_v13  ;;  %v744_v12 = vshrl.u32 %v4214_v31, 16  ;;  %v736_v46 = vor.u32 %v735_v53, %v732_v0  ;;  %v747_v8 = vshll.u32 %v4214_v31, 16 }
  0x52   :  { %v412_v30 = vsel %vm3678_vm5, 0, %v219_v43  ;;  %v2901_v5 = vrot.slane %v3786_v28, 9  ;;  %v223_v41 = vrot.slane %v221_v57, 7  ;;  %v3580_v28 = vld [vmem:[%s5340_s0 + $0x30] ss:$0 sps:$4 sm:$0xff]   ;;  %v1040_v57 = vrot.slane %v3799_v35, 5 }
  0x53   :  { %v4232_v18 = vsel %vm3684_vm6, %v412_v30, 0  ;;  %v746_v10 = vrot.slane %v744_v12, 4  ;;  %v753_v49 = vshll.u32 %v4223_v40, 16  ;;  %v737_v32 = vrot.slane %v736_v46, 4  ;;  %v5523_v50 = vld [vmem:[#allocation34_spill] sm:$0xff] }
  0x54   :  { %5463 = vst [vmem:[#allocation37_spill] sm:$0xff] %v4232_v18  ;;  %v4237_v13 = vcombine.low %v4232_v18, %v4232_v18  ;;  %v4241_v43 = vcombine.high %v4232_v18, %v4232_v18  ;;  %v749_v0 = vrot.slane %v747_v8, 5  ;;  %1460 = vrot.lane.b32.xlu0 %v3019_v22, %s3630_s25  ;;  %v226_v53 = vor.u32 %v224_v14, %v223_v41 }
  0x55   :  { %v755_v12 = vrot.slane %v753_v49, 5  ;;  %v2902_v46 = vrot.slane %v3864_v42, 9  ;;  %v4251_v30 = vsel %vm3745_vm8, %v737_v32, %v741_v16  ;;  %v1041_v16 = vsel %vm4173_vm11, %v2901_v5, %v1040_v57 }
  0x56   :  { %5464 = vst [vmem:[#allocation38_spill] sm:$0xff] %v4251_v30  ;;  %v750_v54 = vor.u32 %v749_v0, %v746_v10  ;;  %v758_v9 = vshrl.u32 %v4237_v13, 16  ;;  %v761_v8 = vshll.u32 %v4237_v13, 16  ;;  %v2959_v22 = vcombine.low %v3759_v61, %v4251_v30 }
  0x57   :  { %v413_v35 = vsel %vm3678_vm5, 0, %v226_v53  ;;  %v767_v42 = vshll.u32 %v4241_v43, 16  ;;  %v1044_v23 = vrot.slane %v3905_v1, 5  ;;  %v235_v2 = vshrl.u32 %v3581_v24, 16 }
  0x58   :  { %v4267_v14 = vsel %vm3684_vm6, %v413_v35, 0  ;;  %v751_v41 = vrot.slane %v750_v54, 4  ;;  %v760_v10 = vrot.slane %v758_v9, 4  ;;  %v763_v49 = vrot.slane %v761_v8, 5  ;;  %1303 = vrot.lane.b32.xlu1 %v2959_v22, %s3630_s25 }
  0x59   :  { %5465 = vst [vmem:[#allocation39_spill] sm:$0xff] %v4267_v14  ;;  %v4272_v32 = vcombine.low %v4267_v14, %v4267_v14  ;;  %v2992_v0 = vcombine.low %v4232_v18, %v4267_v14  ;;  %v769_v53 = vrot.slane %v767_v42, 5  ;;  %v4281_v54 = vcombine.low %v1037_v3, %v1041_v16 }
  0x5a   :  { %v4279_v5 = vsel %vm3745_vm8, %v751_v41, %v755_v12  ;;  %v764_v57 = vor.u32 %v763_v49, %v760_v10  ;;  %v228_v9 = vshrl.u32 %v3580_v28, 16  ;;  %v1045_v22 = vsel %vm4173_vm11, %v2902_v46, %v1044_v23 }
  0x5b   :  { %5466 = vst [vmem:[#allocation40_spill] sm:$0xff] %v4279_v5  ;;  %v231_v35 = vshll.u32 %v3580_v28, 16  ;;  %v3020_v42 = vcombine.low %v1041_v16, %v1045_v22  ;;  %v238_v1 = vshll.u32 %v3581_v24, 16  ;;  %v237_v12 = vrot.slane %v235_v2, 7 }
  0x5c   :  { %v765_v18 = vrot.slane %v764_v57, 4  ;;  %v230_v58 = vrot.slane %v228_v9, 7  ;;  %1398 = vrot.lane.b32.xlu1 %v2992_v0, %s3630_s25  ;;  %v4290_v3 = vcombine.high %v4267_v14, %v4267_v14  ;;  %v772_v41 = vshrl.u32 %v4272_v32, 16 }
  0x5d   :  { %v775_v10 = vshll.u32 %v4272_v32, 16  ;;  %v2903_v46 = vrot.slane %v3881_v55, 9  ;;  %v1048_v24 = vrot.slane %v3915_v21, 5  ;;  %v240_v16 = vor.u32 %v238_v1, %v237_v12  ;;  %v3582_v1 = vld [vmem:[%s5340_s0 + $0x38] ss:$0 sps:$4 sm:$0xff]  }
  0x5e   :  { %v4296_v23 = vsel %vm3745_vm8, %v765_v18, %v769_v53  ;;  %v233_v28 = vor.u32 %v231_v35, %v230_v58  ;;  %v774_v49 = vrot.slane %v772_v41, 4  ;;  %v781_v9 = vshll.u32 %v4290_v3, 16 }
  0x5f   :  { %5467 = vst [vmem:[#allocation41_spill] sm:$0xff] %v4296_v23  ;;  %v2960_v2 = vcombine.low %v4279_v5, %v4296_v23  ;;  %v777_v0 = vrot.slane %v775_v10, 5  ;;  %v1049_v18 = vsel %vm4173_vm11, %v2903_v46, %v1048_v24  ;;  %v2904_v58 = vrot.slane %v4004_v60, 9  ;;  %v3583_v24 = vld [vmem:[%s5340_s0 + $0x3c] ss:$0 sps:$4 sm:$0xff]  }
  0x60   :  { %v414_v57 = vsel %vm3678_vm5, 0, %v233_v28  ;;  %1462 = vrot.lane.b32.xlu1 %v3020_v42, %s3630_s25  ;;  %v415_v55 = vsel %vm3678_vm5, 0, %v240_v16  ;;  %v1052_v35 = vrot.slane %v4044_v4, 5  ;;  %v783_v41 = vrot.slane %v781_v9, 5 }
  0x61   :  { %1305 = vrot.lane.b32.xlu0 %v2960_v2, %s3630_s25  ;;  %v4314_v21 = vsel %vm3684_vm6, %v414_v57, 0  ;;  %v778_v53 = vor.u32 %v777_v0, %v774_v49  ;;  %v4322_v60 = vsel %vm3684_vm6, %v415_v55, 0  ;;  %v4348_v0 = vcombine.low %v1045_v22, %v1049_v18 }
  0x62   :  { %5468 = vst [vmem:[#allocation42_spill] sm:$0xff] %v4314_v21  ;;  %5469 = vst [vmem:[#allocation43_spill] sm:$0xff] %v4322_v60  ;;  %v4326_v42 = vcombine.low %v4314_v21, %v4314_v21  ;;  %v4330_v12 = vcombine.high %v4314_v21, %v4314_v21  ;;  %v4334_v4 = vcombine.low %v4322_v60, %v4322_v60  ;;  %v245_v55 = vshll.u32 %v3582_v1, 16 }
  0x63   :  { %v2993_v10 = vcombine.low %v4314_v21, %v4322_v60  ;;  %v779_v28 = vrot.slane %v778_v53, 4  ;;  %v4340_v46 = vsel %vm4173_vm11, %v2904_v58, %v1052_v35  ;;  %5470 = vst [vmem:[#allocation44_spill] sm:$0xff] %v4348_v0  ;;  %v242_v58 = vshrl.u32 %v3582_v1, 16 }
  0x64   :  { %v786_v2 = vshrl.u32 %v4326_v42, 16  ;;  %v789_v16 = vshll.u32 %v4326_v42, 16  ;;  %v795_v49 = vshll.u32 %v4330_v12, 16  ;;  %v3021_v9 = vcombine.low %v1049_v18, %v4340_v46 }
  0x65   :  { %1400 = vrot.lane.b32.xlu0 %v2993_v10, %s3630_s25  ;;  %v4353_v57 = vsel %vm3745_vm8, %v779_v28, %v783_v41  ;;  %v244_v30 = vrot.slane %v242_v58, 7  ;;  %v249_v14 = vshrl.u32 %v3583_v24, 16  ;;  %v252_v22 = vshll.u32 %v3583_v24, 16 }
  0x66   :  { %5471 = vst [vmem:[#allocation45_spill] sm:$0xff] %v4353_v57  ;;  %v788_v53 = vrot.slane %v786_v2, 4  ;;  %v791_v35 = vrot.slane %v789_v16, 5  ;;  %v797_v8 = vrot.slane %v795_v49, 5  ;;  %v2928_v10 = vcombine.high %v4025_v47, %v4025_v47 }
  0x67   :  { %v1163_v41 = vshrl.u32 %v4147_v56, 16  ;;  %v1166_v28 = vshll.u32 %v4147_v56, 16  ;;  %v4364_v18 = vcombine.high %v4322_v60, %v4322_v60  ;;  %v247_v1 = vor.u32 %v245_v55, %v244_v30 }
  0x68   :  { %v792_v21 = vor.u32 %v791_v35, %v788_v53  ;;  %v251_v2 = vrot.slane %v249_v14, 7  ;;  %v1172_v16 = vshll.u32 %v2928_v10, 16  ;;  %v800_v49 = vshrl.u32 %v4334_v4, 16 }
  0x69   :  { %1464 = vrot.lane.b32.xlu0 %v3021_v9, %s3630_s25  ;;  %v1165_v58 = vrot.slane %v1163_v41, 4  ;;  %v1168_v5 = vrot.slane %v1166_v28, 5  ;;  %v803_v53 = vshll.u32 %v4334_v4, 16  ;;  %v416_v23 = vsel %vm3678_vm5, 0, %v247_v1 }
  0x6a   :  { %v793_v24 = vrot.slane %v792_v21, 4  ;;  %v254_v35 = vor.u32 %v252_v22, %v251_v2  ;;  %v1174_v47 = vrot.slane %v1172_v16, 5  ;;  %v802_v63 = vrot.slane %v800_v49, 4 }
  0x6b   :  { %v4377_v30 = vsel %vm3684_vm6, %v416_v23, 0  ;;  %v1169_v14 = vor.u32 %v1168_v5, %v1165_v58  ;;  %v805_v21 = vrot.slane %v803_v53, 5  ;;  %v809_v28 = vshll.u32 %v4364_v18, 16 }
  0x6c   :  { %v4373_v60 = vsel %vm3745_vm8, %v793_v24, %v797_v8  ;;  %5473 = vst [vmem:[#allocation47_spill] sm:$0xff] %v4377_v30  ;;  %v417_v55 = vsel %vm3678_vm5, 0, %v254_v35  ;;  %v4385_v22 = vcombine.low %v4377_v30, %v4377_v30  ;;  %v4389_v8 = vcombine.high %v4377_v30, %v4377_v30 }
  0x6d   :  { %5472 = vst [vmem:[#allocation46_spill] sm:$0xff] %v4373_v60  ;;  %v2961_v9 = vcombine.low %v4353_v57, %v4373_v60  ;;  %v4393_v23 = vsel %vm3684_vm6, %v417_v55, 0  ;;  %v1170_v5 = vrot.slane %v1169_v14, 4  ;;  %v806_v41 = vor.u32 %v805_v21, %v802_v63  ;;  %v3584_v63 = vld [vmem:[%s5340_s0 + $0x40] ss:$0 sps:$4 sm:$0xff]  }
  0x6e   :  { %5474 = vst [vmem:[#allocation48_spill] sm:$0xff] %v4393_v23  ;;  %v2994_v1 = vcombine.low %v4377_v30, %v4393_v23  ;;  %v814_v2 = vshrl.u32 %v4385_v22, 16  ;;  %v817_v16 = vshll.u32 %v4385_v22, 16  ;;  %v811_v58 = vrot.slane %v809_v28, 5 }
  0x6f   :  { %1307 = vrot.lane.b32.xlu1 %v2961_v9, %s3630_s25  ;;  %v4403_v49 = vsel %vm3745_vm8, %v1170_v5, %v1174_v47  ;;  %v807_v24 = vrot.slane %v806_v41, 4  ;;  %v823_v53 = vshll.u32 %v4389_v8, 16  ;;  %v3585_v47 = vld [vmem:[%s5340_s0 + $0x44] ss:$0 sps:$4 sm:$0xff]   ;;  %v2935_v35 = vrot.slane %v4147_v56, 9 }
  0x70   :  { %5475 = vst [vmem:[#allocation49_spill] sm:$0xff] %v4403_v49  ;;  %v3039_v14 = vcombine.low %v4403_v49, %v3759_v61  ;;  %v816_v21 = vrot.slane %v814_v2, 4  ;;  %v819_v9 = vrot.slane %v817_v16, 5  ;;  %v2905_v2 = vrot.slane %v4016_v34, 9 }
  0x71   :  { %v4418_v55 = vsel %vm3745_vm8, %v807_v24, %v811_v58  ;;  %v825_v5 = vrot.slane %v823_v53, 5  ;;  %v1056_v16 = vrot.slane %v4055_v38, 5  ;;  %v1220_v57 = vrot.slane %v2928_v10, 5  ;;  %v3586_v53 = vld [vmem:[%s5340_s0 + $0x48] ss:$0 sps:$4 sm:$0xff]  }
  0x72   :  { %5476 = vst [vmem:[#allocation50_spill] sm:$0xff] %v4418_v55  ;;  %1500 = vrot.lane.b32.xlu0 %v3039_v14, %s3630_s25  ;;  %v820_v41 = vor.u32 %v819_v9, %v816_v21  ;;  %v256_v49 = vshrl.u32 %v3584_v63, 16  ;;  %v259_v58 = vshll.u32 %v3584_v63, 16  ;;  %v266_v56 = vshll.u32 %v3585_v47, 16  ;;  %v3587_v10 = vld [vmem:[%s5340_s0 + $0x4c] ss:$0 sps:$4 sm:$0xff]  }
  0x73   :  { %1402 = vrot.lane.b32.xlu1 %v2994_v1, %s3630_s25  ;;  %v1057_v24 = vsel %vm4173_vm11, %v2905_v2, %v1056_v16  ;;  %v263_v1 = vshrl.u32 %v3585_v47, 16  ;;  %v4434_v14 = vsel %vm4173_vm11, %v2935_v35, %v1220_v57  ;;  %v1064_v2 = vrot.slane %v4223_v40, 5 }
  0x74   :  { %v821_v62 = vrot.slane %v820_v41, 4  ;;  %5477 = vst [vmem:[#allocation51_spill] sm:$0xff] %v4434_v14  ;;  %v4437_v34 = vcombine.low %v4340_v46, %v1057_v24  ;;  %v258_v38 = vrot.slane %v256_v49, 7  ;;  %v3022_v21 = vcombine.low %v1057_v24, %v4434_v14 }
  0x75   :  { %v265_v9 = vrot.slane %v263_v1, 7  ;;  %v2906_v46 = vrot.slane %v4181_v59, 9  ;;  %v1060_v49 = vrot.slane %v4185_v37, 5  ;;  %v2907_v41 = vrot.slane %v4214_v31, 9 }
  0x76   :  { %5478 = vst [vmem:[#allocation52_spill] sm:$0xff] %v4437_v34  ;;  %v4444_v63 = vsel %vm3745_vm8, %v821_v62, %v825_v5  ;;  %v261_v35 = vor.u32 %v259_v58, %v258_v38  ;;  %1466 = vrot.lane.b32.xlu0 %v3022_v21, %s3630_s25  ;;  %v270_v62 = vshrl.u32 %v3586_v53, 16  ;;  %v277_v59 = vshrl.u32 %v3587_v10, 16 }
  0x77   :  { %v2962_v57 = vcombine.low %v4418_v55, %v4444_v63  ;;  %v268_v47 = vor.u32 %v266_v56, %v265_v9  ;;  %v4459_v16 = vsel %vm4173_vm11, %v2906_v46, %v1060_v49  ;;  %v4469_v31 = vsel %vm4173_vm11, %v2907_v41, %v1064_v2 }
  0x78   :  { %v418_v5 = vsel %vm3678_vm5, 0, %v261_v35  ;;  %5479 = vst [vmem:[#allocation53_spill] sm:$0xff] %v4459_v16  ;;  %5481 = vst [vmem:[#allocation55_spill] sm:$0xff] %v4469_v31  ;;  %v273_v40 = vshll.u32 %v3586_v53, 16  ;;  %v3023_v56 = vcombine.low %v4459_v16, %v4469_v31  ;;  %v272_v9 = vrot.slane %v270_v62, 7 }
  0x79   :  { %1309 = vrot.lane.b32.xlu1 %v2962_v57, %s3630_s25  ;;  %v419_v37 = vsel %vm3678_vm5, 0, %v268_v47  ;;  %v4465_v24 = vsel %vm3684_vm6, %v418_v5, 0  ;;  %v279_v57 = vrot.slane %v277_v59, 7  ;;  %v280_v47 = vshll.u32 %v3587_v10, 16 }
  0x7a   :  { %5480 = vst [vmem:[#allocation54_spill] sm:$0xff] %v4465_v24  ;;  %v4473_v58 = vsel %vm3684_vm6, %v419_v37, 0  ;;  %v4477_v1 = vcombine.low %v4465_v24, %v4465_v24  ;;  %v4481_v38 = vcombine.high %v4465_v24, %v4465_v24  ;;  %v275_v41 = vor.u32 %v273_v40, %v272_v9 }
  0x7b   :  { %5482 = vst [vmem:[#allocation56_spill] sm:$0xff] %v4473_v58  ;;  %v4487_v21 = vcombine.low %v4473_v58, %v4473_v58  ;;  %v2995_v53 = vcombine.low %v4465_v24, %v4473_v58  ;;  %v4497_v2 = vcombine.high %v4473_v58, %v4473_v58  ;;  %v4503_v62 = vcombine.low %v4393_v23, %v4393_v23 }
  0x7c   :  { %v828_v35 = vshrl.u32 %v4477_v1, 16  ;;  %v831_v46 = vshll.u32 %v4477_v1, 16  ;;  %v837_v49 = vshll.u32 %v4481_v38, 16  ;;  %v282_v14 = vor.u32 %v280_v47, %v279_v57 }
  0x7d   :  { %1404 = vrot.lane.b32.xlu1 %v2995_v53, %s3630_s25  ;;  %v842_v5 = vshrl.u32 %v4487_v21, 16  ;;  %v845_v37 = vshll.u32 %v4487_v21, 16  ;;  %v420_v10 = vsel %vm3678_vm5, 0, %v275_v41  ;;  %v851_v9 = vshll.u32 %v4497_v2, 16 }
  0x7e   :  { %v830_v59 = vrot.slane %v828_v35, 4  ;;  %v833_v28 = vrot.slane %v831_v46, 5  ;;  %v839_v60 = vrot.slane %v837_v49, 5  ;;  %v421_v58 = vsel %vm3678_vm5, 0, %v282_v14 }
  0x7f   :  { %v844_v53 = vrot.slane %v842_v5, 4  ;;  %v847_v40 = vrot.slane %v845_v37, 5  ;;  %v4512_v24 = vsel %vm3684_vm6, %v420_v10, 0  ;;  %v4517_v57 = vsel %vm3684_vm6, %v421_v58, 0 }
  0x80   :  { %v834_v55 = vor.u32 %v833_v28, %v830_v59  ;;  %5483 = vst [vmem:[#allocation57_spill] sm:$0xff] %v4512_v24  ;;  %5484 = vst [vmem:[#allocation58_spill] sm:$0xff] %v4517_v57  ;;  %v4521_v35 = vcombine.low %v4512_v24, %v4512_v24  ;;  %v4525_v28 = vcombine.high %v4512_v24, %v4512_v24  ;;  %v853_v47 = vrot.slane %v851_v9, 5  ;;  %v3588_v59 = vld [vmem:[%s5340_s0 + $0x50] ss:$0 sps:$4 sm:$0xff]  }
  0x81   :  { %1468 = vrot.lane.b32.xlu1 %v3023_v56, %s3630_s25  ;;  %v848_v46 = vor.u32 %v847_v40, %v844_v53  ;;  %v4529_v49 = vcombine.low %v4517_v57, %v4517_v57  ;;  %v2908_v56 = vrot.slane %v4237_v13, 9  ;;  %v1068_v10 = vrot.slane %v4241_v43, 5  ;;  %v3589_v40 = vld [vmem:[%s5340_s0 + $0x54] ss:$0 sps:$4 sm:$0xff]  }
  0x82   :  { %v835_v14 = vrot.slane %v834_v55, 4  ;;  %v856_v58 = vshrl.u32 %v4521_v35, 16  ;;  %v859_v5 = vshll.u32 %v4521_v35, 16  ;;  %v865_v37 = vshll.u32 %v4525_v28, 16 }
  0x83   :  { %v849_v41 = vrot.slane %v848_v46, 4  ;;  %v2909_v53 = vrot.slane %v4272_v32, 9  ;;  %v1072_v13 = vrot.slane %v4290_v3, 5  ;;  %v2996_v43 = vcombine.low %v4512_v24, %v4517_v57 }
  0x84   :  { %v4540_v55 = vsel %vm3745_vm8, %v835_v14, %v839_v60  ;;  %v858_v30 = vrot.slane %v856_v58, 4  ;;  %v861_v60 = vrot.slane %v859_v5, 5  ;;  %v4560_v3 = vsel %vm4173_vm11, %v2908_v56, %v1068_v10 }
  0x85   :  { %5485 = vst [vmem:[#allocation59_spill] sm:$0xff] %v4540_v55  ;;  %v2963_v9 = vcombine.low %v3759_v61, %v4540_v55  ;;  %v4552_v46 = vsel %vm3745_vm8, %v849_v41, %v853_v47  ;;  %5487 = vst [vmem:[#allocation61_spill] sm:$0xff] %v4560_v3  ;;  %v4564_v14 = vsel %vm4173_vm11, %v2909_v53, %v1072_v13  ;;  %v3591_v47 = vld [vmem:[%s5340_s0 + $0x58] ss:$0 sps:$4 sm:$0xff]   ;;  %v867_v58 = vrot.slane %v865_v37, 5 }
  0x86   :  { %5486 = vst [vmem:[#allocation60_spill] sm:$0xff] %v4552_v46  ;;  %5488 = vst [vmem:[#allocation62_spill] sm:$0xff] %v4564_v14  ;;  %v862_v41 = vor.u32 %v861_v60, %v858_v30  ;;  %v3024_v5 = vcombine.low %v4560_v3, %v4564_v14  ;;  %v284_v32 = vshrl.u32 %v3588_v59, 16  ;;  %v287_v55 = vshll.u32 %v3588_v59, 16  ;;  %v3592_v30 = vld [vmem:[%s5340_s0 + $0x5c] ss:$0 sps:$4 sm:$0xff]  }
  0x87   :  { %1311 = vrot.lane.b32.xlu0 %v2963_v9, %s3630_s25  ;;  %v291_v24 = vshrl.u32 %v3589_v40, 16  ;;  %v294_v56 = vshll.u32 %v3589_v40, 16  ;;  %v4574_v10 = vcombine.high %v4517_v57, %v4517_v57  ;;  %v870_v31 = vshrl.u32 %v4529_v49, 16 }
  0x88   :  { %v863_v53 = vrot.slane %v862_v41, 4  ;;  %v286_v13 = vrot.slane %v284_v32, 7  ;;  %v873_v16 = vshll.u32 %v4529_v49, 16  ;;  %v298_v59 = vshrl.u32 %v3591_v47, 16 }
  0x89   :  { %v293_v37 = vrot.slane %v291_v24, 7  ;;  %v879_v9 = vshll.u32 %v4574_v10, 16  ;;  %v301_v60 = vshll.u32 %v3591_v47, 16  ;;  %v872_v41 = vrot.slane %v870_v31, 4  ;;  %v4669_v20 = vpop.permute.xlu1 %1295 }
  0x8a   :  { %v4585_v40 = vsel %vm3745_vm8, %v863_v53, %v867_v58  ;;  %v289_v32 = vor.u32 %v287_v55, %v286_v13  ;;  %v875_v14 = vrot.slane %v873_v16, 5  ;;  %v300_v24 = vrot.slane %v298_v59, 7 }
  0x8b   :  { %1406 = vrot.lane.b32.xlu0 %v2996_v43, %s3630_s25  ;;  %5489 = vst [vmem:[#allocation63_spill] sm:$0xff] %v4585_v40  ;;  %v2964_v57 = vcombine.low %v4552_v46, %v4585_v40  ;;  %v296_v34 = vor.u32 %v294_v56, %v293_v37  ;;  %v881_v0 = vrot.slane %v879_v9, 5  ;;  %v305_v43 = vshrl.u32 %v3592_v30, 16 }
  0x8c   :  { %v422_v52 = vsel %vm3678_vm5, 0, %v289_v32  ;;  %v876_v47 = vor.u32 %v875_v14, %v872_v41  ;;  %v303_v31 = vor.u32 %v301_v60, %v300_v24  ;;  %v308_v58 = vshll.u32 %v3592_v30, 16 }
  0x8d   :  { %1313 = vrot.lane.b32.xlu1 %v2964_v57, %s3630_s25  ;;  %v423_v55 = vsel %vm3678_vm5, 0, %v296_v34  ;;  %v4597_v16 = vsel %vm3684_vm6, %v422_v52, 0  ;;  %v307_v53 = vrot.slane %v305_v43, 7  ;;  %v2910_v13 = vrot.slane %v4326_v42, 9 }
  0x8e   :  { %5490 = vst [vmem:[#allocation64_spill] sm:$0xff] %v4597_v16  ;;  %v4602_v56 = vsel %vm3684_vm6, %v423_v55, 0  ;;  %v4606_v14 = vcombine.low %v4597_v16, %v4597_v16  ;;  %v4610_v57 = vcombine.high %v4597_v16, %v4597_v16  ;;  %v877_v34 = vrot.slane %v876_v47, 4  ;;  %v4640_v55 = vpop.permute.xlu0 %1388 }
  0x8f   :  { %1470 = vrot.lane.b32.xlu0 %v3024_v5, %s3630_s25  ;;  %5491 = vst [vmem:[#allocation65_spill] sm:$0xff] %v4602_v56  ;;  %v2997_v52 = vcombine.low %v4597_v16, %v4602_v56  ;;  %v424_v5 = vsel %vm3678_vm5, 0, %v303_v31  ;;  %v310_v32 = vor.u32 %v308_v58, %v307_v53  ;;  %v1076_v42 = vrot.slane %v4330_v12, 5 }
  0x90   :  { %v4619_v30 = vsel %vm3745_vm8, %v877_v34, %v881_v0  ;;  %v884_v37 = vshrl.u32 %v4606_v14, 16  ;;  %v887_v9 = vshll.u32 %v4606_v14, 16  ;;  %v893_v59 = vshll.u32 %v4610_v57, 16  ;;  %v4695_v16 = vpop.permute.xlu1 %1319 }
  0x91   :  { %5492 = vst [vmem:[#allocation66_spill] sm:$0xff] %v4619_v30  ;;  %1408 = vrot.lane.b32.xlu1 %v2997_v52, %s3630_s25  ;;  %v4629_v41 = vsel %vm3684_vm6, %v424_v5, 0  ;;  %v4634_v0 = vcombine.low %v4602_v56, %v4602_v56  ;;  %v425_v31 = vsel %vm3678_vm5, 0, %v310_v32  ;;  %v4646_v58 = vsel %vm4173_vm11, %v2910_v13, %v1076_v42 }
  0x92   :  { %5493 = vst [vmem:[#allocation67_spill] sm:$0xff] %v4629_v41  ;;  %v886_v24 = vrot.slane %v884_v37, 4  ;;  %v889_v47 = vrot.slane %v887_v9, 5  ;;  %v4638_v43 = vcombine.low %v4629_v41, %v4629_v41  ;;  %5494 = vst [vmem:[#allocation68_spill] sm:$0xff] %v4646_v58  ;;  %v2911_v12 = vrot.slane %v4334_v4, 9  ;;  %v4686_v3 = vpop.permute.xlu0 %1412 }
  0x93   :  { %v1080_v34 = vrot.slane %v4364_v18, 5  ;;  %v895_v53 = vrot.slane %v893_v59, 5  ;;  %v4652_v5 = vsel %vm3684_vm6, %v425_v31, 0  ;;  %v4656_v37 = vcombine.high %v4602_v56, %v4602_v56 }
  0x94   :  { %v890_v52 = vor.u32 %v889_v47, %v886_v24  ;;  %v1028_v15 = vrot.slane %v3671_v7, 5  ;;  %v2998_v13 = vcombine.low %v4629_v41, %v4652_v5  ;;  %v4667_v18 = vcombine.high %v4629_v41, %v4629_v41 }
  0x95   :  { %v4663_v4 = vsel %vm4173_vm11, %v2911_v12, %v1080_v34  ;;  %v898_v32 = vshrl.u32 %v4634_v0, 16  ;;  %v901_v7 = vshll.u32 %v4634_v0, 16  ;;  %v907_v42 = vshll.u32 %v4656_v37, 16 }
  0x96   :  { %5495 = vst [vmem:[#allocation69_spill] sm:$0xff] %v4663_v4  ;;  %v891_v9 = vrot.slane %v890_v52, 4  ;;  %v3025_v59 = vcombine.low %v4646_v58, %v4663_v4  ;;  %v912_v24 = vshrl.u32 %v4638_v43, 16  ;;  %v915_v47 = vshll.u32 %v4638_v43, 16 }
  0x97   :  { %v921_v31 = vshll.u32 %v4667_v18, 16  ;;  %v900_v34 = vrot.slane %v898_v32, 4  ;;  %v903_v52 = vrot.slane %v901_v7, 5  ;;  %v2930_v60 = vcombine.high %v4393_v23, %v4393_v23 }
  0x98   :  { %v4681_v12 = vsel %vm3745_vm8, %v891_v9, %v895_v53  ;;  %1472 = vrot.lane.b32.xlu1 %v3025_v59, %s3630_s25  ;;  %v909_v46 = vrot.slane %v907_v42, 5  ;;  %v914_v4 = vrot.slane %v912_v24, 4  ;;  %v917_v58 = vrot.slane %v915_v47, 5 }
  0x99   :  { %v2965_v40 = vcombine.low %v4619_v30, %v4681_v12  ;;  %v904_v56 = vor.u32 %v903_v52, %v900_v34  ;;  %v923_v41 = vrot.slane %v921_v31, 5  ;;  %v1177_v53 = vshrl.u32 %v4503_v62, 16 }
  0x9a   :  { %v1180_v9 = vshll.u32 %v4503_v62, 16  ;;  %v918_v59 = vor.u32 %v917_v58, %v914_v4  ;;  %v1186_v32 = vshll.u32 %v2930_v60, 16  ;;  %v2912_v7 = vrot.slane %v4385_v22, 9  ;;  %v4707_v58 = vpop.permute.xlu0 %1390 }
  0x9b   :  { %1315 = vrot.lane.b32.xlu0 %v2965_v40, %s3630_s25  ;;  %v1084_v23 = vrot.slane %v4389_v8, 5  ;;  %v905_v30 = vrot.slane %v904_v56, 4  ;;  %v1179_v42 = vrot.slane %v1177_v53, 4  ;;  %v2936_v47 = vrot.slane %v4503_v62, 9 }
  0x9c   :  { %v1182_v24 = vrot.slane %v1180_v9, 5  ;;  %v919_v31 = vrot.slane %v918_v59, 4  ;;  %v1188_v34 = vrot.slane %v1186_v32, 5  ;;  %v1224_v52 = vrot.slane %v2930_v60, 5 }
  0x9d   :  { %v4700_v45 = vsel %vm3745_vm8, %v905_v30, %v909_v46  ;;  %v4704_v22 = vsel %vm4173_vm11, %v2912_v7, %v1084_v23  ;;  %v2913_v8 = vrot.slane %v4477_v1, 9  ;;  %v1088_v23 = vrot.slane %v4481_v38, 5 }
  0x9e   :  { %v1183_v40 = vor.u32 %v1182_v24, %v1179_v42  ;;  %v4712_v62 = vsel %vm3745_vm8, %v919_v31, %v923_v41  ;;  %v3013_v56 = vcombine.low %v4681_v12, %v4700_v45  ;;  %v4718_v46 = vsel %vm4173_vm11, %v2936_v47, %v1224_v52  ;;  %v4763_v47 = vpop.permute.xlu0 %1297  ;;  %v5568_v12 = vld [vmem:[#allocation6_spill] sm:$0xff] }
  0x9f   :  { %1410 = vrot.lane.b32.xlu0 %v2998_v13, %s3630_s25  ;;  %v5496_v30 = vrot.slane %v3667_v6, 9  ;;  %v4729_v60 = vcombine.low %v4652_v5, %v4652_v5  ;;  %v2966_v41 = vcombine.low %v4700_v45, %v4712_v62  ;;  %v4735_v4 = vsel %vm4173_vm11, %v2913_v8, %v1088_v23 }
  0xa0   :  { %v1184_v13 = vrot.slane %v1183_v40, 4  ;;  %v2914_v38 = vrot.slane %v4487_v21, 9  ;;  %v1092_v6 = vrot.slane %v4497_v2, 5  ;;  %v2915_v53 = vrot.slane %v4521_v35, 9 }
  0xa1   :  { %v4725_v1 = vsel %vm4173_vm11, %v5496_v30, %v1028_v15  ;;  %v4740_v15 = vpop.permute.xlu1 %1414  ;;  %v3026_v59 = vcombine.low %v4704_v22, %v4718_v46  ;;  %v1096_v32 = vrot.slane %v4525_v28, 5  ;;  %v2916_v7 = vrot.slane %v4529_v49, 9 }
  0xa2   :  { %v4744_v9 = vsel %vm3745_vm8, %v1184_v13, %v1188_v34  ;;  %v1093_v35 = vsel %vm4173_vm11, %v2914_v38, %v1092_v6  ;;  %v1100_v42 = vrot.slane %v4574_v10, 5  ;;  %v2971_v49 = vcombine.low %v4725_v1, %v4193_v39 }
  0xa3   :  { %1317 = vrot.lane.b32.xlu0 %v2966_v41, %s3630_s25  ;;  %v3010_v21 = vcombine.low %v4444_v63, %v4744_v9  ;;  %v3040_v2 = vcombine.low %v4744_v9, %v3759_v61  ;;  %v3027_v24 = vcombine.low %v4735_v4, %v1093_v35  ;;  %v1097_v28 = vsel %vm4173_vm11, %v2915_v53, %v1096_v32  ;;  %v5565_v9 = vld [vmem:[#allocation63_spill] sm:$0xff] }
  0xa4   :  { %vm1512_vm12 = vcmask 523264   ;;  %v1101_v31 = vsel %vm4173_vm11, %v2916_v7, %v1100_v42  ;;  %v4768_v34 = vcombine.low %v1093_v35, %v1097_v28  ;;  %v2917_v10 = vrot.slane %v4606_v14, 9  ;;  %v1393_v35 = vpop.permute.xlu0 %1392  ;;  %v3628_v42 = vld [vmem:[%s5341_s1 + $0x100] sm:$0xff]  }
  0xa5   :  { %1502 = vrot.lane.b32.xlu1 %v3040_v2, %s3630_s25  ;;  %v1104_v52 = vrot.slane %v4610_v57, 5  ;;  %v3028_v40 = vcombine.low %v1097_v28, %v1101_v31  ;;  %v1579_v8 = vsel %vm1512_vm12, %v2971_v49, %v4640_v55  ;;  %v2918_v39 = vrot.slane %v4634_v0, 9  ;;  %v1322_v38 = vpop.permute.xlu1 %1321 }
  0xa6   :  { %v1108_v23 = vrot.slane %v4656_v37, 5  ;;  %2077 = vmatprep.mubr.bf16.mxu0 %v1579_v8  ;;  %v5497_v41 = vmov 0   ;;  %v2920_v14 = vrot.slane %v3739_v48, 9  ;;  %v1116_v57 = vrot.slane %v3767_v11, 5  ;;  %v3611_v8 = vld [vmem:[%s5341_s1 + $0xc8] sm:$0xff]  }
  0xa7   :  { %1476 = vrot.lane.b32.xlu0 %v3027_v24, %s3630_s25  ;;  %v1105_v30 = vsel %vm4173_vm11, %v2917_v10, %v1104_v52  ;;  %v2939_v13 = vcombine.low %v5497_v41, %v3699_v33  ;;  %v2951_v37 = vcombine.low %v5497_v41, %v3729_v44  ;;  %v2932_v6 = vcombine.high %v4652_v5, %v4652_v5  ;;  %v3622_v33 = vld [vmem:[%s5341_s1 + $0x108] sm:$0xff]  }
  0xa8   :  { %v1109_v55 = vsel %vm4173_vm11, %v2918_v39, %v1108_v23  ;;  %v4785_v0 = vcombine.low %v1101_v31, %v1105_v30  ;;  %v4799_v53 = vsel %vm4173_vm11, %v2920_v14, %v1116_v57  ;;  %v1191_v32 = vshrl.u32 %v4729_v60, 16 }
  0xa9   :  { %1474 = vrot.lane.b32.xlu1 %v3026_v59, %s3630_s25  ;;  %v3029_v48 = vcombine.low %v1105_v30, %v1109_v55  ;;  %v1515_v11 = vsel %vm1512_vm12, %v2939_v13, %v4669_v20  ;;  %v2983_v44 = vcombine.low %v4725_v1, %v4799_v53  ;;  %v1563_v7 = vsel %vm1512_vm12, %v2951_v37, %v4695_v16  ;;  %v3610_v20 = vld [vmem:[%s5341_s1 + $0x80] sm:$0xff]   ;;  %v4834_v30 = vpop.permute.xlu1 %1416 }
  0xaa   :  { %2078 = vmatmul.mubr.bf16.vlgmr.msra.gmra.mrb[0].mxu0 %v1515_v11  ;;  %v1194_v2 = vshll.u32 %v4729_v60, 16  ;;  %v1200_v59 = vshll.u32 %v2932_v6, 16  ;;  %v1193_v24 = vrot.slane %v1191_v32, 4  ;;  %v1583_v16 = vsel %vm1512_vm12, %v4281_v54, %v4707_v58  ;;  %v3626_v58 = vld [vmem:[%s5341_s1 + $0x110] sm:$0xff]  }
  0xab   :  { %1480 = vrot.lane.b32.xlu0 %v3029_v48, %s3630_s25  ;;  %3503 = vmatpush3.bf16.msra.mxu0 %v3628_v42  ;;  %v2919_v28 = vrot.slane %v4638_v43, 9  ;;  %v1112_v49 = vrot.slane %v4667_v18, 5  ;;  %v1627_v31 = vsel %vm1512_vm12, %v2983_v44, %v4686_v3  ;;  %v2937_v39 = vrot.slane %v4729_v60, 9 }
  0xac   :  { %v1196_v10 = vrot.slane %v1194_v2, 5  ;;  %v1202_v52 = vrot.slane %v1200_v59, 5  ;;  %2085 = vmatprep.mubr.bf16.mxu0 %v1583_v16  ;;  %3504 = vmatprep.subr.bf16.mxu0 %v3622_v33  ;;  %v1228_v43 = vrot.slane %v2932_v6, 5  ;;  %v2940_v18 = vcombine.low %v3703_v36, %v3780_v26  ;;  %v5501_v2 = vld [vmem:[#allocation5_spill] sm:$0xff]  ;;  %v3614_v16 = vld [vmem:[%s5341_s1 + $0x90] sm:$0xff]  }
  0xad   :  { %1478 = vrot.lane.b32.xlu1 %v3028_v40, %s3630_s25  ;;  %2173 = vmatprep.mubr.bf16.mxu1 %v1627_v31  ;;  %v1113_v3 = vsel %vm4173_vm11, %v2919_v28, %v1112_v49  ;;  %v2921_v23 = vrot.slane %v3814_v51, 9  ;;  %v1120_v14 = vrot.slane %v3834_v17, 5  ;;  %v2922_v40 = vrot.slane %v3845_v25, 9  ;;  %v3612_v51 = vld [vmem:[%s5341_s1 + $0x88] sm:$0xff]   ;;  %v5504_v31 = vld [vmem:[#allocation18_spill] sm:$0xff] }
  0xae   :  { %2174 = vmatmul.mubr.bf16.vlgmr.msra.gmra.mrb[0].mxu1 %v1563_v7  ;;  %v1197_v60 = vor.u32 %v1196_v10, %v1193_v24  ;;  %v4836_v13 = vcombine.low %v1109_v55, %v1113_v3  ;;  %v4842_v57 = vsel %vm4173_vm11, %v2937_v39, %v1228_v43  ;;  %v4846_v36 = vsel %vm1512_vm12, %v2940_v18, %v4763_v47  ;;  %v5498_v55 = vld [vmem:[#allocation2_spill] sm:$0xff]  ;;  %v3613_v47 = vld [vmem:[%s5341_s1 + $0xd0] sm:$0xff]   ;;  %v5500_v7 = vld [vmem:[#allocation9_spill] sm:$0xff] }
  0xaf   :  { %3371 = vmatpush3.bf16.msra.mxu1 %v3610_v20  ;;  %v1124_v26 = vrot.slane %v3849_v27, 5  ;;  %v2952_v17 = vcombine.low %v5498_v55, %v3839_v19  ;;  %3505 = vmatpush3.bf16.msra.mxu0 %v3622_v33  ;;  %v3030_v37 = vcombine.low %v1113_v3, %v4842_v57  ;;  %v1121_v6 = vsel %vm4173_vm11, %v2921_v23, %v1120_v14  ;;  %v1300_v27 = vpop.permute.xlu0 %1299  ;;  %v5499_v19 = vld [vmem:[#allocation44_spill] sm:$0xff]  ;;  %v5502_v20 = vld [vmem:[#allocation11_spill] sm:$0xff]  ;;  %v3615_v43 = vld [vmem:[%s5341_s1 + $0xd8] sm:$0xff]  }
  0xb0   :  { %v1198_v25 = vrot.slane %v1197_v60, 4  ;;  %3372 = vmatprep.subr.bf16.mxu1 %v3611_v8  ;;  %3506 = vmatprep.subr.bf16.mxu0 %v3626_v58  ;;  %v1587_v33 = vsel %vm1512_vm12, %v5499_v19, %v1393_v35  ;;  %v2941_v59 = vcombine.low %v5501_v2, %v5500_v7  ;;  %v2923_v42 = vrot.slane %v5502_v20, 9  ;;  %v5503_v28 = vld [vmem:[#allocation15_spill] sm:$0xff]  ;;  %v5505_v8 = vld [vmem:[#allocation30_spill] sm:$0xff]  ;;  %v5512_v2 = vld [vmem:[#allocation32_spill] sm:$0xff] }
  0xb1   :  { %v1125_v48 = vsel %vm4173_vm11, %v2922_v40, %v1124_v26  ;;  %v4863_v11 = vsel %vm1512_vm12, %v2952_v17, %v1322_v38  ;;  %1482 = vrot.lane.b32.xlu0 %v3030_v37, %s3630_s25  ;;  %v4881_v38 = vld [vmem:[%s5341_s1 + $0x118] sm:$0xff]   ;;  %v1128_v49 = vrot.slane %v5503_v28, 5  ;;  %v2924_v10 = vrot.slane %v5504_v31, 9  ;;  %v5506_v18 = vld [vmem:[#allocation19_spill] sm:$0xff]  ;;  %v5508_v17 = vld [vmem:[#allocation26_spill] sm:$0xff] }
  0xb2   :  { %v4869_v32 = vsel %vm3745_vm8, %v1198_v25, %v1202_v52  ;;  %2086 = vmatmul.mubr.bf16.gmra.mrb[4].mxu0 %v4846_v36  ;;  %v4873_v44 = vcombine.low %v1121_v6, %v1125_v48  ;;  %v1324_v52 = vpop.permute.xlu1 %1323  ;;  %v2933_v39 = vcombine.low %v5505_v8, %v5505_v8  ;;  %v1132_v23 = vrot.slane %v5506_v18, 5  ;;  %v5507_v40 = vld [vmem:[#allocation23_spill] sm:$0xff]  ;;  %v3616_v37 = vld [vmem:[%s5341_s1 + $0x98] sm:$0xff]   ;;  %v5513_v20 = vld [vmem:[#allocation52_spill] sm:$0xff] }
  0xb3   :  { %v3014_v35 = vcombine.low %v4712_v62, %v4869_v32  ;;  %v3041_v24 = vcombine.low %v4869_v32, %v3759_v61  ;;  %3373 = vmatpush3.bf16.msra.mxu1 %v3612_v51  ;;  %2093 = vmatprep.mubr.bf16.mxu0 %v1587_v33  ;;  %v3031_v60 = vcombine.low %v4799_v53, %v1121_v6  ;;  %v2925_v26 = vrot.slane %v5507_v40, 9  ;;  %v1395_v55 = vpop.permute.xlu0 %1394  ;;  %v5509_v6 = vld [vmem:[#allocation17_spill] sm:$0xff]  ;;  %v5511_v33 = vld [vmem:[#allocation31_spill] sm:$0xff]  ;;  %v5572_v32 = vld [vmem:[#allocation24_spill] sm:$0xff] }
  0xb4   :  { %v1631_v3 = vsel %vm1512_vm12, %v4873_v44, %v4740_v15  ;;  %3374 = vmatprep.subr.bf16.mxu1 %v3613_v47  ;;  %3507 = vmatpush3.bf16.msra.mxu0 %v3626_v58  ;;  %v1129_v14 = vsel %vm4173_vm11, %v2923_v42, %v1128_v49  ;;  %v4908_v15 = vsel %vm1512_vm12, %v2941_v59, %v1300_v27  ;;  %v1136_v25 = vrot.slane %v5508_v17, 5  ;;  %v5510_v47 = vld [vmem:[#allocation8_spill] sm:$0xff]  ;;  %v5514_v40 = vld [vmem:[#allocation21_spill] sm:$0xff] }
  0xb5   :  { %1504 = vrot.lane.b32.xlu1 %v3041_v24, %s3630_s25  ;;  %2181 = vmatprep.mubr.bf16.mxu1 %v1631_v3  ;;  %v1133_v51 = vsel %vm4173_vm11, %v2924_v10, %v1132_v23  ;;  %v3032_v58 = vcombine.low %v1125_v48, %v1129_v14  ;;  %v2953_v27 = vcombine.low %v5510_v47, %v5509_v6  ;;  %v2926_v7 = vrot.slane %v5511_v33, 9  ;;  %v3617_v48 = vld [vmem:[%s5341_s1 + $0xe0] sm:$0xff]  }
  0xb6   :  { %2182 = vmatmul.mubr.bf16.gmra.mrb[4].mxu1 %v4863_v11  ;;  %3508 = vmatprep.subr.bf16.mxu0 %v4881_v38  ;;  %v4914_v53 = vcombine.low %v1129_v14, %v1133_v51  ;;  %v1140_v59 = vrot.slane %v5512_v2, 5  ;;  %v1591_v42 = vsel %vm1512_vm12, %v5513_v20, %v1395_v55  ;;  %v1137_v24 = vsel %vm4173_vm11, %v2925_v26, %v1136_v25  ;;  %v5515_v26 = vld [vmem:[#allocation10_spill] sm:$0xff]  ;;  %v5517_v2 = vld [vmem:[#allocation64_spill] sm:$0xff] }
  0xb7   :  { %3375 = vmatpush3.bf16.msra.mxu1 %v3614_v16  ;;  %1486 = vrot.lane.b32.xlu0 %v3032_v58, %s3630_s25  ;;  %v1205_v16 = vshrl.u32 %v2933_v39, 16  ;;  %v3033_v10 = vcombine.low %v1133_v51, %v1137_v24  ;;  %v2934_v3 = vcombine.high %v5505_v8, %v5505_v8  ;;  %v1208_v23 = vshll.u32 %v2933_v39, 16  ;;  %v1302_v17 = vpop.permute.xlu0 %1301 }
  0xb8   :  { %3376 = vmatprep.subr.bf16.mxu1 %v3615_v43  ;;  %v1635_v28 = vsel %vm1512_vm12, %v4914_v53, %v4834_v30  ;;  %v1141_v31 = vsel %vm4173_vm11, %v2926_v7, %v1140_v59  ;;  %v4943_v14 = vsel %vm1512_vm12, %v2953_v27, %v1324_v52  ;;  %v3618_v30 = vld [vmem:[%s5341_s1 + $0xa0] sm:$0xff]   ;;  %v2942_v51 = vcombine.low %v5515_v26, %v5514_v40  ;;  %v3623_v26 = vld [vmem:[%s5341_s1 + $0xb0] sm:$0xff]  }
  0xb9   :  { %1484 = vrot.lane.b32.xlu1 %v3031_v60, %s3630_s25  ;;  %v1419_v49 = vpop.permute.xlu1 %1418  ;;  %2189 = vmatprep.mubr.bf16.mxu1 %v1635_v28  ;;  %v4940_v43 = vcombine.low %v1137_v24, %v1141_v31  ;;  %v1207_v18 = vrot.slane %v1205_v16, 4  ;;  %v2938_v60 = vrot.slane %v2933_v39, 9  ;;  %v1214_v55 = vshll.u32 %v2934_v3, 16  ;;  %v3619_v39 = vld [vmem:[%s5341_s1 + $0xe8] sm:$0xff]   ;;  %v5518_v59 = vld [vmem:[#allocation58_spill] sm:$0xff]  ;;  %v5520_v24 = vld [vmem:[#allocation20_spill] sm:$0xff] }
  0xba   :  { %2094 = vmatmul.mubr.bf16.gmra.mrb[8].mxu0 %v4908_v15  ;;  %v1232_v58 = vrot.slane %v2934_v3, 5  ;;  %v1210_v25 = vrot.slane %v1208_v23, 5  ;;  %v2954_v16 = vcombine.low %v5520_v24, %v5519_v29  ;;  %v5521_v28 = vld [vmem:[#allocation67_spill] sm:$0xff]  ;;  %v5529_v24 = vld [vmem:[#allocation37_spill] sm:$0xff]  ;;  %v3045_v62 = vcombine.low %v4842_v57, %v4725_v1 }
  0xbb   :  { %3377 = vmatpush3.bf16.msra.mxu1 %v3616_v37  ;;  %2101 = vmatprep.mubr.bf16.mxu0 %v1591_v42  ;;  %v1639_v52 = vsel %vm1512_vm12, %v4940_v43, %v1419_v49  ;;  %v5516_v37 = vld [vmem:[#allocation53_spill] sm:$0xff]  ;;  %v1216_v33 = vrot.slane %v1214_v55, 5  ;;  %v3620_v42 = vld [vmem:[%s5341_s1 + $0xa8] sm:$0xff]  }
  0xbc   :  { %3378 = vmatprep.subr.bf16.mxu1 %v3617_v48  ;;  %3509 = vmatpush3.bf16.msra.mxu0 %v4881_v38  ;;  %v2975_v6 = vcombine.low %v4725_v1, %v5516_v37  ;;  %v4961_v47 = vsel %vm4173_vm11, %v2938_v60, %v1232_v58  ;;  %v1211_v27 = vor.u32 %v1210_v25, %v1207_v18  ;;  %v5522_v49 = vld [vmem:[#allocation65_spill] sm:$0xff]  ;;  %v5525_v25 = vld [vmem:[#allocation55_spill] sm:$0xff] }
  0xbd   :  { %1488 = vrot.lane.b32.xlu1 %v3033_v10, %s3630_s25  ;;  %v3034_v7 = vcombine.low %v1141_v31, %v4961_v47  ;;  %v2949_v48 = vcombine.low %v5518_v59, %v5517_v2  ;;  %v1527_v38 = vsel %vm1512_vm12, %v2942_v51, %v1302_v17  ;;  %v2950_v10 = vcombine.low %v5522_v49, %v5521_v28  ;;  %v3621_v31 = vld [vmem:[%s5341_s1 + $0xf0] sm:$0xff]   ;;  %v3624_v55 = vld [vmem:[%s5341_s1 + $0xf8] sm:$0xff]   ;;  %v5561_v49 = vld [vmem:[#allocation59_spill] sm:$0xff] }
  0xbe   :  { %2190 = vmatmul.mubr.bf16.gmra.mrb[8].mxu1 %v4943_v14  ;;  %v1212_v23 = vrot.slane %v1211_v27, 4  ;;  %v2943_v58 = vcombine.low %v5497_v41, %v5523_v50  ;;  %v3625_v17 = vld [vmem:[%s5341_s1 + $0xb8] sm:$0xff]   ;;  %v5526_v27 = vld [vmem:[#allocation3_spill] sm:$0xff]  ;;  %v5534_v50 = vld [vmem:[#allocation14_spill] sm:$0xff] }
  0xbf   :  { %3379 = vmatpush3.bf16.msra.mxu1 %v3618_v30  ;;  %2197 = vmatprep.mubr.bf16.mxu1 %v1639_v52  ;;  %v5524_v52 = vld [vmem:[#allocation61_spill] sm:$0xff] }
  0xc0   :  { %3380 = vmatprep.subr.bf16.mxu1 %v3619_v39  ;;  %v4982_v30 = vsel %vm3745_vm8, %v1212_v23, %v1216_v33  ;;  %v5005_v37 = vcombine.low %v5525_v25, %v5524_v52  ;;  %v5527_v33 = vld [vmem:[#allocation4_spill] sm:$0xff]  ;;  %v5536_v52 = vld [vmem:[#allocation42_spill] sm:$0xff]  ;;  %v5537_v25 = vld [vmem:[#allocation39_spill] sm:$0xff] }
  0xc1   :  { %1490 = vrot.lane.b32.xlu1 %v3034_v7, %s3630_s25  ;;  %v3042_v51 = vcombine.low %v4982_v30, %v3759_v61  ;;  %v5528_v7 = vcombine.low %v5526_v27, %v5527_v33  ;;  %v5531_v23 = vld [vmem:[#allocation68_spill] sm:$0xff]  ;;  %v5539_v33 = vld [vmem:[#allocation27_spill] sm:$0xff] }
  0xc2   :  { %v1397_v18 = vpop.permute.xlu0 %1396  ;;  %2102 = vmatmul.mubr.bf16.gmra.mrb[12].mxu0 %v1527_v38  ;;  %v5538_v27 = vld [vmem:[#allocation16_spill] sm:$0xff] }
  0xc3   :  { %v1326_v3 = vpop.permute.xlu1 %1325  ;;  %v1595_v60 = vsel %vm1512_vm12, %v2975_v6, %v1397_v18  ;;  %3381 = vmatpush3.bf16.msra.mxu1 %v3620_v42  ;;  %1506 = vrot.lane.b32.xlu0 %v3042_v51, %s3630_s25 }
  0xc4   :  { %v4985_v40 = vsel %vm1512_vm12, %v2954_v16, %v1326_v3  ;;  %2109 = vmatprep.mubr.bf16.mxu0 %v1595_v60  ;;  %3382 = vmatprep.subr.bf16.mxu1 %v3621_v31  ;;  %v5530_v16 = vld [vmem:[#allocation36_spill] sm:$0xff]  ;;  %v5532_v60 = vld [vmem:[#allocation62_spill] sm:$0xff] }
  0xc5   :  { %v2944_v3 = vcombine.low %v5530_v16, %v5529_v24 }
  0xc6   :  { %2198 = vmatmul.mubr.bf16.gmra.mrb[12].mxu1 %v4985_v40  ;;  %v1461_v39 = vpop.permute.xlu0 %1460 }
  0xc7   :  { %3383 = vmatpush3.bf16.msra.mxu1 %v3623_v26  ;;  %2238 = vmatprep.mubr.bf16.mxu1 %v4846_v36  ;;  %v1643_v36 = vsel %vm1512_vm12, %v5528_v7, %v1461_v39  ;;  %v5019_v26 = vcombine.low %v5532_v60, %v5531_v23  ;;  %v5540_v7 = vcombine.low %v5538_v27, %v5539_v33 }
  0xc8   :  { %3384 = vmatprep.subr.bf16.mxu1 %v3624_v55  ;;  %v5533_v55 = vld [vmem:[#allocation7_spill] sm:$0xff] }
  0xca   :  { %v1304_v61 = vpop.permute.xlu1 %1303 }
  0xcb   :  { %v1531_v6 = vsel %vm1512_vm12, %v2943_v58, %v1304_v61  ;;  %3385 = vmatpush3.bf16.msra.mxu1 %v3625_v17  ;;  %v5535_v58 = vcombine.low %v5533_v55, %v5534_v50  ;;  %v5543_v55 = vld [vmem:[#allocation47_spill] sm:$0xff] }
  0xcc   :  { %2110 = vmatmul.mubr.bf16.gmra.mrb[16].mxu0 %v1531_v6  ;;  %v2945_v6 = vcombine.low %v5537_v25, %v5536_v52  ;;  %v5544_v50 = vld [vmem:[#allocation43_spill] sm:$0xff] }
  0xce   :  { %v1399_v42 = vpop.permute.xlu1 %1398  ;;  %2239 = vmatmul.mubr.bf16.vlgmr.msra.gmra.mrb[16].mxu1 %v1643_v36 }
  0xcf   :  { %v1599_v29 = vsel %vm1512_vm12, %v5005_v37, %v1399_v42  ;;  %2246 = vmatprep.mubr.bf16.mxu1 %v4908_v15 }
  0xd0   :  { %2117 = vmatprep.mubr.bf16.mxu0 %v1599_v29  ;;  %v5541_v29 = vld [vmem:[#allocation69_spill] sm:$0xff] }
  0xd1   :  { %v5036_v24 = vcombine.low %v5541_v29, %v4704_v22 }
  0xd2   :  { %v1463_v18 = vpop.permute.xlu1 %1462 }
  0xd3   :  { %v1306_v31 = vpop.permute.xlu0 %1305  ;;  %v1647_v17 = vsel %vm1512_vm12, %v5535_v58, %v1463_v18  ;;  %v2946_v58 = vcombine.low %v5544_v50, %v5543_v55 }
  0xd4   :  { %v1535_v51 = vsel %vm1512_vm12, %v2944_v3, %v1306_v31  ;;  %v5542_v3 = vld [vmem:[#allocation22_spill] sm:$0xff] }
  0xd5   :  { %2118 = vmatmul.mubr.bf16.gmra.mrb[20].mxu0 %v1535_v51 }
  0xd6   :  { %2247 = vmatmul.mubr.bf16.gmra.mrb[20].mxu1 %v1647_v17 }
  0xd7   :  { %v1401_v61 = vpop.permute.xlu0 %1400  ;;  %2254 = vmatprep.mubr.bf16.mxu1 %v1527_v38  ;;  %v3035_v38 = vcombine.low %v5542_v3, %v5497_v41 }
  0xd8   :  { %v1603_v39 = vsel %vm1512_vm12, %v5019_v26, %v1401_v61  ;;  %v5545_v61 = vld [vmem:[#allocation28_spill] sm:$0xff] }
  0xd9   :  { %2125 = vmatprep.mubr.bf16.mxu0 %v1603_v39  ;;  %v5546_v39 = vld [vmem:[#allocation49_spill] sm:$0xff] }
  0xdb   :  { %v1465_v15 = vpop.permute.xlu0 %1464 }
  0xdc   :  { %v1651_v36 = vsel %vm1512_vm12, %v5540_v7, %v1465_v15  ;;  %v5547_v15 = vcombine.low %v5545_v61, %v5546_v39  ;;  %v5554_v61 = vld [vmem:[#allocation41_spill] sm:$0xff] }
  0xdd   :  { %v5555_v39 = vld [vmem:[#allocation45_spill] sm:$0xff] }
  0xde   :  { %2255 = vmatmul.mubr.bf16.gmra.mrb[24].mxu1 %v1651_v36  ;;  %v5548_v36 = vld [vmem:[#allocation38_spill] sm:$0xff] }
  0xe1   :  { %v1308_v42 = vpop.permute.xlu1 %1307 }
  0xe2   :  { %v1539_v16 = vsel %vm1512_vm12, %v2945_v6, %v1308_v42  ;;  %v2979_v6 = vcombine.low %v4725_v1, %v4735_v4  ;;  %v5549_v42 = vld [vmem:[#allocation40_spill] sm:$0xff] }
  0xe3   :  { %2126 = vmatmul.mubr.bf16.gmra.mrb[24].mxu0 %v1539_v16  ;;  %v5550_v29 = vcombine.low %v5548_v36, %v5549_v42 }
  0xe4   :  { %v1501_v18 = vpop.permute.xlu0 %1500 }
  0xe5   :  { %v1403_v31 = vpop.permute.xlu1 %1402  ;;  %v1707_v60 = vsel %vm1512_vm12, %v3035_v38, %v1501_v18  ;;  %v5551_v38 = vld [vmem:[#allocation54_spill] sm:$0xff] }
  0xe6   :  { %v1607_v23 = vsel %vm1512_vm12, %v5036_v24, %v1403_v31  ;;  %2262 = vmatprep.mubr.bf16.mxu1 %v1707_v60  ;;  %v2947_v31 = vcombine.low %v5497_v41, %v5551_v38  ;;  %v5553_v60 = vld [vmem:[#allocation56_spill] sm:$0xff] }
  0xe7   :  { %2133 = vmatprep.mubr.bf16.mxu0 %v1607_v23  ;;  %v5552_v23 = vld [vmem:[#allocation57_spill] sm:$0xff] }
  0xe8   :  { %v1467_v22 = vpop.permute.xlu0 %1466  ;;  %v2948_v55 = vcombine.low %v5553_v60, %v5552_v23 }
  0xe9   :  { %v1655_v52 = vsel %vm1512_vm12, %v5547_v15, %v1467_v22  ;;  %v5556_v15 = vcombine.low %v5554_v61, %v5555_v39  ;;  %v3044_v61 = vcombine.low %v4718_v46, %v4725_v1 }
  0xea   :  { %2263 = vmatmul.mubr.bf16.gmra.mrb[28].mxu1 %v1655_v52 }
  0xeb   :  { %v1310_v17 = vpop.permute.xlu1 %1309  ;;  %2270 = vmatprep.mubr.bf16.mxu1 %v1535_v51 }
  0xec   :  { %v1543_v25 = vsel %vm1512_vm12, %v2946_v58, %v1310_v17 }
  0xed   :  { %2134 = vmatmul.mubr.bf16.gmra.mrb[28].mxu0 %v1543_v25 }
  0xef   :  { %v1405_v27 = vpop.permute.xlu1 %1404 }
  0xf0   :  { %v1611_v33 = vsel %vm1512_vm12, %v2979_v6, %v1405_v27 }
  0xf1   :  { %2141 = vmatprep.mubr.bf16.mxu0 %v1611_v33  ;;  %v5557_v33 = vld [vmem:[#allocation46_spill] sm:$0xff] }
  0xf3   :  { %v1469_v7 = vpop.permute.xlu1 %1468 }
  0xf4   :  { %v1659_v3 = vsel %vm1512_vm12, %v5550_v29, %v1469_v7  ;;  %v5558_v7 = vld [vmem:[#allocation50_spill] sm:$0xff] }
  0xf5   :  { %2271 = vmatmul.mubr.bf16.gmra.mrb[32].mxu1 %v1659_v3  ;;  %v5559_v36 = vcombine.low %v5557_v33, %v5558_v7 }
  0xf6   :  { %2278 = vmatprep.mubr.bf16.mxu1 %v1539_v16 }
  0xf9   :  { %v1312_v18 = vpop.permute.xlu0 %1311 }
  0xfa   :  { %v1547_v4 = vsel %vm1512_vm12, %v2947_v31, %v1312_v18  ;;  %v5560_v31 = vld [vmem:[#allocation48_spill] sm:$0xff] }
  0xfb   :  { %2142 = vmatmul.mubr.bf16.gmra.mrb[32].mxu0 %v1547_v4  ;;  %v3036_v18 = vcombine.low %v5560_v31, %v5497_v41 }
  0xfd   :  { %v1407_v51 = vpop.permute.xlu0 %1406 }
  0xfe   :  { %v1615_v50 = vsel %vm1512_vm12, %v4768_v34, %v1407_v51 }
  0xff   :  { %2149 = vmatprep.mubr.bf16.mxu0 %v1615_v50  ;;  %v1314_v58 = vpop.permute.xlu1 %1313 }
 0x100   :  { %v1551_v22 = vsel %vm1512_vm12, %v2948_v55, %v1314_v58  ;;  %v5564_v55 = vld [vmem:[#allocation51_spill] sm:$0xff] }
 0x101   :  { %v1471_v17 = vpop.permute.xlu0 %1470  ;;  %v3043_v50 = vcombine.low %v5564_v55, %v4725_v1 }
 0x102   :  { %v1663_v16 = vsel %vm1512_vm12, %v5556_v15, %v1471_v17  ;;  %v5575_v15 = vld [vmem:[#allocation33_spill] sm:$0xff] }
 0x103   :  { %2150 = vmatmul.mubr.bf16.gmra.mrb[36].mxu0 %v1551_v22  ;;  %2279 = vmatmul.mubr.bf16.gmra.mrb[36].mxu1 %v1663_v16  ;;  %v1409_v52 = vpop.permute.xlu1 %1408 }
 0x104   :  { %2286 = vmatprep.mubr.bf16.mxu1 %v1543_v25  ;;  %v1619_v6 = vsel %vm1512_vm12, %v4785_v0, %v1409_v52 }
 0x105   :  { %2157 = vmatprep.mubr.bf16.mxu0 %v1619_v6  ;;  %v3046_v6 = vcombine.low %v4961_v47, %v4725_v1 }
 0x10a   :  { %v1473_v27 = vpop.permute.xlu1 %1472 }
 0x10b   :  { %v1667_v42 = vsel %vm1512_vm12, %v5559_v36, %v1473_v27 }
 0x10c   :  { %2287 = vmatmul.mubr.bf16.gmra.mrb[40].mxu1 %v1667_v42 }
 0x10d   :  { %v1316_v29 = vpop.permute.xlu0 %1315 }
 0x10e   :  { %v1555_v3 = vsel %vm1512_vm12, %v2949_v48, %v1316_v29 }
 0x10f   :  { %2158 = vmatmul.mubr.bf16.gmra.mrb[40].mxu0 %v1555_v3 }
 0x111   :  { %v1411_v25 = vpop.permute.xlu0 %1410 }
 0x112   :  { %v1623_v38 = vsel %vm1512_vm12, %v4836_v13, %v1411_v25 }
 0x113   :  { %2165 = vmatprep.mubr.bf16.mxu0 %v1623_v38 }
 0x115   :  { %v1318_v4 = vpop.permute.xlu0 %1317 }
 0x116   :  { %v1559_v51 = vsel %vm1512_vm12, %v2950_v10, %v1318_v4  ;;  %v5562_v10 = vld [vmem:[#allocation60_spill] sm:$0xff] }
 0x117   :  { %v1503_v23 = vpop.permute.xlu1 %1502  ;;  %2166 = vmatmul.mubr.bf16.gmra.mrb[44].mxu0 %v1559_v51  ;;  %v5563_v60 = vcombine.low %v5561_v49, %v5562_v10 }
 0x118   :  { %v1711_v2 = vsel %vm1512_vm12, %v3036_v18, %v1503_v23  ;;  %3510 = vmatprep.mubr.msk.bf16.mxu0 %vm1512_vm12, %v4281_v54 }
 0x119   :  { %2294 = vmatprep.mubr.bf16.mxu1 %v1711_v2  ;;  %v1477_v28 = vpop.permute.xlu0 %1476 }
 0x11a   :  { %v1675_v54 = vsel %vm1512_vm12, %v5563_v60, %v1477_v28 }
 0x11b   :  { %v1475_v59 = vpop.permute.xlu1 %1474 }
 0x11c   :  { %v1671_v48 = vsel %vm1512_vm12, %v3010_v21, %v1475_v59  ;;  %v5566_v21 = vld [vmem:[#allocation66_spill] sm:$0xff] }
 0x11d   :  { %2295 = vmatmul.mubr.bf16.gmra.mrb[44].mxu1 %v1671_v48  ;;  %v1481_v58 = vpop.permute.xlu0 %1480 }
 0x11e   :  { %2302 = vmatprep.mubr.bf16.mxu1 %v1551_v22  ;;  %v3037_v22 = vcombine.low %v4652_v5, %v5497_v41 }
 0x11f   :  { %3511 = vmatmul.mubr.msk.bf16.vlgmr.msra.gmra.mrb[48].mxu0 %vm1512_vm12, %v5499_v19  ;;  %v1479_v63 = vpop.permute.xlu1 %1478  ;;  %v5567_v19 = vcombine.low %v5565_v9, %v5566_v21 }
 0x120   :  { %3514 = vmatprep.mubr.msk.bf16.mxu0 %vm1512_vm12, %v5513_v20 }
 0x121   :  { %v1679_v20 = vsel %vm1512_vm12, %v5567_v19, %v1479_v63 }
 0x125   :  { %2303 = vmatmul.mubr.bf16.gmra.mrb[48].mxu1 %v1675_v54 }
 0x126   :  { %2310 = vmatprep.mubr.bf16.mxu1 %v1555_v3 }
 0x127   :  { %3515 = vmatmul.mubr.msk.bf16.gmra.mrb[52].mxu0 %vm1512_vm12, %v3043_v50  ;;  %v1505_v17 = vpop.permute.xlu1 %1504 }
 0x128   :  { %3518 = vmatprep.mubr.msk.bf16.mxu0 %vm1512_vm12, %v5005_v37  ;;  %v1683_v37 = vsel %vm1512_vm12, %v3013_v56, %v1481_v58  ;;  %v1715_v39 = vsel %vm1512_vm12, %v3037_v22, %v1505_v17  ;;  %v5569_v56 = vld [vmem:[#allocation12_spill] sm:$0xff] }
 0x129   :  { %v5570_v46 = vcombine.low %v5568_v12, %v5569_v56 }
 0x12b   :  { %v1485_v5 = vpop.permute.xlu1 %1484 }
 0x12d   :  { %2311 = vmatmul.mubr.bf16.gmra.mrb[52].mxu1 %v1679_v20 }
 0x12e   :  { %2318 = vmatprep.mubr.bf16.mxu1 %v1559_v51 }
 0x12f   :  { %3519 = vmatmul.mubr.msk.bf16.gmra.mrb[56].mxu0 %vm1512_vm12, %v5019_v26  ;;  %v1483_v26 = vpop.permute.xlu0 %1482  ;;  %v1489_v57 = vpop.permute.xlu1 %1488 }
 0x130   :  { %3522 = vmatprep.mubr.msk.bf16.mxu0 %vm1512_vm12, %v5036_v24  ;;  %v1687_v45 = vsel %vm1512_vm12, %v3014_v35, %v1483_v26 }
 0x135   :  { %2319 = vmatmul.mubr.bf16.gmra.mrb[56].mxu1 %v1683_v37 }
 0x136   :  { %2326 = vmatprep.mubr.bf16.mxu1 %v1715_v39 }
 0x137   :  { %3523 = vmatmul.mubr.msk.bf16.gmra.mrb[60].mxu0 %vm1512_vm12, %v3044_v61 }
 0x138   :  { %3526 = vmatprep.mubr.msk.bf16.mxu0 %vm1512_vm12, %v4768_v34  ;;  %v1691_v34 = vsel %vm1512_vm12, %v5570_v46, %v1485_v5 }
 0x13d   :  { %2327 = vmatmul.mubr.bf16.gmra.mrb[60].mxu1 %v1687_v45 }
 0x13e   :  { %2334 = vmatprep.mubr.bf16.mxu1 %v4863_v11  ;;  %v1487_v11 = vpop.permute.xlu0 %1486 }
 0x13f   :  { %3527 = vmatmul.mubr.msk.bf16.gmra.mrb[64].mxu0 %vm1512_vm12, %v4785_v0  ;;  %v5571_v0 = vld [vmem:[#allocation13_spill] sm:$0xff] }
 0x140   :  { %3530 = vmatprep.mubr.msk.bf16.mxu0 %vm1512_vm12, %v4836_v13  ;;  %v5573_v13 = vcombine.low %v5571_v0, %v5572_v32 }
 0x142   :  { %v1695_v35 = vsel %vm1512_vm12, %v5573_v13, %v1487_v11  ;;  %v1507_v24 = vpop.permute.xlu0 %1506 }
 0x145   :  { %2335 = vmatmul.mubr.bf16.gmra.mrb[64].mxu1 %v1691_v34 }
 0x146   :  { %2342 = vmatprep.mubr.bf16.mxu1 %v4943_v14  ;;  %v3038_v14 = vcombine.low %v5505_v8, %v5497_v41  ;;  %v1491_v41 = vpop.permute.xlu1 %1490 }
 0x147   :  { %3531 = vmatmul.mubr.msk.bf16.gmra.mrb[68].mxu0 %vm1512_vm12, %v3045_v62 }
 0x148   :  { %3534 = vmatprep.mubr.msk.bf16.mxu0 %vm1512_vm12, %v4873_v44  ;;  %v5574_v44 = vld [vmem:[#allocation25_spill] sm:$0xff] }
 0x149   :  { %v5576_v16 = vcombine.low %v5574_v44, %v5575_v15 }
 0x14b   :  { %v1699_v52 = vsel %vm1512_vm12, %v5576_v16, %v1489_v57 }
 0x14d   :  { %2343 = vmatmul.mubr.bf16.gmra.mrb[68].mxu1 %v1695_v35 }
 0x14e   :  { %2350 = vmatprep.mubr.bf16.mxu1 %v4985_v40  ;;  %v1719_v40 = vsel %vm1512_vm12, %v3038_v14, %v1507_v24 }
 0x14f   :  { %3535 = vmatmul.mubr.msk.bf16.gmra.mrb[72].mxu0 %vm1512_vm12, %v4914_v53  ;;  %v5577_v53 = vld [vmem:[#allocation35_spill] sm:$0xff] }
 0x150   :  { %3538 = vmatprep.mubr.msk.bf16.mxu0 %vm1512_vm12, %v4940_v43  ;;  %v3018_v27 = vcombine.low %v5577_v53, %v4982_v30 }
 0x152   :  { %v1703_v8 = vsel %vm1512_vm12, %v3018_v27, %v1491_v41 }
 0x155   :  { %2351 = vmatmul.mubr.bf16.gmra.mrb[72].mxu1 %v1699_v52 }
 0x156   :  { %2358 = vmatprep.mubr.bf16.mxu1 %v1719_v40 }
 0x157   :  { %3539 = vmatmul.mubr.msk.bf16.gmra.mrb[76].mxu0 %vm1512_vm12, %v3046_v6 }
 0x15d   :  { %2359 = vmatmul.mubr.bf16.gmra.mrb[76].mxu1 %v1703_v8 }
 0x17d   :  { %v3274_v43 = vpop.f32.mrb[0].mxu0 }
 0x17e   :  { %v3275_v33 = vpop.f32.mrb[1].mxu0 }
 0x17f   :  { %v3276_v7 = vadd.f32 %v3275_v33, %v3274_v43  ;;  %v3277_v36 = vpop.f32.mrb[2].mxu0 }
 0x180   :  { %v3278_v42 = vpop.f32.mrb[3].mxu0 }
 0x181   :  { %v3279_v29 = vadd.f32 %v3278_v42, %v3277_v36  ;;  %v3346_v1 = vpop.f32.mrb[0].mxu1 }
 0x182   :  { %v3347_v47 = vpop.f32.mrb[1].mxu1 }
 0x183   :  { %v5169_v3 = vadd.f32 %v3347_v47, %v3346_v1  ;;  %v3349_v25 = vpop.f32.mrb[2].mxu1 }
 0x184   :  { %v3350_v38 = vpop.f32.mrb[3].mxu1 }
 0x185   :  { %v5171_v30 = vadd.f32 %v3350_v38, %v3349_v25  ;;  %v3280_v31 = vpop.f32.mrb[4].mxu0 }
 0x186   :  { %v3281_v18 = vpop.f32.mrb[5].mxu0 }
 0x187   :  { %v3282_v4 = vadd.f32 %v3281_v18, %v3280_v31  ;;  %v3283_v51 = vpop.f32.mrb[6].mxu0 }
 0x188   :  { %v3284_v23 = vpop.f32.mrb[7].mxu0 }
 0x189   :  { %v3285_v2 = vadd.f32 %v3284_v23, %v3283_v51  ;;  %v3352_v59 = vpop.f32.mrb[4].mxu1 }
 0x18a   :  { %v3353_v48 = vpop.f32.mrb[5].mxu1 }
 0x18b   :  { %v5173_v28 = vadd.f32 %v3353_v48, %v3352_v59  ;;  %v3355_v49 = vpop.f32.mrb[6].mxu1 }
 0x18c   :  { %v3356_v10 = vpop.f32.mrb[7].mxu1 }
 0x18d   :  { %v5175_v60 = vadd.f32 %v3356_v10, %v3355_v49  ;;  %v3286_v54 = vpop.f32.mrb[8].mxu0 }
 0x18e   :  { %v3287_v55 = vpop.f32.mrb[9].mxu0 }
 0x18f   :  { %v3288_v50 = vadd.f32 %v3287_v55, %v3286_v54  ;;  %v3289_v63 = vpop.f32.mrb[10].mxu0 }
 0x190   :  { %v3290_v9 = vpop.f32.mrb[11].mxu0 }
 0x191   :  { %v3291_v21 = vadd.f32 %v3290_v9, %v3289_v63  ;;  %v3358_v19 = vpop.f32.mrb[8].mxu1 }
 0x192   :  { %v3359_v20 = vpop.f32.mrb[9].mxu1 }
 0x193   :  { %v5177_v58 = vadd.f32 %v3359_v20, %v3358_v19  ;;  %v3361_v22 = vpop.f32.mrb[10].mxu1 }
 0x194   :  { %v3362_v17 = vpop.f32.mrb[11].mxu1 }
 0x195   :  { %v5179_v37 = vadd.f32 %v3362_v17, %v3361_v22  ;;  %v3292_v61 = vpop.f32.mrb[12].mxu0 }
 0x196   :  { %v3293_v39 = vpop.f32.mrb[13].mxu0 }
 0x197   :  { %v5181_v26 = vadd.f32 %v3293_v39, %v3292_v61  ;;  %v3295_v45 = vpop.f32.mrb[14].mxu0 }
 0x198   :  { %v3296_v5 = vpop.f32.mrb[15].mxu0 }
 0x199   :  { %v3297_v12 = vadd.f32 %v3296_v5, %v3295_v45  ;;  %v3364_v56 = vpop.f32.mrb[12].mxu1 }
 0x19a   :  { %v3365_v46 = vpop.f32.mrb[13].mxu1 }
 0x19b   :  { %v5183_v34 = vadd.f32 %v3365_v46, %v3364_v56  ;;  %v3367_v62 = vpop.f32.mrb[14].mxu1 }
 0x19c   :  { %v3368_v11 = vpop.f32.mrb[15].mxu1 }
 0x19d   :  { %v5185_v0 = vadd.f32 %v3368_v11, %v3367_v62 }
 0x19f   :  { %v3298_v32 = vpop.f32.mrb[16].mxu0 }
 0x1a0   :  { %v3299_v13 = vpop.f32.mrb[17].mxu0 }
 0x1a1   :  { %v3300_v35 = vadd.f32 %v3299_v13, %v3298_v32  ;;  %v3301_v57 = vpop.f32.mrb[18].mxu0  ;;  %v3386_v44 = vpop.f32.mrb[16].mxu1 }
 0x1a2   :  { %v3302_v14 = vpop.f32.mrb[19].mxu0  ;;  %v3387_v15 = vpop.f32.mrb[17].mxu1 }
 0x1a3   :  { %v3303_v24 = vadd.f32 %v3302_v14, %v3301_v57  ;;  %v3388_v16 = vadd.f32 %v3387_v15, %v3386_v44  ;;  %v3389_v52 = vpop.f32.mrb[18].mxu1 }
 0x1a4   :  { %v3390_v6 = vpop.f32.mrb[19].mxu1 }
 0x1a5   :  { %v3391_v40 = vadd.f32 %v3390_v6, %v3389_v52  ;;  %v5187_v27 = vadd.f32 %v3388_v16, %v3276_v7 }
 0x1a7   :  { %v5191_v33 = vadd.f32 %v3391_v40, %v3279_v29 }
 0x1a8   :  { %v3304_v53 = vpop.f32.mrb[20].mxu0 }
 0x1a9   :  { %v3305_v41 = vpop.f32.mrb[21].mxu0  ;;  %v3392_v1 = vpop.f32.mrb[20].mxu1 }
 0x1aa   :  { %v5189_v8 = vadd.f32 %v3305_v41, %v3304_v53  ;;  %v3307_v43 = vpop.f32.mrb[22].mxu0  ;;  %v3393_v47 = vpop.f32.mrb[21].mxu1 }
 0x1ab   :  { %v3308_v36 = vpop.f32.mrb[23].mxu0  ;;  %v3394_v25 = vadd.f32 %v3393_v47, %v3392_v1  ;;  %v3395_v38 = vpop.f32.mrb[22].mxu1 }
 0x1ac   :  { %v5193_v42 = vadd.f32 %v3308_v36, %v3307_v43  ;;  %v3396_v31 = vpop.f32.mrb[23].mxu1 }
 0x1ad   :  { %v3397_v18 = vadd.f32 %v3396_v31, %v3395_v38  ;;  %v5195_v51 = vadd.f32 %v3394_v25, %v3282_v4 }
 0x1af   :  { %v5197_v23 = vadd.f32 %v3397_v18, %v3285_v2 }
 0x1b1   :  { %v3398_v7 = vpop.f32.mrb[24].mxu1 }
 0x1b2   :  { %v3399_v59 = vpop.f32.mrb[25].mxu1 }
 0x1b3   :  { %v3400_v49 = vadd.f32 %v3399_v59, %v3398_v7  ;;  %v3401_v10 = vpop.f32.mrb[26].mxu1 }
 0x1b4   :  { %v3402_v54 = vpop.f32.mrb[27].mxu1 }
 0x1b5   :  { %v3403_v9 = vadd.f32 %v3402_v54, %v3401_v10  ;;  %v5199_v19 = vadd.f32 %v3400_v49, %v3288_v50 }
 0x1b6   :  { %v3310_v48 = vpop.f32.mrb[24].mxu0 }
 0x1b7   :  { %v3311_v29 = vpop.f32.mrb[25].mxu0  ;;  %v5201_v17 = vadd.f32 %v3403_v9, %v3291_v21 }
 0x1b8   :  { %v3312_v55 = vadd.f32 %v3311_v29, %v3310_v48  ;;  %v3313_v63 = vpop.f32.mrb[26].mxu0 }
 0x1b9   :  { %v3314_v20 = vpop.f32.mrb[27].mxu0 }
 0x1ba   :  { %v3315_v22 = vadd.f32 %v3314_v20, %v3313_v63 }
 0x1bd   :  { %v3404_v4 = vpop.f32.mrb[28].mxu1 }
 0x1be   :  { %v3405_v2 = vpop.f32.mrb[29].mxu1 }
 0x1bf   :  { %v3406_v45 = vadd.f32 %v3405_v2, %v3404_v4  ;;  %v3407_v5 = vpop.f32.mrb[30].mxu1 }
 0x1c0   :  { %v3316_v61 = vpop.f32.mrb[28].mxu0  ;;  %v3408_v62 = vpop.f32.mrb[31].mxu1 }
 0x1c1   :  { %v3317_v39 = vpop.f32.mrb[29].mxu0  ;;  %v3409_v32 = vadd.f32 %v3408_v62, %v3407_v5  ;;  %v5206_v13 = vadd.f32 %v3406_v45, %v5181_v26 }
 0x1c2   :  { %v5203_v56 = vadd.f32 %v3317_v39, %v3316_v61  ;;  %v3319_v46 = vpop.f32.mrb[30].mxu0 }
 0x1c3   :  { %v3320_v11 = vpop.f32.mrb[31].mxu0  ;;  %v5210_v57 = vadd.f32 %v3409_v32, %v3297_v12 }
 0x1c4   :  { %v5208_v50 = vadd.f32 %v3320_v11, %v3319_v46 }
 0x1c8   :  { %v3410_v21 = vpop.f32.mrb[32].mxu1 }
 0x1c9   :  { %v3411_v14 = vpop.f32.mrb[33].mxu1 }
 0x1ca   :  { %v3412_v44 = vadd.f32 %v3411_v14, %v3410_v21  ;;  %v3413_v15 = vpop.f32.mrb[34].mxu1 }
 0x1cb   :  { %v3414_v16 = vpop.f32.mrb[35].mxu1 }
 0x1cc   :  { %v3415_v52 = vadd.f32 %v3414_v16, %v3413_v15  ;;  %v5212_v6 = vadd.f32 %v3412_v44, %v3300_v35 }
 0x1ce   :  { %v3322_v40 = vpop.f32.mrb[32].mxu0  ;;  %v5214_v53 = vadd.f32 %v3415_v52, %v3303_v24 }
 0x1cf   :  { %v3323_v41 = vpop.f32.mrb[33].mxu0 }
 0x1d0   :  { %v5216_v43 = vadd.f32 %v3323_v41, %v3322_v40  ;;  %v3325_v26 = vpop.f32.mrb[34].mxu0 }
 0x1d1   :  { %v3326_v36 = vpop.f32.mrb[35].mxu0 }
 0x1d2   :  { %v5218_v1 = vadd.f32 %v3326_v36, %v3325_v26 }
 0x1d6   :  { %v3328_v12 = vpop.f32.mrb[36].mxu0  ;;  %v3416_v47 = vpop.f32.mrb[36].mxu1 }
 0x1d7   :  { %v3329_v25 = vpop.f32.mrb[37].mxu0  ;;  %v3417_v38 = vpop.f32.mrb[37].mxu1 }
 0x1d8   :  { %v5220_v31 = vadd.f32 %v3329_v25, %v3328_v12  ;;  %v3331_v18 = vpop.f32.mrb[38].mxu0  ;;  %v3418_v7 = vadd.f32 %v3417_v38, %v3416_v47  ;;  %v3419_v35 = vpop.f32.mrb[38].mxu1 }
 0x1d9   :  { %v3332_v59 = vpop.f32.mrb[39].mxu0  ;;  %v3420_v48 = vpop.f32.mrb[39].mxu1 }
 0x1da   :  { %v5222_v24 = vadd.f32 %v3332_v59, %v3331_v18  ;;  %v3421_v49 = vadd.f32 %v3420_v48, %v3419_v35  ;;  %v5225_v10 = vadd.f32 %v3418_v7, %v5189_v8 }
 0x1dc   :  { %v5228_v29 = vadd.f32 %v3421_v49, %v5193_v42 }
 0x1df   :  { %v3422_v54 = vpop.f32.mrb[40].mxu1 }
 0x1e0   :  { %v3423_v63 = vpop.f32.mrb[41].mxu1 }
 0x1e1   :  { %v3424_v9 = vadd.f32 %v3423_v63, %v3422_v54  ;;  %v3425_v20 = vpop.f32.mrb[42].mxu1 }
 0x1e2   :  { %v3334_v4 = vpop.f32.mrb[40].mxu0  ;;  %v3426_v61 = vpop.f32.mrb[43].mxu1 }
 0x1e3   :  { %v3335_v2 = vpop.f32.mrb[41].mxu0  ;;  %v3427_v39 = vadd.f32 %v3426_v61, %v3425_v20  ;;  %v5230_v45 = vadd.f32 %v3424_v9, %v3312_v55 }
 0x1e4   :  { %v5232_v5 = vadd.f32 %v3335_v2, %v3334_v4  ;;  %v3337_v46 = vpop.f32.mrb[42].mxu0 }
 0x1e5   :  { %v3338_v62 = vpop.f32.mrb[43].mxu0  ;;  %v5234_v11 = vadd.f32 %v3427_v39, %v3315_v22 }
 0x1e6   :  { %v5236_v8 = vadd.f32 %v3338_v62, %v3337_v46 }
 0x1ea   :  { %v3340_v42 = vpop.f32.mrb[44].mxu0 }
 0x1eb   :  { %v3341_v32 = vpop.f32.mrb[45].mxu0 }
 0x1ec   :  { %v5238_v21 = vadd.f32 %v3341_v32, %v3340_v42  ;;  %v3343_v14 = vpop.f32.mrb[46].mxu0 }
 0x1ed   :  { %v3344_v44 = vpop.f32.mrb[47].mxu0 }
 0x1ee   :  { %v5240_v15 = vadd.f32 %v3344_v44, %v3343_v14 }
 0x1f0   :  { %v3428_v16 = vpop.f32.mrb[44].mxu1 }
 0x1f1   :  { %v3429_v52 = vpop.f32.mrb[45].mxu1 }
 0x1f2   :  { %v3430_v55 = vadd.f32 %v3429_v52, %v3428_v16  ;;  %v3431_v40 = vpop.f32.mrb[46].mxu1  ;;  %v3512_v41 = vpop.f32.mrb[48].mxu0 }
 0x1f3   :  { %v3432_v26 = vpop.f32.mrb[47].mxu1  ;;  %v2410_v36 = vadd.f32 %v3512_v41, %v5195_v51  ;;  %v2401_v22 = vpop.f32.mrb[49].mxu0 }
 0x1f4   :  { %v3433_v12 = vadd.f32 %v3432_v26, %v3431_v40  ;;  %v2402_v47 = vadd.f32 %v2401_v22, %v5187_v27  ;;  %v3513_v25 = vpop.f32.mrb[50].mxu0  ;;  %v5245_v38 = vadd.f32 %v3430_v55, %v5203_v56 }
 0x1f5   :  { %v2413_v18 = vadd.f32 %v3513_v25, %v5197_v23  ;;  %v2404_v7 = vpop.f32.mrb[51].mxu0  ;;  %v2728_v56 = vmul.f32 %v2410_v36, %v2410_v36 }
 0x1f6   :  { %v2405_v35 = vadd.f32 %v2404_v7, %v5191_v33  ;;  %v5250_v59 = vadd.f32 %v3433_v12, %v5208_v50  ;;  %v2726_v49 = vmul.f32 %v2402_v47, %v2402_v47 }
 0x1f7   :  { %v3171_v48 = vpack.c.bf16 %v2413_v18, %v2410_v36  ;;  %v2729_v61 = vmul.f32 %v2413_v18, %v2413_v18 }
 0x1f8   :  { %v3166_v54 = vpack.c.bf16 %v2405_v35, %v2402_v47  ;;  %v2688_v51 = vadd.f32 %v2405_v35, %v2402_v47  ;;  %v2727_v63 = vmul.f32 %v2405_v35, %v2405_v35  ;;  %v3434_v9 = vpop.f32.mrb[48].mxu1 }
 0x1f9   :  { %3243 = vst [vmem:[%s5342_s2 + $0x8] sm:$0xff] %v3171_v48   ;;  %v3435_v27 = vpop.f32.mrb[49].mxu1 }
 0x1fa   :  { %3167 = vst [vmem:[%s5342_s2] sm:$0xff] %v3166_v54   ;;  %v2689_v33 = vadd.f32 %v2688_v51, %v2410_v36  ;;  %v2758_v23 = vadd.f32 %v2727_v63, %v2726_v49  ;;  %v3436_v50 = vadd.f32 %v3435_v27, %v3434_v9  ;;  %v3437_v20 = vpop.f32.mrb[50].mxu1  ;;  %v3516_v4 = vpop.f32.mrb[52].mxu0 }
 0x1fb   :  { %v3438_v2 = vpop.f32.mrb[51].mxu1  ;;  %v2426_v39 = vadd.f32 %v3516_v4, %v5206_v13  ;;  %v2417_v46 = vpop.f32.mrb[53].mxu0 }
 0x1fc   :  { %v2759_v62 = vadd.f32 %v2758_v23, %v2728_v56  ;;  %v3439_v42 = vadd.f32 %v3438_v2, %v3437_v20  ;;  %v2418_v32 = vadd.f32 %v2417_v46, %v5199_v19  ;;  %v2690_v14 = vadd.f32 %v2689_v33, %v2413_v18  ;;  %v3517_v44 = vpop.f32.mrb[54].mxu0 }
 0x1fd   :  { %v2429_v16 = vadd.f32 %v3517_v44, %v5210_v57  ;;  %v2420_v52 = vpop.f32.mrb[55].mxu0  ;;  %v5262_v55 = vadd.f32 %v3436_v50, %v5216_v43  ;;  %v2732_v43 = vmul.f32 %v2426_v39, %v2426_v39 }
 0x1fe   :  { %v2691_v40 = vadd.f32 %v2690_v14, %v2418_v32  ;;  %v2730_v41 = vmul.f32 %v2418_v32, %v2418_v32  ;;  %v2760_v26 = vadd.f32 %v2759_v62, %v2729_v61  ;;  %v2421_v36 = vadd.f32 %v2420_v52, %v5201_v17 }
 0x1ff   :  { %v3181_v22 = vpack.c.bf16 %v2429_v16, %v2426_v39  ;;  %v5266_v13 = vadd.f32 %v3439_v42, %v5218_v1  ;;  %v2733_v49 = vmul.f32 %v2429_v16, %v2429_v16 }
 0x200   :  { %v2761_v12 = vadd.f32 %v2760_v26, %v2730_v41  ;;  %v3176_v47 = vpack.c.bf16 %v2421_v36, %v2418_v32  ;;  %v2692_v19 = vadd.f32 %v2691_v40, %v2421_v36  ;;  %v2731_v25 = vmul.f32 %v2421_v36, %v2421_v36  ;;  %v3440_v18 = vpop.f32.mrb[52].mxu1 }
 0x201   :  { %3245 = vst [vmem:[%s5342_s2 + $0x18] sm:$0xff] %v3181_v22   ;;  %v3441_v57 = vpop.f32.mrb[53].mxu1 }
 0x202   :  { %3244 = vst [vmem:[%s5342_s2 + $0x10] sm:$0xff] %v3176_v47   ;;  %v2693_v17 = vadd.f32 %v2692_v19, %v2426_v39  ;;  %v2762_v7 = vadd.f32 %v2761_v12, %v2731_v25  ;;  %v3442_v35 = vadd.f32 %v3441_v57, %v3440_v18  ;;  %v3443_v1 = vpop.f32.mrb[54].mxu1  ;;  %v3520_v48 = vpop.f32.mrb[56].mxu0 }
 0x203   :  { %v3444_v54 = vpop.f32.mrb[55].mxu1  ;;  %v2442_v51 = vadd.f32 %v3520_v48, %v5225_v10  ;;  %v2433_v63 = vpop.f32.mrb[57].mxu0 }
 0x204   :  { %v2763_v9 = vadd.f32 %v2762_v7, %v2732_v43  ;;  %v3445_v27 = vadd.f32 %v3444_v54, %v3443_v1  ;;  %v2434_v56 = vadd.f32 %v2433_v63, %v5212_v6  ;;  %v2694_v33 = vadd.f32 %v2693_v17, %v2429_v16  ;;  %v3521_v23 = vpop.f32.mrb[58].mxu0 }
 0x205   :  { %v2445_v50 = vadd.f32 %v3521_v23, %v5228_v29  ;;  %v2436_v20 = vpop.f32.mrb[59].mxu0  ;;  %v2313_v4 = vadd.f32 %v3442_v35, %v5220_v31  ;;  %v2736_v16 = vmul.f32 %v2442_v51, %v2442_v51 }
 0x206   :  { %v2695_v61 = vadd.f32 %v2694_v33, %v2434_v56  ;;  %v2734_v2 = vmul.f32 %v2434_v56, %v2434_v56  ;;  %v2764_v39 = vadd.f32 %v2763_v9, %v2733_v49  ;;  %v2437_v46 = vadd.f32 %v2436_v20, %v5214_v53 }
 0x207   :  { %v3191_v62 = vpack.c.bf16 %v2445_v50, %v2442_v51  ;;  %v2316_v10 = vadd.f32 %v3445_v27, %v5222_v24  ;;  %v2737_v41 = vmul.f32 %v2445_v50, %v2445_v50 }
 0x208   :  { %v2765_v42 = vadd.f32 %v2764_v39, %v2734_v2  ;;  %v3186_v32 = vpack.c.bf16 %v2437_v46, %v2434_v56  ;;  %v2696_v14 = vadd.f32 %v2695_v61, %v2437_v46  ;;  %v2735_v44 = vmul.f32 %v2437_v46, %v2437_v46  ;;  %v3446_v6 = vpop.f32.mrb[56].mxu1 }
 0x209   :  { %3247 = vst [vmem:[%s5342_s2 + $0x28] sm:$0xff] %v3191_v62   ;;  %v3447_v29 = vpop.f32.mrb[57].mxu1 }
 0x20a   :  { %3246 = vst [vmem:[%s5342_s2 + $0x20] sm:$0xff] %v3186_v32   ;;  %v2697_v31 = vadd.f32 %v2696_v14, %v2442_v51  ;;  %v2766_v53 = vadd.f32 %v2765_v42, %v2735_v44  ;;  %v3448_v52 = vadd.f32 %v3447_v29, %v3446_v6  ;;  %v3449_v40 = vpop.f32.mrb[58].mxu1  ;;  %v3524_v24 = vpop.f32.mrb[60].mxu0 }
 0x20b   :  { %v3450_v26 = vpop.f32.mrb[59].mxu1  ;;  %v2458_v36 = vadd.f32 %v3524_v24, %v5245_v38  ;;  %v2449_v22 = vpop.f32.mrb[61].mxu0 }
 0x20c   :  { %v2767_v12 = vadd.f32 %v2766_v53, %v2736_v16  ;;  %v3451_v47 = vadd.f32 %v3450_v26, %v3449_v40  ;;  %v2450_v19 = vadd.f32 %v2449_v22, %v5230_v45  ;;  %v2698_v25 = vadd.f32 %v2697_v31, %v2445_v50  ;;  %v3525_v18 = vpop.f32.mrb[62].mxu0 }
 0x20d   :  { %v2461_v57 = vadd.f32 %v3525_v18, %v5250_v59  ;;  %v2452_v43 = vpop.f32.mrb[63].mxu0  ;;  %v2321_v17 = vadd.f32 %v3448_v52, %v5232_v5  ;;  %v2740_v27 = vmul.f32 %v2458_v36, %v2458_v36 }
 0x20e   :  { %v2699_v7 = vadd.f32 %v2698_v25, %v2450_v19  ;;  %v2738_v35 = vmul.f32 %v2450_v19, %v2450_v19  ;;  %v2768_v1 = vadd.f32 %v2767_v12, %v2737_v41  ;;  %v2453_v48 = vadd.f32 %v2452_v43, %v5234_v11 }
 0x20f   :  { %v3201_v49 = vpack.c.bf16 %v2461_v57, %v2458_v36  ;;  %v2324_v38 = vadd.f32 %v3451_v47, %v5236_v8  ;;  %v2741_v23 = vmul.f32 %v2461_v57, %v2461_v57 }
 0x210   :  { %v2769_v54 = vadd.f32 %v2768_v1, %v2738_v35  ;;  %v3196_v51 = vpack.c.bf16 %v2453_v48, %v2450_v19  ;;  %v2700_v63 = vadd.f32 %v2699_v7, %v2453_v48  ;;  %v2739_v9 = vmul.f32 %v2453_v48, %v2453_v48  ;;  %v3452_v45 = vpop.f32.mrb[60].mxu1 }
 0x211   :  { %3249 = vst [vmem:[%s5342_s2 + $0x38] sm:$0xff] %v3201_v49   ;;  %v3453_v59 = vpop.f32.mrb[61].mxu1 }
 0x212   :  { %3248 = vst [vmem:[%s5342_s2 + $0x30] sm:$0xff] %v3196_v51   ;;  %v2701_v5 = vadd.f32 %v2700_v63, %v2458_v36  ;;  %v2770_v11 = vadd.f32 %v2769_v54, %v2739_v9  ;;  %v3454_v56 = vadd.f32 %v3453_v59, %v3452_v45  ;;  %v3455_v33 = vpop.f32.mrb[62].mxu1  ;;  %v3528_v8 = vpop.f32.mrb[64].mxu0 }
 0x213   :  { %v3456_v50 = vpop.f32.mrb[63].mxu1  ;;  %v2474_v20 = vadd.f32 %v3528_v8, %v2313_v4  ;;  %v2465_v61 = vpop.f32.mrb[65].mxu0 }
 0x214   :  { %v2771_v2 = vadd.f32 %v2770_v11, %v2740_v27  ;;  %v3457_v39 = vadd.f32 %v3456_v50, %v3455_v33  ;;  %v2466_v46 = vadd.f32 %v2465_v61, %v5262_v55  ;;  %v2702_v62 = vadd.f32 %v2701_v5, %v2461_v57  ;;  %v3529_v42 = vpop.f32.mrb[66].mxu0 }
 0x215   :  { %v2477_v32 = vadd.f32 %v3529_v42, %v2316_v10  ;;  %v2468_v14 = vpop.f32.mrb[67].mxu0  ;;  %v2329_v44 = vadd.f32 %v3454_v56, %v5238_v21  ;;  %v2744_v10 = vmul.f32 %v2474_v20, %v2474_v20 }
 0x216   :  { %v2703_v6 = vadd.f32 %v2702_v62, %v2466_v46  ;;  %v2742_v29 = vmul.f32 %v2466_v46, %v2466_v46  ;;  %v2772_v16 = vadd.f32 %v2771_v2, %v2741_v23  ;;  %v2469_v31 = vadd.f32 %v2468_v14, %v5266_v13 }
 0x217   :  { %v3211_v53 = vpack.c.bf16 %v2477_v32, %v2474_v20  ;;  %v2332_v52 = vadd.f32 %v3457_v39, %v5240_v15  ;;  %v2745_v12 = vmul.f32 %v2477_v32, %v2477_v32 }
 0x218   :  { %v2773_v4 = vadd.f32 %v2772_v16, %v2742_v29  ;;  %v3206_v40 = vpack.c.bf16 %v2469_v31, %v2466_v46  ;;  %v2704_v24 = vadd.f32 %v2703_v6, %v2469_v31  ;;  %v2743_v41 = vmul.f32 %v2469_v31, %v2469_v31  ;;  %v3458_v26 = vpop.f32.mrb[64].mxu1 }
 0x219   :  { %3251 = vst [vmem:[%s5342_s2 + $0x48] sm:$0xff] %v3211_v53   ;;  %v3459_v55 = vpop.f32.mrb[65].mxu1 }
 0x21a   :  { %3250 = vst [vmem:[%s5342_s2 + $0x40] sm:$0xff] %v3206_v40   ;;  %v2705_v21 = vadd.f32 %v2704_v24, %v2474_v20  ;;  %v2774_v13 = vadd.f32 %v2773_v4, %v2743_v41  ;;  %v3460_v36 = vadd.f32 %v3459_v55, %v3458_v26  ;;  %v3461_v22 = vpop.f32.mrb[66].mxu1  ;;  %v3532_v15 = vpop.f32.mrb[68].mxu0 }
 0x21b   :  { %v3462_v47 = vpop.f32.mrb[67].mxu1  ;;  %v2490_v19 = vadd.f32 %v3532_v15, %v2329_v44  ;;  %v2481_v25 = vpop.f32.mrb[69].mxu0 }
 0x21c   :  { %v2775_v18 = vadd.f32 %v2774_v13, %v2744_v10  ;;  %v3463_v57 = vadd.f32 %v3462_v47, %v3461_v22  ;;  %v2482_v43 = vadd.f32 %v2481_v25, %v2321_v17  ;;  %v2706_v7 = vadd.f32 %v2705_v21, %v2477_v32  ;;  %v3533_v35 = vpop.f32.mrb[70].mxu0 }
 0x21d   :  { %v2493_v1 = vadd.f32 %v3533_v35, %v2332_v52  ;;  %v2484_v48 = vpop.f32.mrb[71].mxu0  ;;  %v2337_v49 = vadd.f32 %v3460_v36, %v5169_v3  ;;  %v2748_v8 = vmul.f32 %v2490_v19, %v2490_v19 }
 0x21e   :  { %v2707_v54 = vadd.f32 %v2706_v7, %v2482_v43  ;;  %v2746_v51 = vmul.f32 %v2482_v43, %v2482_v43  ;;  %v2776_v63 = vadd.f32 %v2775_v18, %v2745_v12  ;;  %v2485_v9 = vadd.f32 %v2484_v48, %v2324_v38 }
 0x21f   :  { %v3221_v45 = vpack.c.bf16 %v2493_v1, %v2490_v19  ;;  %v2340_v59 = vadd.f32 %v3463_v57, %v5171_v30  ;;  %v2749_v20 = vmul.f32 %v2493_v1, %v2493_v1 }
 0x220   :  { %v2777_v27 = vadd.f32 %v2776_v63, %v2746_v51  ;;  %v3216_v5 = vpack.c.bf16 %v2485_v9, %v2482_v43  ;;  %v2708_v11 = vadd.f32 %v2707_v54, %v2485_v9  ;;  %v2747_v56 = vmul.f32 %v2485_v9, %v2485_v9  ;;  %v3464_v33 = vpop.f32.mrb[68].mxu1 }
 0x221   :  { %3253 = vst [vmem:[%s5342_s2 + $0x58] sm:$0xff] %v3221_v45   ;;  %v3465_v17 = vpop.f32.mrb[69].mxu1 }
 0x222   :  { %3252 = vst [vmem:[%s5342_s2 + $0x50] sm:$0xff] %v3216_v5   ;;  %v2709_v3 = vadd.f32 %v2708_v11, %v2490_v19  ;;  %v2778_v38 = vadd.f32 %v2777_v27, %v2747_v56  ;;  %v3466_v23 = vadd.f32 %v3465_v17, %v3464_v33  ;;  %v3467_v50 = vpop.f32.mrb[70].mxu1  ;;  %v3536_v30 = vpop.f32.mrb[72].mxu0 }
 0x223   :  { %v3468_v61 = vpop.f32.mrb[71].mxu1  ;;  %v2497_v2 = vpop.f32.mrb[73].mxu0 }
 0x224   :  { %v2779_v39 = vadd.f32 %v2778_v38, %v2748_v8  ;;  %v3469_v46 = vadd.f32 %v3468_v61, %v3467_v50  ;;  %v2345_v62 = vadd.f32 %v3466_v23, %v5173_v28  ;;  %v2498_v42 = vadd.f32 %v2497_v2, %v2337_v49  ;;  %v3537_v32 = vpop.f32.mrb[74].mxu0 }
 0x225   :  { %v2710_v14 = vadd.f32 %v2709_v3, %v2493_v1  ;;  %v2500_v44 = vpop.f32.mrb[75].mxu0 }
 0x226   :  { %v2506_v6 = vadd.f32 %v3536_v30, %v2345_v62  ;;  %v2750_v29 = vmul.f32 %v2498_v42, %v2498_v42  ;;  %v2780_v16 = vadd.f32 %v2779_v39, %v2749_v20  ;;  %v2348_v31 = vadd.f32 %v3469_v46, %v5175_v60 }
 0x227   :  { %v2711_v53 = vadd.f32 %v2710_v14, %v2498_v42  ;;  %v2501_v52 = vadd.f32 %v2500_v44, %v2340_v59 }
 0x228   :  { %v2781_v4 = vadd.f32 %v2780_v16, %v2750_v29  ;;  %v2509_v40 = vadd.f32 %v3537_v32, %v2348_v31  ;;  %v3470_v24 = vpop.f32.mrb[72].mxu1  ;;  %v2752_v22 = vmul.f32 %v2506_v6, %v2506_v6 }
 0x229   :  { %v3226_v41 = vpack.c.bf16 %v2501_v52, %v2498_v42  ;;  %v2712_v26 = vadd.f32 %v2711_v53, %v2501_v52  ;;  %v2751_v55 = vmul.f32 %v2501_v52, %v2501_v52  ;;  %v3471_v10 = vpop.f32.mrb[73].mxu1 }
 0x22a   :  { %v3231_v21 = vpack.c.bf16 %v2509_v40, %v2506_v6  ;;  %v3472_v28 = vadd.f32 %v3471_v10, %v3470_v24  ;;  %v3473_v13 = vpop.f32.mrb[74].mxu1  ;;  %v3540_v36 = vpop.f32.mrb[76].mxu0  ;;  %v2753_v57 = vmul.f32 %v2509_v40, %v2509_v40 }
 0x22b   :  { %3254 = vst [vmem:[%s5342_s2 + $0x60] sm:$0xff] %v3226_v41   ;;  %v2713_v15 = vadd.f32 %v2712_v26, %v2506_v6  ;;  %v2782_v60 = vadd.f32 %v2781_v4, %v2751_v55  ;;  %v3474_v12 = vpop.f32.mrb[75].mxu1  ;;  %v2513_v47 = vpop.f32.mrb[77].mxu0 }
 0x22c   :  { %3255 = vst [vmem:[%s5342_s2 + $0x68] sm:$0xff] %v3231_v21   ;;  %v3475_v19 = vadd.f32 %v3474_v12, %v3473_v13  ;;  %v2353_v25 = vadd.f32 %v3472_v28, %v5177_v58  ;;  %v3541_v18 = vpop.f32.mrb[78].mxu0 }
 0x22d   :  { %v2783_v43 = vadd.f32 %v2782_v60, %v2752_v22  ;;  %v2714_v7 = vadd.f32 %v2713_v15, %v2509_v40  ;;  %v2516_v35 = vpop.f32.mrb[79].mxu0 }
 0x22e   :  { %v2514_v1 = vadd.f32 %v2513_v47, %v2353_v25  ;;  %v2356_v48 = vadd.f32 %v3475_v19, %v5179_v37 }
 0x22f   :  { %v2784_v49 = vadd.f32 %v2783_v43, %v2753_v57 }
 0x230   :  { %v2715_v54 = vadd.f32 %v2714_v7, %v2514_v1  ;;  %v2754_v51 = vmul.f32 %v2514_v1, %v2514_v1  ;;  %v2517_v63 = vadd.f32 %v2516_v35, %v2356_v48  ;;  %v3476_v9 = vpop.f32.mrb[76].mxu1 }
 0x231   :  { %v3477_v45 = vpop.f32.mrb[77].mxu1 }
 0x232   :  { %v2785_v59 = vadd.f32 %v2784_v49, %v2754_v51  ;;  %v3236_v27 = vpack.c.bf16 %v2517_v63, %v2514_v1  ;;  %v2716_v5 = vadd.f32 %v2715_v54, %v2517_v63  ;;  %v2755_v11 = vmul.f32 %v2517_v63, %v2517_v63  ;;  %v3479_v56 = vpop.f32.mrb[78].mxu1 }
 0x233   :  { %v3478_v58 = vadd.f32 %v3477_v45, %v3476_v9  ;;  %v3480_v33 = vpop.f32.mrb[79].mxu1 }
 0x234   :  { %3256 = vst [vmem:[%s5342_s2 + $0x70] sm:$0xff] %v3236_v27   ;;  %v2786_v17 = vadd.f32 %v2785_v59, %v2755_v11  ;;  %v3481_v8 = vadd.f32 %v3480_v33, %v3479_v56 }
 0x235   :  { %v2361_v37 = vadd.f32 %v3478_v58, %v5183_v34 }
 0x236   :  { %v2364_v3 = vadd.f32 %v3481_v8, %v5185_v0 }
 0x237   :  { %v2522_v38 = vadd.f32 %v3540_v36, %v2361_v37 }
 0x238   :  { %v2525_v23 = vadd.f32 %v3541_v18, %v2364_v3 }
 0x239   :  { %v2717_v50 = vadd.f32 %v2716_v5, %v2522_v38  ;;  %v2756_v30 = vmul.f32 %v2522_v38, %v2522_v38 }
 0x23a   :  { %v3241_v20 = vpack.c.bf16 %v2525_v23, %v2522_v38  ;;  %v2757_v61 = vmul.f32 %v2525_v23, %v2525_v23 }
 0x23b   :  { %v2787_v2 = vadd.f32 %v2786_v17, %v2756_v30  ;;  %v2718_v39 = vadd.f32 %v2717_v50, %v2525_v23 }
 0x23c   :  { %3257 = vst [vmem:[%s5342_s2 + $0x78] sm:$0xff] %v3241_v20  }
 0x23d   :  { %v2719_v46 = vrot.slane %v2718_v39, 4  ;;  %v2788_v62 = vadd.f32 %v2787_v2, %v2757_v61 }
 0x23f   :  { %v2720_v42 = vadd.f32 %v2719_v46, %v2718_v39  ;;  %v2789_v32 = vrot.slane %v2788_v62, 4 }
 0x241   :  { %v2721_v14 = vrot.slane %v2720_v42, 2  ;;  %v2790_v34 = vadd.f32 %v2789_v32, %v2788_v62 }
 0x243   :  { %v2722_v44 = vadd.f32 %v2721_v14, %v2720_v42  ;;  %v2791_v0 = vrot.slane %v2790_v34, 2 }
 0x245   :  { %v2723_v6 = vrot.slane %v2722_v44, 1  ;;  %v2792_v29 = vadd.f32 %v2791_v0, %v2790_v34 }
 0x247   :  { %v2724_v16 = vadd.f32 %v2723_v6, %v2722_v44  ;;  %v2793_v31 = vrot.slane %v2792_v29, 1 }
 0x249   :  { %2725 = vst [vmem:[%s5343_s3] sm:$0x1] %v2724_v16  ;;  %v2794_v53 = vadd.f32 %v2793_v31, %v2792_v29 }
 0x24b   :  { %2795 = vst [vmem:[%s5344_s4] sm:$0x1] %v2794_v53 }

// kernel: down_forward.6
= control target key start
LH: loop header
LB: loop body
LE: loop exit
PB: predicated region body
PF: predicated region fallthrough
CT: control target
= control target key end

     0   :  { %v6683_v4 = vmov 0   ;;  %vm762_vm0 = vsmask.f32 3328  ;;  %vm763_vm1 = vsmask.f32 7440  ;;  %vm547_vm3 = vcmask 1040384   ;;  %s6676_s3 = inlined_call_operand.vmem [shape: bf16[1152,128], index: 3, kind: input, shape index: {}]   ;;  %s6677_s0 = inlined_call_operand.vmem [shape: bf16[256,128], index: 0, kind: input, shape index: {}]   ;;  %s6678_s1 = inlined_call_operand.vmem [shape: f32[1,128], index: 1, kind: input, shape index: {}]   ;;  %s6679_s2 = inlined_call_operand.vmem [shape: f32[1,128], index: 2, kind: input, shape index: {}]   ;;  %s6680_s4 = inlined_call_operand.vmem [shape: bf16[256,128], index: 4, kind: output, shape index: {0}]   ;;  %s6681_s5 = inlined_call_operand.vmem [shape: f32[1,1,128], index: 5, kind: output, shape index: {1}]   ;;  %s6682_s6 = inlined_call_operand.vmem [shape: f32[1,1,128], index: 6, kind: output, shape index: {2}]  }
   0x1   :  { %v4445_v0 = vld [vmem:[%s6676_s3 + $0x40] sm:$0xff]   ;;  %v4447_v2 = vld [vmem:[%s6676_s3 + $0x48] sm:$0xff]   ;;  %v4574_v5 = vcombine.low %v6683_v4, %v6683_v4  ;;  %v4449_v6 = vld [vmem:[%s6676_s3 + $0x50] sm:$0xff]   ;;  %v4592_v12 = vcombine.high %v6683_v4, %v6683_v4  ;;  %vm548_vm2 = vsmask.f32 256  ;;  %vm582_vm4 = vcmask 1044480  }
   0x2   :  { %v4446_v1 = vld [vmem:[%s6676_s3] sm:$0xff]   ;;  %3908 = vmatprep.subr.bf16.mxu0 %v4445_v0  ;;  %4428 = vmatprep.subr.bf16.mxu1 %v4445_v0  ;;  %v4448_v3 = vld [vmem:[%s6676_s3 + $0x8] sm:$0xff]   ;;  %v4450_v7 = vld [vmem:[%s6676_s3 + $0x10] sm:$0xff]   ;;  %vm583_vm6 = vsmask.f32 4352  ;;  %vm1171_vm9 = vcmask 1042432  }
   0x3   :  { %3909 = vmatpush3.bf16.msra.mxu0 %v4446_v1  ;;  %4436 = vmatpush3.bf16.msra.mxu1 %v4446_v1  ;;  %v766_v8 = vshrl.u32 %v4574_v5, 16  ;;  %v4451_v9 = vld [vmem:[%s6676_s3 + $0x58] sm:$0xff]   ;;  %v769_v10 = vshll.u32 %v4574_v5, 16  ;;  %v4453_v14 = vld [vmem:[%s6676_s3 + $0x60] sm:$0xff]   ;;  %v775_v17 = vshll.u32 %v4592_v12, 16  ;;  %v4455_v18 = vld [vmem:[%s6676_s3 + $0x68] sm:$0xff]  }
   0x4   :  { %3910 = vmatprep.subr.bf16.mxu0 %v4447_v2  ;;  %4429 = vmatprep.subr.bf16.mxu1 %v4447_v2  ;;  %v4452_v11 = vld [vmem:[%s6676_s3 + $0x18] sm:$0xff]   ;;  %v4454_v16 = vld [vmem:[%s6676_s3 + $0x20] sm:$0xff]   ;;  %v4456_v28 = vld [vmem:[%s6676_s3 + $0x28] sm:$0xff]   ;;  %vm1172_vm10 = vcmask 1046532  }
   0x5   :  { %v768_v13 = vrot.slane %v766_v8, 4  ;;  %v771_v15 = vrot.slane %v769_v10, 5  ;;  %v3735_v19 = vld [vmem:[%s6677_s0] sm:$0xff]   ;;  %v777_v31 = vrot.slane %v775_v17, 5  ;;  %v4457_v32 = vld [vmem:[%s6676_s3 + $0x70] sm:$0xff]   ;;  %vm4634_vm5 = vmor %vm762_vm0, %vm763_vm1 }
   0x6   :  { %v4610_v20 = vld [vmem:[%s6678_s1] ss:$0 sm:$0xff]  ;;  %v3736_v22 = vunpack.c.l.bf16 %v3735_v19  ;;  %v3737_v23 = vunpack.c.h.bf16 %v3735_v19  ;;  %v4458_v41 = vld [vmem:[%s6676_s3 + $0x30] sm:$0xff]   ;;  %v4459_v42 = vld [vmem:[%s6676_s3 + $0x78] sm:$0xff]  }
   0x7   :  { %3911 = vmatpush3.bf16.msra.mxu0 %v4448_v3  ;;  %4437 = vmatpush3.bf16.msra.mxu1 %v4448_v3  ;;  %v772_v21 = vor.u32 %v771_v15, %v768_v13  ;;  %v4615_v24 = vld [vmem:[%s6679_s2] ss:$0 sm:$0xff]  ;;  %v3878_v48 = vld [vmem:[%s6677_s0 + $0x8] sm:$0xff]   ;;  %v4460_v50 = vld [vmem:[%s6676_s3 + $0x38] sm:$0xff]  }
   0x8   :  { %3912 = vmatprep.subr.bf16.mxu0 %v4449_v6  ;;  %4430 = vmatprep.subr.bf16.mxu1 %v4449_v6  ;;  %v3889_v25 = vld [vmem:[%s6677_s0 + $0x60] sm:$0xff]   ;;  %v92_v29 = vmul.f32 %v3736_v22, %v4610_v20  ;;  %v93_v30 = vmul.f32 %v3737_v23, %v4610_v20  ;;  %v3890_v49 = vld [vmem:[%s6677_s0 + $0x68] sm:$0xff]   ;;  %v3740_v53 = vunpack.c.l.bf16 %v3878_v48  ;;  %v3741_v59 = vunpack.c.h.bf16 %v3878_v48  ;;  %vm4669_vm7 = vmand %vm547_vm3, %vm548_vm2 }
   0x9   :  { %v3784_v26 = vunpack.c.l.bf16 %v3889_v25  ;;  %v3785_v27 = vunpack.c.h.bf16 %v3889_v25  ;;  %v773_v33 = vrot.slane %v772_v21, 4  ;;  %v3788_v54 = vunpack.c.l.bf16 %v3890_v49  ;;  %v4461_v57 = vld [vmem:[%s6676_s3 + $0xc0] sm:$0xff]   ;;  %vm4681_vm8 = vmand %vm582_vm4, %vm583_vm6  ;;  %v4495_v21 = vld [vmem:[%s6676_s3 + $0x170] sm:$0xff]  }
   0xa   :  { %v131_v36 = vadd.f32 %v4615_v24, %v92_v29  ;;  %v132_v37 = vadd.f32 %v4615_v24, %v93_v30  ;;  %v4462_v58 = vld [vmem:[%s6676_s3 + $0x140] sm:$0xff]   ;;  %v3789_v60 = vunpack.c.h.bf16 %v3890_v49  ;;  %v4674_v15 = vmul.f32 %v3741_v59, %v4610_v20  ;;  %vm5096_vm11 = vmor %vm1171_vm9, %vm1172_vm10 }
   0xb   :  { %3913 = vmatpush3.bf16.msra.mxu0 %v4450_v7  ;;  %4438 = vmatpush3.bf16.msra.mxu1 %v4450_v7  ;;  %v116_v34 = vmul.f32 %v3784_v26, %v4610_v20  ;;  %v117_v35 = vmul.f32 %v3785_v27, %v4610_v20  ;;  %v4648_v45 = vsel %vm4634_vm5, %v773_v33, %v777_v31  ;;  %v4693_v27 = vld [vmem:[%s6677_s0 + $0x10] sm:$0xff]  }
   0xc   :  { %3914 = vmatprep.subr.bf16.mxu0 %v4451_v9  ;;  %4431 = vmatprep.subr.bf16.mxu1 %v4451_v9  ;;  %v163_v43 = vmax.f32 %v131_v36, 0.0  ;;  %v164_v44 = vmax.f32 %v132_v37, 0.0  ;;  %6768 = vst [vmem:[#allocation2_spill] sm:$0xff] %v4648_v45  ;;  %v94_v9 = vmul.f32 %v3740_v53, %v4610_v20  ;;  %v118_v10 = vmul.f32 %v3788_v54, %v4610_v20 }
   0xd   :  { %v155_v39 = vadd.f32 %v4615_v24, %v116_v34  ;;  %v156_v40 = vadd.f32 %v4615_v24, %v117_v35 }
   0xe   :  { %v3670_v51 = vpack.c.bf16 %v163_v43, %v163_v43  ;;  %v3671_v52 = vpack.c.bf16 %v164_v44, %v164_v44  ;;  %v133_v22 = vadd.f32 %v4615_v24, %v94_v9  ;;  %v4688_v26 = vadd.f32 %v4615_v24, %v118_v10 }
   0xf   :  { %3915 = vmatpush3.bf16.msra.mxu0 %v4452_v11  ;;  %4439 = vmatpush3.bf16.msra.mxu1 %v4452_v11  ;;  %v187_v46 = vmax.f32 %v155_v39, 0.0  ;;  %v188_v47 = vmax.f32 %v156_v40, 0.0 }
  0x10   :  { %3916 = vmatprep.subr.bf16.mxu0 %v4453_v14  ;;  %4432 = vmatprep.subr.bf16.mxu1 %v4453_v14  ;;  %v292_v61 = vshrl.u32 %v3670_v51, 16  ;;  %v295_v62 = vshll.u32 %v3670_v51, 16  ;;  %v299_v63 = vshrl.u32 %v3671_v52, 16  ;;  %v302_v0 = vshll.u32 %v3671_v52, 16 }
  0x11   :  { %v3694_v55 = vpack.c.bf16 %v187_v46, %v187_v46  ;;  %v3695_v56 = vpack.c.bf16 %v188_v47, %v188_v47  ;;  %v165_v31 = vmax.f32 %v133_v22, 0.0 }
  0x12   :  { %v294_v7 = vrot.slane %v292_v61, 7  ;;  %v301_v8 = vrot.slane %v299_v63, 7 }
  0x13   :  { %3917 = vmatpush3.bf16.msra.mxu0 %v4454_v16  ;;  %4440 = vmatpush3.bf16.msra.mxu1 %v4454_v16  ;;  %v460_v1 = vshrl.u32 %v3694_v55, 16  ;;  %v463_v2 = vshll.u32 %v3694_v55, 16  ;;  %v467_v3 = vshrl.u32 %v3695_v56, 16  ;;  %v470_v6 = vshll.u32 %v3695_v56, 16 }
  0x14   :  { %3918 = vmatprep.subr.bf16.mxu0 %v4455_v18  ;;  %4433 = vmatprep.subr.bf16.mxu1 %v4455_v18  ;;  %v4677_v16 = vmul.f32 %v3789_v60, %v4610_v20  ;;  %v297_v17 = vor.u32 %v295_v62, %v294_v7  ;;  %v304_v18 = vor.u32 %v302_v0, %v301_v8 }
  0x15   :  { %v462_v13 = vrot.slane %v460_v1, 7  ;;  %v469_v14 = vrot.slane %v467_v3, 7  ;;  %v4739_v46 = vpack.c.bf16 %v165_v31, %v165_v31 }
  0x16   :  { %v550_v29 = vsel %vm4669_vm7, 0, %v297_v17  ;;  %v551_v30 = vsel %vm4669_vm7, 0, %v304_v18 }
  0x17   :  { %3919 = vmatpush3.bf16.msra.mxu0 %v4456_v28  ;;  %4441 = vmatpush3.bf16.msra.mxu1 %v4456_v28  ;;  %v465_v23 = vor.u32 %v463_v2, %v462_v13  ;;  %v472_v25 = vor.u32 %v470_v6, %v469_v14  ;;  %v4703_v33 = vsel %vm4681_vm8, %v550_v29, 0  ;;  %v4707_v34 = vsel %vm4681_vm8, %v551_v30, 0 }
  0x18   :  { %3920 = vmatprep.subr.bf16.mxu0 %v4457_v32  ;;  %4434 = vmatprep.subr.bf16.mxu1 %v4457_v32  ;;  %v3744_v32 = vunpack.c.l.bf16 %v4693_v27  ;;  %v4715_v37 = vcombine.low %v4703_v33, %v4703_v33  ;;  %v4719_v39 = vcombine.high %v4703_v33, %v4703_v33  ;;  %v4723_v40 = vcombine.low %v4707_v34, %v4707_v34 }
  0x19   :  { %v574_v35 = vsel %vm4669_vm7, 0, %v465_v23  ;;  %v575_v36 = vsel %vm4669_vm7, 0, %v472_v25  ;;  %v3458_v44 = vcombine.low %v6683_v4, %v4703_v33 }
  0x1a   :  { %v4735_v43 = vsel %vm4681_vm8, %v575_v36, 0  ;;  %v780_v47 = vshrl.u32 %v4715_v37, 16  ;;  %v783_v48 = vshll.u32 %v4715_v37, 16  ;;  %v789_v49 = vshll.u32 %v4719_v39, 16 }
  0x1b   :  { %3921 = vmatpush3.bf16.msra.mxu0 %v4458_v41  ;;  %4442 = vmatpush3.bf16.msra.mxu1 %v4458_v41  ;;  %v4727_v41 = vcombine.high %v4707_v34, %v4707_v34  ;;  %6774 = vst [vmem:[#allocation4_spill] sm:$0xff] %v4735_v43  ;;  %v797_v51 = vshll.u32 %v4723_v40, 16  ;;  %v4758_v62 = vcombine.low %v4735_v43, %v4735_v43 }
  0x1c   :  { %3922 = vmatprep.subr.bf16.mxu0 %v4459_v42  ;;  %4435 = vmatprep.subr.bf16.mxu1 %v4459_v42  ;;  %v4731_v42 = vsel %vm4681_vm8, %v574_v35, 0  ;;  %v782_v55 = vrot.slane %v780_v47, 4  ;;  %v785_v56 = vrot.slane %v783_v48, 5  ;;  %v4762_v0 = vcombine.high %v4735_v43, %v4735_v43  ;;  %v4464_v35 = vld [vmem:[%s6676_s3 + $0x100] sm:$0xff]  }
  0x1d   :  { %6773 = vst [vmem:[#allocation3_spill] sm:$0xff] %v4731_v42  ;;  %v803_v52 = vshll.u32 %v4727_v41, 16  ;;  %v4750_v54 = vcombine.low %v4731_v42, %v4731_v42  ;;  %v799_v59 = vrot.slane %v797_v51, 5  ;;  %v4754_v61 = vcombine.high %v4731_v42, %v4731_v42  ;;  %6777 = vst [vmem:[#allocation7_spill] sm:$0xff] %v4758_v62 }
  0x1e   :  { %v786_v63 = vor.u32 %v785_v56, %v782_v55  ;;  %6778 = vst [vmem:[#allocation8_spill] sm:$0xff] %v4762_v0  ;;  %v1088_v7 = vshrl.u32 %v4758_v62, 16  ;;  %v1091_v8 = vshll.u32 %v4758_v62, 16  ;;  %v1097_v14 = vshll.u32 %v4762_v0, 16 }
  0x1f   :  { %3923 = vmatpush3.bf16.msra.mxu0 %v4460_v50  ;;  %4443 = vmatpush3.bf16.msra.mxu1 %v4460_v50  ;;  %v794_v50 = vshrl.u32 %v4723_v40, 16  ;;  %6775 = vst [vmem:[#allocation5_spill] sm:$0xff] %v4750_v54  ;;  %v805_v60 = vrot.slane %v803_v52, 5  ;;  %6776 = vst [vmem:[#allocation6_spill] sm:$0xff] %v4754_v61  ;;  %v1074_v1 = vshrl.u32 %v4750_v54, 16  ;;  %v1077_v2 = vshll.u32 %v4750_v54, 16 }
  0x20   :  { %4020 = vmatprep.subr.bf16.mxu1 %v4461_v57  ;;  %4132 = vmatprep.subr.bf16.mxu0 %v4462_v58  ;;  %v791_v57 = vrot.slane %v789_v49, 5  ;;  %v1083_v6 = vshll.u32 %v4754_v61, 16  ;;  %v787_v9 = vrot.slane %v786_v63, 4  ;;  %v1090_v22 = vrot.slane %v1088_v7, 4 }
  0x21   :  { %v796_v58 = vrot.slane %v794_v50, 4  ;;  %v1076_v10 = vrot.slane %v1074_v1, 4  ;;  %v1079_v13 = vrot.slane %v1077_v2, 5  ;;  %v1093_v23 = vrot.slane %v1091_v8, 5  ;;  %v4789_v50 = vld [vmem:[%s6677_s0 + $0x70] sm:$0xff]   ;;  %v4465_v1 = vld [vmem:[%s6676_s3 + $0xc8] sm:$0xff]  }
  0x22   :  { %v1085_v18 = vrot.slane %v1083_v6, 5  ;;  %v4772_v25 = vsel %vm4634_vm5, %v787_v9, %v791_v57  ;;  %v1099_v30 = vrot.slane %v1097_v14, 5  ;;  %v3470_v31 = vcombine.low %v6683_v4, %v4731_v42  ;;  %v4470_v57 = vld [vmem:[%s6676_s3 + $0x148] sm:$0xff]   ;;  %v4831_v9 = vld [vmem:[%s6677_s0 + $0x18] sm:$0xff]  }
  0x23   :  { %v800_v3 = vor.u32 %v799_v59, %v796_v58  ;;  %v1080_v29 = vor.u32 %v1079_v13, %v1076_v10  ;;  %v3474_v47 = vcombine.low %v4648_v45, %v4772_v25  ;;  %v1094_v48 = vor.u32 %v1093_v23, %v1090_v22  ;;  %v4463_v59 = vld [vmem:[%s6676_s3 + $0x80] sm:$0xff]  }
  0x24   :  { %v306_v49 = vshrl.u32 %v4739_v46, 16  ;;  %v309_v55 = vshll.u32 %v4739_v46, 16  ;;  %v189_v56 = vmax.f32 %v4688_v26, 0.0  ;;  %v96_v63 = vmul.f32 %v3744_v32, %v4610_v20 }
  0x25   :  { %v801_v17 = vrot.slane %v800_v3, 4  ;;  %v1081_v52 = vrot.slane %v1080_v29, 4  ;;  %2272 = vmatprep.mubr.bf16.mxu0 %v3474_v47  ;;  %v1095_v58 = vrot.slane %v1094_v48, 4  ;;  %v134_v46 = vadd.f32 %v4615_v24, %v4674_v15  ;;  %v4472_v3 = vld [vmem:[%s6676_s3 + $0x108] sm:$0xff]  }
  0x26   :  { %2273 = vmatmul.mubr.bf16.vlgmr.msra.gmra.mrb[0].mxu0 %v3458_v44  ;;  %v3696_v2 = vpack.c.bf16 %v189_v56, %v189_v56  ;;  %v3792_v6 = vunpack.c.l.bf16 %v4789_v50  ;;  %v4819_v32 = vadd.f32 %v4615_v24, %v4677_v16  ;;  %v135_v8 = vadd.f32 %v4615_v24, %v96_v63  ;;  %v4467_v56 = vld [vmem:[%s6676_s3 + $0xd0] sm:$0xff]  }
  0x27   :  { %v4781_v36 = vsel %vm4634_vm5, %v801_v17, %v805_v60  ;;  %v308_v60 = vrot.slane %v306_v49, 7  ;;  %v4808_v26 = vsel %vm4634_vm5, %v1081_v52, %v1085_v18  ;;  %v4823_v15 = vsel %vm4634_vm5, %v1095_v58, %v1099_v30  ;;  %4133 = vmatpush3.bf16.msra.mxu0 %v4464_v35  ;;  %v4478_v17 = vld [vmem:[%s6676_s3 + $0x150] sm:$0xff]   ;;  %v4466_v49 = vld [vmem:[%s6676_s3 + $0x88] sm:$0xff]  }
  0x28   :  { %6779 = vst [vmem:[#allocation9_spill] sm:$0xff] %v4781_v36  ;;  %6780 = vst [vmem:[#allocation10_spill] sm:$0xff] %v4808_v26  ;;  %v3486_v44 = vcombine.low %v4648_v45, %v4808_v26  ;;  %v474_v10 = vshrl.u32 %v3696_v2, 16  ;;  %v477_v13 = vshll.u32 %v3696_v2, 16  ;;  %4134 = vmatprep.subr.bf16.mxu0 %v4470_v57  ;;  %v166_v14 = vmax.f32 %v134_v46, 0.0  ;;  %v4480_v58 = vld [vmem:[%s6676_s3 + $0x110] sm:$0xff]  }
  0x29   :  { %6781 = vst [vmem:[#allocation11_spill] sm:$0xff] %v4823_v15  ;;  %v311_v7 = vor.u32 %v309_v55, %v308_v60  ;;  %v167_v22 = vmax.f32 %v135_v8, 0.0  ;;  %v120_v23 = vmul.f32 %v3792_v6, %v4610_v20  ;;  %v190_v29 = vmax.f32 %v4819_v32, 0.0  ;;  %v4469_v8 = vld [vmem:[%s6676_s3 + $0xd8] sm:$0xff]  }
  0x2a   :  { %2368 = vmatprep.mubr.bf16.mxu1 %v3486_v44  ;;  %v476_v35 = vrot.slane %v474_v10, 7  ;;  %v3673_v47 = vpack.c.bf16 %v166_v14, %v166_v14 }
  0x2b   :  { %v552_v18 = vsel %vm4669_vm7, 0, %v311_v7  ;;  %2369 = vmatmul.mubr.bf16.vlgmr.msra.gmra.mrb[0].mxu1 %v3470_v31  ;;  %4135 = vmatpush3.bf16.msra.mxu0 %v4472_v3  ;;  %v3674_v60 = vpack.c.bf16 %v167_v22, %v167_v22  ;;  %v4468_v3 = vld [vmem:[%s6676_s3 + $0x90] sm:$0xff]   ;;  %v159_v44 = vadd.f32 %v4615_v24, %v120_v23 }
  0x2c   :  { %v4844_v30 = vsel %vm4681_vm8, %v552_v18, 0  ;;  %4021 = vmatpush3.bf16.msra.mxu1 %v4463_v59  ;;  %v479_v59 = vor.u32 %v477_v13, %v476_v35  ;;  %v313_v63 = vshrl.u32 %v3673_v47, 16  ;;  %v316_v46 = vshll.u32 %v3673_v47, 16  ;;  %4136 = vmatprep.subr.bf16.mxu0 %v4478_v17  ;;  %v4486_v35 = vld [vmem:[%s6676_s3 + $0x118] sm:$0xff]   ;;  %v4487_v47 = vld [vmem:[%s6676_s3 + $0x160] sm:$0xff]  }
  0x2d   :  { %v4852_v52 = vcombine.low %v4844_v30, %v4844_v30  ;;  %v4856_v31 = vcombine.high %v4844_v30, %v4844_v30  ;;  %v4860_v55 = vcombine.low %v4707_v34, %v4844_v30  ;;  %4022 = vmatprep.subr.bf16.mxu1 %v4465_v1  ;;  %v4485_v1 = vld [vmem:[%s6676_s3 + $0x158] sm:$0xff]   ;;  %v320_v13 = vshrl.u32 %v3674_v60, 16 }
  0x2e   :  { %v576_v7 = vsel %vm4669_vm7, 0, %v479_v59  ;;  %v315_v10 = vrot.slane %v313_v63, 7  ;;  %v323_v14 = vshll.u32 %v3674_v60, 16 }
  0x2f   :  { %6782 = vst [vmem:[#allocation12_spill] sm:$0xff] %v4860_v55  ;;  %v808_v2 = vshrl.u32 %v4852_v52, 16  ;;  %v811_v6 = vshll.u32 %v4852_v52, 16  ;;  %v817_v32 = vshll.u32 %v4856_v31, 16  ;;  %v4886_v23 = vsel %vm4681_vm8, %v576_v7, 0  ;;  %4137 = vmatpush3.bf16.msra.mxu0 %v4480_v58 }
  0x30   :  { %4023 = vmatpush3.bf16.msra.mxu1 %v4466_v49  ;;  %6783 = vst [vmem:[#allocation13_spill] sm:$0xff] %v4886_v23  ;;  %v4896_v59 = vcombine.low %v4886_v23, %v4886_v23  ;;  %v4900_v49 = vcombine.high %v4886_v23, %v4886_v23  ;;  %v4904_v60 = vcombine.low %v4735_v43, %v4886_v23  ;;  %v4494_v43 = vld [vmem:[%s6676_s3 + $0x190] sm:$0xff]  }
  0x31   :  { %v810_v17 = vrot.slane %v808_v2, 4  ;;  %v813_v18 = vrot.slane %v811_v6, 5  ;;  %v819_v22 = vrot.slane %v817_v32, 5  ;;  %4024 = vmatprep.subr.bf16.mxu1 %v4467_v56  ;;  %v318_v58 = vor.u32 %v316_v46, %v315_v10  ;;  %v4471_v2 = vld [vmem:[%s6676_s3 + $0x98] sm:$0xff]   ;;  %4138 = vmatprep.subr.bf16.mxu0 %v4485_v1 }
  0x32   :  { %6784 = vst [vmem:[#allocation14_spill] sm:$0xff] %v4896_v59  ;;  %6785 = vst [vmem:[#allocation15_spill] sm:$0xff] %v4900_v49  ;;  %v322_v6 = vrot.slane %v320_v13, 7  ;;  %v191_v32 = vmax.f32 %v159_v44, 0.0  ;;  %v3697_v7 = vpack.c.bf16 %v190_v29, %v190_v29  ;;  %v1102_v16 = vshrl.u32 %v4896_v59, 16  ;;  %v4473_v29 = vld [vmem:[%s6676_s3 + $0xe0] sm:$0xff]  }
  0x33   :  { %6786 = vst [vmem:[#allocation16_spill] sm:$0xff] %v4904_v60  ;;  %v814_v63 = vor.u32 %v813_v18, %v810_v17  ;;  %v1105_v51 = vshll.u32 %v4896_v59, 16  ;;  %v1111_v4 = vshll.u32 %v4900_v49, 16  ;;  %v553_v53 = vsel %vm4669_vm7, 0, %v318_v58  ;;  %4139 = vmatpush3.bf16.msra.mxu0 %v4486_v35  ;;  %v4489_v44 = vld [vmem:[%s6676_s3 + $0x120] sm:$0xff]  }
  0x34   :  { %4025 = vmatpush3.bf16.msra.mxu1 %v4468_v3  ;;  %v325_v46 = vor.u32 %v323_v14, %v322_v6  ;;  %v4916_v10 = vsel %vm4681_vm8, %v553_v53, 0  ;;  %v4918_v13 = vpack.c.bf16 %v191_v32, %v191_v32  ;;  %v1104_v1 = vrot.slane %v1102_v16, 4  ;;  %4140 = vmatprep.subr.bf16.mxu0 %v4487_v47  ;;  %v4491_v53 = vld [vmem:[%s6676_s3 + $0x168] sm:$0xff]   ;;  %v4474_v58 = vld [vmem:[%s6676_s3 + $0xa0] sm:$0xff]  }
  0x35   :  { %v815_v56 = vrot.slane %v814_v63, 4  ;;  %v1107_v17 = vrot.slane %v1105_v51, 5  ;;  %v1113_v18 = vrot.slane %v1111_v4, 5  ;;  %4026 = vmatprep.subr.bf16.mxu1 %v4469_v8  ;;  %v4928_v3 = vcombine.low %v4916_v10, %v4916_v10  ;;  %v4492_v63 = vld [vmem:[%s6676_s3 + $0x128] sm:$0xff]  }
  0x36   :  { %v554_v35 = vsel %vm4669_vm7, 0, %v325_v46  ;;  %v4941_v4 = vcombine.high %v4916_v10, %v4916_v10  ;;  %v481_v51 = vshrl.u32 %v3697_v7, 16  ;;  %v484_v28 = vshll.u32 %v3697_v7, 16  ;;  %v4476_v7 = vld [vmem:[%s6676_s3 + $0xa8] sm:$0xff]  }
  0x37   :  { %v4935_v14 = vsel %vm4634_vm5, %v815_v56, %v819_v22  ;;  %v1108_v8 = vor.u32 %v1107_v17, %v1104_v1  ;;  %v4949_v47 = vsel %vm4681_vm8, %v554_v35, 0  ;;  %v822_v22 = vshrl.u32 %v4928_v3, 16  ;;  %4141 = vmatpush3.bf16.msra.mxu0 %v4489_v44 }
  0x38   :  { %6787 = vst [vmem:[#allocation17_spill] sm:$0xff] %v4935_v14  ;;  %v4945_v16 = vcombine.low %v4781_v36, %v4935_v14  ;;  %4027 = vmatpush3.bf16.msra.mxu1 %v4471_v2  ;;  %v4960_v6 = vcombine.low %v4949_v47, %v4949_v47  ;;  %v4964_v32 = vcombine.high %v4949_v47, %v4949_v47  ;;  %v825_v56 = vshll.u32 %v4928_v3, 16  ;;  %v4475_v2 = vld [vmem:[%s6676_s3 + $0xe8] sm:$0xff]  }
  0x39   :  { %v831_v46 = vshll.u32 %v4941_v4, 16  ;;  %v1109_v1 = vrot.slane %v1108_v8, 4  ;;  %v824_v17 = vrot.slane %v822_v22, 4  ;;  %v483_v35 = vrot.slane %v481_v51, 7  ;;  %4028 = vmatprep.subr.bf16.mxu1 %v4473_v29  ;;  %4142 = vmatprep.subr.bf16.mxu0 %v4491_v53  ;;  %v4477_v53 = vld [vmem:[%s6676_s3 + $0xf0] sm:$0xff]  }
  0x3a   :  { %6788 = vst [vmem:[#allocation18_spill] sm:$0xff] %v4945_v16  ;;  %2280 = vmatprep.mubr.bf16.mxu0 %v4945_v16  ;;  %v827_v57 = vrot.slane %v825_v56, 5  ;;  %v836_v44 = vshrl.u32 %v4960_v6, 16  ;;  %v839_v8 = vshll.u32 %v4960_v6, 16  ;;  %v845_v51 = vshll.u32 %v4964_v32, 16 }
  0x3b   :  { %2281 = vmatmul.mubr.bf16.gmra.mrb[4].mxu0 %v4860_v55  ;;  %v833_v48 = vrot.slane %v831_v46, 5  ;;  %v4983_v29 = vsel %vm4634_vm5, %v1109_v1, %v1113_v18  ;;  %v486_v22 = vor.u32 %v484_v28, %v483_v35  ;;  %v488_v26 = vshrl.u32 %v4918_v13, 16  ;;  %v4496_v18 = vld [vmem:[%s6676_s3 + $0x130] sm:$0xff]  }
  0x3c   :  { %6789 = vst [vmem:[#allocation19_spill] sm:$0xff] %v4983_v29  ;;  %v4989_v56 = vcombine.low %v4823_v15, %v4983_v29  ;;  %v828_v46 = vor.u32 %v827_v57, %v824_v17  ;;  %v838_v55 = vrot.slane %v836_v44, 4  ;;  %v841_v16 = vrot.slane %v839_v8, 5  ;;  %4029 = vmatpush3.bf16.msra.mxu1 %v4474_v58  ;;  %4143 = vmatpush3.bf16.msra.mxu0 %v4492_v63  ;;  %v4481_v44 = vld [vmem:[%s6676_s3 + $0xf8] sm:$0xff]  }
  0x3d   :  { %v847_v28 = vrot.slane %v845_v51, 5  ;;  %v490_v1 = vrot.slane %v488_v26, 7  ;;  %v491_v35 = vshll.u32 %v4918_v13, 16  ;;  %v577_v29 = vsel %vm4669_vm7, 0, %v486_v22  ;;  %4030 = vmatprep.subr.bf16.mxu1 %v4475_v2  ;;  %4144 = vmatprep.subr.bf16.mxu0 %v4495_v21  ;;  %v4479_v26 = vld [vmem:[%s6676_s3 + $0xb0] sm:$0xff]  }
  0x3e   :  { %6790 = vst [vmem:[#allocation20_spill] sm:$0xff] %v4989_v56  ;;  %2376 = vmatprep.mubr.bf16.mxu1 %v4989_v56  ;;  %v829_v57 = vrot.slane %v828_v46, 4  ;;  %v842_v58 = vor.u32 %v841_v16, %v838_v55  ;;  %v5003_v63 = vsel %vm4681_vm8, %v577_v29, 0  ;;  %v5007_v17 = vcombine.low %v4916_v10, %v4949_v47 }
  0x3f   :  { %6791 = vst [vmem:[#allocation21_spill] sm:$0xff] %v5003_v63  ;;  %2377 = vmatmul.mubr.bf16.gmra.mrb[4].mxu1 %v4904_v60  ;;  %v493_v21 = vor.u32 %v491_v35, %v490_v1  ;;  %v5015_v55 = vcombine.low %v5003_v63, %v5003_v63  ;;  %v5019_v13 = vcombine.high %v5003_v63, %v5003_v63  ;;  %v6795_v16 = vunpack.c.h.bf16 %v4693_v27  ;;  %v4499_v27 = vld [vmem:[%s6676_s3 + $0x178] sm:$0xff]   ;;  %v4483_v60 = vld [vmem:[%s6676_s3 + $0x1c0] sm:$0xff]  }
  0x40   :  { %6792 = vst [vmem:[#allocation22_spill] sm:$0xff] %v5007_v17  ;;  %v5029_v8 = vsel %vm4634_vm5, %v829_v57, %v833_v48  ;;  %v843_v29 = vrot.slane %v842_v58, 4  ;;  %4031 = vmatpush3.bf16.msra.mxu1 %v4476_v7  ;;  %v6797_v51 = vunpack.c.l.bf16 %v4831_v9  ;;  %v3793_v46 = vunpack.c.h.bf16 %v4789_v50  ;;  %4145 = vmatpush3.bf16.msra.mxu0 %v4496_v18  ;;  %v3892_v58 = vld [vmem:[%s6677_s0 + $0x78] sm:$0xff]  }
  0x41   :  { %6793 = vst [vmem:[#allocation23_spill] sm:$0xff] %v5015_v55  ;;  %6794 = vst [vmem:[#allocation24_spill] sm:$0xff] %v5019_v13  ;;  %v97_v2 = vmul.f32 %v6795_v16, %v4610_v20  ;;  %v578_v1 = vsel %vm4669_vm7, 0, %v493_v21  ;;  %v1116_v35 = vshrl.u32 %v5015_v55, 16  ;;  %v1119_v48 = vshll.u32 %v5015_v55, 16  ;;  %4032 = vmatprep.subr.bf16.mxu1 %v4477_v53  ;;  %4146 = vmatprep.subr.bf16.mxu0 %v4499_v27  ;;  %v4500_v53 = vld [vmem:[%s6676_s3 + $0x138] sm:$0xff]  }
  0x42   :  { %6796 = vst [vmem:[#allocation25_spill] sm:$0xff] %v5029_v8  ;;  %v98_v22 = vmul.f32 %v6797_v51, %v4610_v20  ;;  %v1125_v7 = vshll.u32 %v5019_v13, 16  ;;  %v5045_v9 = vsel %vm4634_vm5, %v843_v29, %v847_v28  ;;  %v5049_v50 = vsel %vm4681_vm8, %v578_v1, 0  ;;  %v4482_v29 = vld [vmem:[%s6676_s3 + $0xb8] sm:$0xff]  }
  0x43   :  { %6798 = vst [vmem:[#allocation26_spill] sm:$0xff] %v5045_v9  ;;  %6799 = vst [vmem:[#allocation27_spill] sm:$0xff] %v5049_v50  ;;  %v136_v18 = vadd.f32 %v4615_v24, %v97_v2  ;;  %v5061_v28 = vcombine.low %v5029_v8, %v5045_v9  ;;  %v5065_v21 = vcombine.low %v5049_v50, %v5049_v50  ;;  %v1118_v2 = vrot.slane %v1116_v35, 4 }
  0x44   :  { %v137_v57 = vadd.f32 %v4615_v24, %v98_v22  ;;  %v5069_v16 = vcombine.high %v5049_v50, %v5049_v50  ;;  %v1121_v51 = vrot.slane %v1119_v48, 5  ;;  %v1127_v22 = vrot.slane %v1125_v7, 5  ;;  %4033 = vmatpush3.bf16.msra.mxu1 %v4479_v26  ;;  %4147 = vmatpush3.bf16.msra.mxu0 %v4500_v53 }
  0x45   :  { %6800 = vst [vmem:[#allocation28_spill] sm:$0xff] %v5061_v28  ;;  %6801 = vst [vmem:[#allocation29_spill] sm:$0xff] %v5065_v21  ;;  %v5076_v27 = vcombine.low %v5003_v63, %v5049_v50  ;;  %v168_v1 = vmax.f32 %v136_v18, 0.0  ;;  %2288 = vmatprep.mubr.bf16.mxu0 %v5061_v28  ;;  %v1130_v35 = vshrl.u32 %v5065_v21, 16  ;;  %v1133_v56 = vshll.u32 %v5065_v21, 16  ;;  %4034 = vmatprep.subr.bf16.mxu1 %v4481_v44  ;;  %v5090_v28 = vld [vmem:[%s6677_s0 + $0x20] sm:$0xff]  }
  0x46   :  { %6802 = vst [vmem:[#allocation30_spill] sm:$0xff] %v5069_v16  ;;  %v1139_v48 = vshll.u32 %v5069_v16, 16  ;;  %v169_v7 = vmax.f32 %v137_v57, 0.0  ;;  %v1122_v15 = vor.u32 %v1121_v51, %v1118_v2  ;;  %2289 = vmatmul.mubr.bf16.gmra.mrb[8].mxu0 %v5007_v17  ;;  %v3796_v26 = vunpack.c.l.bf16 %v3892_v58 }
  0x47   :  { %6803 = vst [vmem:[#allocation31_spill] sm:$0xff] %v5076_v27  ;;  %v3675_v18 = vpack.c.bf16 %v168_v1, %v168_v1  ;;  %v121_v13 = vmul.f32 %v3793_v46, %v4610_v20  ;;  %v1132_v55 = vrot.slane %v1130_v35, 4  ;;  %v1135_v50 = vrot.slane %v1133_v56, 5 }
  0x48   :  { %v1141_v53 = vrot.slane %v1139_v48, 5  ;;  %v3676_v49 = vpack.c.bf16 %v169_v7, %v169_v7  ;;  %v1123_v21 = vrot.slane %v1122_v15, 4  ;;  %v122_v44 = vmul.f32 %v3796_v26, %v4610_v20  ;;  %4035 = vmatpush3.bf16.msra.mxu1 %v4482_v29 }
  0x49   :  { %v327_v16 = vshrl.u32 %v3675_v18, 16  ;;  %v330_v57 = vshll.u32 %v3675_v18, 16  ;;  %v1136_v2 = vor.u32 %v1135_v50, %v1132_v55  ;;  %v160_v46 = vadd.f32 %v4615_v24, %v121_v13  ;;  %4244 = vmatprep.subr.bf16.mxu1 %v4483_v60 }
  0x4a   :  { %v334_v51 = vshrl.u32 %v3676_v49, 16  ;;  %v337_v58 = vshll.u32 %v3676_v49, 16  ;;  %v5102_v15 = vsel %vm4634_vm5, %v1123_v21, %v1127_v22  ;;  %v161_v35 = vadd.f32 %v4615_v24, %v122_v44 }
  0x4b   :  { %6806 = vst [vmem:[#allocation32_spill] sm:$0xff] %v5102_v15  ;;  %v329_v1 = vrot.slane %v327_v16, 7  ;;  %v3752_v55 = vunpack.c.l.bf16 %v5090_v28  ;;  %v1137_v50 = vrot.slane %v1136_v2, 4  ;;  %v192_v29 = vmax.f32 %v160_v46, 0.0 }
  0x4c   :  { %v336_v49 = vrot.slane %v334_v51, 7  ;;  %v193_v7 = vmax.f32 %v161_v35, 0.0  ;;  %v6807_v60 = vrot.slane %v4592_v12, 5  ;;  %v6808_v21 = vrot.slane %v4574_v5, 9 }
  0x4d   :  { %v332_v48 = vor.u32 %v330_v57, %v329_v1  ;;  %v100_v18 = vmul.f32 %v3752_v55, %v4610_v20  ;;  %v5119_v22 = vsel %vm4634_vm5, %v1137_v50, %v1141_v53  ;;  %v3699_v44 = vpack.c.bf16 %v192_v29, %v192_v29 }
  0x4e   :  { %v5115_v16 = vsel %vm5096_vm11, %v6808_v21, %v6807_v60  ;;  %6809 = vst [vmem:[#allocation33_spill] sm:$0xff] %v5119_v22  ;;  %v339_v26 = vor.u32 %v337_v58, %v336_v49  ;;  %v5124_v57 = vcombine.low %v5102_v15, %v5119_v22  ;;  %v3700_v5 = vpack.c.bf16 %v193_v7, %v193_v7 }
  0x4f   :  { %v555_v12 = vsel %vm4669_vm7, 0, %v332_v48  ;;  %v5129_v20 = vadd.f32 %v4615_v24, %v100_v18  ;;  %v495_v58 = vshrl.u32 %v3699_v44, 16  ;;  %v498_v46 = vshll.u32 %v3699_v44, 16 }
  0x50   :  { %6810 = vst [vmem:[#allocation34_spill] sm:$0xff] %v5124_v57  ;;  %v556_v51 = vsel %vm4669_vm7, 0, %v339_v26  ;;  %v5135_v53 = vsel %vm4681_vm8, %v555_v12, 0  ;;  %2384 = vmatprep.mubr.bf16.mxu1 %v5124_v57  ;;  %v502_v55 = vshrl.u32 %v3700_v5, 16  ;;  %v505_v48 = vshll.u32 %v3700_v5, 16 }
  0x51   :  { %v5140_v1 = vsel %vm4681_vm8, %v556_v51, 0  ;;  %v5144_v35 = vcombine.low %v5135_v53, %v5135_v53  ;;  %v5148_v24 = vcombine.high %v5135_v53, %v5135_v53  ;;  %2385 = vmatmul.mubr.bf16.gmra.mrb[8].mxu1 %v5076_v27  ;;  %v497_v29 = vrot.slane %v495_v58, 7 }
  0x52   :  { %v5153_v50 = vcombine.low %v5140_v1, %v5140_v1  ;;  %v5157_v49 = vcombine.high %v5140_v1, %v5140_v1  ;;  %v504_v21 = vrot.slane %v502_v55, 7  ;;  %v4502_v55 = vld [vmem:[%s6676_s3 + $0x200] sm:$0xff]  }
  0x53   :  { %v850_v7 = vshrl.u32 %v5144_v35, 16  ;;  %v853_v18 = vshll.u32 %v5144_v35, 16  ;;  %v859_v60 = vshll.u32 %v5148_v24, 16  ;;  %v500_v51 = vor.u32 %v498_v46, %v497_v29  ;;  %4380 = vmatprep.subr.bf16.mxu0 %v4502_v55 }
  0x54   :  { %v864_v26 = vshrl.u32 %v5153_v50, 16  ;;  %v867_v44 = vshll.u32 %v5153_v50, 16  ;;  %v873_v12 = vshll.u32 %v5157_v49, 16  ;;  %v507_v57 = vor.u32 %v505_v48, %v504_v21 }
  0x55   :  { %v852_v13 = vrot.slane %v850_v7, 4  ;;  %v855_v2 = vrot.slane %v853_v18, 5  ;;  %v861_v27 = vrot.slane %v859_v60, 5  ;;  %v579_v15 = vsel %vm4669_vm7, 0, %v500_v51 }
  0x56   :  { %v866_v58 = vrot.slane %v864_v26, 4  ;;  %v869_v5 = vrot.slane %v867_v44, 5  ;;  %v875_v22 = vrot.slane %v873_v12, 5  ;;  %v580_v59 = vsel %vm4669_vm7, 0, %v507_v57 }
  0x57   :  { %v856_v17 = vor.u32 %v855_v2, %v852_v13  ;;  %v5174_v46 = vsel %vm4681_vm8, %v579_v15, 0  ;;  %v5178_v29 = vcombine.low %v5135_v53, %v5140_v1  ;;  %v5182_v7 = vsel %vm4681_vm8, %v580_v59, 0 }
  0x58   :  { %6811 = vst [vmem:[#allocation35_spill] sm:$0xff] %v5174_v46  ;;  %v870_v48 = vor.u32 %v869_v5, %v866_v58  ;;  %6813 = vst [vmem:[#allocation37_spill] sm:$0xff] %v5182_v7  ;;  %v5186_v18 = vcombine.low %v5174_v46, %v5174_v46  ;;  %v5190_v13 = vcombine.high %v5174_v46, %v5174_v46  ;;  %v1204_v9 = vrot.slane %v5157_v49, 5  ;;  %v4510_v49 = vld [vmem:[%s6676_s3 + $0x1f8] sm:$0xff]  }
  0x59   :  { %6812 = vst [vmem:[#allocation36_spill] sm:$0xff] %v5178_v29  ;;  %v857_v15 = vrot.slane %v856_v17, 4  ;;  %v5194_v2 = vcombine.low %v5182_v7, %v5182_v7  ;;  %v5198_v57 = vcombine.high %v5182_v7, %v5182_v7  ;;  %v5202_v59 = vcombine.low %v5174_v46, %v5182_v7 }
  0x5a   :  { %6814 = vst [vmem:[#allocation38_spill] sm:$0xff] %v5186_v18  ;;  %6815 = vst [vmem:[#allocation39_spill] sm:$0xff] %v5190_v13  ;;  %v871_v60 = vrot.slane %v870_v48, 4  ;;  %v1144_v21 = vshrl.u32 %v5186_v18, 16  ;;  %v1147_v26 = vshll.u32 %v5186_v18, 16  ;;  %v1153_v44 = vshll.u32 %v5190_v13, 16 }
  0x5b   :  { %6816 = vst [vmem:[#allocation40_spill] sm:$0xff] %v5194_v2  ;;  %6817 = vst [vmem:[#allocation41_spill] sm:$0xff] %v5198_v57  ;;  %v5209_v17 = vsel %vm4634_vm5, %v857_v15, %v861_v27  ;;  %v1158_v12 = vshrl.u32 %v5194_v2, 16  ;;  %v1161_v51 = vshll.u32 %v5194_v2, 16  ;;  %v1167_v58 = vshll.u32 %v5198_v57, 16  ;;  %v3882_v13 = vld [vmem:[%s6677_s0 + $0x28] sm:$0xff]  }
  0x5c   :  { %6818 = vst [vmem:[#allocation42_spill] sm:$0xff] %v5202_v59  ;;  %6819 = vst [vmem:[#allocation43_spill] sm:$0xff] %v5209_v17  ;;  %v5216_v5 = vsel %vm4634_vm5, %v871_v60, %v875_v22  ;;  %v1146_v55 = vrot.slane %v1144_v21, 4  ;;  %v1149_v48 = vrot.slane %v1147_v26, 5  ;;  %v1155_v7 = vrot.slane %v1153_v44, 5 }
  0x5d   :  { %6820 = vst [vmem:[#allocation44_spill] sm:$0xff] %v5216_v5  ;;  %v5223_v27 = vcombine.low %v5209_v17, %v5216_v5  ;;  %v1160_v15 = vrot.slane %v1158_v12, 4  ;;  %v1163_v18 = vrot.slane %v1161_v51, 5  ;;  %v1169_v2 = vrot.slane %v1167_v58, 5  ;;  %v4509_v17 = vld [vmem:[%s6676_s3 + $0x1b0] sm:$0xff]  }
  0x5e   :  { %v1150_v46 = vor.u32 %v1149_v48, %v1146_v55  ;;  %v171_v57 = vmax.f32 %v5129_v20, 0.0  ;;  %v6822_v22 = vrot.slane %v4719_v39, 5  ;;  %v6823_v60 = vrot.slane %v4715_v37, 9  ;;  %v5244_v39 = vld [vmem:[%s6678_s1] ss:$0 sm:$0xff] }
  0x5f   :  { %6821 = vst [vmem:[#allocation45_spill] sm:$0xff] %v5223_v27  ;;  %v3753_v26 = vunpack.c.h.bf16 %v5090_v28  ;;  %2296 = vmatprep.mubr.bf16.mxu0 %v5223_v27  ;;  %v1164_v44 = vor.u32 %v1163_v18, %v1160_v15  ;;  %v3756_v51 = vunpack.c.l.bf16 %v3882_v13  ;;  %v3419_v18 = vrot.slane %v4723_v40, 9  ;;  %v5258_v20 = vld [vmem:[%s6679_s2] ss:$0 sm:$0xff] }
  0x60   :  { %v5232_v21 = vsel %vm5096_vm11, %v6823_v60, %v6822_v22  ;;  %v1151_v58 = vrot.slane %v1150_v46, 4  ;;  %2297 = vmatmul.mubr.bf16.gmra.mrb[12].mxu0 %v5178_v29  ;;  %v3678_v37 = vpack.c.bf16 %v171_v57, %v171_v57  ;;  %v1184_v15 = vrot.slane %v4727_v41, 5 }
  0x61   :  { %v101_v28 = vmul.f32 %v5244_v39, %v3753_v26  ;;  %v1165_v55 = vrot.slane %v1164_v44, 4  ;;  %v102_v48 = vmul.f32 %v5244_v39, %v3756_v51  ;;  %v3420_v22 = vrot.slane %v4852_v52, 9  ;;  %v5264_v26 = vld [vmem:[%s6677_s0 + $0x30] sm:$0xff]  }
  0x62   :  { %v5253_v46 = vsel %vm4634_vm5, %v1151_v58, %v1155_v7  ;;  %v348_v57 = vshrl.u32 %v3678_v37, 16  ;;  %v351_v60 = vshll.u32 %v3678_v37, 16  ;;  %v5273_v7 = vsel %vm5096_vm11, %v3419_v18, %v1184_v15  ;;  %v6899_v19 = vld [vmem:[#allocation40_spill] sm:$0xff] }
  0x63   :  { %6824 = vst [vmem:[#allocation46_spill] sm:$0xff] %v5253_v46  ;;  %v140_v40 = vadd.f32 %v5258_v20, %v101_v28  ;;  %v5268_v41 = vsel %vm4634_vm5, %v1165_v55, %v1169_v2  ;;  %v141_v52 = vadd.f32 %v5258_v20, %v102_v48  ;;  %v1188_v44 = vrot.slane %v4856_v31, 5 }
  0x64   :  { %6825 = vst [vmem:[#allocation47_spill] sm:$0xff] %v5268_v41  ;;  %v5278_v51 = vcombine.low %v5253_v46, %v5268_v41  ;;  %v350_v58 = vrot.slane %v348_v57, 7  ;;  %v3757_v28 = vunpack.c.h.bf16 %v3882_v13  ;;  %v3760_v55 = vunpack.c.l.bf16 %v5264_v26  ;;  %v4484_v41 = vld [vmem:[%s6676_s3 + $0x180] sm:$0xff]  }
  0x65   :  { %v172_v37 = vmax.f32 %v140_v40, 0.0  ;;  %v173_v12 = vmax.f32 %v141_v52, 0.0  ;;  %v5282_v2 = vsel %vm5096_vm11, %v3420_v22, %v1188_v44  ;;  %v3421_v40 = vrot.slane %v4928_v3, 9 }
  0x66   :  { %6826 = vst [vmem:[#allocation48_spill] sm:$0xff] %v5278_v51  ;;  %2392 = vmatprep.mubr.bf16.mxu1 %v5278_v51  ;;  %v353_v31 = vor.u32 %v351_v60, %v350_v58  ;;  %v5290_v15 = vcombine.low %v5273_v7, %v5282_v2  ;;  %v103_v13 = vmul.f32 %v5244_v39, %v3757_v28  ;;  %v1192_v52 = vrot.slane %v4941_v4, 5 }
  0x67   :  { %v3679_v48 = vpack.c.bf16 %v172_v37, %v172_v37  ;;  %2393 = vmatmul.mubr.bf16.gmra.mrb[12].mxu1 %v5202_v59  ;;  %v3680_v57 = vpack.c.bf16 %v173_v12, %v173_v12  ;;  %v104_v22 = vmul.f32 %v5244_v39, %v3760_v55  ;;  %v6828_v60 = vcombine.low %v4703_v33, %v4707_v34 }
  0x68   :  { %6827 = vst [vmem:[#allocation49_spill] sm:$0xff] %v5290_v15  ;;  %v558_v44 = vsel %vm4669_vm7, 0, %v353_v31  ;;  %v142_v28 = vadd.f32 %v5258_v20, %v103_v13  ;;  %v6829_v34 = vmov 0   ;;  %v6830_v62 = vcombine.low %v5115_v16, %v5232_v21 }
  0x69   :  { %2433 = vmatprep.mubr.bf16.mxu1 %v6828_v60  ;;  %v355_v58 = vshrl.u32 %v3679_v48, 16  ;;  %v358_v37 = vshll.u32 %v3679_v48, 16  ;;  %v5305_v12 = vsel %vm4681_vm8, %v558_v44, 0  ;;  %v362_v55 = vshrl.u32 %v3680_v57, 16 }
  0x6a   :  { %v365_v18 = vshll.u32 %v3680_v57, 16  ;;  %v143_v3 = vadd.f32 %v5258_v20, %v104_v22  ;;  %v5310_v4 = vcombine.low %v5305_v12, %v5305_v12  ;;  %v5314_v33 = vcombine.high %v5305_v12, %v5305_v12 }
  0x6b   :  { %v5318_v31 = vcombine.low %v6829_v34, %v5305_v12  ;;  %v357_v48 = vrot.slane %v355_v58, 7  ;;  %v364_v13 = vrot.slane %v362_v55, 7  ;;  %v174_v44 = vmax.f32 %v142_v28, 0.0 }
  0x6c   :  { %v175_v60 = vmax.f32 %v143_v3, 0.0  ;;  %v5322_v57 = vsel %vm5096_vm11, %v3421_v40, %v1192_v52  ;;  %v878_v22 = vshrl.u32 %v5310_v4, 16  ;;  %v881_v59 = vshll.u32 %v5310_v4, 16  ;;  %v4488_v40 = vld [vmem:[%s6676_s3 + $0x1c8] sm:$0xff]  }
  0x6d   :  { %v887_v51 = vshll.u32 %v5314_v33, 16  ;;  %v360_v46 = vor.u32 %v358_v37, %v357_v48  ;;  %v367_v29 = vor.u32 %v365_v18, %v364_v13  ;;  %v3681_v58 = vpack.c.bf16 %v174_v44, %v174_v44 }
  0x6e   :  { %v5330_v55 = vpack.c.bf16 %v175_v60, %v175_v60  ;;  %v880_v52 = vrot.slane %v878_v22, 4  ;;  %v883_v3 = vrot.slane %v881_v59, 5 }
  0x6f   :  { %v889_v27 = vrot.slane %v887_v51, 5  ;;  %v559_v0 = vsel %vm4669_vm7, 0, %v360_v46  ;;  %2434 = vmatmul.mubr.bf16.vlgmr.msra.gmra.mrb[16].mxu1 %v6830_v62  ;;  %v560_v18 = vsel %vm4669_vm7, 0, %v367_v29  ;;  %v369_v48 = vshrl.u32 %v3681_v58, 16  ;;  %v4490_v29 = vld [vmem:[%s6676_s3 + $0x188] sm:$0xff]  }
  0x70   :  { %v5345_v37 = vsel %vm4681_vm8, %v559_v0, 0  ;;  %v372_v13 = vshll.u32 %v3681_v58, 16  ;;  %v884_v44 = vor.u32 %v883_v3, %v880_v52  ;;  %4245 = vmatpush3.bf16.msra.mxu1 %v4484_v41  ;;  %v5349_v59 = vsel %vm4681_vm8, %v560_v18, 0 }
  0x71   :  { %v5353_v46 = vcombine.low %v5345_v37, %v5345_v37  ;;  %v5357_v62 = vcombine.high %v5345_v37, %v5345_v37  ;;  %v6831_v0 = vcombine.low %v4844_v30, %v4916_v10  ;;  %v5367_v41 = vcombine.low %v5349_v59, %v5349_v59  ;;  %4246 = vmatprep.subr.bf16.mxu1 %v4488_v40  ;;  %v4493_v30 = vld [vmem:[%s6676_s3 + $0x1d0] sm:$0xff]  }
  0x72   :  { %v5371_v51 = vcombine.high %v5349_v59, %v5349_v59  ;;  %v5375_v60 = vcombine.low %v5345_v37, %v5349_v59  ;;  %v371_v22 = vrot.slane %v369_v48, 7  ;;  %v885_v10 = vrot.slane %v884_v44, 4 }
  0x73   :  { %2441 = vmatprep.mubr.bf16.mxu1 %v6831_v0  ;;  %v892_v58 = vshrl.u32 %v5353_v46, 16  ;;  %v895_v52 = vshll.u32 %v5353_v46, 16  ;;  %v901_v3 = vshll.u32 %v5357_v62, 16  ;;  %v906_v18 = vshrl.u32 %v5367_v41, 16 }
  0x74   :  { %6832 = vst [vmem:[#allocation50_spill] sm:$0xff] %v5375_v60  ;;  %v909_v0 = vshll.u32 %v5367_v41, 16  ;;  %v915_v28 = vshll.u32 %v5371_v51, 16  ;;  %v374_v23 = vor.u32 %v372_v13, %v371_v22  ;;  %v5388_v40 = vsel %vm4634_vm5, %v885_v10, %v889_v27  ;;  %4247 = vmatpush3.bf16.msra.mxu1 %v4490_v29  ;;  %v5402_v29 = vld [vmem:[%s6677_s0 + $0x38] sm:$0xff]  }
  0x75   :  { %6833 = vst [vmem:[#allocation51_spill] sm:$0xff] %v5388_v40  ;;  %v894_v48 = vrot.slane %v892_v58, 4  ;;  %v897_v63 = vrot.slane %v895_v52, 5  ;;  %v903_v44 = vrot.slane %v901_v3, 5  ;;  %v3478_v5 = vcombine.low %v4648_v45, %v5388_v40  ;;  %4248 = vmatprep.subr.bf16.mxu1 %v4493_v30 }
  0x76   :  { %v908_v61 = vrot.slane %v906_v18, 4  ;;  %v911_v54 = vrot.slane %v909_v0, 5  ;;  %v917_v42 = vrot.slane %v915_v28, 5  ;;  %v376_v22 = vshrl.u32 %v5330_v55, 16  ;;  %v4497_v28 = vld [vmem:[%s6676_s3 + $0x1d8] sm:$0xff]  }
  0x77   :  { %v898_v13 = vor.u32 %v897_v63, %v894_v48  ;;  %v379_v27 = vshll.u32 %v5330_v55, 16  ;;  %v561_v10 = vsel %vm4669_vm7, 0, %v374_v23  ;;  %2304 = vmatprep.mubr.bf16.mxu0 %v3478_v5  ;;  %2442 = vmatmul.mubr.bf16.gmra.mrb[20].mxu1 %v5290_v15  ;;  %v1196_v55 = vrot.slane %v4964_v32, 5  ;;  %v4498_v0 = vld [vmem:[%s6676_s3 + $0x198] sm:$0xff]  }
  0x78   :  { %v912_v30 = vor.u32 %v911_v54, %v908_v61  ;;  %v5410_v63 = vsel %vm4681_vm8, %v561_v10, 0  ;;  %v3761_v23 = vunpack.c.h.bf16 %v5264_v26  ;;  %2305 = vmatmul.mubr.bf16.gmra.mrb[16].mxu0 %v5318_v31  ;;  %v378_v52 = vrot.slane %v376_v22, 7  ;;  %4249 = vmatpush3.bf16.msra.mxu1 %v4494_v43 }
  0x79   :  { %v899_v58 = vrot.slane %v898_v13, 4  ;;  %v5417_v3 = vcombine.low %v5410_v63, %v5410_v63  ;;  %v5421_v54 = vcombine.high %v5410_v63, %v5410_v63  ;;  %v6834_v61 = vcombine.low %v4949_v47, %v5135_v53  ;;  %4250 = vmatprep.subr.bf16.mxu1 %v4497_v28 }
  0x7a   :  { %v913_v5 = vrot.slane %v912_v30, 4  ;;  %v6835_v32 = vrot.slane %v4960_v6, 9  ;;  %v3764_v31 = vunpack.c.l.bf16 %v5402_v29  ;;  %v105_v18 = vmul.f32 %v5244_v39, %v3761_v23 }
  0x7b   :  { %2449 = vmatprep.mubr.bf16.mxu1 %v6834_v61  ;;  %v5439_v47 = vsel %vm4634_vm5, %v899_v58, %v903_v44  ;;  %v381_v53 = vor.u32 %v379_v27, %v378_v52  ;;  %v920_v6 = vshrl.u32 %v5417_v3, 16  ;;  %v923_v48 = vshll.u32 %v5417_v3, 16  ;;  %v4501_v44 = vld [vmem:[%s6676_s3 + $0x1e0] sm:$0xff]  }
  0x7c   :  { %v5430_v26 = vsel %vm5096_vm11, %v6835_v32, %v1196_v55  ;;  %6837 = vst [vmem:[#allocation53_spill] sm:$0xff] %v5439_v47  ;;  %v5445_v13 = vsel %vm4634_vm5, %v913_v5, %v917_v42  ;;  %v929_v43 = vshll.u32 %v5421_v54, 16  ;;  %v106_v10 = vmul.f32 %v5244_v39, %v3764_v31  ;;  %4251 = vmatpush3.bf16.msra.mxu1 %v4498_v0  ;;  %v4503_v52 = vld [vmem:[%s6676_s3 + $0x1a0] sm:$0xff]   ;;  %v4504_v31 = vld [vmem:[%s6676_s3 + $0x1e8] sm:$0xff]  }
  0x7d   :  { %6836 = vst [vmem:[#allocation52_spill] sm:$0xff] %v5430_v26  ;;  %6838 = vst [vmem:[#allocation54_spill] sm:$0xff] %v5445_v13  ;;  %v5450_v22 = vcombine.low %v5322_v57, %v5430_v26  ;;  %v5458_v27 = vcombine.low %v5439_v47, %v5445_v13  ;;  %v562_v42 = vsel %vm4669_vm7, 0, %v381_v53  ;;  %v922_v28 = vrot.slane %v920_v6, 4  ;;  %v4519_v6 = vld [vmem:[%s6677_s0 + $0x18] sm:$0xff]   ;;  %4252 = vmatprep.subr.bf16.mxu1 %v4501_v44  ;;  %v4506_v44 = vld [vmem:[%s6676_s3 + $0x1a8] sm:$0xff]  }
  0x7e   :  { %v925_v30 = vrot.slane %v923_v48, 5  ;;  %v5464_v55 = vsel %vm4681_vm8, %v562_v42, 0  ;;  %v144_v23 = vadd.f32 %v5258_v20, %v105_v18  ;;  %v145_v58 = vadd.f32 %v5258_v20, %v106_v10  ;;  %v5504_v13 = vld [vmem:[%s6677_s0 + $0x40] sm:$0xff]  }
  0x7f   :  { %6839 = vst [vmem:[#allocation55_spill] sm:$0xff] %v5450_v22  ;;  %6840 = vst [vmem:[#allocation56_spill] sm:$0xff] %v5458_v27  ;;  %2312 = vmatprep.mubr.bf16.mxu0 %v5458_v27  ;;  %v5474_v61 = vcombine.low %v5464_v55, %v5464_v55  ;;  %v5478_v5 = vcombine.high %v5464_v55, %v5464_v55  ;;  %v931_v18 = vrot.slane %v929_v43, 5  ;;  %2450 = vmatmul.mubr.bf16.gmra.mrb[24].mxu1 %v5450_v22 }
  0x80   :  { %v926_v32 = vor.u32 %v925_v30, %v922_v28  ;;  %v176_v0 = vmax.f32 %v144_v23, 0.0  ;;  %v177_v53 = vmax.f32 %v145_v58, 0.0  ;;  %v3749_v48 = vunpack.c.h.bf16 %v4519_v6  ;;  %2313 = vmatmul.mubr.bf16.gmra.mrb[20].mxu0 %v5375_v60  ;;  %4253 = vmatpush3.bf16.msra.mxu1 %v4503_v52 }
  0x81   :  { %v934_v10 = vshrl.u32 %v5474_v61, 16  ;;  %v937_v42 = vshll.u32 %v5474_v61, 16  ;;  %v943_v28 = vshll.u32 %v5478_v5, 16  ;;  %v5493_v43 = vcombine.low %v5410_v63, %v5464_v55  ;;  %4254 = vmatprep.subr.bf16.mxu1 %v4504_v31 }
  0x82   :  { %v3683_v30 = vpack.c.bf16 %v176_v0, %v176_v0  ;;  %v3684_v23 = vpack.c.bf16 %v177_v53, %v177_v53  ;;  %v99_v58 = vmul.f32 %v5244_v39, %v3749_v48  ;;  %v3423_v22 = vrot.slane %v5144_v35, 9  ;;  %v4507_v35 = vld [vmem:[%s6676_s3 + $0x1f0] sm:$0xff]  }
  0x83   :  { %6841 = vst [vmem:[#allocation57_spill] sm:$0xff] %v5493_v43  ;;  %v927_v6 = vrot.slane %v926_v32, 4  ;;  %v936_v15 = vrot.slane %v934_v10, 4  ;;  %v939_v60 = vrot.slane %v937_v42, 5  ;;  %v1200_v27 = vrot.slane %v5148_v24, 5 }
  0x84   :  { %v383_v52 = vshrl.u32 %v3683_v30, 16  ;;  %v386_v0 = vshll.u32 %v3683_v30, 16  ;;  %v390_v53 = vshrl.u32 %v3684_v23, 16  ;;  %v393_v48 = vshll.u32 %v3684_v23, 16  ;;  %4255 = vmatpush3.bf16.msra.mxu1 %v4506_v44 }
  0x85   :  { %v940_v40 = vor.u32 %v939_v60, %v936_v15  ;;  %v945_v32 = vrot.slane %v943_v28, 5  ;;  %v138_v10 = vadd.f32 %v5258_v20, %v99_v58  ;;  %v3424_v24 = vrot.slane %v5153_v50, 9  ;;  %4256 = vmatprep.subr.bf16.mxu1 %v4507_v35 }
  0x86   :  { %v385_v42 = vrot.slane %v383_v52, 7  ;;  %v392_v47 = vrot.slane %v390_v53, 7  ;;  %v3768_v31 = vunpack.c.l.bf16 %v5504_v13  ;;  %v5518_v30 = vsel %vm4634_vm5, %v927_v6, %v931_v18 }
  0x87   :  { %6842 = vst [vmem:[#allocation58_spill] sm:$0xff] %v5518_v30  ;;  %v941_v15 = vrot.slane %v940_v40, 4  ;;  %v170_v60 = vmax.f32 %v138_v10, 0.0  ;;  %v5522_v50 = vsel %vm5096_vm11, %v3423_v22, %v1200_v27  ;;  %v5536_v22 = vsel %vm5096_vm11, %v3424_v24, %v1204_v9  ;;  %v4512_v9 = vld [vmem:[%s6676_s3 + $0x1b8] sm:$0xff]  }
  0x88   :  { %6843 = vst [vmem:[#allocation59_spill] sm:$0xff] %v5522_v50  ;;  %v388_v28 = vor.u32 %v386_v0, %v385_v42  ;;  %v395_v23 = vor.u32 %v393_v48, %v392_v47  ;;  %v108_v58 = vmul.f32 %v5244_v39, %v3768_v31  ;;  %6845 = vst [vmem:[#allocation61_spill] sm:$0xff] %v5536_v22  ;;  %v3425_v27 = vrot.slane %v5310_v4, 9 }
  0x89   :  { %v5532_v40 = vsel %vm4634_vm5, %v941_v15, %v945_v32  ;;  %v3677_v18 = vpack.c.bf16 %v170_v60, %v170_v60  ;;  %4257 = vmatpush3.bf16.msra.mxu1 %v4509_v17  ;;  %v5579_v31 = vcombine.low %v5522_v50, %v5536_v22  ;;  %v1208_v60 = vrot.slane %v5314_v33, 5 }
  0x8a   :  { %6844 = vst [vmem:[#allocation60_spill] sm:$0xff] %v5532_v40  ;;  %v5541_v6 = vcombine.low %v5518_v30, %v5532_v40  ;;  %v563_v47 = vsel %vm4669_vm7, 0, %v388_v28  ;;  %v564_v35 = vsel %vm4669_vm7, 0, %v395_v23  ;;  %v147_v52 = vadd.f32 %v5258_v20, %v108_v58  ;;  %4258 = vmatprep.subr.bf16.mxu1 %v4510_v49 }
  0x8b   :  { %v5553_v4 = vsel %vm4681_vm8, %v563_v47, 0  ;;  %v5557_v0 = vsel %vm4681_vm8, %v564_v35, 0  ;;  %v341_v53 = vshrl.u32 %v3677_v18, 16  ;;  %v344_v48 = vshll.u32 %v3677_v18, 16  ;;  %6847 = vst [vmem:[#allocation63_spill] sm:$0xff] %v5579_v31 }
  0x8c   :  { %6846 = vst [vmem:[#allocation62_spill] sm:$0xff] %v5541_v6  ;;  %2320 = vmatprep.mubr.bf16.mxu0 %v5541_v6  ;;  %v5562_v17 = vcombine.low %v5553_v4, %v5553_v4  ;;  %v5566_v32 = vcombine.high %v5553_v4, %v5553_v4  ;;  %v5570_v10 = vcombine.low %v5557_v0, %v5557_v0  ;;  %v179_v15 = vmax.f32 %v147_v52, 0.0 }
  0x8d   :  { %v5574_v24 = vcombine.high %v5557_v0, %v5557_v0  ;;  %2321 = vmatmul.mubr.bf16.gmra.mrb[24].mxu0 %v5493_v43  ;;  %v343_v42 = vrot.slane %v341_v53, 7  ;;  %4259 = vmatpush3.bf16.msra.mxu1 %v4512_v9  ;;  %v5590_v33 = vcombine.low %v5553_v4, %v5557_v0  ;;  %v5596_v9 = vsel %vm5096_vm11, %v3425_v27, %v1208_v60 }
  0x8e   :  { %v948_v49 = vshrl.u32 %v5562_v17, 16  ;;  %v951_v28 = vshll.u32 %v5562_v17, 16  ;;  %v957_v23 = vshll.u32 %v5566_v32, 16  ;;  %v962_v58 = vshrl.u32 %v5570_v10, 16 }
  0x8f   :  { %v965_v18 = vshll.u32 %v5570_v10, 16  ;;  %v971_v47 = vshll.u32 %v5574_v24, 16  ;;  %v346_v35 = vor.u32 %v344_v48, %v343_v42  ;;  %v3686_v53 = vpack.c.bf16 %v179_v15, %v179_v15  ;;  %6848 = vst [vmem:[#allocation64_spill] sm:$0xff] %v5590_v33  ;;  %v3886_v48 = vld [vmem:[%s6677_s0 + $0x48] sm:$0xff]  }
  0x90   :  { %v950_v44 = vrot.slane %v948_v49, 4  ;;  %v953_v43 = vrot.slane %v951_v28, 5  ;;  %v964_v52 = vrot.slane %v962_v58, 4  ;;  %v959_v15 = vrot.slane %v957_v23, 5 }
  0x91   :  { %v967_v6 = vrot.slane %v965_v18, 5  ;;  %v557_v40 = vsel %vm4669_vm7, 0, %v346_v35  ;;  %v404_v30 = vshrl.u32 %v3686_v53, 16  ;;  %v407_v28 = vshll.u32 %v3686_v53, 16 }
  0x92   :  { %v954_v42 = vor.u32 %v953_v43, %v950_v44  ;;  %v5603_v49 = vsel %vm4681_vm8, %v557_v40, 0  ;;  %v973_v18 = vrot.slane %v971_v47, 5  ;;  %v3494_v27 = vcombine.low %v5115_v16, %v5596_v9 }
  0x93   :  { %v968_v58 = vor.u32 %v967_v6, %v964_v52  ;;  %v3509_v35 = vcombine.low %v5140_v1, %v5603_v49  ;;  %v406_v22 = vrot.slane %v404_v30, 7  ;;  %v3769_v60 = vunpack.c.h.bf16 %v5504_v13 }
  0x94   :  { %v955_v26 = vrot.slane %v954_v42, 4  ;;  %v3772_v50 = vunpack.c.l.bf16 %v3886_v48  ;;  %v3426_v40 = vrot.slane %v5353_v46, 9  ;;  %v1212_v23 = vrot.slane %v5357_v62, 5 }
  0x95   :  { %v969_v43 = vrot.slane %v968_v58, 4  ;;  %2457 = vmatprep.mubr.bf16.mxu1 %v3509_v35  ;;  %v409_v44 = vor.u32 %v407_v28, %v406_v22  ;;  %v109_v1 = vmul.f32 %v5244_v39, %v3769_v60  ;;  %v3427_v13 = vrot.slane %v5367_v41, 9 }
  0x96   :  { %v5614_v6 = vsel %vm4634_vm5, %v955_v26, %v959_v15  ;;  %2458 = vmatmul.mubr.bf16.gmra.mrb[28].mxu1 %v5579_v31  ;;  %v110_v30 = vmul.f32 %v5244_v39, %v3772_v50  ;;  %v6851_v62 = vcombine.low %v5305_v12, %v5345_v37  ;;  %v3511_v26 = vcombine.low %v5349_v59, %v5410_v63  ;;  %v5645_v12 = vld [vmem:[%s6677_s0 + $0x50] sm:$0xff]  }
  0x97   :  { %6849 = vst [vmem:[#allocation65_spill] sm:$0xff] %v5614_v6  ;;  %v5622_v47 = vsel %vm4634_vm5, %v969_v43, %v973_v18  ;;  %v566_v46 = vsel %vm4669_vm7, 0, %v409_v44  ;;  %v1216_v22 = vrot.slane %v5371_v51, 5  ;;  %v148_v53 = vadd.f32 %v5258_v20, %v109_v1 }
  0x98   :  { %6850 = vst [vmem:[#allocation66_spill] sm:$0xff] %v5622_v47  ;;  %2465 = vmatprep.mubr.bf16.mxu1 %v6851_v62  ;;  %v5634_v50 = vcombine.low %v5614_v6, %v5622_v47  ;;  %v5638_v41 = vsel %vm4681_vm8, %v566_v46, 0  ;;  %v149_v52 = vadd.f32 %v5258_v20, %v110_v30  ;;  %v5657_v51 = vsel %vm5096_vm11, %v3426_v40, %v1212_v23 }
  0x99   :  { %v5649_v37 = vcombine.low %v5638_v41, %v5638_v41  ;;  %v5653_v59 = vcombine.high %v5638_v41, %v5638_v41  ;;  %v5661_v63 = vsel %vm5096_vm11, %v3427_v13, %v1216_v22  ;;  %v3466_v42 = vcombine.low %v6829_v34, %v5638_v41 }
  0x9a   :  { %6852 = vst [vmem:[#allocation67_spill] sm:$0xff] %v5634_v50  ;;  %2328 = vmatprep.mubr.bf16.mxu0 %v5634_v50  ;;  %v180_v15 = vmax.f32 %v148_v53, 0.0  ;;  %v181_v28 = vmax.f32 %v149_v52, 0.0  ;;  %v3773_v58 = vunpack.c.h.bf16 %v3886_v48  ;;  %v3776_v43 = vunpack.c.l.bf16 %v5645_v12 }
  0x9b   :  { %2329 = vmatmul.mubr.bf16.gmra.mrb[28].mxu0 %v5590_v33  ;;  %v976_v18 = vshrl.u32 %v5649_v37, 16  ;;  %v979_v35 = vshll.u32 %v5649_v37, 16  ;;  %v985_v60 = vshll.u32 %v5653_v59, 16  ;;  %v5673_v23 = vcombine.low %v5657_v51, %v5661_v63 }
  0x9c   :  { %v3687_v44 = vpack.c.bf16 %v180_v15, %v180_v15  ;;  %v3688_v40 = vpack.c.bf16 %v181_v28, %v181_v28  ;;  %v111_v1 = vmul.f32 %v5244_v39, %v3773_v58  ;;  %v112_v46 = vmul.f32 %v5244_v39, %v3776_v43 }
  0x9d   :  { %6853 = vst [vmem:[#allocation68_spill] sm:$0xff] %v5673_v23  ;;  %v978_v30 = vrot.slane %v976_v18, 4  ;;  %v981_v48 = vrot.slane %v979_v35, 5  ;;  %v987_v13 = vrot.slane %v985_v60, 5  ;;  %v3428_v33 = vrot.slane %v5417_v3, 9 }
  0x9e   :  { %2466 = vmatmul.mubr.bf16.gmra.mrb[32].mxu1 %v3494_v27  ;;  %v411_v62 = vshrl.u32 %v3687_v44, 16  ;;  %v414_v22 = vshll.u32 %v3687_v44, 16  ;;  %v418_v53 = vshrl.u32 %v3688_v40, 16  ;;  %v421_v52 = vshll.u32 %v3688_v40, 16 }
  0x9f   :  { %v982_v31 = vor.u32 %v981_v48, %v978_v30  ;;  %2473 = vmatprep.mubr.bf16.mxu1 %v3511_v26  ;;  %v150_v15 = vadd.f32 %v5258_v20, %v111_v1  ;;  %v151_v28 = vadd.f32 %v5258_v20, %v112_v46  ;;  %v1220_v18 = vrot.slane %v5421_v54, 5 }
  0xa0   :  { %v413_v50 = vrot.slane %v411_v62, 7  ;;  %v420_v58 = vrot.slane %v418_v53, 7  ;;  %v3429_v35 = vrot.slane %v5474_v61, 9  ;;  %v1224_v44 = vrot.slane %v5478_v5, 5 }
  0xa1   :  { %v983_v60 = vrot.slane %v982_v31, 4  ;;  %v182_v27 = vmax.f32 %v150_v15, 0.0  ;;  %v183_v43 = vmax.f32 %v151_v28, 0.0  ;;  %v3512_v26 = vcombine.low %v5464_v55, %v5553_v4 }
  0xa2   :  { %v416_v40 = vor.u32 %v414_v22, %v413_v50  ;;  %v423_v30 = vor.u32 %v421_v52, %v420_v58  ;;  %v5687_v1 = vsel %vm5096_vm11, %v3428_v33, %v1220_v18  ;;  %v3777_v31 = vunpack.c.h.bf16 %v5645_v12 }
  0xa3   :  { %v5691_v3 = vsel %vm4634_vm5, %v983_v60, %v987_v13  ;;  %v3689_v54 = vpack.c.bf16 %v182_v27, %v182_v27  ;;  %v3690_v61 = vpack.c.bf16 %v183_v43, %v183_v43  ;;  %v5702_v4 = vsel %vm5096_vm11, %v3429_v35, %v1224_v44 }
  0xa4   :  { %6854 = vst [vmem:[#allocation69_spill] sm:$0xff] %v5691_v3  ;;  %v3482_v5 = vcombine.low %v4648_v45, %v5691_v3  ;;  %v567_v50 = vsel %vm4669_vm7, 0, %v416_v40  ;;  %v568_v55 = vsel %vm4669_vm7, 0, %v423_v30  ;;  %v5731_v58 = vcombine.low %v5687_v1, %v5702_v4  ;;  %v5742_v30 = vld [vmem:[%s6677_s0 + $0x58] sm:$0xff]  }
  0xa5   :  { %v5706_v33 = vsel %vm4681_vm8, %v567_v50, 0  ;;  %v5710_v12 = vsel %vm4681_vm8, %v568_v55, 0  ;;  %v425_v48 = vshrl.u32 %v3689_v54, 16  ;;  %v428_v13 = vshll.u32 %v3689_v54, 16 }
  0xa6   :  { %2336 = vmatprep.mubr.bf16.mxu0 %v3482_v5  ;;  %v5714_v46 = vcombine.low %v5706_v33, %v5706_v33  ;;  %v5718_v62 = vcombine.high %v5706_v33, %v5706_v33  ;;  %v5722_v22 = vcombine.low %v5710_v12, %v5710_v12  ;;  %v5726_v53 = vcombine.high %v5710_v12, %v5710_v12 }
  0xa7   :  { %2337 = vmatmul.mubr.bf16.gmra.mrb[32].mxu0 %v3466_v42  ;;  %2474 = vmatmul.mubr.bf16.gmra.mrb[36].mxu1 %v5673_v23  ;;  %v427_v52 = vrot.slane %v425_v48, 7  ;;  %v432_v15 = vshrl.u32 %v3690_v61, 16  ;;  %v435_v28 = vshll.u32 %v3690_v61, 16  ;;  %6855 = vst [vmem:[#allocation70_spill] sm:$0xff] %v5731_v58 }
  0xa8   :  { %v990_v18 = vshrl.u32 %v5714_v46, 16  ;;  %v993_v35 = vshll.u32 %v5714_v46, 16  ;;  %v999_v60 = vshll.u32 %v5718_v62, 16  ;;  %v1004_v27 = vshrl.u32 %v5722_v22, 16  ;;  %2481 = vmatprep.mubr.bf16.mxu1 %v3512_v26 }
  0xa9   :  { %v1007_v42 = vshll.u32 %v5722_v22, 16  ;;  %v1013_v43 = vshll.u32 %v5726_v53, 16  ;;  %v430_v44 = vor.u32 %v428_v13, %v427_v52  ;;  %v434_v40 = vrot.slane %v432_v15, 7 }
  0xaa   :  { %v992_v54 = vrot.slane %v990_v18, 4  ;;  %v995_v61 = vrot.slane %v993_v35, 5  ;;  %v1001_v5 = vrot.slane %v999_v60, 5  ;;  %v1006_v50 = vrot.slane %v1004_v27, 4 }
  0xab   :  { %v1009_v55 = vrot.slane %v1007_v42, 5  ;;  %v1015_v48 = vrot.slane %v1013_v43, 5  ;;  %v437_v23 = vor.u32 %v435_v28, %v434_v40  ;;  %v569_v26 = vsel %vm4669_vm7, 0, %v430_v44 }
  0xac   :  { %v996_v34 = vor.u32 %v995_v61, %v992_v54  ;;  %v5748_v13 = vsel %vm4681_vm8, %v569_v26, 0  ;;  %v3780_v52 = vunpack.c.l.bf16 %v5742_v30  ;;  %v113_v15 = vmul.f32 %v5244_v39, %v3777_v31 }
  0xad   :  { %v1010_v45 = vor.u32 %v1009_v55, %v1006_v50  ;;  %v570_v18 = vsel %vm4669_vm7, 0, %v437_v23  ;;  %v5756_v35 = vcombine.low %v5748_v13, %v5748_v13  ;;  %v5760_v28 = vcombine.high %v5748_v13, %v5748_v13 }
  0xae   :  { %v997_v60 = vrot.slane %v996_v34, 4  ;;  %v5764_v27 = vsel %vm4681_vm8, %v570_v18, 0  ;;  %v114_v42 = vmul.f32 %v5244_v39, %v3780_v52  ;;  %v152_v31 = vadd.f32 %v5258_v20, %v113_v15 }
  0xaf   :  { %v1011_v43 = vrot.slane %v1010_v45, 4  ;;  %v5770_v23 = vcombine.low %v5764_v27, %v5764_v27  ;;  %v5774_v44 = vcombine.high %v5764_v27, %v5764_v27  ;;  %v1018_v40 = vshrl.u32 %v5756_v35, 16  ;;  %2482 = vmatmul.mubr.bf16.gmra.mrb[40].mxu1 %v5731_v58 }
  0xb0   :  { %v5780_v34 = vsel %vm4634_vm5, %v997_v60, %v1001_v5  ;;  %v5784_v54 = vcombine.low %v5706_v33, %v5710_v12  ;;  %v1021_v45 = vshll.u32 %v5756_v35, 16  ;;  %v1027_v61 = vshll.u32 %v5760_v28, 16 }
  0xb1   :  { %6856 = vst [vmem:[#allocation71_spill] sm:$0xff] %v5780_v34  ;;  %v5790_v50 = vsel %vm4634_vm5, %v1011_v43, %v1015_v48  ;;  %v1020_v55 = vrot.slane %v1018_v40, 4  ;;  %v1032_v26 = vshrl.u32 %v5770_v23, 16  ;;  %v1035_v52 = vshll.u32 %v5770_v23, 16 }
  0xb2   :  { %6857 = vst [vmem:[#allocation72_spill] sm:$0xff] %v5784_v54  ;;  %6858 = vst [vmem:[#allocation73_spill] sm:$0xff] %v5790_v50  ;;  %v5796_v5 = vcombine.low %v5780_v34, %v5790_v50  ;;  %v1023_v15 = vrot.slane %v1021_v45, 5  ;;  %v1041_v18 = vshll.u32 %v5774_v44, 16  ;;  %v153_v47 = vadd.f32 %v5258_v20, %v114_v42 }
  0xb3   :  { %v1034_v60 = vrot.slane %v1032_v26, 4  ;;  %v1037_v58 = vrot.slane %v1035_v52, 5  ;;  %v184_v6 = vmax.f32 %v152_v31, 0.0  ;;  %v1029_v43 = vrot.slane %v1027_v61, 5 }
  0xb4   :  { %6859 = vst [vmem:[#allocation74_spill] sm:$0xff] %v5796_v5  ;;  %2344 = vmatprep.mubr.bf16.mxu0 %v5796_v5  ;;  %v1024_v48 = vor.u32 %v1023_v15, %v1020_v55  ;;  %v3765_v40 = vunpack.c.h.bf16 %v5402_v29  ;;  %v1043_v14 = vrot.slane %v1041_v18, 5  ;;  %v185_v50 = vmax.f32 %v153_v47, 0.0 }
  0xb5   :  { %2345 = vmatmul.mubr.bf16.gmra.mrb[36].mxu0 %v5784_v54  ;;  %v1038_v3 = vor.u32 %v1037_v58, %v1034_v60  ;;  %v3691_v34 = vpack.c.bf16 %v184_v6, %v184_v6  ;;  %v5810_v29 = vcombine.low %v5748_v13, %v5764_v27  ;;  %v3430_v18 = vrot.slane %v5562_v17, 9 }
  0xb6   :  { %v1025_v45 = vrot.slane %v1024_v48, 4  ;;  %v107_v8 = vmul.f32 %v5244_v39, %v3765_v40  ;;  %v3692_v52 = vpack.c.bf16 %v185_v50, %v185_v50 }
  0xb7   :  { %v1039_v26 = vrot.slane %v1038_v3, 4  ;;  %v439_v36 = vshrl.u32 %v3691_v34, 16  ;;  %v442_v42 = vshll.u32 %v3691_v34, 16  ;;  %6860 = vst [vmem:[#allocation75_spill] sm:$0xff] %v5810_v29 }
  0xb8   :  { %v5806_v31 = vsel %vm4634_vm5, %v1025_v45, %v1029_v43  ;;  %v146_v58 = vadd.f32 %v5258_v20, %v107_v8  ;;  %v446_v61 = vshrl.u32 %v3692_v52, 16  ;;  %v449_v3 = vshll.u32 %v3692_v52, 16 }
  0xb9   :  { %v5815_v6 = vsel %vm4634_vm5, %v1039_v26, %v1043_v14  ;;  %v441_v47 = vrot.slane %v439_v36, 7  ;;  %v1228_v8 = vrot.slane %v5566_v32, 5  ;;  %v3431_v14 = vrot.slane %v5570_v10, 9 }
  0xba   :  { %v5819_v34 = vcombine.low %v5806_v31, %v5815_v6  ;;  %v178_v50 = vmax.f32 %v146_v58, 0.0  ;;  %v448_v15 = vrot.slane %v446_v61, 7  ;;  %v1232_v36 = vrot.slane %v5574_v24, 5 }
  0xbb   :  { %v444_v55 = vor.u32 %v442_v42, %v441_v47  ;;  %v5849_v42 = vsel %vm5096_vm11, %v3430_v18, %v1228_v8 }
  0xbc   :  { %6861 = vst [vmem:[#allocation76_spill] sm:$0xff] %v5819_v34  ;;  %2352 = vmatprep.mubr.bf16.mxu0 %v5819_v34  ;;  %v3685_v60 = vpack.c.bf16 %v178_v50, %v178_v50  ;;  %v451_v48 = vor.u32 %v449_v3, %v448_v15  ;;  %v5853_v58 = vsel %vm5096_vm11, %v3431_v14, %v1232_v36 }
  0xbd   :  { %2353 = vmatmul.mubr.bf16.gmra.mrb[40].mxu0 %v5810_v29  ;;  %v571_v43 = vsel %vm4669_vm7, 0, %v444_v55 }
  0xbe   :  { %v5831_v40 = vsel %vm4681_vm8, %v571_v43, 0  ;;  %v397_v17 = vshrl.u32 %v3685_v60, 16  ;;  %v400_v45 = vshll.u32 %v3685_v60, 16  ;;  %v572_v26 = vsel %vm4669_vm7, 0, %v451_v48 }
  0xbf   :  { %v5837_v32 = vcombine.low %v5831_v40, %v5831_v40  ;;  %v5841_v10 = vcombine.high %v5831_v40, %v5831_v40  ;;  %v5845_v24 = vsel %vm4681_vm8, %v572_v26, 0 }
  0xc0   :  { %v399_v52 = vrot.slane %v397_v17, 7  ;;  %v5857_v47 = vcombine.low %v5845_v24, %v5845_v24  ;;  %v5861_v61 = vcombine.high %v5845_v24, %v5845_v24  ;;  %v5873_v17 = vcombine.low %v5849_v42, %v5853_v58 }
  0xc1   :  { %v1046_v3 = vshrl.u32 %v5837_v32, 16  ;;  %v1049_v50 = vshll.u32 %v5837_v32, 16  ;;  %v1055_v55 = vshll.u32 %v5841_v10, 16 }
  0xc2   :  { %v402_v15 = vor.u32 %v400_v45, %v399_v52  ;;  %v1060_v8 = vshrl.u32 %v5857_v47, 16  ;;  %v1063_v14 = vshll.u32 %v5857_v47, 16  ;;  %v1069_v48 = vshll.u32 %v5861_v61, 16 }
  0xc3   :  { %v1048_v18 = vrot.slane %v1046_v3, 4  ;;  %v1051_v60 = vrot.slane %v1049_v50, 5  ;;  %v1057_v36 = vrot.slane %v1055_v55, 5  ;;  %v3514_v3 = vcombine.low %v5638_v41, %v5706_v33 }
  0xc4   :  { %v565_v43 = vsel %vm4669_vm7, 0, %v402_v15  ;;  %v1062_v29 = vrot.slane %v1060_v8, 4  ;;  %v1065_v34 = vrot.slane %v1063_v14, 5  ;;  %v3432_v50 = vrot.slane %v5649_v37, 9 }
  0xc5   :  { %v1052_v26 = vor.u32 %v1051_v60, %v1048_v18  ;;  %v5877_v45 = vsel %vm4681_vm8, %v565_v43, 0  ;;  %v1236_v55 = vrot.slane %v5653_v59, 5  ;;  %v1071_v5 = vrot.slane %v1069_v48, 5 }
  0xc6   :  { %v3513_v52 = vcombine.low %v5557_v0, %v5877_v45  ;;  %v1066_v54 = vor.u32 %v1065_v34, %v1062_v29  ;;  %v3781_v41 = vunpack.c.h.bf16 %v5742_v30  ;;  %v5901_v59 = vcombine.low %v5831_v40, %v5845_v24 }
  0xc7   :  { %v1053_v15 = vrot.slane %v1052_v26, 4  ;;  %v5892_v0 = vsel %vm5096_vm11, %v3432_v50, %v1236_v55  ;;  %v3433_v34 = vrot.slane %v5714_v46, 9  ;;  %v1240_v8 = vrot.slane %v5718_v62, 5  ;;  %v4505_v50 = vld [vmem:[%s6676_s3 + $0x208] sm:$0xff]  }
  0xc8   :  { %2489 = vmatprep.mubr.bf16.mxu1 %v3513_v52  ;;  %v1067_v60 = vrot.slane %v1066_v54, 4  ;;  %v3538_v54 = vcombine.low %v5232_v21, %v5273_v7  ;;  %v115_v29 = vmul.f32 %v5244_v39, %v3781_v41  ;;  %v3498_v30 = vcombine.low %v5115_v16, %v5892_v0 }
  0xc9   :  { %v5887_v18 = vsel %vm4634_vm5, %v1053_v15, %v1057_v36  ;;  %2490 = vmatmul.mubr.bf16.gmra.mrb[44].mxu1 %v5873_v17  ;;  %v3434_v14 = vrot.slane %v5722_v22, 9  ;;  %v1244_v36 = vrot.slane %v5726_v53, 5  ;;  %v3542_v7 = vcombine.low %v5596_v9, %v5657_v51 }
  0xca   :  { %2497 = vmatprep.mubr.bf16.mxu1 %v3514_v3  ;;  %v5897_v37 = vsel %vm4634_vm5, %v1067_v60, %v1071_v5  ;;  %v3515_v5 = vcombine.low %v5710_v12, %v5748_v13  ;;  %v154_v21 = vadd.f32 %v5258_v20, %v115_v29  ;;  %v5925_v12 = vsel %vm5096_vm11, %v3433_v34, %v1240_v8  ;;  %v6862_v60 = vld [vmem:[#allocation9_spill] sm:$0xff] }
  0xcb   :  { %v5905_v33 = vcombine.low %v5887_v18, %v5897_v37  ;;  %v5929_v46 = vsel %vm5096_vm11, %v3434_v14, %v1244_v36  ;;  %v3543_v20 = vcombine.low %v5661_v63, %v5687_v1  ;;  %v3446_v22 = vcombine.low %v5603_v49, %v5603_v49  ;;  %v6864_v34 = vld [vmem:[#allocation25_spill] sm:$0xff]  ;;  %v6866_v36 = vld [vmem:[#allocation59_spill] sm:$0xff]  ;;  %v6894_v63 = vld [vmem:[#allocation58_spill] sm:$0xff] }
  0xcc   :  { %v186_v39 = vmax.f32 %v154_v21, 0.0  ;;  %v3539_v53 = vcombine.low %v5282_v2, %v5322_v57  ;;  %v5939_v43 = vcombine.low %v5925_v12, %v5929_v46  ;;  %v3516_v26 = vcombine.low %v5764_v27, %v5831_v40  ;;  %v4521_v40 = vld [vmem:[%s6677_s0 + $0x78] sm:$0xff]   ;;  %v6867_v21 = vld [vmem:[#allocation52_spill] sm:$0xff]  ;;  %v6895_v1 = vld [vmem:[#allocation54_spill] sm:$0xff] }
  0xcd   :  { %2360 = vmatprep.mubr.bf16.mxu0 %v5905_v33  ;;  %v3435_v52 = vrot.slane %v5756_v35, 9  ;;  %v1248_v3 = vrot.slane %v5760_v28, 5  ;;  %v3436_v55 = vrot.slane %v5770_v23, 9  ;;  %v1252_v2 = vrot.slane %v5774_v44, 5  ;;  %v4520_v35 = vld [vmem:[%s6676_s3 + $0x200] sm:$0xff]   ;;  %v6865_v8 = vld [vmem:[#allocation17_spill] sm:$0xff] }
  0xce   :  { %2361 = vmatmul.mubr.bf16.gmra.mrb[44].mxu0 %v5901_v59  ;;  %v3693_v62 = vpack.c.bf16 %v186_v39, %v186_v39  ;;  %v3544_v15 = vcombine.low %v5702_v4, %v5849_v42  ;;  %v6863_v41 = vcombine.low %v4772_v25, %v6862_v60  ;;  %v3447_v27 = vcombine.high %v5603_v49, %v5603_v49  ;;  %v4508_v25 = vld [vmem:[%s6676_s3 + $0x210] sm:$0xff]  }
  0xcf   :  { %2594 = vmatprep.mubr.bf16.mxu0 %v3538_v54  ;;  %v1311_v23 = vshrl.u32 %v3446_v22, 16  ;;  %v1314_v44 = vshll.u32 %v3446_v22, 16  ;;  %v3797_v54 = vunpack.c.h.bf16 %v4521_v40  ;;  %v5969_v29 = vsel %vm5096_vm11, %v3435_v52, %v1248_v3  ;;  %v4522_v52 = vld [vmem:[%s6678_s1] ss:$0 sm:$0xff] }
  0xd0   :  { %v453_v13 = vshrl.u32 %v3693_v62, 16  ;;  %v456_v48 = vshll.u32 %v3693_v62, 16  ;;  %v3523_v14 = vcombine.low %v6865_v8, %v6864_v34  ;;  %v3540_v39 = vcombine.low %v6867_v21, %v6866_v36  ;;  %v4513_v34 = vld [vmem:[%s6676_s3 + $0x220] sm:$0xff]  }
  0xd1   :  { %2498 = vmatmul.mubr.bf16.gmra.mrb[48].mxu1 %v3498_v30  ;;  %v5973_v30 = vsel %vm5096_vm11, %v3436_v55, %v1252_v2  ;;  %v123_v3 = vmul.f32 %v4522_v52, %v3797_v54  ;;  %v3437_v2 = vrot.slane %v5837_v32, 9  ;;  %v3438_v60 = vrot.slane %v5857_v47, 9  ;;  %v6868_v32 = vld [vmem:[#allocation71_spill] sm:$0xff]  ;;  %v6871_v54 = vld [vmem:[#allocation26_spill] sm:$0xff] }
  0xd2   :  { %2505 = vmatprep.mubr.bf16.mxu1 %v3515_v5  ;;  %v455_v57 = vrot.slane %v453_v13, 7  ;;  %v1368_v13 = vrot.slane %v3447_v27, 5  ;;  %v5990_v55 = vcombine.low %v5969_v29, %v5973_v30  ;;  %v3448_v9 = vcombine.low %v5877_v45, %v5877_v45 }
  0xd3   :  { %v3527_v11 = vcombine.low %v6895_v1, %v6894_v63  ;;  %v6900_v1 = vld [vmem:[#allocation41_spill] sm:$0xff] }
  0xd4   :  { %v458_v28 = vor.u32 %v456_v48, %v455_v57  ;;  %v1313_v48 = vrot.slane %v1311_v23, 4  ;;  %v1256_v57 = vrot.slane %v5841_v10, 5  ;;  %v6869_v23 = vld [vmem:[#allocation69_spill] sm:$0xff] }
  0xd6   :  { %2595 = vmatmul.mubr.bf16.vlgmr.msra.gmra.mrb[48].mxu0 %v6863_v41  ;;  %v573_v5 = vsel %vm4669_vm7, 0, %v458_v28  ;;  %v1260_v41 = vrot.slane %v5861_v61, 5  ;;  %v1320_v28 = vshll.u32 %v3447_v27, 16  ;;  %v6870_v61 = vld [vmem:[#allocation43_spill] sm:$0xff] }
  0xd7   :  { %4381 = vmatpush3.bf16.msra.mxu0 %v4520_v35  ;;  %2602 = vmatprep.mubr.bf16.mxu0 %v3539_v53  ;;  %v5983_v62 = vsel %vm4681_vm8, %v573_v5, 0  ;;  %v3454_v53 = vrot.slane %v3446_v22, 9  ;;  %v4511_v22 = vld [vmem:[%s6676_s3 + $0x218] sm:$0xff]   ;;  %v3524_v27 = vcombine.low %v6871_v54, %v6870_v61  ;;  %v6017_v5 = vsel %vm5096_vm11, %v3437_v2, %v1256_v57  ;;  %v6874_v54 = vld [vmem:[#allocation4_spill] sm:$0xff] }
  0xd8   :  { %4382 = vmatprep.subr.bf16.mxu0 %v4505_v50  ;;  %v3450_v35 = vcombine.low %v5983_v62, %v5983_v62  ;;  %v3451_v21 = vcombine.high %v5983_v62, %v5983_v62 }
  0xd9   :  { %2506 = vmatmul.mubr.bf16.gmra.mrb[52].mxu1 %v5939_v43 }
  0xda   :  { %2513 = vmatprep.mubr.bf16.mxu1 %v3516_v26  ;;  %v1316_v26 = vrot.slane %v1314_v44, 5  ;;  %v6007_v44 = vsel %vm5096_vm11, %v3454_v53, %v1368_v13  ;;  %v6873_v53 = vld [vmem:[#allocation61_spill] sm:$0xff]  ;;  %v1342_v52 = vshll.u32 %v3450_v35, 16  ;;  %v1376_v57 = vrot.slane %v3451_v21, 5 }
  0xdb   :  { %4383 = vmatpush3.bf16.msra.mxu0 %v4505_v50  ;;  %v3517_v50 = vcombine.low %v5845_v24, %v5983_v62  ;;  %v4523_v24 = vld [vmem:[%s6679_s2] ss:$0 sm:$0xff]  ;;  %v3541_v13 = vcombine.low %v6873_v53, %v6007_v44 }
  0xdc   :  { %4384 = vmatprep.subr.bf16.mxu0 %v4508_v25  ;;  %v1317_v40 = vor.u32 %v1316_v26, %v1313_v48  ;;  %v162_v47 = vadd.f32 %v4523_v24, %v123_v3  ;;  %v1322_v48 = vrot.slane %v1320_v28, 5  ;;  %v1339_v26 = vshrl.u32 %v3450_v35, 16  ;;  %v6875_v28 = vld [vmem:[#allocation3_spill] sm:$0xff] }
  0xdd   :  { %v1344_v61 = vrot.slane %v1342_v52, 5  ;;  %v3518_v53 = vcombine.low %v6875_v28, %v6874_v54  ;;  %v6881_v28 = vld [vmem:[#allocation7_spill] sm:$0xff] }
  0xde   :  { %2603 = vmatmul.mubr.bf16.gmra.mrb[52].mxu0 %v3523_v14  ;;  %v6026_v14 = vsel %vm5096_vm11, %v3438_v60, %v1260_v41  ;;  %v1318_v3 = vrot.slane %v1317_v40, 4  ;;  %v194_v2 = vmax.f32 %v162_v47, 0.0  ;;  %v4514_v41 = vld [vmem:[%s6676_s3 + $0x228] sm:$0xff]   ;;  %v1341_v24 = vrot.slane %v1339_v26, 4 }
  0xdf   :  { %2610 = vmatprep.mubr.bf16.mxu0 %v3540_v39  ;;  %4385 = vmatpush3.bf16.msra.mxu0 %v4508_v25  ;;  %v6872_v25 = vld [vmem:[#allocation73_spill] sm:$0xff]  ;;  %v3456_v39 = vrot.slane %v3450_v35, 9  ;;  %v6036_v60 = vcombine.low %v6017_v5, %v6026_v14 }
  0xe0   :  { %4386 = vmatprep.subr.bf16.mxu0 %v4511_v22  ;;  %v6876_v35 = vld [vmem:[#allocation5_spill] sm:$0xff]  ;;  %v1345_v8 = vor.u32 %v1344_v61, %v1341_v24  ;;  %v6053_v26 = vsel %vm4634_vm5, %v1318_v3, %v1322_v48  ;;  %v3701_v52 = vpack.c.bf16 %v194_v2, %v194_v2 }
  0xe1   :  { %2514 = vmatmul.mubr.bf16.gmra.mrb[56].mxu1 %v5990_v55  ;;  %v3439_v40 = vrot.slane %v6876_v35, 9  ;;  %v6879_v2 = vld [vmem:[#allocation21_spill] sm:$0xff] }
  0xe2   :  { %2521 = vmatprep.mubr.bf16.mxu1 %v3517_v50  ;;  %v1348_v50 = vshll.u32 %v3451_v21, 16  ;;  %v6047_v21 = vsel %vm5096_vm11, %v3456_v39, %v1376_v57  ;;  %v1346_v54 = vrot.slane %v1345_v8, 4  ;;  %v4516_v61 = vld [vmem:[%s6676_s3 + $0x238] sm:$0xff]  }
  0xe3   :  { %4387 = vmatpush3.bf16.msra.mxu0 %v4511_v22  ;;  %v6877_v22 = vld [vmem:[#allocation6_spill] sm:$0xff] }
  0xe4   :  { %4388 = vmatprep.subr.bf16.mxu0 %v4513_v34  ;;  %v1264_v47 = vrot.slane %v6877_v22, 5  ;;  %v1350_v10 = vrot.slane %v1348_v50, 5  ;;  %v6880_v50 = vld [vmem:[#allocation13_spill] sm:$0xff]  ;;  %v6884_v22 = vld [vmem:[#allocation15_spill] sm:$0xff] }
  0xe5   :  { %v3519_v24 = vcombine.low %v6880_v50, %v6879_v2 }
  0xe6   :  { %2611 = vmatmul.mubr.bf16.gmra.mrb[56].mxu0 %v3524_v27  ;;  %v4515_v27 = vld [vmem:[%s6676_s3 + $0x230] sm:$0xff]   ;;  %v6061_v39 = vsel %vm5096_vm11, %v3439_v40, %v1264_v47  ;;  %v6067_v48 = vsel %vm4634_vm5, %v1346_v54, %v1350_v10  ;;  %v6883_v40 = vld [vmem:[#allocation14_spill] sm:$0xff]  ;;  %v1272_v47 = vrot.slane %v6884_v22, 5 }
  0xe7   :  { %2618 = vmatprep.mubr.bf16.mxu0 %v3541_v13  ;;  %4389 = vmatpush3.bf16.msra.mxu0 %v4513_v34  ;;  %v6878_v13 = vld [vmem:[#allocation44_spill] sm:$0xff]  ;;  %v509_v34 = vshrl.u32 %v3701_v52, 16  ;;  %v3502_v3 = vcombine.low %v5115_v16, %v6061_v39  ;;  %v6893_v22 = vld [vmem:[#allocation30_spill] sm:$0xff] }
  0xe8   :  { %4390 = vmatprep.subr.bf16.mxu0 %v4514_v41  ;;  %v3525_v57 = vcombine.low %v6878_v13, %v6053_v26  ;;  %v6882_v10 = vld [vmem:[#allocation8_spill] sm:$0xff]  ;;  %v512_v13 = vshll.u32 %v3701_v52, 16  ;;  %v6888_v52 = vld [vmem:[#allocation35_spill] sm:$0xff] }
  0xe9   :  { %2522 = vmatmul.mubr.bf16.gmra.mrb[60].mxu1 %v6036_v60  ;;  %v1268_v35 = vrot.slane %v6882_v10, 5  ;;  %v511_v54 = vrot.slane %v509_v34, 7 }
  0xea   :  { %2529 = vmatprep.mubr.bf16.mxu1 %v3518_v53  ;;  %v3440_v53 = vrot.slane %v6881_v28, 9  ;;  %v6885_v28 = vld [vmem:[#allocation53_spill] sm:$0xff] }
  0xeb   :  { %4391 = vmatpush3.bf16.msra.mxu0 %v4514_v41  ;;  %v3441_v41 = vrot.slane %v6883_v40, 9  ;;  %v514_v51 = vor.u32 %v512_v13, %v511_v54  ;;  %v6892_v40 = vld [vmem:[#allocation29_spill] sm:$0xff]  ;;  %v1325_v54 = vshrl.u32 %v3448_v9, 16  ;;  %v1328_v13 = vshll.u32 %v3448_v9, 16 }
  0xec   :  { %4392 = vmatprep.subr.bf16.mxu0 %v4515_v27  ;;  %v6087_v2 = vsel %vm5096_vm11, %v3440_v53, %v1268_v35  ;;  %v6891_v53 = vld [vmem:[#allocation24_spill] sm:$0xff] }
  0xed   :  { %v6091_v50 = vsel %vm5096_vm11, %v3441_v41, %v1272_v47  ;;  %v1276_v35 = vrot.slane %v6891_v53, 5  ;;  %v3443_v41 = vrot.slane %v6892_v40, 9  ;;  %v1280_v47 = vrot.slane %v6893_v22, 5  ;;  %v6896_v53 = vld [vmem:[#allocation38_spill] sm:$0xff]  ;;  %v6897_v40 = vld [vmem:[#allocation39_spill] sm:$0xff] }
  0xee   :  { %2619 = vmatmul.mubr.bf16.gmra.mrb[60].mxu0 %v3525_v57  ;;  %v6886_v57 = vld [vmem:[#allocation51_spill] sm:$0xff] }
  0xef   :  { %2626 = vmatprep.mubr.bf16.mxu0 %v3542_v7  ;;  %4393 = vmatpush3.bf16.msra.mxu0 %v4515_v27  ;;  %v3526_v10 = vcombine.low %v6886_v57, %v6885_v28  ;;  %v6099_v7 = vcombine.low %v6087_v2, %v6091_v50  ;;  %v6889_v27 = vld [vmem:[#allocation27_spill] sm:$0xff]  ;;  %v3449_v28 = vcombine.high %v5877_v45, %v5877_v45 }
  0xf0   :  { %4394 = vmatprep.subr.bf16.mxu0 %v4516_v61  ;;  %v3520_v34 = vcombine.low %v6889_v27, %v6888_v52  ;;  %v1327_v52 = vrot.slane %v1325_v54, 4  ;;  %v1330_v27 = vrot.slane %v1328_v13, 5 }
  0xf1   :  { %2530 = vmatmul.mubr.bf16.gmra.mrb[64].mxu1 %v3502_v3  ;;  %6887 = vst [vmem:[#allocation9_spill] sm:$0xff] %v6099_v7  ;;  %v6890_v3 = vld [vmem:[#allocation23_spill] sm:$0xff]  ;;  %v1334_v36 = vshll.u32 %v3449_v28, 16 }
  0xf2   :  { %2537 = vmatprep.mubr.bf16.mxu1 %v3519_v24  ;;  %v3442_v24 = vrot.slane %v6890_v3, 9 }
  0xf3   :  { %4395 = vmatpush3.bf16.msra.mxu0 %v4516_v61  ;;  %v581_v61 = vsel %vm4669_vm7, 0, %v514_v51  ;;  %v3455_v51 = vrot.slane %v3448_v9, 9  ;;  %v1288_v9 = vrot.slane %v6900_v1, 5 }
  0xf4   :  { %v6117_v57 = vsel %vm5096_vm11, %v3442_v24, %v1276_v35  ;;  %v1372_v24 = vrot.slane %v3449_v28, 5  ;;  %v3444_v35 = vrot.slane %v6896_v53, 9  ;;  %v1331_v53 = vor.u32 %v1330_v27, %v1327_v52  ;;  %v6902_v28 = vld [vmem:[#allocation60_spill] sm:$0xff] }
  0xf6   :  { %2627 = vmatmul.mubr.bf16.gmra.mrb[64].mxu0 %v3526_v10  ;;  %v6121_v10 = vsel %vm5096_vm11, %v3443_v41, %v1280_v47  ;;  %v1284_v41 = vrot.slane %v6897_v40, 5  ;;  %v6898_v47 = vld [vmem:[#allocation37_spill] sm:$0xff] }
  0xf7   :  { %2634 = vmatprep.mubr.bf16.mxu0 %v3543_v20  ;;  %v6127_v20 = vsel %vm4681_vm8, %v581_v61, 0  ;;  %v3445_v61 = vrot.slane %v6899_v19, 9  ;;  %v6903_v19 = vld [vmem:[#allocation18_spill] sm:$0xff] }
  0xf8   :  { %v3521_v63 = vcombine.low %v6898_v47, %v6127_v20  ;;  %v6149_v47 = vsel %vm5096_vm11, %v3455_v51, %v1372_v24  ;;  %v1332_v24 = vrot.slane %v1331_v53, 4 }
  0xf9   :  { %2538 = vmatmul.mubr.bf16.gmra.mrb[68].mxu1 %v6099_v7  ;;  %v3924_v3 = vpop.f32.mrb[0].mxu0  ;;  %v6157_v4 = vsel %vm5096_vm11, %v3445_v61, %v1288_v9  ;;  %v3545_v51 = vcombine.low %v5853_v58, %v6149_v47  ;;  %v6904_v58 = vld [vmem:[#allocation66_spill] sm:$0xff] }
  0xfa   :  { %2545 = vmatprep.mubr.bf16.mxu1 %v3520_v34  ;;  %v6131_v34 = vcombine.low %v6117_v57, %v6121_v10  ;;  %v3925_v22 = vpop.f32.mrb[1].mxu0 }
  0xfb   :  { %v6139_v54 = vadd.f32 %v3925_v22, %v3924_v3  ;;  %v3927_v13 = vpop.f32.mrb[2].mxu0  ;;  %v1336_v22 = vrot.slane %v1334_v36, 5  ;;  %v3546_v36 = vcombine.low %v5892_v0, %v5925_v12 }
  0xfc   :  { %v3928_v8 = vpop.f32.mrb[3].mxu0 }
  0xfd   :  { %v6144_v7 = vadd.f32 %v3928_v8, %v3927_v13  ;;  %v6901_v8 = vld [vmem:[#allocation65_spill] sm:$0xff]  ;;  %v6905_v13 = vld [vmem:[#allocation12_spill] sm:$0xff] }
  0xfe   :  { %2635 = vmatmul.mubr.bf16.gmra.mrb[68].mxu0 %v3527_v11  ;;  %v3996_v40 = vpop.f32.mrb[0].mxu1  ;;  %v6153_v11 = vsel %vm5096_vm11, %v3444_v35, %v1284_v41  ;;  %v3528_v52 = vcombine.low %v6902_v28, %v6901_v8  ;;  %v6173_v41 = vsel %vm4634_vm5, %v1332_v24, %v1336_v22  ;;  %v3547_v28 = vcombine.low %v5929_v46, %v5969_v29 }
  0xff   :  { %2642 = vmatprep.mubr.bf16.mxu0 %v3544_v15  ;;  %v3997_v3 = vpop.f32.mrb[1].mxu1  ;;  %v6169_v35 = vcombine.low %v6153_v11, %v6157_v4  ;;  %v3529_v61 = vcombine.low %v6904_v58, %v6173_v41  ;;  %v6909_v58 = vld [vmem:[#allocation45_spill] sm:$0xff]  ;;  %v3548_v46 = vcombine.low %v5973_v30, %v6017_v5 }
 0x100   :  { %v6159_v42 = vadd.f32 %v3997_v3, %v3996_v40  ;;  %v3999_v15 = vpop.f32.mrb[2].mxu1  ;;  %v6906_v3 = vld [vmem:[#allocation28_spill] sm:$0xff] }
 0x101   :  { %2546 = vmatmul.mubr.bf16.gmra.mrb[72].mxu1 %v6131_v34  ;;  %v4000_v27 = vpop.f32.mrb[3].mxu1 }
 0x102   :  { %2553 = vmatprep.mubr.bf16.mxu1 %v3521_v63  ;;  %v6165_v63 = vadd.f32 %v4000_v27, %v3999_v15 }
 0x106   :  { %2643 = vmatmul.mubr.bf16.gmra.mrb[72].mxu0 %v3528_v52 }
 0x107   :  { %2650 = vmatprep.mubr.bf16.mxu0 %v3545_v51  ;;  %v6907_v51 = vcombine.low %v6869_v23, %v6868_v32 }
 0x109   :  { %2554 = vmatmul.mubr.bf16.gmra.mrb[76].mxu1 %v6169_v35 }
 0x10a   :  { %2755 = vmatprep.mubr.bf16.mxu1 %v6903_v19  ;;  %v6908_v19 = vld [vmem:[#allocation22_spill] sm:$0xff] }
 0x10e   :  { %2651 = vmatmul.mubr.bf16.gmra.mrb[76].mxu0 %v3529_v61  ;;  %v3930_v1 = vpop.f32.mrb[4].mxu0 }
 0x10f   :  { %2658 = vmatprep.mubr.bf16.mxu0 %v3546_v36  ;;  %v3931_v9 = vpop.f32.mrb[5].mxu0 }
 0x110   :  { %v6182_v53 = vadd.f32 %v3931_v9, %v3930_v1  ;;  %v3933_v40 = vpop.f32.mrb[6].mxu0  ;;  %v6910_v9 = vld [vmem:[#allocation2_spill] sm:$0xff] }
 0x111   :  { %2756 = vmatmul.mubr.bf16.vlgmr.msra.gmra.mrb[80].mxu1 %v6905_v13  ;;  %v3934_v15 = vpop.f32.mrb[7].mxu0  ;;  %v3558_v32 = vcombine.low %v6053_v26, %v6910_v9  ;;  %v6911_v13 = vcombine.low %v6872_v25, %v5806_v31 }
 0x112   :  { %2763 = vmatprep.mubr.bf16.mxu1 %v6906_v3  ;;  %v6185_v8 = vadd.f32 %v3934_v15, %v3933_v40  ;;  %v4002_v52 = vpop.f32.mrb[4].mxu1  ;;  %v6912_v3 = vld [vmem:[#allocation36_spill] sm:$0xff]  ;;  %v6913_v15 = vmov 0  }
 0x113   :  { %v4003_v27 = vpop.f32.mrb[5].mxu1  ;;  %v3554_v30 = vcombine.low %v5603_v49, %v6913_v15  ;;  %v3550_v49 = vcombine.low %v6061_v39, %v6087_v2  ;;  %v6920_v2 = vld [vmem:[#allocation10_spill] sm:$0xff] }
 0x114   :  { %v6189_v0 = vadd.f32 %v4003_v27, %v4002_v52  ;;  %v4005_v12 = vpop.f32.mrb[6].mxu1  ;;  %v6915_v52 = vcombine.low %v6026_v14, %v6047_v21  ;;  %v6919_v14 = vld [vmem:[#allocation62_spill] sm:$0xff] }
 0x115   :  { %v4006_v24 = vpop.f32.mrb[7].mxu1 }
 0x116   :  { %2659 = vmatmul.mubr.bf16.gmra.mrb[80].mxu0 %v6907_v51  ;;  %v6194_v22 = vadd.f32 %v4006_v24, %v4005_v12  ;;  %v6916_v12 = vld [vmem:[#allocation56_spill] sm:$0xff]  ;;  %v3452_v24 = vcombine.low %v6127_v20, %v6127_v20 }
 0x117   :  { %2666 = vmatprep.mubr.bf16.mxu0 %v3547_v28  ;;  %v6914_v28 = vcombine.low %v5815_v6, %v5887_v18  ;;  %v6917_v6 = vcombine.low %v5897_v37, %v6067_v48  ;;  %v6918_v18 = vld [vmem:[#allocation50_spill] sm:$0xff] }
 0x119   :  { %2764 = vmatmul.mubr.bf16.gmra.mrb[84].mxu1 %v6908_v19  ;;  %v3936_v61 = vpop.f32.mrb[8].mxu0  ;;  %v3551_v19 = vcombine.low %v6091_v50, %v6117_v57  ;;  %v3453_v50 = vcombine.high %v6127_v20, %v6127_v20  ;;  %v6924_v57 = vld [vmem:[#allocation67_spill] sm:$0xff] }
 0x11a   :  { %2771 = vmatprep.mubr.bf16.mxu1 %v6909_v58  ;;  %v3937_v29 = vpop.f32.mrb[9].mxu0 }
 0x11b   :  { %v6200_v36 = vadd.f32 %v3937_v29, %v3936_v61  ;;  %v3939_v1 = vpop.f32.mrb[10].mxu0  ;;  %v6921_v29 = vld [vmem:[#allocation11_spill] sm:$0xff] }
 0x11c   :  { %v3940_v23 = vpop.f32.mrb[11].mxu0  ;;  %v6922_v37 = vcombine.low %v6920_v2, %v6921_v29  ;;  %v1362_v2 = vshll.u32 %v3453_v50, 16  ;;  %v6927_v29 = vld [vmem:[#allocation64_spill] sm:$0xff] }
 0x11d   :  { %v6207_v40 = vadd.f32 %v3940_v23, %v3939_v1  ;;  %v1356_v23 = vshll.u32 %v3452_v24, 16 }
 0x11e   :  { %2667 = vmatmul.mubr.bf16.gmra.mrb[84].mxu0 %v6911_v13 }
 0x11f   :  { %2674 = vmatprep.mubr.bf16.mxu0 %v3548_v46 }
 0x121   :  { %2772 = vmatmul.mubr.bf16.gmra.mrb[88].mxu1 %v6912_v3  ;;  %v6923_v3 = vld [vmem:[#allocation57_spill] sm:$0xff] }
 0x122   :  { %2779 = vmatprep.mubr.bf16.mxu1 %v3558_v32  ;;  %v1353_v32 = vshrl.u32 %v3452_v24, 16 }
 0x124   :  { %v4008_v5 = vpop.f32.mrb[8].mxu1 }
 0x125   :  { %v4009_v26 = vpop.f32.mrb[9].mxu1 }
 0x126   :  { %2675 = vmatmul.mubr.bf16.gmra.mrb[88].mxu0 %v6914_v28  ;;  %v6218_v31 = vadd.f32 %v4009_v26, %v4008_v5  ;;  %v4011_v25 = vpop.f32.mrb[10].mxu1  ;;  %v6926_v5 = vld [vmem:[#allocation19_spill] sm:$0xff] }
 0x127   :  { %2682 = vmatprep.mubr.bf16.mxu0 %v6915_v52  ;;  %v4012_v27 = vpop.f32.mrb[11].mxu1  ;;  %v3552_v52 = vcombine.low %v6121_v10, %v6153_v11  ;;  %v6928_v11 = vld [vmem:[#allocation46_spill] sm:$0xff] }
 0x128   :  { %v6221_v51 = vadd.f32 %v4012_v27, %v4011_v25  ;;  %v1355_v25 = vrot.slane %v1353_v32, 4  ;;  %v1358_v27 = vrot.slane %v1356_v23, 5  ;;  %v1364_v23 = vrot.slane %v1362_v2, 5 }
 0x129   :  { %2780 = vmatmul.mubr.bf16.gmra.mrb[92].mxu1 %v3554_v30  ;;  %v6925_v30 = vld [vmem:[#allocation32_spill] sm:$0xff] }
 0x12a   :  { %2787 = vmatprep.mubr.bf16.mxu1 %v6916_v12  ;;  %v3535_v28 = vcombine.low %v6926_v5, %v6925_v30 }
 0x12e   :  { %2683 = vmatmul.mubr.bf16.gmra.mrb[92].mxu0 %v6917_v6  ;;  %v1380_v6 = vrot.slane %v3453_v50, 5  ;;  %v3555_v50 = vcombine.low %v5877_v45, %v6913_v15  ;;  %v6931_v45 = vld [vmem:[#allocation47_spill] sm:$0xff] }
 0x12f   :  { %2690 = vmatprep.mubr.bf16.mxu0 %v3550_v49  ;;  %v3457_v49 = vrot.slane %v3452_v24, 9  ;;  %v6929_v24 = vld [vmem:[#allocation33_spill] sm:$0xff] }
 0x131   :  { %2788 = vmatmul.mubr.bf16.gmra.mrb[96].mxu1 %v6918_v18  ;;  %v6258_v10 = vsel %vm5096_vm11, %v3457_v49, %v1380_v6 }
 0x132   :  { %2795 = vmatprep.mubr.bf16.mxu1 %v6919_v14 }
 0x133   :  { %v3942_v58 = vpop.f32.mrb[12].mxu0 }
 0x134   :  { %v3943_v61 = vpop.f32.mrb[13].mxu0 }
 0x135   :  { %v6234_v46 = vadd.f32 %v3943_v61, %v3942_v58  ;;  %v3945_v39 = vpop.f32.mrb[14].mxu0 }
 0x136   :  { %2691 = vmatmul.mubr.bf16.gmra.mrb[96].mxu0 %v6922_v37  ;;  %v3946_v1 = vpop.f32.mrb[15].mxu0  ;;  %v3536_v37 = vcombine.low %v6929_v24, %v6928_v11  ;;  %v6933_v24 = vld [vmem:[#allocation72_spill] sm:$0xff] }
 0x137   :  { %2698 = vmatprep.mubr.bf16.mxu0 %v3551_v19  ;;  %v6239_v13 = vadd.f32 %v3946_v1, %v3945_v39  ;;  %v3559_v19 = vcombine.low %v6173_v41, %v6910_v9  ;;  %v1359_v39 = vor.u32 %v1358_v27, %v1355_v25  ;;  %v3553_v41 = vcombine.low %v6157_v4, %v6258_v10 }
 0x139   :  { %2796 = vmatmul.mubr.bf16.gmra.mrb[100].mxu1 %v6923_v3  ;;  %v1360_v32 = vrot.slane %v1359_v39, 4 }
 0x13a   :  { %2803 = vmatprep.mubr.bf16.mxu1 %v6924_v57  ;;  %v4014_v26 = vpop.f32.mrb[12].mxu1 }
 0x13b   :  { %v4015_v12 = vpop.f32.mrb[13].mxu1 }
 0x13c   :  { %v6249_v18 = vadd.f32 %v4015_v12, %v4014_v26  ;;  %v4017_v14 = vpop.f32.mrb[14].mxu1  ;;  %v6271_v26 = vsel %vm4634_vm5, %v1360_v32, %v1364_v23 }
 0x13d   :  { %v4018_v58 = vpop.f32.mrb[15].mxu1  ;;  %v3537_v25 = vcombine.low %v6931_v45, %v6271_v26 }
 0x13e   :  { %2699 = vmatmul.mubr.bf16.gmra.mrb[100].mxu0 %v3535_v28  ;;  %v6253_v61 = vadd.f32 %v4018_v58, %v4017_v14 }
 0x13f   :  { %2706 = vmatprep.mubr.bf16.mxu0 %v3552_v52  ;;  %v6930_v52 = vld [vmem:[#allocation74_spill] sm:$0xff] }
 0x141   :  { %2804 = vmatmul.mubr.bf16.gmra.mrb[104].mxu1 %v6927_v29  ;;  %v6932_v29 = vld [vmem:[#allocation49_spill] sm:$0xff] }
 0x142   :  { %2811 = vmatprep.mubr.bf16.mxu1 %v3559_v19  ;;  %v4036_v1 = vpop.f32.mrb[16].mxu1 }
 0x143   :  { %v4037_v3 = vpop.f32.mrb[17].mxu1 }
 0x144   :  { %v4038_v57 = vadd.f32 %v4037_v3, %v4036_v1  ;;  %v4039_v30 = vpop.f32.mrb[18].mxu1  ;;  %v6934_v1 = vld [vmem:[#allocation76_spill] sm:$0xff] }
 0x145   :  { %v4040_v5 = vpop.f32.mrb[19].mxu1 }
 0x146   :  { %2707 = vmatmul.mubr.bf16.gmra.mrb[104].mxu0 %v3536_v37  ;;  %v6267_v56 = vadd.f32 %v4038_v57, %v6139_v54  ;;  %v4041_v28 = vadd.f32 %v4040_v5, %v4039_v30 }
 0x147   :  { %2714 = vmatprep.mubr.bf16.mxu0 %v3553_v41 }
 0x148   :  { %v6274_v4 = vadd.f32 %v4041_v28, %v6144_v7  ;;  %v6935_v28 = vld [vmem:[#allocation55_spill] sm:$0xff] }
 0x149   :  { %2812 = vmatmul.mubr.bf16.gmra.mrb[108].mxu1 %v3555_v50 }
 0x14a   :  { %2819 = vmatprep.mubr.bf16.mxu1 %v6930_v52  ;;  %v4042_v27 = vpop.f32.mrb[20].mxu1 }
 0x14b   :  { %v3948_v12 = vpop.f32.mrb[16].mxu0  ;;  %v4043_v49 = vpop.f32.mrb[21].mxu1 }
 0x14c   :  { %v3949_v54 = vpop.f32.mrb[17].mxu0  ;;  %v4044_v6 = vadd.f32 %v4043_v49, %v4042_v27  ;;  %v4045_v14 = vpop.f32.mrb[22].mxu1 }
 0x14d   :  { %v6279_v19 = vadd.f32 %v3949_v54, %v3948_v12  ;;  %v3951_v38 = vpop.f32.mrb[18].mxu0  ;;  %v4046_v58 = vpop.f32.mrb[23].mxu1  ;;  %v6937_v12 = vld [vmem:[#allocation75_spill] sm:$0xff]  ;;  %v3562_v54 = vcombine.low %v6007_v44, %v5115_v16  ;;  %v6939_v44 = vld [vmem:[#allocation70_spill] sm:$0xff] }
 0x14e   :  { %2715 = vmatmul.mubr.bf16.gmra.mrb[108].mxu0 %v3537_v25  ;;  %v3952_v39 = vpop.f32.mrb[19].mxu0  ;;  %v6282_v7 = vadd.f32 %v4044_v6, %v6182_v53  ;;  %v4047_v2 = vadd.f32 %v4046_v58, %v4045_v14  ;;  %v6936_v25 = vld [vmem:[#allocation63_spill] sm:$0xff]  ;;  %v3560_v6 = vcombine.low %v6067_v48, %v6910_v9 }
 0x14f   :  { %4396 = vmatprep.mubr.bf16.mxu0 %v6932_v29  ;;  %v6285_v11 = vadd.f32 %v3952_v39, %v3951_v38  ;;  %v6940_v29 = vld [vmem:[#allocation20_spill] sm:$0xff] }
 0x150   :  { %v6289_v37 = vadd.f32 %v4047_v2, %v6185_v8 }
 0x151   :  { %2820 = vmatmul.mubr.bf16.gmra.mrb[112].mxu1 %v6933_v24  ;;  %v3563_v24 = vcombine.low %v6149_v47, %v5115_v16 }
 0x152   :  { %2827 = vmatprep.mubr.bf16.mxu1 %v6934_v1  ;;  %v4048_v41 = vpop.f32.mrb[24].mxu1 }
 0x153   :  { %v3954_v32 = vpop.f32.mrb[20].mxu0  ;;  %v4049_v23 = vpop.f32.mrb[25].mxu1 }
 0x154   :  { %v3955_v3 = vpop.f32.mrb[21].mxu0  ;;  %v4050_v50 = vadd.f32 %v4049_v23, %v4048_v41  ;;  %v4051_v57 = vpop.f32.mrb[26].mxu1 }
 0x155   :  { %v6292_v53 = vadd.f32 %v3955_v3, %v3954_v32  ;;  %v3957_v30 = vpop.f32.mrb[22].mxu0  ;;  %v4052_v5 = vpop.f32.mrb[27].mxu1 }
 0x156   :  { %4397 = vmatmul.mubr.bf16.vlgmr.msra.gmra.mrb[112].mxu0 %v6935_v28  ;;  %v3958_v52 = vpop.f32.mrb[23].mxu0  ;;  %v6296_v45 = vadd.f32 %v4050_v50, %v6200_v36  ;;  %v4053_v8 = vadd.f32 %v4052_v5, %v4051_v57  ;;  %v6938_v36 = vld [vmem:[#allocation68_spill] sm:$0xff] }
 0x157   :  { %4400 = vmatprep.mubr.bf16.mxu0 %v6936_v25  ;;  %v6299_v27 = vadd.f32 %v3958_v52, %v3957_v30  ;;  %v6941_v5 = vld [vmem:[#allocation16_spill] sm:$0xff]  ;;  %v6942_v52 = vld [vmem:[#allocation34_spill] sm:$0xff] }
 0x158   :  { %v6303_v49 = vadd.f32 %v4053_v8, %v6207_v40 }
 0x159   :  { %2828 = vmatmul.mubr.bf16.gmra.mrb[116].mxu1 %v6937_v12 }
 0x15a   :  { %2835 = vmatprep.mubr.bf16.mxu1 %v5905_v33  ;;  %v3556_v33 = vcombine.low %v5983_v62, %v6913_v15 }
 0x15e   :  { %4401 = vmatmul.mubr.bf16.gmra.mrb[116].mxu0 %v3562_v54 }
 0x15f   :  { %4404 = vmatprep.mubr.bf16.mxu0 %v6938_v36  ;;  %v6943_v36 = vld [vmem:[#allocation31_spill] sm:$0xff] }
 0x160   :  { %v3960_v14 = vpop.f32.mrb[24].mxu0 }
 0x161   :  { %2836 = vmatmul.mubr.bf16.gmra.mrb[120].mxu1 %v5901_v59  ;;  %v3961_v38 = vpop.f32.mrb[25].mxu0 }
 0x162   :  { %2843 = vmatprep.mubr.bf16.mxu1 %v3560_v6  ;;  %v6312_v58 = vadd.f32 %v3961_v38, %v3960_v14  ;;  %v3963_v40 = vpop.f32.mrb[26].mxu0  ;;  %v6944_v14 = vld [vmem:[#allocation48_spill] sm:$0xff] }
 0x163   :  { %v3964_v39 = vpop.f32.mrb[27].mxu0 }
 0x164   :  { %v6314_v2 = vadd.f32 %v3964_v39, %v3963_v40  ;;  %v3564_v39 = vcombine.low %v6047_v21, %v5115_v16 }
 0x166   :  { %4405 = vmatmul.mubr.bf16.gmra.mrb[120].mxu0 %v6939_v44 }
 0x167   :  { %4408 = vmatprep.mubr.bf16.mxu0 %v5873_v17 }
 0x169   :  { %2844 = vmatmul.mubr.bf16.gmra.mrb[124].mxu1 %v3556_v33  ;;  %v4054_v48 = vpop.f32.mrb[28].mxu1 }
 0x16a   :  { %2851 = vmatprep.mubr.bf16.mxu1 %v6940_v29  ;;  %v4055_v59 = vpop.f32.mrb[29].mxu1 }
 0x16b   :  { %v4056_v1 = vadd.f32 %v4055_v59, %v4054_v48  ;;  %v4057_v41 = vpop.f32.mrb[30].mxu1 }
 0x16c   :  { %v4058_v32 = vpop.f32.mrb[31].mxu1 }
 0x16d   :  { %v6324_v23 = vadd.f32 %v4056_v1, %v6234_v46  ;;  %v4059_v3 = vadd.f32 %v4058_v32, %v4057_v41  ;;  %v6945_v32 = vld [vmem:[#allocation9_spill] sm:$0xff] }
 0x16e   :  { %v3966_v62 = vpop.f32.mrb[28].mxu0  ;;  %4409 = vmatmul.mubr.bf16.gmra.mrb[124].mxu0 %v3563_v24 }
 0x16f   :  { %v3967_v50 = vpop.f32.mrb[29].mxu0  ;;  %v6327_v17 = vadd.f32 %v4059_v3, %v6239_v13  ;;  %4412 = vmatprep.mubr.bf16.mxu0 %v5939_v43  ;;  %v6946_v3 = vld [vmem:[#allocation42_spill] sm:$0xff] }
 0x170   :  { %v6330_v57 = vadd.f32 %v3967_v50, %v3966_v62  ;;  %v3969_v30 = vpop.f32.mrb[30].mxu0 }
 0x171   :  { %2852 = vmatmul.mubr.bf16.gmra.mrb[128].mxu1 %v6941_v5  ;;  %v3970_v47 = vpop.f32.mrb[31].mxu0  ;;  %v4060_v28 = vpop.f32.mrb[32].mxu1 }
 0x172   :  { %2859 = vmatprep.mubr.bf16.mxu1 %v6942_v52  ;;  %v6334_v46 = vadd.f32 %v3970_v47, %v3969_v30  ;;  %v4061_v8 = vpop.f32.mrb[33].mxu1 }
 0x173   :  { %v4062_v25 = vadd.f32 %v4061_v8, %v4060_v28  ;;  %v4063_v12 = vpop.f32.mrb[34].mxu1 }
 0x174   :  { %v4064_v54 = vpop.f32.mrb[35].mxu1 }
 0x175   :  { %v6337_v13 = vadd.f32 %v4062_v25, %v6279_v19  ;;  %v4065_v6 = vadd.f32 %v4064_v54, %v4063_v12 }
 0x176   :  { %4413 = vmatmul.mubr.bf16.gmra.mrb[128].mxu0 %v5990_v55 }
 0x177   :  { %v6341_v43 = vadd.f32 %v4065_v6, %v6285_v11  ;;  %4416 = vmatprep.mubr.bf16.mxu0 %v6036_v60  ;;  %v3561_v60 = vcombine.low %v6271_v26, %v6910_v9  ;;  %v3557_v9 = vcombine.low %v6127_v20, %v6913_v15  ;;  %v3565_v20 = vcombine.low %v6258_v10, %v5115_v16 }
 0x179   :  { %2860 = vmatmul.mubr.bf16.gmra.mrb[132].mxu1 %v6943_v36 }
 0x17a   :  { %2867 = vmatprep.mubr.bf16.mxu1 %v6944_v14  ;;  %v3972_v38 = vpop.f32.mrb[32].mxu0  ;;  %v4066_v40 = vpop.f32.mrb[36].mxu1 }
 0x17b   :  { %v3973_v33 = vpop.f32.mrb[33].mxu0  ;;  %v4067_v19 = vpop.f32.mrb[37].mxu1 }
 0x17c   :  { %v3974_v44 = vadd.f32 %v3973_v33, %v3972_v38  ;;  %v3975_v48 = vpop.f32.mrb[34].mxu0  ;;  %v4068_v29 = vadd.f32 %v4067_v19, %v4066_v40  ;;  %v4069_v55 = vpop.f32.mrb[38].mxu1 }
 0x17d   :  { %v3976_v59 = vpop.f32.mrb[35].mxu0  ;;  %v4070_v11 = vpop.f32.mrb[39].mxu1 }
 0x17e   :  { %v3977_v24 = vadd.f32 %v3976_v59, %v3975_v48  ;;  %v6351_v1 = vadd.f32 %v4068_v29, %v6292_v53  ;;  %v4071_v41 = vadd.f32 %v4070_v11, %v4069_v55  ;;  %4417 = vmatmul.mubr.bf16.gmra.mrb[132].mxu0 %v3564_v39 }
 0x17f   :  { %4420 = vmatprep.mubr.bf16.mxu0 %v6945_v32 }
 0x180   :  { %v6355_v21 = vadd.f32 %v4071_v41, %v6299_v27 }
 0x181   :  { %2868 = vmatmul.mubr.bf16.gmra.mrb[136].mxu1 %v6946_v3 }
 0x182   :  { %2875 = vmatprep.mubr.bf16.mxu1 %v3561_v60  ;;  %v4072_v62 = vpop.f32.mrb[40].mxu1 }
 0x183   :  { %v4073_v50 = vpop.f32.mrb[41].mxu1 }
 0x184   :  { %v4074_v30 = vadd.f32 %v4073_v50, %v4072_v62  ;;  %v4075_v5 = vpop.f32.mrb[42].mxu1 }
 0x185   :  { %v4076_v26 = vpop.f32.mrb[43].mxu1 }
 0x186   :  { %v6361_v53 = vadd.f32 %v4074_v30, %v6312_v58  ;;  %v4077_v47 = vadd.f32 %v4076_v26, %v4075_v5  ;;  %4421 = vmatmul.mubr.bf16.gmra.mrb[136].mxu0 %v6131_v34 }
 0x187   :  { %4424 = vmatprep.mubr.bf16.mxu0 %v6169_v35 }
 0x188   :  { %v3978_v27 = vpop.f32.mrb[36].mxu0  ;;  %v6366_v28 = vadd.f32 %v4077_v47, %v6314_v2 }
 0x189   :  { %2876 = vmatmul.mubr.bf16.gmra.mrb[140].mxu1 %v3557_v9  ;;  %v3979_v52 = vpop.f32.mrb[37].mxu0 }
 0x18a   :  { %v3980_v8 = vadd.f32 %v3979_v52, %v3978_v27  ;;  %v3981_v25 = vpop.f32.mrb[38].mxu0 }
 0x18b   :  { %v3982_v15 = vpop.f32.mrb[39].mxu0 }
 0x18c   :  { %v3983_v12 = vadd.f32 %v3982_v15, %v3981_v25 }
 0x18e   :  { %4425 = vmatmul.mubr.bf16.gmra.mrb[140].mxu0 %v3565_v20 }
 0x190   :  { %v3984_v58 = vpop.f32.mrb[40].mxu0 }
 0x191   :  { %v3985_v54 = vpop.f32.mrb[41].mxu0 }
 0x192   :  { %v3986_v6 = vadd.f32 %v3985_v54, %v3984_v58  ;;  %v3987_v34 = vpop.f32.mrb[42].mxu0 }
 0x193   :  { %v3988_v36 = vpop.f32.mrb[43].mxu0 }
 0x194   :  { %v3989_v35 = vadd.f32 %v3988_v36, %v3987_v34 }
 0x19c   :  { %v4078_v14 = vpop.f32.mrb[44].mxu1 }
 0x19d   :  { %v4079_v38 = vpop.f32.mrb[45].mxu1 }
 0x19e   :  { %v4080_v2 = vadd.f32 %v4079_v38, %v4078_v14  ;;  %v4081_v40 = vpop.f32.mrb[46].mxu1 }
 0x19f   :  { %v4082_v39 = vpop.f32.mrb[47].mxu1 }
 0x1a0   :  { %v6371_v33 = vadd.f32 %v4080_v2, %v6330_v57  ;;  %v4083_v19 = vadd.f32 %v4082_v39, %v4081_v40 }
 0x1a1   :  { %v3990_v48 = vpop.f32.mrb[44].mxu0 }
 0x1a2   :  { %v6374_v16 = vadd.f32 %v4083_v19, %v6334_v46  ;;  %v3991_v10 = vpop.f32.mrb[45].mxu0 }
 0x1a3   :  { %v3992_v29 = vadd.f32 %v3991_v10, %v3990_v48  ;;  %v3993_v55 = vpop.f32.mrb[46].mxu0 }
 0x1a4   :  { %v4084_v59 = vpop.f32.mrb[48].mxu1  ;;  %v3994_v11 = vpop.f32.mrb[47].mxu0 }
 0x1a5   :  { %v4085_v60 = vpop.f32.mrb[49].mxu1  ;;  %v3995_v41 = vadd.f32 %v3994_v11, %v3993_v55 }
 0x1a6   :  { %v4086_v32 = vadd.f32 %v4085_v60, %v4084_v59  ;;  %v4087_v3 = vpop.f32.mrb[50].mxu1 }
 0x1a7   :  { %v4088_v62 = vpop.f32.mrb[51].mxu1 }
 0x1a8   :  { %v6376_v50 = vadd.f32 %v4086_v32, %v3974_v44  ;;  %v4089_v30 = vadd.f32 %v4088_v62, %v4087_v3 }
 0x1a9   :  { %v4148_v57 = vpop.f32.mrb[48].mxu0 }
 0x1aa   :  { %v6378_v5 = vadd.f32 %v4089_v30, %v3977_v24  ;;  %v4149_v9 = vpop.f32.mrb[49].mxu0 }
 0x1ab   :  { %v4150_v26 = vadd.f32 %v4149_v9, %v4148_v57  ;;  %v4151_v46 = vpop.f32.mrb[50].mxu0 }
 0x1ac   :  { %v4090_v47 = vpop.f32.mrb[52].mxu1  ;;  %v4152_v27 = vpop.f32.mrb[51].mxu0 }
 0x1ad   :  { %v4091_v52 = vpop.f32.mrb[53].mxu1  ;;  %v6381_v25 = vadd.f32 %v4150_v26, %v6267_v56  ;;  %v4153_v20 = vadd.f32 %v4152_v27, %v4151_v46 }
 0x1ae   :  { %v4092_v15 = vadd.f32 %v4091_v52, %v4090_v47  ;;  %v4093_v58 = vpop.f32.mrb[54].mxu1 }
 0x1af   :  { %v4094_v54 = vpop.f32.mrb[55].mxu1  ;;  %v6384_v44 = vadd.f32 %v4153_v20, %v6274_v4 }
 0x1b0   :  { %v6386_v34 = vadd.f32 %v4092_v15, %v3980_v8  ;;  %v4095_v24 = vadd.f32 %v4094_v54, %v4093_v58 }
 0x1b1   :  { %v4154_v36 = vpop.f32.mrb[52].mxu0 }
 0x1b2   :  { %v6388_v14 = vadd.f32 %v4095_v24, %v3983_v12  ;;  %v4155_v38 = vpop.f32.mrb[53].mxu0 }
 0x1b3   :  { %v4156_v2 = vadd.f32 %v4155_v38, %v4154_v36  ;;  %v4157_v40 = vpop.f32.mrb[54].mxu0 }
 0x1b4   :  { %v4096_v39 = vpop.f32.mrb[56].mxu1  ;;  %v4158_v19 = vpop.f32.mrb[55].mxu0 }
 0x1b5   :  { %v4097_v56 = vpop.f32.mrb[57].mxu1  ;;  %v6391_v48 = vadd.f32 %v4156_v2, %v6282_v7  ;;  %v4159_v10 = vadd.f32 %v4158_v19, %v4157_v40 }
 0x1b6   :  { %v4098_v55 = vadd.f32 %v4097_v56, %v4096_v39  ;;  %v4099_v59 = vpop.f32.mrb[58].mxu1 }
 0x1b7   :  { %v4100_v4 = vpop.f32.mrb[59].mxu1  ;;  %v6394_v8 = vadd.f32 %v4159_v10, %v6289_v37 }
 0x1b8   :  { %v6396_v11 = vadd.f32 %v4098_v55, %v3986_v6  ;;  %v4101_v12 = vadd.f32 %v4100_v4, %v4099_v59 }
 0x1b9   :  { %v4160_v60 = vpop.f32.mrb[56].mxu0 }
 0x1ba   :  { %v6398_v32 = vadd.f32 %v4101_v12, %v3989_v35  ;;  %v4161_v3 = vpop.f32.mrb[57].mxu0 }
 0x1bb   :  { %v4162_v62 = vadd.f32 %v4161_v3, %v4160_v60  ;;  %v4163_v30 = vpop.f32.mrb[58].mxu0 }
 0x1bc   :  { %v4102_v57 = vpop.f32.mrb[60].mxu1  ;;  %v4164_v9 = vpop.f32.mrb[59].mxu0 }
 0x1bd   :  { %v4103_v7 = vpop.f32.mrb[61].mxu1  ;;  %v6401_v26 = vadd.f32 %v4162_v62, %v6296_v45  ;;  %v4165_v46 = vadd.f32 %v4164_v9, %v4163_v30 }
 0x1be   :  { %v4104_v47 = vadd.f32 %v4103_v7, %v4102_v57  ;;  %v4105_v27 = vpop.f32.mrb[62].mxu1 }
 0x1bf   :  { %v4106_v37 = vpop.f32.mrb[63].mxu1  ;;  %v6404_v6 = vadd.f32 %v4165_v46, %v6303_v49 }
 0x1c0   :  { %v6406_v52 = vadd.f32 %v4104_v47, %v3992_v29  ;;  %v4107_v35 = vadd.f32 %v4106_v37, %v4105_v27 }
 0x1c1   :  { %v4166_v20 = vpop.f32.mrb[60].mxu0 }
 0x1c2   :  { %v6408_v15 = vadd.f32 %v4107_v35, %v3995_v41  ;;  %v4167_v58 = vpop.f32.mrb[61].mxu0 }
 0x1c3   :  { %v4168_v54 = vadd.f32 %v4167_v58, %v4166_v20  ;;  %v4169_v24 = vpop.f32.mrb[62].mxu0 }
 0x1c4   :  { %v4108_v36 = vpop.f32.mrb[64].mxu1  ;;  %v4170_v38 = vpop.f32.mrb[63].mxu0 }
 0x1c5   :  { %v4109_v45 = vpop.f32.mrb[65].mxu1  ;;  %v6411_v2 = vadd.f32 %v4168_v54, %v6324_v23  ;;  %v4171_v40 = vadd.f32 %v4170_v38, %v4169_v24 }
 0x1c6   :  { %v4110_v39 = vadd.f32 %v4109_v45, %v4108_v36  ;;  %v4111_v19 = vpop.f32.mrb[66].mxu1 }
 0x1c7   :  { %v4112_v49 = vpop.f32.mrb[67].mxu1  ;;  %v6414_v29 = vadd.f32 %v4171_v40, %v6327_v17 }
 0x1c8   :  { %v6417_v56 = vadd.f32 %v4110_v39, %v6159_v42  ;;  %v4113_v41 = vadd.f32 %v4112_v49, %v4111_v19 }
 0x1c9   :  { %v4172_v10 = vpop.f32.mrb[64].mxu0 }
 0x1ca   :  { %v6420_v55 = vadd.f32 %v4113_v41, %v6165_v63  ;;  %v4173_v59 = vpop.f32.mrb[65].mxu0 }
 0x1cb   :  { %v4174_v4 = vadd.f32 %v4173_v59, %v4172_v10  ;;  %v4175_v12 = vpop.f32.mrb[66].mxu0 }
 0x1cc   :  { %v4114_v23 = vpop.f32.mrb[68].mxu1  ;;  %v4176_v60 = vpop.f32.mrb[67].mxu0 }
 0x1cd   :  { %v4115_v3 = vpop.f32.mrb[69].mxu1  ;;  %v6423_v62 = vadd.f32 %v4174_v4, %v6337_v13  ;;  %v4177_v30 = vadd.f32 %v4176_v60, %v4175_v12 }
 0x1ce   :  { %v4116_v17 = vadd.f32 %v4115_v3, %v4114_v23  ;;  %v4117_v57 = vpop.f32.mrb[70].mxu1 }
 0x1cf   :  { %v4118_v9 = vpop.f32.mrb[71].mxu1  ;;  %v6426_v42 = vadd.f32 %v4177_v30, %v6341_v43 }
 0x1d0   :  { %v6429_v7 = vadd.f32 %v4116_v17, %v6189_v0  ;;  %v4119_v63 = vadd.f32 %v4118_v9, %v4117_v57 }
 0x1d1   :  { %v4178_v46 = vpop.f32.mrb[68].mxu0 }
 0x1d2   :  { %v6432_v47 = vadd.f32 %v4119_v63, %v6194_v22  ;;  %v4179_v27 = vpop.f32.mrb[69].mxu0 }
 0x1d3   :  { %v4180_v37 = vadd.f32 %v4179_v27, %v4178_v46  ;;  %v4181_v35 = vpop.f32.mrb[70].mxu0 }
 0x1d4   :  { %v4120_v13 = vpop.f32.mrb[72].mxu1  ;;  %v4182_v20 = vpop.f32.mrb[71].mxu0 }
 0x1d5   :  { %v4121_v58 = vpop.f32.mrb[73].mxu1  ;;  %v6435_v54 = vadd.f32 %v4180_v37, %v6351_v1  ;;  %v4183_v24 = vadd.f32 %v4182_v20, %v4181_v35 }
 0x1d6   :  { %v4122_v43 = vadd.f32 %v4121_v58, %v4120_v13  ;;  %v4123_v36 = vpop.f32.mrb[74].mxu1 }
 0x1d7   :  { %v4124_v38 = vpop.f32.mrb[75].mxu1  ;;  %v6438_v0 = vadd.f32 %v4183_v24, %v6355_v21 }
 0x1d8   :  { %v6441_v45 = vadd.f32 %v4122_v43, %v6218_v31  ;;  %v4125_v22 = vadd.f32 %v4124_v38, %v4123_v36 }
 0x1d9   :  { %v4184_v40 = vpop.f32.mrb[72].mxu0 }
 0x1da   :  { %v6444_v39 = vadd.f32 %v4125_v22, %v6221_v51  ;;  %v4185_v19 = vpop.f32.mrb[73].mxu0 }
 0x1db   :  { %v4186_v49 = vadd.f32 %v4185_v19, %v4184_v40  ;;  %v4187_v41 = vpop.f32.mrb[74].mxu0 }
 0x1dc   :  { %v4126_v1 = vpop.f32.mrb[76].mxu1  ;;  %v4188_v10 = vpop.f32.mrb[75].mxu0 }
 0x1dd   :  { %v4127_v59 = vpop.f32.mrb[77].mxu1  ;;  %v6447_v4 = vadd.f32 %v4186_v49, %v6361_v53  ;;  %v4189_v12 = vadd.f32 %v4188_v10, %v4187_v41 }
 0x1de   :  { %v4128_v21 = vadd.f32 %v4127_v59, %v4126_v1  ;;  %v4129_v23 = vpop.f32.mrb[78].mxu1 }
 0x1df   :  { %v4130_v60 = vpop.f32.mrb[79].mxu1  ;;  %v6450_v31 = vadd.f32 %v4189_v12, %v6366_v28 }
 0x1e0   :  { %v6453_v3 = vadd.f32 %v4128_v21, %v6249_v18  ;;  %v4131_v51 = vadd.f32 %v4130_v60, %v4129_v23 }
 0x1e1   :  { %v4190_v30 = vpop.f32.mrb[76].mxu0 }
 0x1e2   :  { %v6456_v17 = vadd.f32 %v4131_v51, %v6253_v61  ;;  %v4191_v57 = vpop.f32.mrb[77].mxu0 }
 0x1e3   :  { %v4192_v9 = vadd.f32 %v4191_v57, %v4190_v30  ;;  %v4193_v63 = vpop.f32.mrb[78].mxu0 }
 0x1e4   :  { %v4260_v53 = vpop.f32.mrb[80].mxu1  ;;  %v4194_v46 = vpop.f32.mrb[79].mxu0 }
 0x1e5   :  { %v4261_v27 = vpop.f32.mrb[81].mxu1  ;;  %v6459_v37 = vadd.f32 %v4192_v9, %v6371_v33  ;;  %v4195_v35 = vadd.f32 %v4194_v46, %v4193_v63 }
 0x1e6   :  { %v4262_v28 = vadd.f32 %v4261_v27, %v4260_v53  ;;  %v4263_v13 = vpop.f32.mrb[82].mxu1 }
 0x1e7   :  { %v4264_v20 = vpop.f32.mrb[83].mxu1  ;;  %v6462_v18 = vadd.f32 %v4195_v35, %v6374_v16 }
 0x1e8   :  { %v4265_v58 = vadd.f32 %v4264_v20, %v4263_v13  ;;  %v6465_v61 = vadd.f32 %v4262_v28, %v6381_v25 }
 0x1e9   :  { %v4196_v24 = vpop.f32.mrb[80].mxu0 }
 0x1ea   :  { %v6468_v43 = vadd.f32 %v4265_v58, %v6384_v44  ;;  %v4197_v36 = vpop.f32.mrb[81].mxu0 }
 0x1eb   :  { %v4198_v38 = vadd.f32 %v4197_v36, %v4196_v24  ;;  %v4199_v22 = vpop.f32.mrb[82].mxu0 }
 0x1ec   :  { %v4266_v33 = vpop.f32.mrb[84].mxu1  ;;  %v4200_v40 = vpop.f32.mrb[83].mxu0 }
 0x1ed   :  { %v4267_v19 = vpop.f32.mrb[85].mxu1  ;;  %v6471_v49 = vadd.f32 %v4198_v38, %v6376_v50  ;;  %v4201_v41 = vadd.f32 %v4200_v40, %v4199_v22 }
 0x1ee   :  { %v4268_v16 = vadd.f32 %v4267_v19, %v4266_v33  ;;  %v4269_v1 = vpop.f32.mrb[86].mxu1 }
 0x1ef   :  { %v4270_v10 = vpop.f32.mrb[87].mxu1  ;;  %v6474_v25 = vadd.f32 %v4201_v41, %v6378_v5 }
 0x1f0   :  { %v4271_v59 = vadd.f32 %v4270_v10, %v4269_v1  ;;  %v6477_v44 = vadd.f32 %v4268_v16, %v6391_v48 }
 0x1f1   :  { %v4202_v12 = vpop.f32.mrb[84].mxu0 }
 0x1f2   :  { %v6480_v21 = vadd.f32 %v4271_v59, %v6394_v8  ;;  %v4203_v23 = vpop.f32.mrb[85].mxu0 }
 0x1f3   :  { %v4204_v60 = vadd.f32 %v4203_v23, %v4202_v12  ;;  %v4205_v51 = vpop.f32.mrb[86].mxu0 }
 0x1f4   :  { %v4272_v50 = vpop.f32.mrb[88].mxu1  ;;  %v4206_v30 = vpop.f32.mrb[87].mxu0 }
 0x1f5   :  { %v4273_v57 = vpop.f32.mrb[89].mxu1  ;;  %v6483_v9 = vadd.f32 %v4204_v60, %v6386_v34  ;;  %v4207_v63 = vadd.f32 %v4206_v30, %v4205_v51 }
 0x1f6   :  { %v4274_v5 = vadd.f32 %v4273_v57, %v4272_v50  ;;  %v4275_v53 = vpop.f32.mrb[90].mxu1 }
 0x1f7   :  { %v4276_v46 = vpop.f32.mrb[91].mxu1  ;;  %v6486_v48 = vadd.f32 %v4207_v63, %v6388_v14 }
 0x1f8   :  { %v4277_v27 = vadd.f32 %v4276_v46, %v4275_v53  ;;  %v6489_v8 = vadd.f32 %v4274_v5, %v6401_v26 }
 0x1f9   :  { %v4208_v35 = vpop.f32.mrb[88].mxu0 }
 0x1fa   :  { %v6492_v28 = vadd.f32 %v4277_v27, %v6404_v6  ;;  %v4209_v13 = vpop.f32.mrb[89].mxu0 }
 0x1fb   :  { %v4210_v20 = vadd.f32 %v4209_v13, %v4208_v35  ;;  %v4211_v58 = vpop.f32.mrb[90].mxu0 }
 0x1fc   :  { %v4278_v34 = vpop.f32.mrb[92].mxu1  ;;  %v4212_v24 = vpop.f32.mrb[91].mxu0 }
 0x1fd   :  { %v4279_v36 = vpop.f32.mrb[93].mxu1  ;;  %v6495_v38 = vadd.f32 %v4210_v20, %v6396_v11  ;;  %v4213_v22 = vadd.f32 %v4212_v24, %v4211_v58 }
 0x1fe   :  { %v4280_v14 = vadd.f32 %v4279_v36, %v4278_v34  ;;  %v4281_v33 = vpop.f32.mrb[94].mxu1 }
 0x1ff   :  { %v4282_v40 = vpop.f32.mrb[95].mxu1  ;;  %v6498_v26 = vadd.f32 %v4213_v22, %v6398_v32 }
 0x200   :  { %v4283_v19 = vadd.f32 %v4282_v40, %v4281_v33  ;;  %v6501_v6 = vadd.f32 %v4280_v14, %v6411_v2 }
 0x201   :  { %v4214_v41 = vpop.f32.mrb[92].mxu0 }
 0x202   :  { %v6504_v16 = vadd.f32 %v4283_v19, %v6414_v29  ;;  %v4215_v1 = vpop.f32.mrb[93].mxu0 }
 0x203   :  { %v4216_v10 = vadd.f32 %v4215_v1, %v4214_v41  ;;  %v4217_v59 = vpop.f32.mrb[94].mxu0 }
 0x204   :  { %v4284_v11 = vpop.f32.mrb[96].mxu1  ;;  %v4218_v12 = vpop.f32.mrb[95].mxu0 }
 0x205   :  { %v4285_v23 = vpop.f32.mrb[97].mxu1  ;;  %v6507_v60 = vadd.f32 %v4216_v10, %v6406_v52  ;;  %v4219_v51 = vadd.f32 %v4218_v12, %v4217_v59 }
 0x206   :  { %v4286_v32 = vadd.f32 %v4285_v23, %v4284_v11  ;;  %v4287_v50 = vpop.f32.mrb[98].mxu1 }
 0x207   :  { %v4288_v30 = vpop.f32.mrb[99].mxu1  ;;  %v6510_v2 = vadd.f32 %v4219_v51, %v6408_v15 }
 0x208   :  { %v4289_v57 = vadd.f32 %v4288_v30, %v4287_v50  ;;  %v6513_v29 = vadd.f32 %v4286_v32, %v6423_v62 }
 0x209   :  { %v4220_v63 = vpop.f32.mrb[96].mxu0 }
 0x20a   :  { %v6516_v5 = vadd.f32 %v4289_v57, %v6426_v42  ;;  %v4221_v53 = vpop.f32.mrb[97].mxu0 }
 0x20b   :  { %v4222_v46 = vadd.f32 %v4221_v53, %v4220_v63  ;;  %v4223_v27 = vpop.f32.mrb[98].mxu0 }
 0x20c   :  { %v4290_v52 = vpop.f32.mrb[100].mxu1  ;;  %v4224_v35 = vpop.f32.mrb[99].mxu0 }
 0x20d   :  { %v4291_v13 = vpop.f32.mrb[101].mxu1  ;;  %v6519_v20 = vadd.f32 %v4222_v46, %v6417_v56  ;;  %v4225_v58 = vadd.f32 %v4224_v35, %v4223_v27 }
 0x20e   :  { %v4292_v15 = vadd.f32 %v4291_v13, %v4290_v52  ;;  %v4293_v34 = vpop.f32.mrb[102].mxu1 }
 0x20f   :  { %v4294_v24 = vpop.f32.mrb[103].mxu1  ;;  %v6522_v62 = vadd.f32 %v4225_v58, %v6420_v55 }
 0x210   :  { %v4295_v36 = vadd.f32 %v4294_v24, %v4293_v34  ;;  %v6525_v42 = vadd.f32 %v4292_v15, %v6435_v54 }
 0x211   :  { %v4226_v22 = vpop.f32.mrb[100].mxu0 }
 0x212   :  { %v6528_v14 = vadd.f32 %v4295_v36, %v6438_v0  ;;  %v4227_v33 = vpop.f32.mrb[101].mxu0 }
 0x213   :  { %v4228_v40 = vadd.f32 %v4227_v33, %v4226_v22  ;;  %v4229_v19 = vpop.f32.mrb[102].mxu0 }
 0x214   :  { %v4296_v56 = vpop.f32.mrb[104].mxu1  ;;  %v4230_v41 = vpop.f32.mrb[103].mxu0 }
 0x215   :  { %v4297_v1 = vpop.f32.mrb[105].mxu1  ;;  %v6531_v10 = vadd.f32 %v4228_v40, %v6429_v7  ;;  %v4231_v59 = vadd.f32 %v4230_v41, %v4229_v19 }
 0x216   :  { %v4298_v55 = vadd.f32 %v4297_v1, %v4296_v56  ;;  %v4299_v11 = vpop.f32.mrb[106].mxu1 }
 0x217   :  { %v4300_v12 = vpop.f32.mrb[107].mxu1  ;;  %v6534_v54 = vadd.f32 %v4231_v59, %v6432_v47 }
 0x218   :  { %v4301_v23 = vadd.f32 %v4300_v12, %v4299_v11  ;;  %v6537_v0 = vadd.f32 %v4298_v55, %v6447_v4 }
 0x219   :  { %v4232_v51 = vpop.f32.mrb[104].mxu0 }
 0x21a   :  { %v6540_v32 = vadd.f32 %v4301_v23, %v6450_v31  ;;  %v4233_v50 = vpop.f32.mrb[105].mxu0 }
 0x21b   :  { %v4234_v30 = vadd.f32 %v4233_v50, %v4232_v51  ;;  %v4235_v57 = vpop.f32.mrb[106].mxu0 }
 0x21c   :  { %v4302_v7 = vpop.f32.mrb[108].mxu1  ;;  %v4236_v63 = vpop.f32.mrb[107].mxu0 }
 0x21d   :  { %v4303_v53 = vpop.f32.mrb[109].mxu1  ;;  %v6543_v46 = vadd.f32 %v4234_v30, %v6441_v45  ;;  %v4237_v27 = vadd.f32 %v4236_v63, %v4235_v57 }
 0x21e   :  { %v4304_v47 = vadd.f32 %v4303_v53, %v4302_v7  ;;  %v4305_v52 = vpop.f32.mrb[110].mxu1 }
 0x21f   :  { %v4306_v35 = vpop.f32.mrb[111].mxu1  ;;  %v6546_v4 = vadd.f32 %v4237_v27, %v6444_v39 }
 0x220   :  { %v4307_v13 = vadd.f32 %v4306_v35, %v4305_v52  ;;  %v6549_v31 = vadd.f32 %v4304_v47, %v6459_v37 }
 0x221   :  { %v4238_v58 = vpop.f32.mrb[108].mxu0 }
 0x222   :  { %v6552_v15 = vadd.f32 %v4307_v13, %v6462_v18  ;;  %v4239_v34 = vpop.f32.mrb[109].mxu0 }
 0x223   :  { %v4240_v24 = vadd.f32 %v4239_v34, %v4238_v58  ;;  %v4241_v36 = vpop.f32.mrb[110].mxu0 }
 0x224   :  { %v4308_v45 = vpop.f32.mrb[112].mxu1  ;;  %v4242_v22 = vpop.f32.mrb[111].mxu0 }
 0x225   :  { %v4309_v33 = vpop.f32.mrb[113].mxu1  ;;  %v6555_v40 = vadd.f32 %v4240_v24, %v6453_v3  ;;  %v4243_v19 = vadd.f32 %v4242_v22, %v4241_v36 }
 0x226   :  { %v4310_v39 = vadd.f32 %v4309_v33, %v4308_v45  ;;  %v4311_v56 = vpop.f32.mrb[114].mxu1 }
 0x227   :  { %v4312_v41 = vpop.f32.mrb[115].mxu1  ;;  %v6558_v37 = vadd.f32 %v4243_v19, %v6456_v17 }
 0x228   :  { %v4313_v1 = vadd.f32 %v4312_v41, %v4311_v56  ;;  %v6561_v18 = vadd.f32 %v4310_v39, %v6471_v49 }
 0x229   :  { %v4398_v59 = vpop.f32.mrb[112].mxu0 }
 0x22a   :  { %v6564_v55 = vadd.f32 %v4313_v1, %v6474_v25  ;;  %v2927_v11 = vadd.f32 %v4398_v59, %v6477_v44  ;;  %v2918_v12 = vpop.f32.mrb[113].mxu0 }
 0x22b   :  { %v2919_v3 = vadd.f32 %v2918_v12, %v6465_v61  ;;  %v4399_v23 = vpop.f32.mrb[114].mxu0 }
 0x22c   :  { %v4314_v51 = vpop.f32.mrb[116].mxu1  ;;  %v2930_v50 = vadd.f32 %v4399_v23, %v6480_v21  ;;  %v2921_v30 = vpop.f32.mrb[115].mxu0  ;;  %v3245_v21 = vmul.f32 %v2927_v11, %v2927_v11 }
 0x22d   :  { %v4315_v17 = vpop.f32.mrb[117].mxu1  ;;  %v2922_v57 = vadd.f32 %v2921_v30, %v6468_v43  ;;  %v3243_v63 = vmul.f32 %v2919_v3, %v2919_v3 }
 0x22e   :  { %v4316_v7 = vadd.f32 %v4315_v17, %v4314_v51  ;;  %v4317_v49 = vpop.f32.mrb[118].mxu1  ;;  %v3806_v53 = vpack.c.bf16 %v2930_v50, %v2927_v11  ;;  %v3246_v36 = vmul.f32 %v2930_v50, %v2930_v50 }
 0x22f   :  { %v4318_v27 = vpop.f32.mrb[119].mxu1  ;;  %v3801_v25 = vpack.c.bf16 %v2922_v57, %v2919_v3  ;;  %v3205_v47 = vadd.f32 %v2922_v57, %v2919_v3  ;;  %v3244_v52 = vmul.f32 %v2922_v57, %v2922_v57 }
 0x230   :  { %v4319_v44 = vadd.f32 %v4318_v27, %v4317_v49  ;;  %3893 = vst [vmem:[%s6680_s4 + $0x8] sm:$0xff] %v3806_v53   ;;  %v6574_v61 = vadd.f32 %v4316_v7, %v6483_v9 }
 0x231   :  { %3802 = vst [vmem:[%s6680_s4] sm:$0xff] %v3801_v25   ;;  %v3206_v43 = vadd.f32 %v3205_v47, %v2927_v11  ;;  %v3275_v35 = vadd.f32 %v3244_v52, %v3243_v63  ;;  %v4402_v13 = vpop.f32.mrb[116].mxu0 }
 0x232   :  { %v6580_v58 = vadd.f32 %v4319_v44, %v6486_v48  ;;  %v2943_v34 = vadd.f32 %v4402_v13, %v6501_v6  ;;  %v2934_v24 = vpop.f32.mrb[117].mxu0 }
 0x233   :  { %v3276_v45 = vadd.f32 %v3275_v35, %v3245_v21  ;;  %v2935_v22 = vadd.f32 %v2934_v24, %v6489_v8  ;;  %v3207_v9 = vadd.f32 %v3206_v43, %v2930_v50  ;;  %v4403_v33 = vpop.f32.mrb[118].mxu0 }
 0x234   :  { %v4320_v19 = vpop.f32.mrb[120].mxu1  ;;  %v2946_v39 = vadd.f32 %v4403_v33, %v6504_v16  ;;  %v2937_v56 = vpop.f32.mrb[119].mxu0  ;;  %v3249_v57 = vmul.f32 %v2943_v34, %v2943_v34 }
 0x235   :  { %v4321_v41 = vpop.f32.mrb[121].mxu1  ;;  %v3208_v1 = vadd.f32 %v3207_v9, %v2935_v22  ;;  %v3247_v59 = vmul.f32 %v2935_v22, %v2935_v22  ;;  %v3277_v11 = vadd.f32 %v3276_v45, %v3246_v36  ;;  %v2938_v48 = vadd.f32 %v2937_v56, %v6492_v28 }
 0x236   :  { %v4323_v12 = vpop.f32.mrb[122].mxu1  ;;  %v3816_v3 = vpack.c.bf16 %v2946_v39, %v2943_v34  ;;  %v4322_v6 = vadd.f32 %v4321_v41, %v4320_v19  ;;  %v3250_v25 = vmul.f32 %v2946_v39, %v2946_v39 }
 0x237   :  { %v4324_v23 = vpop.f32.mrb[123].mxu1  ;;  %v3278_v51 = vadd.f32 %v3277_v11, %v3247_v59  ;;  %v3811_v30 = vpack.c.bf16 %v2938_v48, %v2935_v22  ;;  %v3209_v17 = vadd.f32 %v3208_v1, %v2938_v48  ;;  %v3248_v8 = vmul.f32 %v2938_v48, %v2938_v48 }
 0x238   :  { %3895 = vst [vmem:[%s6680_s4 + $0x18] sm:$0xff] %v3816_v3   ;;  %v4325_v16 = vadd.f32 %v4324_v23, %v4323_v12  ;;  %v6590_v50 = vadd.f32 %v4322_v6, %v6495_v38 }
 0x239   :  { %3894 = vst [vmem:[%s6680_s4 + $0x10] sm:$0xff] %v3811_v30   ;;  %v3210_v28 = vadd.f32 %v3209_v17, %v2943_v34  ;;  %v3279_v7 = vadd.f32 %v3278_v51, %v3248_v8  ;;  %v4406_v49 = vpop.f32.mrb[120].mxu0 }
 0x23a   :  { %v2959_v63 = vadd.f32 %v4406_v49, %v6525_v42  ;;  %v2950_v53 = vpop.f32.mrb[121].mxu0  ;;  %v6597_v27 = vadd.f32 %v4325_v16, %v6498_v26 }
 0x23b   :  { %v3280_v47 = vadd.f32 %v3279_v7, %v3249_v57  ;;  %v2951_v52 = vadd.f32 %v2950_v53, %v6513_v29  ;;  %v3211_v38 = vadd.f32 %v3210_v28, %v2946_v39  ;;  %v4407_v44 = vpop.f32.mrb[122].mxu0 }
 0x23c   :  { %v4326_v21 = vpop.f32.mrb[124].mxu1  ;;  %v2962_v43 = vadd.f32 %v4407_v44, %v6528_v14  ;;  %v2953_v35 = vpop.f32.mrb[123].mxu0  ;;  %v3253_v41 = vmul.f32 %v2959_v63, %v2959_v63 }
 0x23d   :  { %v4327_v13 = vpop.f32.mrb[125].mxu1  ;;  %v3212_v34 = vadd.f32 %v3211_v38, %v2951_v52  ;;  %v3251_v24 = vmul.f32 %v2951_v52, %v2951_v52  ;;  %v3281_v36 = vadd.f32 %v3280_v47, %v3250_v25  ;;  %v2954_v42 = vadd.f32 %v2953_v35, %v6516_v5 }
 0x23e   :  { %v4329_v45 = vpop.f32.mrb[126].mxu1  ;;  %v3826_v22 = vpack.c.bf16 %v2962_v43, %v2959_v63  ;;  %v4328_v26 = vadd.f32 %v4327_v13, %v4326_v21  ;;  %v3254_v3 = vmul.f32 %v2962_v43, %v2962_v43 }
 0x23f   :  { %v4330_v9 = vpop.f32.mrb[127].mxu1  ;;  %v3282_v33 = vadd.f32 %v3281_v36, %v3251_v24  ;;  %v3821_v19 = vpack.c.bf16 %v2954_v42, %v2951_v52  ;;  %v3213_v56 = vadd.f32 %v3212_v34, %v2954_v42  ;;  %v3252_v29 = vmul.f32 %v2954_v42, %v2954_v42 }
 0x240   :  { %3897 = vst [vmem:[%s6680_s4 + $0x28] sm:$0xff] %v3826_v22   ;;  %v4331_v14 = vadd.f32 %v4330_v9, %v4329_v45  ;;  %v6606_v39 = vadd.f32 %v4328_v26, %v6507_v60 }
 0x241   :  { %3896 = vst [vmem:[%s6680_s4 + $0x20] sm:$0xff] %v3821_v19   ;;  %v3214_v5 = vadd.f32 %v3213_v56, %v2959_v63  ;;  %v3283_v1 = vadd.f32 %v3282_v33, %v3252_v29  ;;  %v4410_v59 = vpop.f32.mrb[124].mxu0 }
 0x242   :  { %v2975_v11 = vadd.f32 %v4410_v59, %v6549_v31  ;;  %v2966_v48 = vpop.f32.mrb[125].mxu0  ;;  %v6613_v12 = vadd.f32 %v4331_v14, %v6510_v2 }
 0x243   :  { %v3284_v6 = vadd.f32 %v3283_v1, %v3253_v41  ;;  %v2967_v23 = vadd.f32 %v2966_v48, %v6537_v0  ;;  %v3215_v60 = vadd.f32 %v3214_v5, %v2962_v43  ;;  %v4411_v51 = vpop.f32.mrb[126].mxu0 }
 0x244   :  { %v4332_v30 = vpop.f32.mrb[128].mxu1  ;;  %v2978_v17 = vadd.f32 %v4411_v51, %v6552_v15  ;;  %v2969_v8 = vpop.f32.mrb[127].mxu0  ;;  %v3257_v44 = vmul.f32 %v2975_v11, %v2975_v11 }
 0x245   :  { %v4333_v16 = vpop.f32.mrb[129].mxu1  ;;  %v3216_v57 = vadd.f32 %v3215_v60, %v2967_v23  ;;  %v3255_v28 = vmul.f32 %v2967_v23, %v2967_v23  ;;  %v3285_v7 = vadd.f32 %v3284_v6, %v3254_v3  ;;  %v2970_v31 = vadd.f32 %v2969_v8, %v6540_v32 }
 0x246   :  { %v4335_v49 = vpop.f32.mrb[130].mxu1  ;;  %v3836_v63 = vpack.c.bf16 %v2978_v17, %v2975_v11  ;;  %v4334_v2 = vadd.f32 %v4333_v16, %v4332_v30  ;;  %v3258_v24 = vmul.f32 %v2978_v17, %v2978_v17 }
 0x247   :  { %v4336_v53 = vpop.f32.mrb[131].mxu1  ;;  %v3286_v25 = vadd.f32 %v3285_v7, %v3255_v28  ;;  %v3831_v47 = vpack.c.bf16 %v2970_v31, %v2967_v23  ;;  %v3217_v52 = vadd.f32 %v3216_v57, %v2970_v31  ;;  %v3256_v0 = vmul.f32 %v2970_v31, %v2970_v31 }
 0x248   :  { %3899 = vst [vmem:[%s6680_s4 + $0x38] sm:$0xff] %v3836_v63   ;;  %v4337_v15 = vadd.f32 %v4336_v53, %v4335_v49  ;;  %v6622_v38 = vadd.f32 %v4334_v2, %v6519_v20 }
 0x249   :  { %3898 = vst [vmem:[%s6680_s4 + $0x30] sm:$0xff] %v3831_v47   ;;  %v3218_v32 = vadd.f32 %v3217_v52, %v2975_v11  ;;  %v3287_v21 = vadd.f32 %v3286_v25, %v3256_v0  ;;  %v4414_v43 = vpop.f32.mrb[128].mxu0 }
 0x24a   :  { %v2991_v35 = vadd.f32 %v4414_v43, %v6574_v61  ;;  %v2982_v13 = vpop.f32.mrb[129].mxu0  ;;  %v6629_v34 = vadd.f32 %v4337_v15, %v6522_v62 }
 0x24b   :  { %v3288_v36 = vadd.f32 %v3287_v21, %v3257_v44  ;;  %v2983_v42 = vadd.f32 %v2982_v13, %v6561_v18  ;;  %v3219_v20 = vadd.f32 %v3218_v32, %v2978_v17  ;;  %v4415_v45 = vpop.f32.mrb[130].mxu0 }
 0x24c   :  { %v4338_v22 = vpop.f32.mrb[132].mxu1  ;;  %v2994_v26 = vadd.f32 %v4415_v45, %v6580_v58  ;;  %v2985_v9 = vpop.f32.mrb[131].mxu0  ;;  %v3261_v3 = vmul.f32 %v2991_v35, %v2991_v35 }
 0x24d   :  { %v4339_v33 = vpop.f32.mrb[133].mxu1  ;;  %v3220_v19 = vadd.f32 %v3219_v20, %v2983_v42  ;;  %v3259_v56 = vmul.f32 %v2983_v42, %v2983_v42  ;;  %v3289_v29 = vadd.f32 %v3288_v36, %v3258_v24  ;;  %v2986_v61 = vadd.f32 %v2985_v9, %v6564_v55 }
 0x24e   :  { %v4341_v14 = vpop.f32.mrb[134].mxu1  ;;  %v3846_v41 = vpack.c.bf16 %v2994_v26, %v2991_v35  ;;  %v4340_v62 = vadd.f32 %v4339_v33, %v4338_v22  ;;  %v3262_v17 = vmul.f32 %v2994_v26, %v2994_v26 }
 0x24f   :  { %v4342_v5 = vpop.f32.mrb[135].mxu1  ;;  %v3290_v1 = vadd.f32 %v3289_v29, %v3259_v56  ;;  %v3841_v59 = vpack.c.bf16 %v2986_v61, %v2983_v42  ;;  %v3221_v11 = vadd.f32 %v3220_v19, %v2986_v61  ;;  %v3260_v18 = vmul.f32 %v2986_v61, %v2986_v61 }
 0x250   :  { %3901 = vst [vmem:[%s6680_s4 + $0x48] sm:$0xff] %v3846_v41   ;;  %v4343_v58 = vadd.f32 %v4342_v5, %v4341_v14  ;;  %v2862_v48 = vadd.f32 %v4340_v62, %v6531_v10 }
 0x251   :  { %3900 = vst [vmem:[%s6680_s4 + $0x40] sm:$0xff] %v3841_v59   ;;  %v3222_v55 = vadd.f32 %v3221_v11, %v2991_v35  ;;  %v3291_v6 = vadd.f32 %v3290_v1, %v3260_v18  ;;  %v4418_v23 = vpop.f32.mrb[132].mxu0 }
 0x252   :  { %v3007_v60 = vadd.f32 %v4418_v23, %v6606_v39  ;;  %v2998_v51 = vpop.f32.mrb[133].mxu0  ;;  %v2865_v30 = vadd.f32 %v4343_v58, %v6534_v54 }
 0x253   :  { %v3292_v8 = vadd.f32 %v3291_v6, %v3261_v3  ;;  %v2999_v16 = vadd.f32 %v2998_v51, %v6590_v50  ;;  %v3223_v57 = vadd.f32 %v3222_v55, %v2994_v26  ;;  %v4419_v28 = vpop.f32.mrb[134].mxu0 }
 0x254   :  { %v4344_v10 = vpop.f32.mrb[136].mxu1  ;;  %v3010_v7 = vadd.f32 %v4419_v28, %v6613_v12  ;;  %v3001_v31 = vpop.f32.mrb[135].mxu0  ;;  %v3265_v21 = vmul.f32 %v3007_v60, %v3007_v60 }
 0x255   :  { %v4345_v49 = vpop.f32.mrb[137].mxu1  ;;  %v3224_v63 = vadd.f32 %v3223_v57, %v2999_v16  ;;  %v3263_v2 = vmul.f32 %v2999_v16, %v2999_v16  ;;  %v3293_v53 = vadd.f32 %v3292_v8, %v3262_v17  ;;  %v3002_v25 = vadd.f32 %v3001_v31, %v6597_v27 }
 0x256   :  { %v4347_v39 = vpop.f32.mrb[138].mxu1  ;;  %v3856_v47 = vpack.c.bf16 %v3010_v7, %v3007_v60  ;;  %v4346_v52 = vadd.f32 %v4345_v49, %v4344_v10  ;;  %v3266_v42 = vmul.f32 %v3010_v7, %v3010_v7 }
 0x257   :  { %v4348_v54 = vpop.f32.mrb[139].mxu1  ;;  %v3294_v0 = vadd.f32 %v3293_v53, %v3263_v2  ;;  %v3851_v15 = vpack.c.bf16 %v3002_v25, %v2999_v16  ;;  %v3225_v44 = vadd.f32 %v3224_v63, %v3002_v25  ;;  %v3264_v50 = vmul.f32 %v3002_v25, %v3002_v25 }
 0x258   :  { %3903 = vst [vmem:[%s6680_s4 + $0x58] sm:$0xff] %v3856_v47   ;;  %v4349_v12 = vadd.f32 %v4348_v54, %v4347_v39  ;;  %v2870_v32 = vadd.f32 %v4346_v52, %v6543_v46 }
 0x259   :  { %3902 = vst [vmem:[%s6680_s4 + $0x50] sm:$0xff] %v3851_v15   ;;  %v3226_v27 = vadd.f32 %v3225_v44, %v3007_v60  ;;  %v3295_v43 = vadd.f32 %v3294_v0, %v3264_v50  ;;  %v4422_v35 = vpop.f32.mrb[136].mxu0 }
 0x25a   :  { %v3023_v13 = vadd.f32 %v4422_v35, %v2862_v48  ;;  %v3014_v24 = vpop.f32.mrb[137].mxu0  ;;  %v2873_v36 = vadd.f32 %v4349_v12, %v6546_v4 }
 0x25b   :  { %v3296_v20 = vadd.f32 %v3295_v43, %v3265_v21  ;;  %v3015_v45 = vadd.f32 %v3014_v24, %v6622_v38  ;;  %v3227_v22 = vadd.f32 %v3226_v27, %v3010_v7  ;;  %v4423_v26 = vpop.f32.mrb[138].mxu0 }
 0x25c   :  { %v4350_v9 = vpop.f32.mrb[140].mxu1  ;;  %v3026_v46 = vadd.f32 %v4423_v26, %v2865_v30  ;;  %v3017_v33 = vpop.f32.mrb[139].mxu0  ;;  %v3269_v48 = vmul.f32 %v3023_v13, %v3023_v13 }
 0x25d   :  { %v4351_v19 = vpop.f32.mrb[141].mxu1  ;;  %v3228_v56 = vadd.f32 %v3227_v22, %v3015_v45  ;;  %v3267_v29 = vmul.f32 %v3015_v45, %v3015_v45  ;;  %v3297_v61 = vadd.f32 %v3296_v20, %v3266_v42  ;;  %v3018_v14 = vadd.f32 %v3017_v33, %v6629_v34 }
 0x25e   :  { %v4353_v41 = vpop.f32.mrb[142].mxu1  ;;  %v3866_v62 = vpack.c.bf16 %v3026_v46, %v3023_v13  ;;  %v4352_v5 = vadd.f32 %v4351_v19, %v4350_v9  ;;  %v3270_v51 = vmul.f32 %v3026_v46, %v3026_v46 }
 0x25f   :  { %v4354_v1 = vpop.f32.mrb[143].mxu1  ;;  %v3298_v4 = vadd.f32 %v3297_v61, %v3267_v29  ;;  %v3861_v59 = vpack.c.bf16 %v3018_v14, %v3015_v45  ;;  %v3229_v11 = vadd.f32 %v3228_v56, %v3018_v14  ;;  %v3268_v18 = vmul.f32 %v3018_v14, %v3018_v14 }
 0x260   :  { %3905 = vst [vmem:[%s6680_s4 + $0x68] sm:$0xff] %v3866_v62   ;;  %v2878_v38 = vadd.f32 %v4352_v5, %v6555_v40  ;;  %v4355_v58 = vadd.f32 %v4354_v1, %v4353_v41 }
 0x261   :  { %3904 = vst [vmem:[%s6680_s4 + $0x60] sm:$0xff] %v3861_v59   ;;  %v3230_v34 = vadd.f32 %v3229_v11, %v3023_v13  ;;  %v3299_v3 = vadd.f32 %v3298_v4, %v3268_v18  ;;  %v4426_v55 = vpop.f32.mrb[140].mxu0 }
 0x262   :  { %v3039_v6 = vadd.f32 %v4426_v55, %v2878_v38  ;;  %v3030_v23 = vpop.f32.mrb[141].mxu0  ;;  %v2881_v60 = vadd.f32 %v4355_v58, %v6558_v37 }
 0x263   :  { %v3300_v30 = vadd.f32 %v3299_v3, %v3269_v48  ;;  %v3031_v17 = vadd.f32 %v3030_v23, %v2870_v32  ;;  %v3231_v8 = vadd.f32 %v3230_v34, %v3026_v46  ;;  %v4427_v16 = vpop.f32.mrb[142].mxu0 }
 0x264   :  { %v3042_v57 = vadd.f32 %v4427_v16, %v2881_v60  ;;  %v3033_v40 = vpop.f32.mrb[143].mxu0  ;;  %v3273_v49 = vmul.f32 %v3039_v6, %v3039_v6 }
 0x265   :  { %v3232_v28 = vadd.f32 %v3231_v8, %v3031_v17  ;;  %v3271_v10 = vmul.f32 %v3031_v17, %v3031_v17  ;;  %v3301_v7 = vadd.f32 %v3300_v30, %v3270_v51  ;;  %v3034_v31 = vadd.f32 %v3033_v40, %v2873_v36 }
 0x266   :  { %v3876_v63 = vpack.c.bf16 %v3042_v57, %v3039_v6  ;;  %v3274_v37 = vmul.f32 %v3042_v57, %v3042_v57 }
 0x267   :  { %v3302_v2 = vadd.f32 %v3301_v7, %v3271_v10  ;;  %v3871_v53 = vpack.c.bf16 %v3034_v31, %v3031_v17  ;;  %v3233_v25 = vadd.f32 %v3232_v28, %v3034_v31  ;;  %v3272_v39 = vmul.f32 %v3034_v31, %v3034_v31 }
 0x268   :  { %3907 = vst [vmem:[%s6680_s4 + $0x78] sm:$0xff] %v3876_v63  }
 0x269   :  { %3906 = vst [vmem:[%s6680_s4 + $0x70] sm:$0xff] %v3871_v53   ;;  %v3234_v47 = vadd.f32 %v3233_v25, %v3039_v6  ;;  %v3303_v52 = vadd.f32 %v3302_v2, %v3272_v39 }
 0x26b   :  { %v3235_v54 = vadd.f32 %v3234_v47, %v3042_v57  ;;  %v3304_v0 = vadd.f32 %v3303_v52, %v3273_v49 }
 0x26d   :  { %v3236_v15 = vrot.slane %v3235_v54, 4  ;;  %v3305_v44 = vadd.f32 %v3304_v0, %v3274_v37 }
 0x26f   :  { %v3237_v50 = vadd.f32 %v3236_v15, %v3235_v54  ;;  %v3306_v12 = vrot.slane %v3305_v44, 4 }
 0x271   :  { %v3238_v32 = vrot.slane %v3237_v50, 2  ;;  %v3307_v21 = vadd.f32 %v3306_v12, %v3305_v44 }
 0x273   :  { %v3239_v27 = vadd.f32 %v3238_v32, %v3237_v50  ;;  %v3308_v43 = vrot.slane %v3307_v21, 2 }
 0x275   :  { %v3240_v35 = vrot.slane %v3239_v27, 1  ;;  %v3309_v13 = vadd.f32 %v3308_v43, %v3307_v21 }
 0x277   :  { %v3241_v24 = vadd.f32 %v3240_v35, %v3239_v27  ;;  %v3310_v36 = vrot.slane %v3309_v13, 1 }
 0x279   :  { %3242 = vst [vmem:[%s6681_s5] sm:$0x1] %v3241_v24  ;;  %v3311_v42 = vadd.f32 %v3310_v36, %v3309_v13 }
 0x27b   :  { %3312 = vst [vmem:[%s6682_s6] sm:$0x1] %v3311_v42 }

</bundles_post_ra>
